<compile_context>
chip_gen: v7x
topology: tpu7x:2x2x1
jax: 0.10.0
libtpu: 0.0.40
codegen_flags: <defaults>
</compile_context>

<pallas_src>
import math
import functools

import jax
import jax.numpy as jnp
from jax import lax
from jax.experimental import pallas as pl
from jax.experimental.pallas import tpu as pltpu  # noqa: F401  (TPU backend)

# ----------------------------- model config --------------------------------
D_MODEL = 32
D_FF = 64
N_HEADS = 4
D_HEAD = D_MODEL // N_HEADS
N_LAYERS = 2
SRC_VOCAB = 11
TGT_VOCAB = 11
LN_EPS = 1e-6
NEG_INF = -1e9
_INV_SQRT_DK = 1.0 / math.sqrt(D_HEAD)


# ------------------------- in-kernel helper math ----------------------------
def _ln(x, g, b):
    # Annotated-Transformer LayerNorm: g * (x - mean) / (std + eps) + b,
    # std is unbiased (torch.std default).
    mean = jnp.mean(x, axis=-1, keepdims=True)
    var_u = jnp.sum(jnp.square(x - mean), axis=-1, keepdims=True) * (
        1.0 / (D_MODEL - 1)
    )
    std = jnp.sqrt(var_u)
    return g * (x - mean) / (std + LN_EPS) + b


def _linear(x, w, b):
    return jnp.dot(x, w, preferred_element_type=jnp.float32) + b


def _attend_one(q_bh, k_bh, v_bh, mask_b):
    # q_bh: (Sq, dk), k_bh / v_bh: (Sk, dk), mask_b: (1, Sk) or (Sq, Sk)
    s = lax.dot_general(
        q_bh, k_bh, (((1,), (1,)), ((), ())), preferred_element_type=jnp.float32
    ) * _INV_SQRT_DK
    s = jnp.where(mask_b > 0.0, s, NEG_INF)  # masked_fill(mask == 0, -1e9)
    s = s - jnp.max(s, axis=-1, keepdims=True)
    p = jnp.exp(s)
    p = p / jnp.sum(p, axis=-1, keepdims=True)
    return jnp.dot(p, v_bh, preferred_element_type=jnp.float32)


def _mha(xq, xkv, mask_ref, wqkv, bqkv, wo, bo, batch, sq, sk, self_attn):
    # xq: (B*Sq, D), xkv: (B*Sk, D).  wqkv: (D, 3D) packed [Wq | Wk | Wv].
    if self_attn:
        qkv = _linear(xq, wqkv, bqkv)                     # (B*Sq, 3D), one MXU call
        q = qkv[:, 0:D_MODEL]
        kv = qkv[:, D_MODEL:]                             # [K | V]  (B*Sk, 2D)
    else:
        q = _linear(xq, wqkv[:, 0:D_MODEL], bqkv[:, 0:D_MODEL])
        kv = _linear(xkv, wqkv[:, D_MODEL:], bqkv[:, D_MODEL:])

    rows = []
    for b in range(batch):                                # static unroll
        mask_b = mask_ref[b]                              # (1, Sk) or (Sq, Sk)
        heads = []
        for h in range(N_HEADS):                          # static unroll
            lo = h * D_HEAD
            hi = lo + D_HEAD
            q_bh = q[b * sq:(b + 1) * sq, lo:hi]
            k_bh = kv[b * sk:(b + 1) * sk, lo:hi]
            v_bh = kv[b * sk:(b + 1) * sk, D_MODEL + lo:D_MODEL + hi]
            heads.append(_attend_one(q_bh, k_bh, v_bh, mask_b))
        rows.append(jnp.concatenate(heads, axis=-1))      # (Sq, D)
    o = jnp.concatenate(rows, axis=0)                     # (B*Sq, D)
    return _linear(o, wo, bo)


def _ffn(x, w1, b1, w2, b2):
    h = jnp.maximum(_linear(x, w1, b1), 0.0)
    return _linear(h, w2, b2)


# ------------------------------ fused kernel --------------------------------
def _encdec_kernel(
    src_emb_ref, tgt_emb_ref, src_mask_ref, tgt_mask_ref,
    enc_wqkv, enc_bqkv, enc_wo, enc_bo,
    enc_w1, enc_b1, enc_w2, enc_b2, enc_ln,
    dec_swqkv, dec_sbqkv, dec_swo, dec_sbo,
    dec_cwqkv, dec_cbqkv, dec_cwo, dec_cbo,
    dec_w1, dec_b1, dec_w2, dec_b2, dec_ln,
    final_ln,
    out_ref,
):
    batch = src_mask_ref.shape[0]
    s_src = src_mask_ref.shape[2]
    s_tgt = tgt_mask_ref.shape[1]

    # ------------------------------ encoder ---------------------------------
    x = src_emb_ref[...]                                  # (B*S_src, D)
    for l in range(N_LAYERS):
        ln = enc_ln[l]                                    # (4, D): g1,b1,g2,b2
        xn = _ln(x, ln[0:1, :], ln[1:2, :])               # shared for q, k, v
        x = x + _mha(xn, xn, src_mask_ref,
                     enc_wqkv[l], enc_bqkv[l], enc_wo[l], enc_bo[l],
                     batch, s_src, s_src, self_attn=True)
        xn = _ln(x, ln[2:3, :], ln[3:4, :])
        x = x + _ffn(xn, enc_w1[l], enc_b1[l], enc_w2[l], enc_b2[l])
    fln = final_ln[...]                                   # (4, D)
    memory = _ln(x, fln[0:1, :], fln[1:2, :])             # encoder output (B*S_src, D)

    # ------------------------------ decoder ---------------------------------
    y = tgt_emb_ref[...]                                  # (B*S_tgt, D)
    for l in range(N_LAYERS):
        ln = dec_ln[l]                                    # (6, D): g1,b1,g2,b2,g3,b3
        yn = _ln(y, ln[0:1, :], ln[1:2, :])
        y = y + _mha(yn, yn, tgt_mask_ref,
                     dec_swqkv[l], dec_sbqkv[l], dec_swo[l], dec_sbo[l],
                     batch, s_tgt, s_tgt, self_attn=True)
        yn = _ln(y, ln[2:3, :], ln[3:4, :])
        y = y + _mha(yn, memory, src_mask_ref,
                     dec_cwqkv[l], dec_cbqkv[l], dec_cwo[l], dec_cbo[l],
                     batch, s_tgt, s_src, self_attn=False)
        yn = _ln(y, ln[4:5, :], ln[5:6, :])
        y = y + _ffn(yn, dec_w1[l], dec_b1[l], dec_w2[l], dec_b2[l])

    out_ref[...] = _ln(y, fln[2:3, :], fln[3:4, :])


# ------------------------------ host-side glue -------------------------------
PARAM_ORDER = (
    "enc_wqkv", "enc_bqkv", "enc_wo", "enc_bo",
    "enc_w1", "enc_b1", "enc_w2", "enc_b2", "enc_ln",
    "dec_swqkv", "dec_sbqkv", "dec_swo", "dec_sbo",
    "dec_cwqkv", "dec_cbqkv", "dec_cwo", "dec_cbo",
    "dec_w1", "dec_b1", "dec_w2", "dec_b2", "dec_ln",
    "final_ln",
)


def positional_encoding(seq_len, d_model):
    pos = jnp.arange(seq_len, dtype=jnp.float32)[:, None]
    div = jnp.exp(
        jnp.arange(0, d_model, 2, dtype=jnp.float32) * (-math.log(10000.0) / d_model)
    )
    pe = jnp.zeros((seq_len, d_model), jnp.float32)
    pe = pe.at[:, 0::2].set(jnp.sin(pos * div))
    pe = pe.at[:, 1::2].set(jnp.cos(pos * div))
    return pe


def embed(tokens, lut):
    # Embeddings(d_model, vocab): lut(x) * sqrt(d_model), then PositionalEncoding.
    # TODO(synk): token-id gather kept in plain JAX (tiny vocab lookup).
    x = lut[tokens] * math.sqrt(D_MODEL)
    return x + positional_encoding(tokens.shape[1], D_MODEL)[None, :, :]


def encoder_decoder_forward(packed, src, tgt, src_mask, tgt_mask):
    """EncoderDecoder.forward: decode(encode(src, src_mask), src_mask, tgt, tgt_mask)."""
    b, s_src = src.shape
    s_tgt = tgt.shape[1]
    src_emb = embed(src, packed["src_embed"]).reshape(b * s_src, D_MODEL)
    tgt_emb = embed(tgt, packed["tgt_embed"]).reshape(b * s_tgt, D_MODEL)

    out = pl.pallas_call(
        _encdec_kernel,
        out_shape=jax.ShapeDtypeStruct((b * s_tgt, D_MODEL), jnp.float32),
    )(
        src_emb, tgt_emb,
        src_mask.astype(jnp.float32), tgt_mask.astype(jnp.float32),
        *[packed[name] for name in PARAM_ORDER],
    )
    return out.reshape(b, s_tgt, D_MODEL)


# ----------------------------- parameter init -------------------------------
def init_params(key):
    keys = iter(jax.random.split(key, 256))

    def dense(din, dout):
        return {
            "w": jax.random.normal(next(keys), (din, dout), jnp.float32)
            * (1.0 / math.sqrt(din)),
            "b": jnp.zeros((dout,), jnp.float32),
        }

    def mha():
        return {
            "q": dense(D_MODEL, D_MODEL),
            "k": dense(D_MODEL, D_MODEL),
            "v": dense(D_MODEL, D_MODEL),
            "o": dense(D_MODEL, D_MODEL),
        }

    def ln():
        return {
            "g": jnp.ones((D_MODEL,), jnp.float32),
            "b": jnp.zeros((D_MODEL,), jnp.float32),
        }

    def enc_layer():
        return {
            "self_attn": mha(),
            "ff1": dense(D_MODEL, D_FF),
            "ff2": dense(D_FF, D_MODEL),
            "ln1": ln(),
            "ln2": ln(),
        }

    def dec_layer():
        return {
            "self_attn": mha(),
            "src_attn": mha(),
            "ff1": dense(D_MODEL, D_FF),
            "ff2": dense(D_FF, D_MODEL),
            "ln1": ln(),
            "ln2": ln(),
            "ln3": ln(),
        }

    return {
        "src_embed": jax.random.normal(next(keys), (SRC_VOCAB, D_MODEL), jnp.float32)
        * 0.02,
        "tgt_embed": jax.random.normal(next(keys), (TGT_VOCAB, D_MODEL), jnp.float32)
        * 0.02,
        "encoder": [enc_layer() for _ in range(N_LAYERS)],
        "encoder_norm": ln(),
        "decoder": [dec_layer() for _ in range(N_LAYERS)],
        "decoder_norm": ln(),
    }


def pack_params(params):
    """Stack per-layer weights into a small number of arrays for the fused kernel."""
    def qkv_w(p):
        return jnp.concatenate([p["q"]["w"], p["k"]["w"], p["v"]["w"]], axis=1)

    def qkv_b(p):
        return jnp.concatenate([p["q"]["b"], p["k"]["b"], p["v"]["b"]])[None, :]

    def row(v):
        return v[None, :]

    enc = params["encoder"]
    dec = params["decoder"]
    return {
        "src_embed": params["src_embed"],
        "tgt_embed": params["tgt_embed"],
        "enc_wqkv": jnp.stack([qkv_w(l["self_attn"]) for l in enc]),
        "enc_bqkv": jnp.stack([qkv_b(l["self_attn"]) for l in enc]),
        "enc_wo": jnp.stack([l["self_attn"]["o"]["w"] for l in enc]),
        "enc_bo": jnp.stack([row(l["self_attn"]["o"]["b"]) for l in enc]),
        "enc_w1": jnp.stack([l["ff1"]["w"] for l in enc]),
        "enc_b1": jnp.stack([row(l["ff1"]["b"]) for l in enc]),
        "enc_w2": jnp.stack([l["ff2"]["w"] for l in enc]),
        "enc_b2": jnp.stack([row(l["ff2"]["b"]) for l in enc]),
        "enc_ln": jnp.stack([
            jnp.stack([l["ln1"]["g"], l["ln1"]["b"], l["ln2"]["g"], l["ln2"]["b"]])
            for l in enc
        ]),
        "dec_swqkv": jnp.stack([qkv_w(l["self_attn"]) for l in dec]),
        "dec_sbqkv": jnp.stack([qkv_b(l["self_attn"]) for l in dec]),
        "dec_swo": jnp.stack([l["self_attn"]["o"]["w"] for l in dec]),
        "dec_sbo": jnp.stack([row(l["self_attn"]["o"]["b"]) for l in dec]),
        "dec_cwqkv": jnp.stack([qkv_w(l["src_attn"]) for l in dec]),
        "dec_cbqkv": jnp.stack([qkv_b(l["src_attn"]) for l in dec]),
        "dec_cwo": jnp.stack([l["src_attn"]["o"]["w"] for l in dec]),
        "dec_cbo": jnp.stack([row(l["src_attn"]["o"]["b"]) for l in dec]),
        "dec_w1": jnp.stack([l["ff1"]["w"] for l in dec]),
        "dec_b1": jnp.stack([row(l["ff1"]["b"]) for l in dec]),
        "dec_w2": jnp.stack([l["ff2"]["w"] for l in dec]),
        "dec_b2": jnp.stack([row(l["ff2"]["b"]) for l in dec]),
        "dec_ln": jnp.stack([
            jnp.stack([l["ln1"]["g"], l["ln1"]["b"], l["ln2"]["g"], l["ln2"]["b"],
                       l["ln3"]["g"], l["ln3"]["b"]])
            for l in dec
        ]),
        "final_ln": jnp.stack([
            params["encoder_norm"]["g"], params["encoder_norm"]["b"],
            params["decoder_norm"]["g"], params["decoder_norm"]["b"],
        ]),
    }


# ----------------------------------- main ------------------------------------
if __name__ == "__main__":
    key = jax.random.PRNGKey(0)
    k_param, k_src, k_tgt = jax.random.split(key, 3)

    B, S_SRC, S_TGT = 2, 8, 8
    params = init_params(k_param)
    packed = pack_params(params)

    src = jax.random.randint(k_src, (B, S_SRC), 1, SRC_VOCAB, dtype=jnp.int32)
    tgt = jax.random.randint(k_tgt, (B, S_TGT), 1, TGT_VOCAB, dtype=jnp.int32)

    # src_mask: (B, 1, S_src) all-ones pad mask; tgt_mask: causal (B, S_tgt, S_tgt)
    src_mask = jnp.ones((B, 1, S_SRC), jnp.float32)
    tgt_mask = jnp.broadcast_to(
        jnp.tril(jnp.ones((S_TGT, S_TGT), jnp.float32))[None, :, :], (B, S_TGT, S_TGT)
    )

    fwd = jax.jit(functools.partial(encoder_decoder_forward, packed))
    out = fwd(src, tgt, src_mask, tgt_mask)
    jax.block_until_ready(out)

    assert out.shape == (B, S_TGT, D_MODEL)
    assert bool(jnp.all(jnp.isfinite(out)))
    print("KERNEL_OK")
</pallas_src>

<mosaic_0001>
module attributes {stable_mosaic.version = 11 : i64} {
  func.func @_encdec_kernel(%arg0: memref<16x32xf32, #tpu.memory_space<vmem>>, %arg1: memref<16x32xf32, #tpu.memory_space<vmem>>, %arg2: memref<2x1x8xf32, #tpu.memory_space<vmem>>, %arg3: memref<2x8x8xf32, #tpu.memory_space<vmem>>, %arg4: memref<2x32x96xf32, #tpu.memory_space<vmem>>, %arg5: memref<2x1x96xf32, #tpu.memory_space<vmem>>, %arg6: memref<2x32x32xf32, #tpu.memory_space<vmem>>, %arg7: memref<2x1x32xf32, #tpu.memory_space<vmem>>, %arg8: memref<2x32x64xf32, #tpu.memory_space<vmem>>, %arg9: memref<2x1x64xf32, #tpu.memory_space<vmem>>, %arg10: memref<2x64x32xf32, #tpu.memory_space<vmem>>, %arg11: memref<2x1x32xf32, #tpu.memory_space<vmem>>, %arg12: memref<2x4x32xf32, #tpu.memory_space<vmem>>, %arg13: memref<2x32x96xf32, #tpu.memory_space<vmem>>, %arg14: memref<2x1x96xf32, #tpu.memory_space<vmem>>, %arg15: memref<2x32x32xf32, #tpu.memory_space<vmem>>, %arg16: memref<2x1x32xf32, #tpu.memory_space<vmem>>, %arg17: memref<2x32x96xf32, #tpu.memory_space<vmem>>, %arg18: memref<2x1x96xf32, #tpu.memory_space<vmem>>, %arg19: memref<2x32x32xf32, #tpu.memory_space<vmem>>, %arg20: memref<2x1x32xf32, #tpu.memory_space<vmem>>, %arg21: memref<2x32x64xf32, #tpu.memory_space<vmem>>, %arg22: memref<2x1x64xf32, #tpu.memory_space<vmem>>, %arg23: memref<2x64x32xf32, #tpu.memory_space<vmem>>, %arg24: memref<2x1x32xf32, #tpu.memory_space<vmem>>, %arg25: memref<2x6x32xf32, #tpu.memory_space<vmem>>, %arg26: memref<4x32xf32, #tpu.memory_space<vmem>>, %arg27: memref<16x32xf32, #tpu.memory_space<vmem>>) attributes {dimension_semantics = [], scalar_prefetch = 0 : i64, scratch_operands = 0 : i64, tpu.core_type = #tpu.core_type<tc>} {
    %c0 = arith.constant 0 : index
    %c0_0 = arith.constant 0 : index
    %0 = vector.load %arg0[%c0, %c0_0] : memref<16x32xf32, #tpu.memory_space<vmem>>, vector<16x32xf32>
    %c0_1 = arith.constant 0 : index
    %c0_2 = arith.constant 0 : index
    %c0_3 = arith.constant 0 : index
    %1 = vector.load %arg12[%c0_1, %c0_2, %c0_3] : memref<2x4x32xf32, #tpu.memory_space<vmem>>, vector<1x4x32xf32>
    %2 = vector.shape_cast %1 : vector<1x4x32xf32> to vector<4x32xf32>
    %3 = vector.extract_strided_slice %2 {offsets = [0, 0], sizes = [1, 32], strides = [1, 1]} : vector<4x32xf32> to vector<1x32xf32>
    %4 = vector.extract_strided_slice %2 {offsets = [1, 0], sizes = [1, 32], strides = [1, 1]} : vector<4x32xf32> to vector<1x32xf32>
    %cst = arith.constant dense<0.000000e+00> : vector<16xf32>
    %5 = vector.multi_reduction <add>, %0, %cst [1] : vector<16x32xf32> to vector<16xf32>
    %6 = vector.shape_cast %5 : vector<16xf32> to vector<16x1xf32>
    %cst_4 = arith.constant 3.200000e+01 : f32
    %7 = vector.broadcast %cst_4 : f32 to vector<16x1xf32>
    %8 = arith.divf %6, %7 : vector<16x1xf32>
    %9 = vector.broadcast %8 : vector<16x1xf32> to vector<16x32xf32>
    %10 = arith.subf %0, %9 : vector<16x32xf32>
    %11 = arith.mulf %10, %10 : vector<16x32xf32>
    %cst_5 = arith.constant dense<0.000000e+00> : vector<16xf32>
    %12 = vector.multi_reduction <add>, %11, %cst_5 [1] : vector<16x32xf32> to vector<16xf32>
    %13 = vector.shape_cast %12 : vector<16xf32> to vector<16x1xf32>
    %cst_6 = arith.constant 0.0322580636 : f32
    %14 = vector.broadcast %cst_6 : f32 to vector<16x1xf32>
    %15 = arith.mulf %13, %14 : vector<16x1xf32>
    %16 = math.sqrt %15 : vector<16x1xf32>
    %17 = vector.broadcast %8 : vector<16x1xf32> to vector<16x32xf32>
    %18 = arith.subf %0, %17 : vector<16x32xf32>
    %19 = vector.broadcast %3 : vector<1x32xf32> to vector<16x32xf32>
    %20 = arith.mulf %19, %18 : vector<16x32xf32>
    %cst_7 = arith.constant 9.99999997E-7 : f32
    %21 = vector.broadcast %cst_7 : f32 to vector<16x1xf32>
    %22 = arith.addf %16, %21 : vector<16x1xf32>
    %23 = vector.broadcast %22 : vector<16x1xf32> to vector<16x32xf32>
    %24 = arith.divf %20, %23 : vector<16x32xf32>
    %25 = vector.broadcast %4 : vector<1x32xf32> to vector<16x32xf32>
    %26 = arith.addf %24, %25 : vector<16x32xf32>
    %c0_8 = arith.constant 0 : index
    %c0_9 = arith.constant 0 : index
    %c0_10 = arith.constant 0 : index
    %27 = vector.load %arg4[%c0_8, %c0_9, %c0_10] : memref<2x32x96xf32, #tpu.memory_space<vmem>>, vector<1x32x96xf32>
    %28 = vector.shape_cast %27 : vector<1x32x96xf32> to vector<32x96xf32>
    %c0_11 = arith.constant 0 : index
    %c0_12 = arith.constant 0 : index
    %c0_13 = arith.constant 0 : index
    %29 = vector.load %arg5[%c0_11, %c0_12, %c0_13] : memref<2x1x96xf32, #tpu.memory_space<vmem>>, vector<1x1x96xf32>
    %30 = vector.shape_cast %29 : vector<1x1x96xf32> to vector<1x96xf32>
    %c0_14 = arith.constant 0 : index
    %c0_15 = arith.constant 0 : index
    %c0_16 = arith.constant 0 : index
    %31 = vector.load %arg6[%c0_14, %c0_15, %c0_16] : memref<2x32x32xf32, #tpu.memory_space<vmem>>, vector<1x32x32xf32>
    %32 = vector.shape_cast %31 : vector<1x32x32xf32> to vector<32x32xf32>
    %c0_17 = arith.constant 0 : index
    %c0_18 = arith.constant 0 : index
    %c0_19 = arith.constant 0 : index
    %33 = vector.load %arg7[%c0_17, %c0_18, %c0_19] : memref<2x1x32xf32, #tpu.memory_space<vmem>>, vector<1x1x32xf32>
    %34 = vector.shape_cast %33 : vector<1x1x32xf32> to vector<1x32xf32>
    %cst_20 = arith.constant dense<0.000000e+00> : vector<16x96xf32>
    %35 = tpu.matmul %26, %28, %cst_20 {dimension_numbers = #tpu.dot_dimension_numbers<[1], [0], [0], [1], [0, 0, 1, 1], [], []>} : vector<16x32xf32>, vector<32x96xf32>, vector<16x96xf32> -> vector<16x96xf32>
    %36 = vector.broadcast %30 : vector<1x96xf32> to vector<16x96xf32>
    %37 = arith.addf %35, %36 : vector<16x96xf32>
    %38 = vector.extract_strided_slice %37 {offsets = [0, 0], sizes = [16, 32], strides = [1, 1]} : vector<16x96xf32> to vector<16x32xf32>
    %39 = vector.extract_strided_slice %37 {offsets = [0, 32], sizes = [16, 64], strides = [1, 1]} : vector<16x96xf32> to vector<16x64xf32>
    %c0_21 = arith.constant 0 : index
    %c0_22 = arith.constant 0 : index
    %c0_23 = arith.constant 0 : index
    %40 = vector.load %arg2[%c0_21, %c0_22, %c0_23] : memref<2x1x8xf32, #tpu.memory_space<vmem>>, vector<1x1x8xf32>
    %41 = vector.shape_cast %40 : vector<1x1x8xf32> to vector<1x8xf32>
    %42 = vector.extract_strided_slice %38 {offsets = [0, 0], sizes = [8, 8], strides = [1, 1]} : vector<16x32xf32> to vector<8x8xf32>
    %43 = vector.extract_strided_slice %39 {offsets = [0, 0], sizes = [8, 8], strides = [1, 1]} : vector<16x64xf32> to vector<8x8xf32>
    %44 = vector.extract_strided_slice %39 {offsets = [0, 32], sizes = [8, 8], strides = [1, 1]} : vector<16x64xf32> to vector<8x8xf32>
    %cst_24 = arith.constant dense<0.000000e+00> : vector<8x8xf32>
    %45 = tpu.matmul %42, %43, %cst_24 {dimension_numbers = #tpu.dot_dimension_numbers<[1], [1], [0], [0], [0, 0, 1, 0], [], []>} : vector<8x8xf32>, vector<8x8xf32>, vector<8x8xf32> -> vector<8x8xf32>
    %cst_25 = arith.constant 0.353553385 : f32
    %46 = vector.broadcast %cst_25 : f32 to vector<8x8xf32>
    %47 = arith.mulf %45, %46 : vector<8x8xf32>
    %cst_26 = arith.constant 0.000000e+00 : f32
    %48 = vector.broadcast %cst_26 : f32 to vector<1x8xf32>
    %49 = arith.cmpf ogt, %41, %48 : vector<1x8xf32>
    %cst_27 = arith.constant -1.000000e+09 : f32
    %50 = vector.shape_cast %49 : vector<1x8xi1> to vector<1x8xi1>
    %51 = vector.broadcast %50 : vector<1x8xi1> to vector<8x8xi1>
    %52 = vector.broadcast %cst_27 : f32 to vector<8x8xf32>
    %53 = arith.select %51, %47, %52 : vector<8x8xi1>, vector<8x8xf32>
    %cst_28 = arith.constant dense<0xFF800000> : vector<8xf32>
    %54 = vector.multi_reduction <maximumf>, %53, %cst_28 [1] : vector<8x8xf32> to vector<8xf32>
    %55 = vector.shape_cast %54 : vector<8xf32> to vector<8x1xf32>
    %56 = vector.broadcast %55 : vector<8x1xf32> to vector<8x8xf32>
    %57 = arith.subf %53, %56 : vector<8x8xf32>
    %58 = math.exp %57 : vector<8x8xf32>
    %cst_29 = arith.constant dense<0.000000e+00> : vector<8xf32>
    %59 = vector.multi_reduction <add>, %58, %cst_29 [1] : vector<8x8xf32> to vector<8xf32>
    %60 = vector.shape_cast %59 : vector<8xf32> to vector<8x1xf32>
    %61 = vector.broadcast %60 : vector<8x1xf32> to vector<8x8xf32>
    %62 = arith.divf %58, %61 : vector<8x8xf32>
    %cst_30 = arith.constant dense<0.000000e+00> : vector<8x8xf32>
    %63 = tpu.matmul %62, %44, %cst_30 {dimension_numbers = #tpu.dot_dimension_numbers<[1], [0], [0], [1], [0, 0, 1, 1], [], []>} : vector<8x8xf32>, vector<8x8xf32>, vector<8x8xf32> -> vector<8x8xf32>
    %64 = vector.extract_strided_slice %38 {offsets = [0, 8], sizes = [8, 8], strides = [1, 1]} : vector<16x32xf32> to vector<8x8xf32>
    %65 = vector.extract_strided_slice %39 {offsets = [0, 8], sizes = [8, 8], strides = [1, 1]} : vector<16x64xf32> to vector<8x8xf32>
    %66 = vector.extract_strided_slice %39 {offsets = [0, 40], sizes = [8, 8], strides = [1, 1]} : vector<16x64xf32> to vector<8x8xf32>
    %cst_31 = arith.constant dense<0.000000e+00> : vector<8x8xf32>
    %67 = tpu.matmul %64, %65, %cst_31 {dimension_numbers = #tpu.dot_dimension_numbers<[1], [1], [0], [0], [0, 0, 1, 0], [], []>} : vector<8x8xf32>, vector<8x8xf32>, vector<8x8xf32> -> vector<8x8xf32>
    %cst_32 = arith.constant 0.353553385 : f32
    %68 = vector.broadcast %cst_32 : f32 to vector<8x8xf32>
    %69 = arith.mulf %67, %68 : vector<8x8xf32>
    %cst_33 = arith.constant 0.000000e+00 : f32
    %70 = vector.broadcast %cst_33 : f32 to vector<1x8xf32>
    %71 = arith.cmpf ogt, %41, %70 : vector<1x8xf32>
    %cst_34 = arith.constant -1.000000e+09 : f32
    %72 = vector.shape_cast %71 : vector<1x8xi1> to vector<1x8xi1>
    %73 = vector.broadcast %72 : vector<1x8xi1> to vector<8x8xi1>
    %74 = vector.broadcast %cst_34 : f32 to vector<8x8xf32>
    %75 = arith.select %73, %69, %74 : vector<8x8xi1>, vector<8x8xf32>
    %cst_35 = arith.constant dense<0xFF800000> : vector<8xf32>
    %76 = vector.multi_reduction <maximumf>, %75, %cst_35 [1] : vector<8x8xf32> to vector<8xf32>
    %77 = vector.shape_cast %76 : vector<8xf32> to vector<8x1xf32>
    %78 = vector.broadcast %77 : vector<8x1xf32> to vector<8x8xf32>
    %79 = arith.subf %75, %78 : vector<8x8xf32>
    %80 = math.exp %79 : vector<8x8xf32>
    %cst_36 = arith.constant dense<0.000000e+00> : vector<8xf32>
    %81 = vector.multi_reduction <add>, %80, %cst_36 [1] : vector<8x8xf32> to vector<8xf32>
    %82 = vector.shape_cast %81 : vector<8xf32> to vector<8x1xf32>
    %83 = vector.broadcast %82 : vector<8x1xf32> to vector<8x8xf32>
    %84 = arith.divf %80, %83 : vector<8x8xf32>
    %cst_37 = arith.constant dense<0.000000e+00> : vector<8x8xf32>
    %85 = tpu.matmul %84, %66, %cst_37 {dimension_numbers = #tpu.dot_dimension_numbers<[1], [0], [0], [1], [0, 0, 1, 1], [], []>} : vector<8x8xf32>, vector<8x8xf32>, vector<8x8xf32> -> vector<8x8xf32>
    %86 = vector.extract_strided_slice %38 {offsets = [0, 16], sizes = [8, 8], strides = [1, 1]} : vector<16x32xf32> to vector<8x8xf32>
    %87 = vector.extract_strided_slice %39 {offsets = [0, 16], sizes = [8, 8], strides = [1, 1]} : vector<16x64xf32> to vector<8x8xf32>
    %88 = vector.extract_strided_slice %39 {offsets = [0, 48], sizes = [8, 8], strides = [1, 1]} : vector<16x64xf32> to vector<8x8xf32>
    %cst_38 = arith.constant dense<0.000000e+00> : vector<8x8xf32>
    %89 = tpu.matmul %86, %87, %cst_38 {dimension_numbers = #tpu.dot_dimension_numbers<[1], [1], [0], [0], [0, 0, 1, 0], [], []>} : vector<8x8xf32>, vector<8x8xf32>, vector<8x8xf32> -> vector<8x8xf32>
    %cst_39 = arith.constant 0.353553385 : f32
    %90 = vector.broadcast %cst_39 : f32 to vector<8x8xf32>
    %91 = arith.mulf %89, %90 : vector<8x8xf32>
    %cst_40 = arith.constant 0.000000e+00 : f32
    %92 = vector.broadcast %cst_40 : f32 to vector<1x8xf32>
    %93 = arith.cmpf ogt, %41, %92 : vector<1x8xf32>
    %cst_41 = arith.constant -1.000000e+09 : f32
    %94 = vector.shape_cast %93 : vector<1x8xi1> to vector<1x8xi1>
    %95 = vector.broadcast %94 : vector<1x8xi1> to vector<8x8xi1>
    %96 = vector.broadcast %cst_41 : f32 to vector<8x8xf32>
    %97 = arith.select %95, %91, %96 : vector<8x8xi1>, vector<8x8xf32>
    %cst_42 = arith.constant dense<0xFF800000> : vector<8xf32>
    %98 = vector.multi_reduction <maximumf>, %97, %cst_42 [1] : vector<8x8xf32> to vector<8xf32>
    %99 = vector.shape_cast %98 : vector<8xf32> to vector<8x1xf32>
    %100 = vector.broadcast %99 : vector<8x1xf32> to vector<8x8xf32>
    %101 = arith.subf %97, %100 : vector<8x8xf32>
    %102 = math.exp %101 : vector<8x8xf32>
    %cst_43 = arith.constant dense<0.000000e+00> : vector<8xf32>
    %103 = vector.multi_reduction <add>, %102, %cst_43 [1] : vector<8x8xf32> to vector<8xf32>
    %104 = vector.shape_cast %103 : vector<8xf32> to vector<8x1xf32>
    %105 = vector.broadcast %104 : vector<8x1xf32> to vector<8x8xf32>
    %106 = arith.divf %102, %105 : vector<8x8xf32>
    %cst_44 = arith.constant dense<0.000000e+00> : vector<8x8xf32>
    %107 = tpu.matmul %106, %88, %cst_44 {dimension_numbers = #tpu.dot_dimension_numbers<[1], [0], [0], [1], [0, 0, 1, 1], [], []>} : vector<8x8xf32>, vector<8x8xf32>, vector<8x8xf32> -> vector<8x8xf32>
    %108 = vector.extract_strided_slice %38 {offsets = [0, 24], sizes = [8, 8], strides = [1, 1]} : vector<16x32xf32> to vector<8x8xf32>
    %109 = vector.extract_strided_slice %39 {offsets = [0, 24], sizes = [8, 8], strides = [1, 1]} : vector<16x64xf32> to vector<8x8xf32>
    %110 = vector.extract_strided_slice %39 {offsets = [0, 56], sizes = [8, 8], strides = [1, 1]} : vector<16x64xf32> to vector<8x8xf32>
    %cst_45 = arith.constant dense<0.000000e+00> : vector<8x8xf32>
    %111 = tpu.matmul %108, %109, %cst_45 {dimension_numbers = #tpu.dot_dimension_numbers<[1], [1], [0], [0], [0, 0, 1, 0], [], []>} : vector<8x8xf32>, vector<8x8xf32>, vector<8x8xf32> -> vector<8x8xf32>
    %cst_46 = arith.constant 0.353553385 : f32
    %112 = vector.broadcast %cst_46 : f32 to vector<8x8xf32>
    %113 = arith.mulf %111, %112 : vector<8x8xf32>
    %cst_47 = arith.constant 0.000000e+00 : f32
    %114 = vector.broadcast %cst_47 : f32 to vector<1x8xf32>
    %115 = arith.cmpf ogt, %41, %114 : vector<1x8xf32>
    %cst_48 = arith.constant -1.000000e+09 : f32
    %116 = vector.shape_cast %115 : vector<1x8xi1> to vector<1x8xi1>
    %117 = vector.broadcast %116 : vector<1x8xi1> to vector<8x8xi1>
    %118 = vector.broadcast %cst_48 : f32 to vector<8x8xf32>
    %119 = arith.select %117, %113, %118 : vector<8x8xi1>, vector<8x8xf32>
    %cst_49 = arith.constant dense<0xFF800000> : vector<8xf32>
    %120 = vector.multi_reduction <maximumf>, %119, %cst_49 [1] : vector<8x8xf32> to vector<8xf32>
    %121 = vector.shape_cast %120 : vector<8xf32> to vector<8x1xf32>
    %122 = vector.broadcast %121 : vector<8x1xf32> to vector<8x8xf32>
    %123 = arith.subf %119, %122 : vector<8x8xf32>
    %124 = math.exp %123 : vector<8x8xf32>
    %cst_50 = arith.constant dense<0.000000e+00> : vector<8xf32>
    %125 = vector.multi_reduction <add>, %124, %cst_50 [1] : vector<8x8xf32> to vector<8xf32>
    %126 = vector.shape_cast %125 : vector<8xf32> to vector<8x1xf32>
    %127 = vector.broadcast %126 : vector<8x1xf32> to vector<8x8xf32>
    %128 = arith.divf %124, %127 : vector<8x8xf32>
    %cst_51 = arith.constant dense<0.000000e+00> : vector<8x8xf32>
    %129 = tpu.matmul %128, %110, %cst_51 {dimension_numbers = #tpu.dot_dimension_numbers<[1], [0], [0], [1], [0, 0, 1, 1], [], []>} : vector<8x8xf32>, vector<8x8xf32>, vector<8x8xf32> -> vector<8x8xf32>
    %130 = tpu.concatenate %63, %85, %107, %129 in 1 : vector<8x8xf32>, vector<8x8xf32>, vector<8x8xf32>, vector<8x8xf32> -> vector<8x32xf32>
    %c1 = arith.constant 1 : index
    %c0_52 = arith.constant 0 : index
    %c0_53 = arith.constant 0 : index
    %131 = vector.load %arg2[%c1, %c0_52, %c0_53] : memref<2x1x8xf32, #tpu.memory_space<vmem>>, vector<1x1x8xf32>
    %132 = vector.shape_cast %131 : vector<1x1x8xf32> to vector<1x8xf32>
    %133 = vector.extract_strided_slice %38 {offsets = [8, 0], sizes = [8, 8], strides = [1, 1]} : vector<16x32xf32> to vector<8x8xf32>
    %134 = vector.extract_strided_slice %39 {offsets = [8, 0], sizes = [8, 8], strides = [1, 1]} : vector<16x64xf32> to vector<8x8xf32>
    %135 = vector.extract_strided_slice %39 {offsets = [8, 32], sizes = [8, 8], strides = [1, 1]} : vector<16x64xf32> to vector<8x8xf32>
    %cst_54 = arith.constant dense<0.000000e+00> : vector<8x8xf32>
    %136 = tpu.matmul %133, %134, %cst_54 {dimension_numbers = #tpu.dot_dimension_numbers<[1], [1], [0], [0], [0, 0, 1, 0], [], []>} : vector<8x8xf32>, vector<8x8xf32>, vector<8x8xf32> -> vector<8x8xf32>
    %cst_55 = arith.constant 0.353553385 : f32
    %137 = vector.broadcast %cst_55 : f32 to vector<8x8xf32>
    %138 = arith.mulf %136, %137 : vector<8x8xf32>
    %cst_56 = arith.constant 0.000000e+00 : f32
    %139 = vector.broadcast %cst_56 : f32 to vector<1x8xf32>
    %140 = arith.cmpf ogt, %132, %139 : vector<1x8xf32>
    %cst_57 = arith.constant -1.000000e+09 : f32
    %141 = vector.shape_cast %140 : vector<1x8xi1> to vector<1x8xi1>
    %142 = vector.broadcast %141 : vector<1x8xi1> to vector<8x8xi1>
    %143 = vector.broadcast %cst_57 : f32 to vector<8x8xf32>
    %144 = arith.select %142, %138, %143 : vector<8x8xi1>, vector<8x8xf32>
    %cst_58 = arith.constant dense<0xFF800000> : vector<8xf32>
    %145 = vector.multi_reduction <maximumf>, %144, %cst_58 [1] : vector<8x8xf32> to vector<8xf32>
    %146 = vector.shape_cast %145 : vector<8xf32> to vector<8x1xf32>
    %147 = vector.broadcast %146 : vector<8x1xf32> to vector<8x8xf32>
    %148 = arith.subf %144, %147 : vector<8x8xf32>
    %149 = math.exp %148 : vector<8x8xf32>
    %cst_59 = arith.constant dense<0.000000e+00> : vector<8xf32>
    %150 = vector.multi_reduction <add>, %149, %cst_59 [1] : vector<8x8xf32> to vector<8xf32>
    %151 = vector.shape_cast %150 : vector<8xf32> to vector<8x1xf32>
    %152 = vector.broadcast %151 : vector<8x1xf32> to vector<8x8xf32>
    %153 = arith.divf %149, %152 : vector<8x8xf32>
    %cst_60 = arith.constant dense<0.000000e+00> : vector<8x8xf32>
    %154 = tpu.matmul %153, %135, %cst_60 {dimension_numbers = #tpu.dot_dimension_numbers<[1], [0], [0], [1], [0, 0, 1, 1], [], []>} : vector<8x8xf32>, vector<8x8xf32>, vector<8x8xf32> -> vector<8x8xf32>
    %155 = vector.extract_strided_slice %38 {offsets = [8, 8], sizes = [8, 8], strides = [1, 1]} : vector<16x32xf32> to vector<8x8xf32>
    %156 = vector.extract_strided_slice %39 {offsets = [8, 8], sizes = [8, 8], strides = [1, 1]} : vector<16x64xf32> to vector<8x8xf32>
    %157 = vector.extract_strided_slice %39 {offsets = [8, 40], sizes = [8, 8], strides = [1, 1]} : vector<16x64xf32> to vector<8x8xf32>
    %cst_61 = arith.constant dense<0.000000e+00> : vector<8x8xf32>
    %158 = tpu.matmul %155, %156, %cst_61 {dimension_numbers = #tpu.dot_dimension_numbers<[1], [1], [0], [0], [0, 0, 1, 0], [], []>} : vector<8x8xf32>, vector<8x8xf32>, vector<8x8xf32> -> vector<8x8xf32>
    %cst_62 = arith.constant 0.353553385 : f32
    %159 = vector.broadcast %cst_62 : f32 to vector<8x8xf32>
    %160 = arith.mulf %158, %159 : vector<8x8xf32>
    %cst_63 = arith.constant 0.000000e+00 : f32
    %161 = vector.broadcast %cst_63 : f32 to vector<1x8xf32>
    %162 = arith.cmpf ogt, %132, %161 : vector<1x8xf32>
    %cst_64 = arith.constant -1.000000e+09 : f32
    %163 = vector.shape_cast %162 : vector<1x8xi1> to vector<1x8xi1>
    %164 = vector.broadcast %163 : vector<1x8xi1> to vector<8x8xi1>
    %165 = vector.broadcast %cst_64 : f32 to vector<8x8xf32>
    %166 = arith.select %164, %160, %165 : vector<8x8xi1>, vector<8x8xf32>
    %cst_65 = arith.constant dense<0xFF800000> : vector<8xf32>
    %167 = vector.multi_reduction <maximumf>, %166, %cst_65 [1] : vector<8x8xf32> to vector<8xf32>
    %168 = vector.shape_cast %167 : vector<8xf32> to vector<8x1xf32>
    %169 = vector.broadcast %168 : vector<8x1xf32> to vector<8x8xf32>
    %170 = arith.subf %166, %169 : vector<8x8xf32>
    %171 = math.exp %170 : vector<8x8xf32>
    %cst_66 = arith.constant dense<0.000000e+00> : vector<8xf32>
    %172 = vector.multi_reduction <add>, %171, %cst_66 [1] : vector<8x8xf32> to vector<8xf32>
    %173 = vector.shape_cast %172 : vector<8xf32> to vector<8x1xf32>
    %174 = vector.broadcast %173 : vector<8x1xf32> to vector<8x8xf32>
    %175 = arith.divf %171, %174 : vector<8x8xf32>
    %cst_67 = arith.constant dense<0.000000e+00> : vector<8x8xf32>
    %176 = tpu.matmul %175, %157, %cst_67 {dimension_numbers = #tpu.dot_dimension_numbers<[1], [0], [0], [1], [0, 0, 1, 1], [], []>} : vector<8x8xf32>, vector<8x8xf32>, vector<8x8xf32> -> vector<8x8xf32>
    %177 = vector.extract_strided_slice %38 {offsets = [8, 16], sizes = [8, 8], strides = [1, 1]} : vector<16x32xf32> to vector<8x8xf32>
    %178 = vector.extract_strided_slice %39 {offsets = [8, 16], sizes = [8, 8], strides = [1, 1]} : vector<16x64xf32> to vector<8x8xf32>
    %179 = vector.extract_strided_slice %39 {offsets = [8, 48], sizes = [8, 8], strides = [1, 1]} : vector<16x64xf32> to vector<8x8xf32>
    %cst_68 = arith.constant dense<0.000000e+00> : vector<8x8xf32>
    %180 = tpu.matmul %177, %178, %cst_68 {dimension_numbers = #tpu.dot_dimension_numbers<[1], [1], [0], [0], [0, 0, 1, 0], [], []>} : vector<8x8xf32>, vector<8x8xf32>, vector<8x8xf32> -> vector<8x8xf32>
    %cst_69 = arith.constant 0.353553385 : f32
    %181 = vector.broadcast %cst_69 : f32 to vector<8x8xf32>
    %182 = arith.mulf %180, %181 : vector<8x8xf32>
    %cst_70 = arith.constant 0.000000e+00 : f32
    %183 = vector.broadcast %cst_70 : f32 to vector<1x8xf32>
    %184 = arith.cmpf ogt, %132, %183 : vector<1x8xf32>
    %cst_71 = arith.constant -1.000000e+09 : f32
    %185 = vector.shape_cast %184 : vector<1x8xi1> to vector<1x8xi1>
    %186 = vector.broadcast %185 : vector<1x8xi1> to vector<8x8xi1>
    %187 = vector.broadcast %cst_71 : f32 to vector<8x8xf32>
    %188 = arith.select %186, %182, %187 : vector<8x8xi1>, vector<8x8xf32>
    %cst_72 = arith.constant dense<0xFF800000> : vector<8xf32>
    %189 = vector.multi_reduction <maximumf>, %188, %cst_72 [1] : vector<8x8xf32> to vector<8xf32>
    %190 = vector.shape_cast %189 : vector<8xf32> to vector<8x1xf32>
    %191 = vector.broadcast %190 : vector<8x1xf32> to vector<8x8xf32>
    %192 = arith.subf %188, %191 : vector<8x8xf32>
    %193 = math.exp %192 : vector<8x8xf32>
    %cst_73 = arith.constant dense<0.000000e+00> : vector<8xf32>
    %194 = vector.multi_reduction <add>, %193, %cst_73 [1] : vector<8x8xf32> to vector<8xf32>
    %195 = vector.shape_cast %194 : vector<8xf32> to vector<8x1xf32>
    %196 = vector.broadcast %195 : vector<8x1xf32> to vector<8x8xf32>
    %197 = arith.divf %193, %196 : vector<8x8xf32>
    %cst_74 = arith.constant dense<0.000000e+00> : vector<8x8xf32>
    %198 = tpu.matmul %197, %179, %cst_74 {dimension_numbers = #tpu.dot_dimension_numbers<[1], [0], [0], [1], [0, 0, 1, 1], [], []>} : vector<8x8xf32>, vector<8x8xf32>, vector<8x8xf32> -> vector<8x8xf32>
    %199 = vector.extract_strided_slice %38 {offsets = [8, 24], sizes = [8, 8], strides = [1, 1]} : vector<16x32xf32> to vector<8x8xf32>
    %200 = vector.extract_strided_slice %39 {offsets = [8, 24], sizes = [8, 8], strides = [1, 1]} : vector<16x64xf32> to vector<8x8xf32>
    %201 = vector.extract_strided_slice %39 {offsets = [8, 56], sizes = [8, 8], strides = [1, 1]} : vector<16x64xf32> to vector<8x8xf32>
    %cst_75 = arith.constant dense<0.000000e+00> : vector<8x8xf32>
    %202 = tpu.matmul %199, %200, %cst_75 {dimension_numbers = #tpu.dot_dimension_numbers<[1], [1], [0], [0], [0, 0, 1, 0], [], []>} : vector<8x8xf32>, vector<8x8xf32>, vector<8x8xf32> -> vector<8x8xf32>
    %cst_76 = arith.constant 0.353553385 : f32
    %203 = vector.broadcast %cst_76 : f32 to vector<8x8xf32>
    %204 = arith.mulf %202, %203 : vector<8x8xf32>
    %cst_77 = arith.constant 0.000000e+00 : f32
    %205 = vector.broadcast %cst_77 : f32 to vector<1x8xf32>
    %206 = arith.cmpf ogt, %132, %205 : vector<1x8xf32>
    %cst_78 = arith.constant -1.000000e+09 : f32
    %207 = vector.shape_cast %206 : vector<1x8xi1> to vector<1x8xi1>
    %208 = vector.broadcast %207 : vector<1x8xi1> to vector<8x8xi1>
    %209 = vector.broadcast %cst_78 : f32 to vector<8x8xf32>
    %210 = arith.select %208, %204, %209 : vector<8x8xi1>, vector<8x8xf32>
    %cst_79 = arith.constant dense<0xFF800000> : vector<8xf32>
    %211 = vector.multi_reduction <maximumf>, %210, %cst_79 [1] : vector<8x8xf32> to vector<8xf32>
    %212 = vector.shape_cast %211 : vector<8xf32> to vector<8x1xf32>
    %213 = vector.broadcast %212 : vector<8x1xf32> to vector<8x8xf32>
    %214 = arith.subf %210, %213 : vector<8x8xf32>
    %215 = math.exp %214 : vector<8x8xf32>
    %cst_80 = arith.constant dense<0.000000e+00> : vector<8xf32>
    %216 = vector.multi_reduction <add>, %215, %cst_80 [1] : vector<8x8xf32> to vector<8xf32>
    %217 = vector.shape_cast %216 : vector<8xf32> to vector<8x1xf32>
    %218 = vector.broadcast %217 : vector<8x1xf32> to vector<8x8xf32>
    %219 = arith.divf %215, %218 : vector<8x8xf32>
    %cst_81 = arith.constant dense<0.000000e+00> : vector<8x8xf32>
    %220 = tpu.matmul %219, %201, %cst_81 {dimension_numbers = #tpu.dot_dimension_numbers<[1], [0], [0], [1], [0, 0, 1, 1], [], []>} : vector<8x8xf32>, vector<8x8xf32>, vector<8x8xf32> -> vector<8x8xf32>
    %221 = tpu.concatenate %154, %176, %198, %220 in 1 : vector<8x8xf32>, vector<8x8xf32>, vector<8x8xf32>, vector<8x8xf32> -> vector<8x32xf32>
    %222 = tpu.concatenate %130, %221 in 0 : vector<8x32xf32>, vector<8x32xf32> -> vector<16x32xf32>
    %cst_82 = arith.constant dense<0.000000e+00> : vector<16x32xf32>
    %223 = tpu.matmul %222, %32, %cst_82 {dimension_numbers = #tpu.dot_dimension_numbers<[1], [0], [0], [1], [0, 0, 1, 1], [], []>} : vector<16x32xf32>, vector<32x32xf32>, vector<16x32xf32> -> vector<16x32xf32>
    %224 = vector.broadcast %34 : vector<1x32xf32> to vector<16x32xf32>
    %225 = arith.addf %223, %224 : vector<16x32xf32>
    %226 = arith.addf %0, %225 : vector<16x32xf32>
    %227 = vector.extract_strided_slice %2 {offsets = [2, 0], sizes = [1, 32], strides = [1, 1]} : vector<4x32xf32> to vector<1x32xf32>
    %228 = vector.extract_strided_slice %2 {offsets = [3, 0], sizes = [1, 32], strides = [1, 1]} : vector<4x32xf32> to vector<1x32xf32>
    %cst_83 = arith.constant dense<0.000000e+00> : vector<16xf32>
    %229 = vector.multi_reduction <add>, %226, %cst_83 [1] : vector<16x32xf32> to vector<16xf32>
    %230 = vector.shape_cast %229 : vector<16xf32> to vector<16x1xf32>
    %cst_84 = arith.constant 3.200000e+01 : f32
    %231 = vector.broadcast %cst_84 : f32 to vector<16x1xf32>
    %232 = arith.divf %230, %231 : vector<16x1xf32>
    %233 = vector.broadcast %232 : vector<16x1xf32> to vector<16x32xf32>
    %234 = arith.subf %226, %233 : vector<16x32xf32>
    %235 = arith.mulf %234, %234 : vector<16x32xf32>
    %cst_85 = arith.constant dense<0.000000e+00> : vector<16xf32>
    %236 = vector.multi_reduction <add>, %235, %cst_85 [1] : vector<16x32xf32> to vector<16xf32>
    %237 = vector.shape_cast %236 : vector<16xf32> to vector<16x1xf32>
    %cst_86 = arith.constant 0.0322580636 : f32
    %238 = vector.broadcast %cst_86 : f32 to vector<16x1xf32>
    %239 = arith.mulf %237, %238 : vector<16x1xf32>
    %240 = math.sqrt %239 : vector<16x1xf32>
    %241 = vector.broadcast %232 : vector<16x1xf32> to vector<16x32xf32>
    %242 = arith.subf %226, %241 : vector<16x32xf32>
    %243 = vector.broadcast %227 : vector<1x32xf32> to vector<16x32xf32>
    %244 = arith.mulf %243, %242 : vector<16x32xf32>
    %cst_87 = arith.constant 9.99999997E-7 : f32
    %245 = vector.broadcast %cst_87 : f32 to vector<16x1xf32>
    %246 = arith.addf %240, %245 : vector<16x1xf32>
    %247 = vector.broadcast %246 : vector<16x1xf32> to vector<16x32xf32>
    %248 = arith.divf %244, %247 : vector<16x32xf32>
    %249 = vector.broadcast %228 : vector<1x32xf32> to vector<16x32xf32>
    %250 = arith.addf %248, %249 : vector<16x32xf32>
    %c0_88 = arith.constant 0 : index
    %c0_89 = arith.constant 0 : index
    %c0_90 = arith.constant 0 : index
    %251 = vector.load %arg8[%c0_88, %c0_89, %c0_90] : memref<2x32x64xf32, #tpu.memory_space<vmem>>, vector<1x32x64xf32>
    %252 = vector.shape_cast %251 : vector<1x32x64xf32> to vector<32x64xf32>
    %c0_91 = arith.constant 0 : index
    %c0_92 = arith.constant 0 : index
    %c0_93 = arith.constant 0 : index
    %253 = vector.load %arg9[%c0_91, %c0_92, %c0_93] : memref<2x1x64xf32, #tpu.memory_space<vmem>>, vector<1x1x64xf32>
    %254 = vector.shape_cast %253 : vector<1x1x64xf32> to vector<1x64xf32>
    %c0_94 = arith.constant 0 : index
    %c0_95 = arith.constant 0 : index
    %c0_96 = arith.constant 0 : index
    %255 = vector.load %arg10[%c0_94, %c0_95, %c0_96] : memref<2x64x32xf32, #tpu.memory_space<vmem>>, vector<1x64x32xf32>
    %256 = vector.shape_cast %255 : vector<1x64x32xf32> to vector<64x32xf32>
    %c0_97 = arith.constant 0 : index
    %c0_98 = arith.constant 0 : index
    %c0_99 = arith.constant 0 : index
    %257 = vector.load %arg11[%c0_97, %c0_98, %c0_99] : memref<2x1x32xf32, #tpu.memory_space<vmem>>, vector<1x1x32xf32>
    %258 = vector.shape_cast %257 : vector<1x1x32xf32> to vector<1x32xf32>
    %cst_100 = arith.constant dense<0.000000e+00> : vector<16x64xf32>
    %259 = tpu.matmul %250, %252, %cst_100 {dimension_numbers = #tpu.dot_dimension_numbers<[1], [0], [0], [1], [0, 0, 1, 1], [], []>} : vector<16x32xf32>, vector<32x64xf32>, vector<16x64xf32> -> vector<16x64xf32>
    %260 = vector.broadcast %254 : vector<1x64xf32> to vector<16x64xf32>
    %261 = arith.addf %259, %260 : vector<16x64xf32>
    %cst_101 = arith.constant 0.000000e+00 : f32
    %262 = vector.broadcast %cst_101 : f32 to vector<16x64xf32>
    %263 = arith.maximumf %261, %262 : vector<16x64xf32>
    %cst_102 = arith.constant dense<0.000000e+00> : vector<16x32xf32>
    %264 = tpu.matmul %263, %256, %cst_102 {dimension_numbers = #tpu.dot_dimension_numbers<[1], [0], [0], [1], [0, 0, 1, 1], [], []>} : vector<16x64xf32>, vector<64x32xf32>, vector<16x32xf32> -> vector<16x32xf32>
    %265 = vector.broadcast %258 : vector<1x32xf32> to vector<16x32xf32>
    %266 = arith.addf %264, %265 : vector<16x32xf32>
    %267 = arith.addf %226, %266 : vector<16x32xf32>
    %c1_103 = arith.constant 1 : index
    %c0_104 = arith.constant 0 : index
    %c0_105 = arith.constant 0 : index
    %268 = vector.load %arg12[%c1_103, %c0_104, %c0_105] : memref<2x4x32xf32, #tpu.memory_space<vmem>>, vector<1x4x32xf32>
    %269 = vector.shape_cast %268 : vector<1x4x32xf32> to vector<4x32xf32>
    %270 = vector.extract_strided_slice %269 {offsets = [0, 0], sizes = [1, 32], strides = [1, 1]} : vector<4x32xf32> to vector<1x32xf32>
    %271 = vector.extract_strided_slice %269 {offsets = [1, 0], sizes = [1, 32], strides = [1, 1]} : vector<4x32xf32> to vector<1x32xf32>
    %cst_106 = arith.constant dense<0.000000e+00> : vector<16xf32>
    %272 = vector.multi_reduction <add>, %267, %cst_106 [1] : vector<16x32xf32> to vector<16xf32>
    %273 = vector.shape_cast %272 : vector<16xf32> to vector<16x1xf32>
    %cst_107 = arith.constant 3.200000e+01 : f32
    %274 = vector.broadcast %cst_107 : f32 to vector<16x1xf32>
    %275 = arith.divf %273, %274 : vector<16x1xf32>
    %276 = vector.broadcast %275 : vector<16x1xf32> to vector<16x32xf32>
    %277 = arith.subf %267, %276 : vector<16x32xf32>
    %278 = arith.mulf %277, %277 : vector<16x32xf32>
    %cst_108 = arith.constant dense<0.000000e+00> : vector<16xf32>
    %279 = vector.multi_reduction <add>, %278, %cst_108 [1] : vector<16x32xf32> to vector<16xf32>
    %280 = vector.shape_cast %279 : vector<16xf32> to vector<16x1xf32>
    %cst_109 = arith.constant 0.0322580636 : f32
    %281 = vector.broadcast %cst_109 : f32 to vector<16x1xf32>
    %282 = arith.mulf %280, %281 : vector<16x1xf32>
    %283 = math.sqrt %282 : vector<16x1xf32>
    %284 = vector.broadcast %275 : vector<16x1xf32> to vector<16x32xf32>
    %285 = arith.subf %267, %284 : vector<16x32xf32>
    %286 = vector.broadcast %270 : vector<1x32xf32> to vector<16x32xf32>
    %287 = arith.mulf %286, %285 : vector<16x32xf32>
    %cst_110 = arith.constant 9.99999997E-7 : f32
    %288 = vector.broadcast %cst_110 : f32 to vector<16x1xf32>
    %289 = arith.addf %283, %288 : vector<16x1xf32>
    %290 = vector.broadcast %289 : vector<16x1xf32> to vector<16x32xf32>
    %291 = arith.divf %287, %290 : vector<16x32xf32>
    %292 = vector.broadcast %271 : vector<1x32xf32> to vector<16x32xf32>
    %293 = arith.addf %291, %292 : vector<16x32xf32>
    %c1_111 = arith.constant 1 : index
    %c0_112 = arith.constant 0 : index
    %c0_113 = arith.constant 0 : index
    %294 = vector.load %arg4[%c1_111, %c0_112, %c0_113] : memref<2x32x96xf32, #tpu.memory_space<vmem>>, vector<1x32x96xf32>
    %295 = vector.shape_cast %294 : vector<1x32x96xf32> to vector<32x96xf32>
    %c1_114 = arith.constant 1 : index
    %c0_115 = arith.constant 0 : index
    %c0_116 = arith.constant 0 : index
    %296 = vector.load %arg5[%c1_114, %c0_115, %c0_116] : memref<2x1x96xf32, #tpu.memory_space<vmem>>, vector<1x1x96xf32>
    %297 = vector.shape_cast %296 : vector<1x1x96xf32> to vector<1x96xf32>
    %c1_117 = arith.constant 1 : index
    %c0_118 = arith.constant 0 : index
    %c0_119 = arith.constant 0 : index
    %298 = vector.load %arg6[%c1_117, %c0_118, %c0_119] : memref<2x32x32xf32, #tpu.memory_space<vmem>>, vector<1x32x32xf32>
    %299 = vector.shape_cast %298 : vector<1x32x32xf32> to vector<32x32xf32>
    %c1_120 = arith.constant 1 : index
    %c0_121 = arith.constant 0 : index
    %c0_122 = arith.constant 0 : index
    %300 = vector.load %arg7[%c1_120, %c0_121, %c0_122] : memref<2x1x32xf32, #tpu.memory_space<vmem>>, vector<1x1x32xf32>
    %301 = vector.shape_cast %300 : vector<1x1x32xf32> to vector<1x32xf32>
    %cst_123 = arith.constant dense<0.000000e+00> : vector<16x96xf32>
    %302 = tpu.matmul %293, %295, %cst_123 {dimension_numbers = #tpu.dot_dimension_numbers<[1], [0], [0], [1], [0, 0, 1, 1], [], []>} : vector<16x32xf32>, vector<32x96xf32>, vector<16x96xf32> -> vector<16x96xf32>
    %303 = vector.broadcast %297 : vector<1x96xf32> to vector<16x96xf32>
    %304 = arith.addf %302, %303 : vector<16x96xf32>
    %305 = vector.extract_strided_slice %304 {offsets = [0, 0], sizes = [16, 32], strides = [1, 1]} : vector<16x96xf32> to vector<16x32xf32>
    %306 = vector.extract_strided_slice %304 {offsets = [0, 32], sizes = [16, 64], strides = [1, 1]} : vector<16x96xf32> to vector<16x64xf32>
    %c0_124 = arith.constant 0 : index
    %c0_125 = arith.constant 0 : index
    %c0_126 = arith.constant 0 : index
    %307 = vector.load %arg2[%c0_124, %c0_125, %c0_126] : memref<2x1x8xf32, #tpu.memory_space<vmem>>, vector<1x1x8xf32>
    %308 = vector.shape_cast %307 : vector<1x1x8xf32> to vector<1x8xf32>
    %309 = vector.extract_strided_slice %305 {offsets = [0, 0], sizes = [8, 8], strides = [1, 1]} : vector<16x32xf32> to vector<8x8xf32>
    %310 = vector.extract_strided_slice %306 {offsets = [0, 0], sizes = [8, 8], strides = [1, 1]} : vector<16x64xf32> to vector<8x8xf32>
    %311 = vector.extract_strided_slice %306 {offsets = [0, 32], sizes = [8, 8], strides = [1, 1]} : vector<16x64xf32> to vector<8x8xf32>
    %cst_127 = arith.constant dense<0.000000e+00> : vector<8x8xf32>
    %312 = tpu.matmul %309, %310, %cst_127 {dimension_numbers = #tpu.dot_dimension_numbers<[1], [1], [0], [0], [0, 0, 1, 0], [], []>} : vector<8x8xf32>, vector<8x8xf32>, vector<8x8xf32> -> vector<8x8xf32>
    %cst_128 = arith.constant 0.353553385 : f32
    %313 = vector.broadcast %cst_128 : f32 to vector<8x8xf32>
    %314 = arith.mulf %312, %313 : vector<8x8xf32>
    %cst_129 = arith.constant 0.000000e+00 : f32
    %315 = vector.broadcast %cst_129 : f32 to vector<1x8xf32>
    %316 = arith.cmpf ogt, %308, %315 : vector<1x8xf32>
    %cst_130 = arith.constant -1.000000e+09 : f32
    %317 = vector.shape_cast %316 : vector<1x8xi1> to vector<1x8xi1>
    %318 = vector.broadcast %317 : vector<1x8xi1> to vector<8x8xi1>
    %319 = vector.broadcast %cst_130 : f32 to vector<8x8xf32>
    %320 = arith.select %318, %314, %319 : vector<8x8xi1>, vector<8x8xf32>
    %cst_131 = arith.constant dense<0xFF800000> : vector<8xf32>
    %321 = vector.multi_reduction <maximumf>, %320, %cst_131 [1] : vector<8x8xf32> to vector<8xf32>
    %322 = vector.shape_cast %321 : vector<8xf32> to vector<8x1xf32>
    %323 = vector.broadcast %322 : vector<8x1xf32> to vector<8x8xf32>
    %324 = arith.subf %320, %323 : vector<8x8xf32>
    %325 = math.exp %324 : vector<8x8xf32>
    %cst_132 = arith.constant dense<0.000000e+00> : vector<8xf32>
    %326 = vector.multi_reduction <add>, %325, %cst_132 [1] : vector<8x8xf32> to vector<8xf32>
    %327 = vector.shape_cast %326 : vector<8xf32> to vector<8x1xf32>
    %328 = vector.broadcast %327 : vector<8x1xf32> to vector<8x8xf32>
    %329 = arith.divf %325, %328 : vector<8x8xf32>
    %cst_133 = arith.constant dense<0.000000e+00> : vector<8x8xf32>
    %330 = tpu.matmul %329, %311, %cst_133 {dimension_numbers = #tpu.dot_dimension_numbers<[1], [0], [0], [1], [0, 0, 1, 1], [], []>} : vector<8x8xf32>, vector<8x8xf32>, vector<8x8xf32> -> vector<8x8xf32>
    %331 = vector.extract_strided_slice %305 {offsets = [0, 8], sizes = [8, 8], strides = [1, 1]} : vector<16x32xf32> to vector<8x8xf32>
    %332 = vector.extract_strided_slice %306 {offsets = [0, 8], sizes = [8, 8], strides = [1, 1]} : vector<16x64xf32> to vector<8x8xf32>
    %333 = vector.extract_strided_slice %306 {offsets = [0, 40], sizes = [8, 8], strides = [1, 1]} : vector<16x64xf32> to vector<8x8xf32>
    %cst_134 = arith.constant dense<0.000000e+00> : vector<8x8xf32>
    %334 = tpu.matmul %331, %332, %cst_134 {dimension_numbers = #tpu.dot_dimension_numbers<[1], [1], [0], [0], [0, 0, 1, 0], [], []>} : vector<8x8xf32>, vector<8x8xf32>, vector<8x8xf32> -> vector<8x8xf32>
    %cst_135 = arith.constant 0.353553385 : f32
    %335 = vector.broadcast %cst_135 : f32 to vector<8x8xf32>
    %336 = arith.mulf %334, %335 : vector<8x8xf32>
    %cst_136 = arith.constant 0.000000e+00 : f32
    %337 = vector.broadcast %cst_136 : f32 to vector<1x8xf32>
    %338 = arith.cmpf ogt, %308, %337 : vector<1x8xf32>
    %cst_137 = arith.constant -1.000000e+09 : f32
    %339 = vector.shape_cast %338 : vector<1x8xi1> to vector<1x8xi1>
    %340 = vector.broadcast %339 : vector<1x8xi1> to vector<8x8xi1>
    %341 = vector.broadcast %cst_137 : f32 to vector<8x8xf32>
    %342 = arith.select %340, %336, %341 : vector<8x8xi1>, vector<8x8xf32>
    %cst_138 = arith.constant dense<0xFF800000> : vector<8xf32>
    %343 = vector.multi_reduction <maximumf>, %342, %cst_138 [1] : vector<8x8xf32> to vector<8xf32>
    %344 = vector.shape_cast %343 : vector<8xf32> to vector<8x1xf32>
    %345 = vector.broadcast %344 : vector<8x1xf32> to vector<8x8xf32>
    %346 = arith.subf %342, %345 : vector<8x8xf32>
    %347 = math.exp %346 : vector<8x8xf32>
    %cst_139 = arith.constant dense<0.000000e+00> : vector<8xf32>
    %348 = vector.multi_reduction <add>, %347, %cst_139 [1] : vector<8x8xf32> to vector<8xf32>
    %349 = vector.shape_cast %348 : vector<8xf32> to vector<8x1xf32>
    %350 = vector.broadcast %349 : vector<8x1xf32> to vector<8x8xf32>
    %351 = arith.divf %347, %350 : vector<8x8xf32>
    %cst_140 = arith.constant dense<0.000000e+00> : vector<8x8xf32>
    %352 = tpu.matmul %351, %333, %cst_140 {dimension_numbers = #tpu.dot_dimension_numbers<[1], [0], [0], [1], [0, 0, 1, 1], [], []>} : vector<8x8xf32>, vector<8x8xf32>, vector<8x8xf32> -> vector<8x8xf32>
    %353 = vector.extract_strided_slice %305 {offsets = [0, 16], sizes = [8, 8], strides = [1, 1]} : vector<16x32xf32> to vector<8x8xf32>
    %354 = vector.extract_strided_slice %306 {offsets = [0, 16], sizes = [8, 8], strides = [1, 1]} : vector<16x64xf32> to vector<8x8xf32>
    %355 = vector.extract_strided_slice %306 {offsets = [0, 48], sizes = [8, 8], strides = [1, 1]} : vector<16x64xf32> to vector<8x8xf32>
    %cst_141 = arith.constant dense<0.000000e+00> : vector<8x8xf32>
    %356 = tpu.matmul %353, %354, %cst_141 {dimension_numbers = #tpu.dot_dimension_numbers<[1], [1], [0], [0], [0, 0, 1, 0], [], []>} : vector<8x8xf32>, vector<8x8xf32>, vector<8x8xf32> -> vector<8x8xf32>
    %cst_142 = arith.constant 0.353553385 : f32
    %357 = vector.broadcast %cst_142 : f32 to vector<8x8xf32>
    %358 = arith.mulf %356, %357 : vector<8x8xf32>
    %cst_143 = arith.constant 0.000000e+00 : f32
    %359 = vector.broadcast %cst_143 : f32 to vector<1x8xf32>
    %360 = arith.cmpf ogt, %308, %359 : vector<1x8xf32>
    %cst_144 = arith.constant -1.000000e+09 : f32
    %361 = vector.shape_cast %360 : vector<1x8xi1> to vector<1x8xi1>
    %362 = vector.broadcast %361 : vector<1x8xi1> to vector<8x8xi1>
    %363 = vector.broadcast %cst_144 : f32 to vector<8x8xf32>
    %364 = arith.select %362, %358, %363 : vector<8x8xi1>, vector<8x8xf32>
    %cst_145 = arith.constant dense<0xFF800000> : vector<8xf32>
    %365 = vector.multi_reduction <maximumf>, %364, %cst_145 [1] : vector<8x8xf32> to vector<8xf32>
    %366 = vector.shape_cast %365 : vector<8xf32> to vector<8x1xf32>
    %367 = vector.broadcast %366 : vector<8x1xf32> to vector<8x8xf32>
    %368 = arith.subf %364, %367 : vector<8x8xf32>
    %369 = math.exp %368 : vector<8x8xf32>
    %cst_146 = arith.constant dense<0.000000e+00> : vector<8xf32>
    %370 = vector.multi_reduction <add>, %369, %cst_146 [1] : vector<8x8xf32> to vector<8xf32>
    %371 = vector.shape_cast %370 : vector<8xf32> to vector<8x1xf32>
    %372 = vector.broadcast %371 : vector<8x1xf32> to vector<8x8xf32>
    %373 = arith.divf %369, %372 : vector<8x8xf32>
    %cst_147 = arith.constant dense<0.000000e+00> : vector<8x8xf32>
    %374 = tpu.matmul %373, %355, %cst_147 {dimension_numbers = #tpu.dot_dimension_numbers<[1], [0], [0], [1], [0, 0, 1, 1], [], []>} : vector<8x8xf32>, vector<8x8xf32>, vector<8x8xf32> -> vector<8x8xf32>
    %375 = vector.extract_strided_slice %305 {offsets = [0, 24], sizes = [8, 8], strides = [1, 1]} : vector<16x32xf32> to vector<8x8xf32>
    %376 = vector.extract_strided_slice %306 {offsets = [0, 24], sizes = [8, 8], strides = [1, 1]} : vector<16x64xf32> to vector<8x8xf32>
    %377 = vector.extract_strided_slice %306 {offsets = [0, 56], sizes = [8, 8], strides = [1, 1]} : vector<16x64xf32> to vector<8x8xf32>
    %cst_148 = arith.constant dense<0.000000e+00> : vector<8x8xf32>
    %378 = tpu.matmul %375, %376, %cst_148 {dimension_numbers = #tpu.dot_dimension_numbers<[1], [1], [0], [0], [0, 0, 1, 0], [], []>} : vector<8x8xf32>, vector<8x8xf32>, vector<8x8xf32> -> vector<8x8xf32>
    %cst_149 = arith.constant 0.353553385 : f32
    %379 = vector.broadcast %cst_149 : f32 to vector<8x8xf32>
    %380 = arith.mulf %378, %379 : vector<8x8xf32>
    %cst_150 = arith.constant 0.000000e+00 : f32
    %381 = vector.broadcast %cst_150 : f32 to vector<1x8xf32>
    %382 = arith.cmpf ogt, %308, %381 : vector<1x8xf32>
    %cst_151 = arith.constant -1.000000e+09 : f32
    %383 = vector.shape_cast %382 : vector<1x8xi1> to vector<1x8xi1>
    %384 = vector.broadcast %383 : vector<1x8xi1> to vector<8x8xi1>
    %385 = vector.broadcast %cst_151 : f32 to vector<8x8xf32>
    %386 = arith.select %384, %380, %385 : vector<8x8xi1>, vector<8x8xf32>
    %cst_152 = arith.constant dense<0xFF800000> : vector<8xf32>
    %387 = vector.multi_reduction <maximumf>, %386, %cst_152 [1] : vector<8x8xf32> to vector<8xf32>
    %388 = vector.shape_cast %387 : vector<8xf32> to vector<8x1xf32>
    %389 = vector.broadcast %388 : vector<8x1xf32> to vector<8x8xf32>
    %390 = arith.subf %386, %389 : vector<8x8xf32>
    %391 = math.exp %390 : vector<8x8xf32>
    %cst_153 = arith.constant dense<0.000000e+00> : vector<8xf32>
    %392 = vector.multi_reduction <add>, %391, %cst_153 [1] : vector<8x8xf32> to vector<8xf32>
    %393 = vector.shape_cast %392 : vector<8xf32> to vector<8x1xf32>
    %394 = vector.broadcast %393 : vector<8x1xf32> to vector<8x8xf32>
    %395 = arith.divf %391, %394 : vector<8x8xf32>
    %cst_154 = arith.constant dense<0.000000e+00> : vector<8x8xf32>
    %396 = tpu.matmul %395, %377, %cst_154 {dimension_numbers = #tpu.dot_dimension_numbers<[1], [0], [0], [1], [0, 0, 1, 1], [], []>} : vector<8x8xf32>, vector<8x8xf32>, vector<8x8xf32> -> vector<8x8xf32>
    %397 = tpu.concatenate %330, %352, %374, %396 in 1 : vector<8x8xf32>, vector<8x8xf32>, vector<8x8xf32>, vector<8x8xf32> -> vector<8x32xf32>
    %c1_155 = arith.constant 1 : index
    %c0_156 = arith.constant 0 : index
    %c0_157 = arith.constant 0 : index
    %398 = vector.load %arg2[%c1_155, %c0_156, %c0_157] : memref<2x1x8xf32, #tpu.memory_space<vmem>>, vector<1x1x8xf32>
    %399 = vector.shape_cast %398 : vector<1x1x8xf32> to vector<1x8xf32>
    %400 = vector.extract_strided_slice %305 {offsets = [8, 0], sizes = [8, 8], strides = [1, 1]} : vector<16x32xf32> to vector<8x8xf32>
    %401 = vector.extract_strided_slice %306 {offsets = [8, 0], sizes = [8, 8], strides = [1, 1]} : vector<16x64xf32> to vector<8x8xf32>
    %402 = vector.extract_strided_slice %306 {offsets = [8, 32], sizes = [8, 8], strides = [1, 1]} : vector<16x64xf32> to vector<8x8xf32>
    %cst_158 = arith.constant dense<0.000000e+00> : vector<8x8xf32>
    %403 = tpu.matmul %400, %401, %cst_158 {dimension_numbers = #tpu.dot_dimension_numbers<[1], [1], [0], [0], [0, 0, 1, 0], [], []>} : vector<8x8xf32>, vector<8x8xf32>, vector<8x8xf32> -> vector<8x8xf32>
    %cst_159 = arith.constant 0.353553385 : f32
    %404 = vector.broadcast %cst_159 : f32 to vector<8x8xf32>
    %405 = arith.mulf %403, %404 : vector<8x8xf32>
    %cst_160 = arith.constant 0.000000e+00 : f32
    %406 = vector.broadcast %cst_160 : f32 to vector<1x8xf32>
    %407 = arith.cmpf ogt, %399, %406 : vector<1x8xf32>
    %cst_161 = arith.constant -1.000000e+09 : f32
    %408 = vector.shape_cast %407 : vector<1x8xi1> to vector<1x8xi1>
    %409 = vector.broadcast %408 : vector<1x8xi1> to vector<8x8xi1>
    %410 = vector.broadcast %cst_161 : f32 to vector<8x8xf32>
    %411 = arith.select %409, %405, %410 : vector<8x8xi1>, vector<8x8xf32>
    %cst_162 = arith.constant dense<0xFF800000> : vector<8xf32>
    %412 = vector.multi_reduction <maximumf>, %411, %cst_162 [1] : vector<8x8xf32> to vector<8xf32>
    %413 = vector.shape_cast %412 : vector<8xf32> to vector<8x1xf32>
    %414 = vector.broadcast %413 : vector<8x1xf32> to vector<8x8xf32>
    %415 = arith.subf %411, %414 : vector<8x8xf32>
    %416 = math.exp %415 : vector<8x8xf32>
    %cst_163 = arith.constant dense<0.000000e+00> : vector<8xf32>
    %417 = vector.multi_reduction <add>, %416, %cst_163 [1] : vector<8x8xf32> to vector<8xf32>
    %418 = vector.shape_cast %417 : vector<8xf32> to vector<8x1xf32>
    %419 = vector.broadcast %418 : vector<8x1xf32> to vector<8x8xf32>
    %420 = arith.divf %416, %419 : vector<8x8xf32>
    %cst_164 = arith.constant dense<0.000000e+00> : vector<8x8xf32>
    %421 = tpu.matmul %420, %402, %cst_164 {dimension_numbers = #tpu.dot_dimension_numbers<[1], [0], [0], [1], [0, 0, 1, 1], [], []>} : vector<8x8xf32>, vector<8x8xf32>, vector<8x8xf32> -> vector<8x8xf32>
    %422 = vector.extract_strided_slice %305 {offsets = [8, 8], sizes = [8, 8], strides = [1, 1]} : vector<16x32xf32> to vector<8x8xf32>
    %423 = vector.extract_strided_slice %306 {offsets = [8, 8], sizes = [8, 8], strides = [1, 1]} : vector<16x64xf32> to vector<8x8xf32>
    %424 = vector.extract_strided_slice %306 {offsets = [8, 40], sizes = [8, 8], strides = [1, 1]} : vector<16x64xf32> to vector<8x8xf32>
    %cst_165 = arith.constant dense<0.000000e+00> : vector<8x8xf32>
    %425 = tpu.matmul %422, %423, %cst_165 {dimension_numbers = #tpu.dot_dimension_numbers<[1], [1], [0], [0], [0, 0, 1, 0], [], []>} : vector<8x8xf32>, vector<8x8xf32>, vector<8x8xf32> -> vector<8x8xf32>
    %cst_166 = arith.constant 0.353553385 : f32
    %426 = vector.broadcast %cst_166 : f32 to vector<8x8xf32>
    %427 = arith.mulf %425, %426 : vector<8x8xf32>
    %cst_167 = arith.constant 0.000000e+00 : f32
    %428 = vector.broadcast %cst_167 : f32 to vector<1x8xf32>
    %429 = arith.cmpf ogt, %399, %428 : vector<1x8xf32>
    %cst_168 = arith.constant -1.000000e+09 : f32
    %430 = vector.shape_cast %429 : vector<1x8xi1> to vector<1x8xi1>
    %431 = vector.broadcast %430 : vector<1x8xi1> to vector<8x8xi1>
    %432 = vector.broadcast %cst_168 : f32 to vector<8x8xf32>
    %433 = arith.select %431, %427, %432 : vector<8x8xi1>, vector<8x8xf32>
    %cst_169 = arith.constant dense<0xFF800000> : vector<8xf32>
    %434 = vector.multi_reduction <maximumf>, %433, %cst_169 [1] : vector<8x8xf32> to vector<8xf32>
    %435 = vector.shape_cast %434 : vector<8xf32> to vector<8x1xf32>
    %436 = vector.broadcast %435 : vector<8x1xf32> to vector<8x8xf32>
    %437 = arith.subf %433, %436 : vector<8x8xf32>
    %438 = math.exp %437 : vector<8x8xf32>
    %cst_170 = arith.constant dense<0.000000e+00> : vector<8xf32>
    %439 = vector.multi_reduction <add>, %438, %cst_170 [1] : vector<8x8xf32> to vector<8xf32>
    %440 = vector.shape_cast %439 : vector<8xf32> to vector<8x1xf32>
    %441 = vector.broadcast %440 : vector<8x1xf32> to vector<8x8xf32>
    %442 = arith.divf %438, %441 : vector<8x8xf32>
    %cst_171 = arith.constant dense<0.000000e+00> : vector<8x8xf32>
    %443 = tpu.matmul %442, %424, %cst_171 {dimension_numbers = #tpu.dot_dimension_numbers<[1], [0], [0], [1], [0, 0, 1, 1], [], []>} : vector<8x8xf32>, vector<8x8xf32>, vector<8x8xf32> -> vector<8x8xf32>
    %444 = vector.extract_strided_slice %305 {offsets = [8, 16], sizes = [8, 8], strides = [1, 1]} : vector<16x32xf32> to vector<8x8xf32>
    %445 = vector.extract_strided_slice %306 {offsets = [8, 16], sizes = [8, 8], strides = [1, 1]} : vector<16x64xf32> to vector<8x8xf32>
    %446 = vector.extract_strided_slice %306 {offsets = [8, 48], sizes = [8, 8], strides = [1, 1]} : vector<16x64xf32> to vector<8x8xf32>
    %cst_172 = arith.constant dense<0.000000e+00> : vector<8x8xf32>
    %447 = tpu.matmul %444, %445, %cst_172 {dimension_numbers = #tpu.dot_dimension_numbers<[1], [1], [0], [0], [0, 0, 1, 0], [], []>} : vector<8x8xf32>, vector<8x8xf32>, vector<8x8xf32> -> vector<8x8xf32>
    %cst_173 = arith.constant 0.353553385 : f32
    %448 = vector.broadcast %cst_173 : f32 to vector<8x8xf32>
    %449 = arith.mulf %447, %448 : vector<8x8xf32>
    %cst_174 = arith.constant 0.000000e+00 : f32
    %450 = vector.broadcast %cst_174 : f32 to vector<1x8xf32>
    %451 = arith.cmpf ogt, %399, %450 : vector<1x8xf32>
    %cst_175 = arith.constant -1.000000e+09 : f32
    %452 = vector.shape_cast %451 : vector<1x8xi1> to vector<1x8xi1>
    %453 = vector.broadcast %452 : vector<1x8xi1> to vector<8x8xi1>
    %454 = vector.broadcast %cst_175 : f32 to vector<8x8xf32>
    %455 = arith.select %453, %449, %454 : vector<8x8xi1>, vector<8x8xf32>
    %cst_176 = arith.constant dense<0xFF800000> : vector<8xf32>
    %456 = vector.multi_reduction <maximumf>, %455, %cst_176 [1] : vector<8x8xf32> to vector<8xf32>
    %457 = vector.shape_cast %456 : vector<8xf32> to vector<8x1xf32>
    %458 = vector.broadcast %457 : vector<8x1xf32> to vector<8x8xf32>
    %459 = arith.subf %455, %458 : vector<8x8xf32>
    %460 = math.exp %459 : vector<8x8xf32>
    %cst_177 = arith.constant dense<0.000000e+00> : vector<8xf32>
    %461 = vector.multi_reduction <add>, %460, %cst_177 [1] : vector<8x8xf32> to vector<8xf32>
    %462 = vector.shape_cast %461 : vector<8xf32> to vector<8x1xf32>
    %463 = vector.broadcast %462 : vector<8x1xf32> to vector<8x8xf32>
    %464 = arith.divf %460, %463 : vector<8x8xf32>
    %cst_178 = arith.constant dense<0.000000e+00> : vector<8x8xf32>
    %465 = tpu.matmul %464, %446, %cst_178 {dimension_numbers = #tpu.dot_dimension_numbers<[1], [0], [0], [1], [0, 0, 1, 1], [], []>} : vector<8x8xf32>, vector<8x8xf32>, vector<8x8xf32> -> vector<8x8xf32>
    %466 = vector.extract_strided_slice %305 {offsets = [8, 24], sizes = [8, 8], strides = [1, 1]} : vector<16x32xf32> to vector<8x8xf32>
    %467 = vector.extract_strided_slice %306 {offsets = [8, 24], sizes = [8, 8], strides = [1, 1]} : vector<16x64xf32> to vector<8x8xf32>
    %468 = vector.extract_strided_slice %306 {offsets = [8, 56], sizes = [8, 8], strides = [1, 1]} : vector<16x64xf32> to vector<8x8xf32>
    %cst_179 = arith.constant dense<0.000000e+00> : vector<8x8xf32>
    %469 = tpu.matmul %466, %467, %cst_179 {dimension_numbers = #tpu.dot_dimension_numbers<[1], [1], [0], [0], [0, 0, 1, 0], [], []>} : vector<8x8xf32>, vector<8x8xf32>, vector<8x8xf32> -> vector<8x8xf32>
    %cst_180 = arith.constant 0.353553385 : f32
    %470 = vector.broadcast %cst_180 : f32 to vector<8x8xf32>
    %471 = arith.mulf %469, %470 : vector<8x8xf32>
    %cst_181 = arith.constant 0.000000e+00 : f32
    %472 = vector.broadcast %cst_181 : f32 to vector<1x8xf32>
    %473 = arith.cmpf ogt, %399, %472 : vector<1x8xf32>
    %cst_182 = arith.constant -1.000000e+09 : f32
    %474 = vector.shape_cast %473 : vector<1x8xi1> to vector<1x8xi1>
    %475 = vector.broadcast %474 : vector<1x8xi1> to vector<8x8xi1>
    %476 = vector.broadcast %cst_182 : f32 to vector<8x8xf32>
    %477 = arith.select %475, %471, %476 : vector<8x8xi1>, vector<8x8xf32>
    %cst_183 = arith.constant dense<0xFF800000> : vector<8xf32>
    %478 = vector.multi_reduction <maximumf>, %477, %cst_183 [1] : vector<8x8xf32> to vector<8xf32>
    %479 = vector.shape_cast %478 : vector<8xf32> to vector<8x1xf32>
    %480 = vector.broadcast %479 : vector<8x1xf32> to vector<8x8xf32>
    %481 = arith.subf %477, %480 : vector<8x8xf32>
    %482 = math.exp %481 : vector<8x8xf32>
    %cst_184 = arith.constant dense<0.000000e+00> : vector<8xf32>
    %483 = vector.multi_reduction <add>, %482, %cst_184 [1] : vector<8x8xf32> to vector<8xf32>
    %484 = vector.shape_cast %483 : vector<8xf32> to vector<8x1xf32>
    %485 = vector.broadcast %484 : vector<8x1xf32> to vector<8x8xf32>
    %486 = arith.divf %482, %485 : vector<8x8xf32>
    %cst_185 = arith.constant dense<0.000000e+00> : vector<8x8xf32>
    %487 = tpu.matmul %486, %468, %cst_185 {dimension_numbers = #tpu.dot_dimension_numbers<[1], [0], [0], [1], [0, 0, 1, 1], [], []>} : vector<8x8xf32>, vector<8x8xf32>, vector<8x8xf32> -> vector<8x8xf32>
    %488 = tpu.concatenate %421, %443, %465, %487 in 1 : vector<8x8xf32>, vector<8x8xf32>, vector<8x8xf32>, vector<8x8xf32> -> vector<8x32xf32>
    %489 = tpu.concatenate %397, %488 in 0 : vector<8x32xf32>, vector<8x32xf32> -> vector<16x32xf32>
    %cst_186 = arith.constant dense<0.000000e+00> : vector<16x32xf32>
    %490 = tpu.matmul %489, %299, %cst_186 {dimension_numbers = #tpu.dot_dimension_numbers<[1], [0], [0], [1], [0, 0, 1, 1], [], []>} : vector<16x32xf32>, vector<32x32xf32>, vector<16x32xf32> -> vector<16x32xf32>
    %491 = vector.broadcast %301 : vector<1x32xf32> to vector<16x32xf32>
    %492 = arith.addf %490, %491 : vector<16x32xf32>
    %493 = arith.addf %267, %492 : vector<16x32xf32>
    %494 = vector.extract_strided_slice %269 {offsets = [2, 0], sizes = [1, 32], strides = [1, 1]} : vector<4x32xf32> to vector<1x32xf32>
    %495 = vector.extract_strided_slice %269 {offsets = [3, 0], sizes = [1, 32], strides = [1, 1]} : vector<4x32xf32> to vector<1x32xf32>
    %cst_187 = arith.constant dense<0.000000e+00> : vector<16xf32>
    %496 = vector.multi_reduction <add>, %493, %cst_187 [1] : vector<16x32xf32> to vector<16xf32>
    %497 = vector.shape_cast %496 : vector<16xf32> to vector<16x1xf32>
    %cst_188 = arith.constant 3.200000e+01 : f32
    %498 = vector.broadcast %cst_188 : f32 to vector<16x1xf32>
    %499 = arith.divf %497, %498 : vector<16x1xf32>
    %500 = vector.broadcast %499 : vector<16x1xf32> to vector<16x32xf32>
    %501 = arith.subf %493, %500 : vector<16x32xf32>
    %502 = arith.mulf %501, %501 : vector<16x32xf32>
    %cst_189 = arith.constant dense<0.000000e+00> : vector<16xf32>
    %503 = vector.multi_reduction <add>, %502, %cst_189 [1] : vector<16x32xf32> to vector<16xf32>
    %504 = vector.shape_cast %503 : vector<16xf32> to vector<16x1xf32>
    %cst_190 = arith.constant 0.0322580636 : f32
    %505 = vector.broadcast %cst_190 : f32 to vector<16x1xf32>
    %506 = arith.mulf %504, %505 : vector<16x1xf32>
    %507 = math.sqrt %506 : vector<16x1xf32>
    %508 = vector.broadcast %499 : vector<16x1xf32> to vector<16x32xf32>
    %509 = arith.subf %493, %508 : vector<16x32xf32>
    %510 = vector.broadcast %494 : vector<1x32xf32> to vector<16x32xf32>
    %511 = arith.mulf %510, %509 : vector<16x32xf32>
    %cst_191 = arith.constant 9.99999997E-7 : f32
    %512 = vector.broadcast %cst_191 : f32 to vector<16x1xf32>
    %513 = arith.addf %507, %512 : vector<16x1xf32>
    %514 = vector.broadcast %513 : vector<16x1xf32> to vector<16x32xf32>
    %515 = arith.divf %511, %514 : vector<16x32xf32>
    %516 = vector.broadcast %495 : vector<1x32xf32> to vector<16x32xf32>
    %517 = arith.addf %515, %516 : vector<16x32xf32>
    %c1_192 = arith.constant 1 : index
    %c0_193 = arith.constant 0 : index
    %c0_194 = arith.constant 0 : index
    %518 = vector.load %arg8[%c1_192, %c0_193, %c0_194] : memref<2x32x64xf32, #tpu.memory_space<vmem>>, vector<1x32x64xf32>
    %519 = vector.shape_cast %518 : vector<1x32x64xf32> to vector<32x64xf32>
    %c1_195 = arith.constant 1 : index
    %c0_196 = arith.constant 0 : index
    %c0_197 = arith.constant 0 : index
    %520 = vector.load %arg9[%c1_195, %c0_196, %c0_197] : memref<2x1x64xf32, #tpu.memory_space<vmem>>, vector<1x1x64xf32>
    %521 = vector.shape_cast %520 : vector<1x1x64xf32> to vector<1x64xf32>
    %c1_198 = arith.constant 1 : index
    %c0_199 = arith.constant 0 : index
    %c0_200 = arith.constant 0 : index
    %522 = vector.load %arg10[%c1_198, %c0_199, %c0_200] : memref<2x64x32xf32, #tpu.memory_space<vmem>>, vector<1x64x32xf32>
    %523 = vector.shape_cast %522 : vector<1x64x32xf32> to vector<64x32xf32>
    %c1_201 = arith.constant 1 : index
    %c0_202 = arith.constant 0 : index
    %c0_203 = arith.constant 0 : index
    %524 = vector.load %arg11[%c1_201, %c0_202, %c0_203] : memref<2x1x32xf32, #tpu.memory_space<vmem>>, vector<1x1x32xf32>
    %525 = vector.shape_cast %524 : vector<1x1x32xf32> to vector<1x32xf32>
    %cst_204 = arith.constant dense<0.000000e+00> : vector<16x64xf32>
    %526 = tpu.matmul %517, %519, %cst_204 {dimension_numbers = #tpu.dot_dimension_numbers<[1], [0], [0], [1], [0, 0, 1, 1], [], []>} : vector<16x32xf32>, vector<32x64xf32>, vector<16x64xf32> -> vector<16x64xf32>
    %527 = vector.broadcast %521 : vector<1x64xf32> to vector<16x64xf32>
    %528 = arith.addf %526, %527 : vector<16x64xf32>
    %cst_205 = arith.constant 0.000000e+00 : f32
    %529 = vector.broadcast %cst_205 : f32 to vector<16x64xf32>
    %530 = arith.maximumf %528, %529 : vector<16x64xf32>
    %cst_206 = arith.constant dense<0.000000e+00> : vector<16x32xf32>
    %531 = tpu.matmul %530, %523, %cst_206 {dimension_numbers = #tpu.dot_dimension_numbers<[1], [0], [0], [1], [0, 0, 1, 1], [], []>} : vector<16x64xf32>, vector<64x32xf32>, vector<16x32xf32> -> vector<16x32xf32>
    %532 = vector.broadcast %525 : vector<1x32xf32> to vector<16x32xf32>
    %533 = arith.addf %531, %532 : vector<16x32xf32>
    %534 = arith.addf %493, %533 : vector<16x32xf32>
    %c0_207 = arith.constant 0 : index
    %c0_208 = arith.constant 0 : index
    %535 = vector.load %arg26[%c0_207, %c0_208] : memref<4x32xf32, #tpu.memory_space<vmem>>, vector<4x32xf32>
    %536 = vector.extract_strided_slice %535 {offsets = [0, 0], sizes = [1, 32], strides = [1, 1]} : vector<4x32xf32> to vector<1x32xf32>
    %537 = vector.extract_strided_slice %535 {offsets = [1, 0], sizes = [1, 32], strides = [1, 1]} : vector<4x32xf32> to vector<1x32xf32>
    %cst_209 = arith.constant dense<0.000000e+00> : vector<16xf32>
    %538 = vector.multi_reduction <add>, %534, %cst_209 [1] : vector<16x32xf32> to vector<16xf32>
    %539 = vector.shape_cast %538 : vector<16xf32> to vector<16x1xf32>
    %cst_210 = arith.constant 3.200000e+01 : f32
    %540 = vector.broadcast %cst_210 : f32 to vector<16x1xf32>
    %541 = arith.divf %539, %540 : vector<16x1xf32>
    %542 = vector.broadcast %541 : vector<16x1xf32> to vector<16x32xf32>
    %543 = arith.subf %534, %542 : vector<16x32xf32>
    %544 = arith.mulf %543, %543 : vector<16x32xf32>
    %cst_211 = arith.constant dense<0.000000e+00> : vector<16xf32>
    %545 = vector.multi_reduction <add>, %544, %cst_211 [1] : vector<16x32xf32> to vector<16xf32>
    %546 = vector.shape_cast %545 : vector<16xf32> to vector<16x1xf32>
    %cst_212 = arith.constant 0.0322580636 : f32
    %547 = vector.broadcast %cst_212 : f32 to vector<16x1xf32>
    %548 = arith.mulf %546, %547 : vector<16x1xf32>
    %549 = math.sqrt %548 : vector<16x1xf32>
    %550 = vector.broadcast %541 : vector<16x1xf32> to vector<16x32xf32>
    %551 = arith.subf %534, %550 : vector<16x32xf32>
    %552 = vector.broadcast %536 : vector<1x32xf32> to vector<16x32xf32>
    %553 = arith.mulf %552, %551 : vector<16x32xf32>
    %cst_213 = arith.constant 9.99999997E-7 : f32
    %554 = vector.broadcast %cst_213 : f32 to vector<16x1xf32>
    %555 = arith.addf %549, %554 : vector<16x1xf32>
    %556 = vector.broadcast %555 : vector<16x1xf32> to vector<16x32xf32>
    %557 = arith.divf %553, %556 : vector<16x32xf32>
    %558 = vector.broadcast %537 : vector<1x32xf32> to vector<16x32xf32>
    %559 = arith.addf %557, %558 : vector<16x32xf32>
    %c0_214 = arith.constant 0 : index
    %c0_215 = arith.constant 0 : index
    %560 = vector.load %arg1[%c0_214, %c0_215] : memref<16x32xf32, #tpu.memory_space<vmem>>, vector<16x32xf32>
    %c0_216 = arith.constant 0 : index
    %c0_217 = arith.constant 0 : index
    %c0_218 = arith.constant 0 : index
    %561 = vector.load %arg25[%c0_216, %c0_217, %c0_218] : memref<2x6x32xf32, #tpu.memory_space<vmem>>, vector<1x6x32xf32>
    %562 = vector.shape_cast %561 : vector<1x6x32xf32> to vector<6x32xf32>
    %563 = vector.extract_strided_slice %562 {offsets = [0, 0], sizes = [1, 32], strides = [1, 1]} : vector<6x32xf32> to vector<1x32xf32>
    %564 = vector.extract_strided_slice %562 {offsets = [1, 0], sizes = [1, 32], strides = [1, 1]} : vector<6x32xf32> to vector<1x32xf32>
    %cst_219 = arith.constant dense<0.000000e+00> : vector<16xf32>
    %565 = vector.multi_reduction <add>, %560, %cst_219 [1] : vector<16x32xf32> to vector<16xf32>
    %566 = vector.shape_cast %565 : vector<16xf32> to vector<16x1xf32>
    %cst_220 = arith.constant 3.200000e+01 : f32
    %567 = vector.broadcast %cst_220 : f32 to vector<16x1xf32>
    %568 = arith.divf %566, %567 : vector<16x1xf32>
    %569 = vector.broadcast %568 : vector<16x1xf32> to vector<16x32xf32>
    %570 = arith.subf %560, %569 : vector<16x32xf32>
    %571 = arith.mulf %570, %570 : vector<16x32xf32>
    %cst_221 = arith.constant dense<0.000000e+00> : vector<16xf32>
    %572 = vector.multi_reduction <add>, %571, %cst_221 [1] : vector<16x32xf32> to vector<16xf32>
    %573 = vector.shape_cast %572 : vector<16xf32> to vector<16x1xf32>
    %cst_222 = arith.constant 0.0322580636 : f32
    %574 = vector.broadcast %cst_222 : f32 to vector<16x1xf32>
    %575 = arith.mulf %573, %574 : vector<16x1xf32>
    %576 = math.sqrt %575 : vector<16x1xf32>
    %577 = vector.broadcast %568 : vector<16x1xf32> to vector<16x32xf32>
    %578 = arith.subf %560, %577 : vector<16x32xf32>
    %579 = vector.broadcast %563 : vector<1x32xf32> to vector<16x32xf32>
    %580 = arith.mulf %579, %578 : vector<16x32xf32>
    %cst_223 = arith.constant 9.99999997E-7 : f32
    %581 = vector.broadcast %cst_223 : f32 to vector<16x1xf32>
    %582 = arith.addf %576, %581 : vector<16x1xf32>
    %583 = vector.broadcast %582 : vector<16x1xf32> to vector<16x32xf32>
    %584 = arith.divf %580, %583 : vector<16x32xf32>
    %585 = vector.broadcast %564 : vector<1x32xf32> to vector<16x32xf32>
    %586 = arith.addf %584, %585 : vector<16x32xf32>
    %c0_224 = arith.constant 0 : index
    %c0_225 = arith.constant 0 : index
    %c0_226 = arith.constant 0 : index
    %587 = vector.load %arg13[%c0_224, %c0_225, %c0_226] : memref<2x32x96xf32, #tpu.memory_space<vmem>>, vector<1x32x96xf32>
    %588 = vector.shape_cast %587 : vector<1x32x96xf32> to vector<32x96xf32>
    %c0_227 = arith.constant 0 : index
    %c0_228 = arith.constant 0 : index
    %c0_229 = arith.constant 0 : index
    %589 = vector.load %arg14[%c0_227, %c0_228, %c0_229] : memref<2x1x96xf32, #tpu.memory_space<vmem>>, vector<1x1x96xf32>
    %590 = vector.shape_cast %589 : vector<1x1x96xf32> to vector<1x96xf32>
    %c0_230 = arith.constant 0 : index
    %c0_231 = arith.constant 0 : index
    %c0_232 = arith.constant 0 : index
    %591 = vector.load %arg15[%c0_230, %c0_231, %c0_232] : memref<2x32x32xf32, #tpu.memory_space<vmem>>, vector<1x32x32xf32>
    %592 = vector.shape_cast %591 : vector<1x32x32xf32> to vector<32x32xf32>
    %c0_233 = arith.constant 0 : index
    %c0_234 = arith.constant 0 : index
    %c0_235 = arith.constant 0 : index
    %593 = vector.load %arg16[%c0_233, %c0_234, %c0_235] : memref<2x1x32xf32, #tpu.memory_space<vmem>>, vector<1x1x32xf32>
    %594 = vector.shape_cast %593 : vector<1x1x32xf32> to vector<1x32xf32>
    %cst_236 = arith.constant dense<0.000000e+00> : vector<16x96xf32>
    %595 = tpu.matmul %586, %588, %cst_236 {dimension_numbers = #tpu.dot_dimension_numbers<[1], [0], [0], [1], [0, 0, 1, 1], [], []>} : vector<16x32xf32>, vector<32x96xf32>, vector<16x96xf32> -> vector<16x96xf32>
    %596 = vector.broadcast %590 : vector<1x96xf32> to vector<16x96xf32>
    %597 = arith.addf %595, %596 : vector<16x96xf32>
    %598 = vector.extract_strided_slice %597 {offsets = [0, 0], sizes = [16, 32], strides = [1, 1]} : vector<16x96xf32> to vector<16x32xf32>
    %599 = vector.extract_strided_slice %597 {offsets = [0, 32], sizes = [16, 64], strides = [1, 1]} : vector<16x96xf32> to vector<16x64xf32>
    %c0_237 = arith.constant 0 : index
    %c0_238 = arith.constant 0 : index
    %c0_239 = arith.constant 0 : index
    %600 = vector.load %arg3[%c0_237, %c0_238, %c0_239] : memref<2x8x8xf32, #tpu.memory_space<vmem>>, vector<1x8x8xf32>
    %601 = vector.shape_cast %600 : vector<1x8x8xf32> to vector<8x8xf32>
    %602 = vector.extract_strided_slice %598 {offsets = [0, 0], sizes = [8, 8], strides = [1, 1]} : vector<16x32xf32> to vector<8x8xf32>
    %603 = vector.extract_strided_slice %599 {offsets = [0, 0], sizes = [8, 8], strides = [1, 1]} : vector<16x64xf32> to vector<8x8xf32>
    %604 = vector.extract_strided_slice %599 {offsets = [0, 32], sizes = [8, 8], strides = [1, 1]} : vector<16x64xf32> to vector<8x8xf32>
    %cst_240 = arith.constant dense<0.000000e+00> : vector<8x8xf32>
    %605 = tpu.matmul %602, %603, %cst_240 {dimension_numbers = #tpu.dot_dimension_numbers<[1], [1], [0], [0], [0, 0, 1, 0], [], []>} : vector<8x8xf32>, vector<8x8xf32>, vector<8x8xf32> -> vector<8x8xf32>
    %cst_241 = arith.constant 0.353553385 : f32
    %606 = vector.broadcast %cst_241 : f32 to vector<8x8xf32>
    %607 = arith.mulf %605, %606 : vector<8x8xf32>
    %cst_242 = arith.constant 0.000000e+00 : f32
    %608 = vector.broadcast %cst_242 : f32 to vector<8x8xf32>
    %609 = arith.cmpf ogt, %601, %608 : vector<8x8xf32>
    %cst_243 = arith.constant -1.000000e+09 : f32
    %610 = vector.broadcast %cst_243 : f32 to vector<8x8xf32>
    %611 = arith.select %609, %607, %610 : vector<8x8xi1>, vector<8x8xf32>
    %cst_244 = arith.constant dense<0xFF800000> : vector<8xf32>
    %612 = vector.multi_reduction <maximumf>, %611, %cst_244 [1] : vector<8x8xf32> to vector<8xf32>
    %613 = vector.shape_cast %612 : vector<8xf32> to vector<8x1xf32>
    %614 = vector.broadcast %613 : vector<8x1xf32> to vector<8x8xf32>
    %615 = arith.subf %611, %614 : vector<8x8xf32>
    %616 = math.exp %615 : vector<8x8xf32>
    %cst_245 = arith.constant dense<0.000000e+00> : vector<8xf32>
    %617 = vector.multi_reduction <add>, %616, %cst_245 [1] : vector<8x8xf32> to vector<8xf32>
    %618 = vector.shape_cast %617 : vector<8xf32> to vector<8x1xf32>
    %619 = vector.broadcast %618 : vector<8x1xf32> to vector<8x8xf32>
    %620 = arith.divf %616, %619 : vector<8x8xf32>
    %cst_246 = arith.constant dense<0.000000e+00> : vector<8x8xf32>
    %621 = tpu.matmul %620, %604, %cst_246 {dimension_numbers = #tpu.dot_dimension_numbers<[1], [0], [0], [1], [0, 0, 1, 1], [], []>} : vector<8x8xf32>, vector<8x8xf32>, vector<8x8xf32> -> vector<8x8xf32>
    %622 = vector.extract_strided_slice %598 {offsets = [0, 8], sizes = [8, 8], strides = [1, 1]} : vector<16x32xf32> to vector<8x8xf32>
    %623 = vector.extract_strided_slice %599 {offsets = [0, 8], sizes = [8, 8], strides = [1, 1]} : vector<16x64xf32> to vector<8x8xf32>
    %624 = vector.extract_strided_slice %599 {offsets = [0, 40], sizes = [8, 8], strides = [1, 1]} : vector<16x64xf32> to vector<8x8xf32>
    %cst_247 = arith.constant dense<0.000000e+00> : vector<8x8xf32>
    %625 = tpu.matmul %622, %623, %cst_247 {dimension_numbers = #tpu.dot_dimension_numbers<[1], [1], [0], [0], [0, 0, 1, 0], [], []>} : vector<8x8xf32>, vector<8x8xf32>, vector<8x8xf32> -> vector<8x8xf32>
    %cst_248 = arith.constant 0.353553385 : f32
    %626 = vector.broadcast %cst_248 : f32 to vector<8x8xf32>
    %627 = arith.mulf %625, %626 : vector<8x8xf32>
    %cst_249 = arith.constant 0.000000e+00 : f32
    %628 = vector.broadcast %cst_249 : f32 to vector<8x8xf32>
    %629 = arith.cmpf ogt, %601, %628 : vector<8x8xf32>
    %cst_250 = arith.constant -1.000000e+09 : f32
    %630 = vector.broadcast %cst_250 : f32 to vector<8x8xf32>
    %631 = arith.select %629, %627, %630 : vector<8x8xi1>, vector<8x8xf32>
    %cst_251 = arith.constant dense<0xFF800000> : vector<8xf32>
    %632 = vector.multi_reduction <maximumf>, %631, %cst_251 [1] : vector<8x8xf32> to vector<8xf32>
    %633 = vector.shape_cast %632 : vector<8xf32> to vector<8x1xf32>
    %634 = vector.broadcast %633 : vector<8x1xf32> to vector<8x8xf32>
    %635 = arith.subf %631, %634 : vector<8x8xf32>
    %636 = math.exp %635 : vector<8x8xf32>
    %cst_252 = arith.constant dense<0.000000e+00> : vector<8xf32>
    %637 = vector.multi_reduction <add>, %636, %cst_252 [1] : vector<8x8xf32> to vector<8xf32>
    %638 = vector.shape_cast %637 : vector<8xf32> to vector<8x1xf32>
    %639 = vector.broadcast %638 : vector<8x1xf32> to vector<8x8xf32>
    %640 = arith.divf %636, %639 : vector<8x8xf32>
    %cst_253 = arith.constant dense<0.000000e+00> : vector<8x8xf32>
    %641 = tpu.matmul %640, %624, %cst_253 {dimension_numbers = #tpu.dot_dimension_numbers<[1], [0], [0], [1], [0, 0, 1, 1], [], []>} : vector<8x8xf32>, vector<8x8xf32>, vector<8x8xf32> -> vector<8x8xf32>
    %642 = vector.extract_strided_slice %598 {offsets = [0, 16], sizes = [8, 8], strides = [1, 1]} : vector<16x32xf32> to vector<8x8xf32>
    %643 = vector.extract_strided_slice %599 {offsets = [0, 16], sizes = [8, 8], strides = [1, 1]} : vector<16x64xf32> to vector<8x8xf32>
    %644 = vector.extract_strided_slice %599 {offsets = [0, 48], sizes = [8, 8], strides = [1, 1]} : vector<16x64xf32> to vector<8x8xf32>
    %cst_254 = arith.constant dense<0.000000e+00> : vector<8x8xf32>
    %645 = tpu.matmul %642, %643, %cst_254 {dimension_numbers = #tpu.dot_dimension_numbers<[1], [1], [0], [0], [0, 0, 1, 0], [], []>} : vector<8x8xf32>, vector<8x8xf32>, vector<8x8xf32> -> vector<8x8xf32>
    %cst_255 = arith.constant 0.353553385 : f32
    %646 = vector.broadcast %cst_255 : f32 to vector<8x8xf32>
    %647 = arith.mulf %645, %646 : vector<8x8xf32>
    %cst_256 = arith.constant 0.000000e+00 : f32
    %648 = vector.broadcast %cst_256 : f32 to vector<8x8xf32>
    %649 = arith.cmpf ogt, %601, %648 : vector<8x8xf32>
    %cst_257 = arith.constant -1.000000e+09 : f32
    %650 = vector.broadcast %cst_257 : f32 to vector<8x8xf32>
    %651 = arith.select %649, %647, %650 : vector<8x8xi1>, vector<8x8xf32>
    %cst_258 = arith.constant dense<0xFF800000> : vector<8xf32>
    %652 = vector.multi_reduction <maximumf>, %651, %cst_258 [1] : vector<8x8xf32> to vector<8xf32>
    %653 = vector.shape_cast %652 : vector<8xf32> to vector<8x1xf32>
    %654 = vector.broadcast %653 : vector<8x1xf32> to vector<8x8xf32>
    %655 = arith.subf %651, %654 : vector<8x8xf32>
    %656 = math.exp %655 : vector<8x8xf32>
    %cst_259 = arith.constant dense<0.000000e+00> : vector<8xf32>
    %657 = vector.multi_reduction <add>, %656, %cst_259 [1] : vector<8x8xf32> to vector<8xf32>
    %658 = vector.shape_cast %657 : vector<8xf32> to vector<8x1xf32>
    %659 = vector.broadcast %658 : vector<8x1xf32> to vector<8x8xf32>
    %660 = arith.divf %656, %659 : vector<8x8xf32>
    %cst_260 = arith.constant dense<0.000000e+00> : vector<8x8xf32>
    %661 = tpu.matmul %660, %644, %cst_260 {dimension_numbers = #tpu.dot_dimension_numbers<[1], [0], [0], [1], [0, 0, 1, 1], [], []>} : vector<8x8xf32>, vector<8x8xf32>, vector<8x8xf32> -> vector<8x8xf32>
    %662 = vector.extract_strided_slice %598 {offsets = [0, 24], sizes = [8, 8], strides = [1, 1]} : vector<16x32xf32> to vector<8x8xf32>
    %663 = vector.extract_strided_slice %599 {offsets = [0, 24], sizes = [8, 8], strides = [1, 1]} : vector<16x64xf32> to vector<8x8xf32>
    %664 = vector.extract_strided_slice %599 {offsets = [0, 56], sizes = [8, 8], strides = [1, 1]} : vector<16x64xf32> to vector<8x8xf32>
    %cst_261 = arith.constant dense<0.000000e+00> : vector<8x8xf32>
    %665 = tpu.matmul %662, %663, %cst_261 {dimension_numbers = #tpu.dot_dimension_numbers<[1], [1], [0], [0], [0, 0, 1, 0], [], []>} : vector<8x8xf32>, vector<8x8xf32>, vector<8x8xf32> -> vector<8x8xf32>
    %cst_262 = arith.constant 0.353553385 : f32
    %666 = vector.broadcast %cst_262 : f32 to vector<8x8xf32>
    %667 = arith.mulf %665, %666 : vector<8x8xf32>
    %cst_263 = arith.constant 0.000000e+00 : f32
    %668 = vector.broadcast %cst_263 : f32 to vector<8x8xf32>
    %669 = arith.cmpf ogt, %601, %668 : vector<8x8xf32>
    %cst_264 = arith.constant -1.000000e+09 : f32
    %670 = vector.broadcast %cst_264 : f32 to vector<8x8xf32>
    %671 = arith.select %669, %667, %670 : vector<8x8xi1>, vector<8x8xf32>
    %cst_265 = arith.constant dense<0xFF800000> : vector<8xf32>
    %672 = vector.multi_reduction <maximumf>, %671, %cst_265 [1] : vector<8x8xf32> to vector<8xf32>
    %673 = vector.shape_cast %672 : vector<8xf32> to vector<8x1xf32>
    %674 = vector.broadcast %673 : vector<8x1xf32> to vector<8x8xf32>
    %675 = arith.subf %671, %674 : vector<8x8xf32>
    %676 = math.exp %675 : vector<8x8xf32>
    %cst_266 = arith.constant dense<0.000000e+00> : vector<8xf32>
    %677 = vector.multi_reduction <add>, %676, %cst_266 [1] : vector<8x8xf32> to vector<8xf32>
    %678 = vector.shape_cast %677 : vector<8xf32> to vector<8x1xf32>
    %679 = vector.broadcast %678 : vector<8x1xf32> to vector<8x8xf32>
    %680 = arith.divf %676, %679 : vector<8x8xf32>
    %cst_267 = arith.constant dense<0.000000e+00> : vector<8x8xf32>
    %681 = tpu.matmul %680, %664, %cst_267 {dimension_numbers = #tpu.dot_dimension_numbers<[1], [0], [0], [1], [0, 0, 1, 1], [], []>} : vector<8x8xf32>, vector<8x8xf32>, vector<8x8xf32> -> vector<8x8xf32>
    %682 = tpu.concatenate %621, %641, %661, %681 in 1 : vector<8x8xf32>, vector<8x8xf32>, vector<8x8xf32>, vector<8x8xf32> -> vector<8x32xf32>
    %c1_268 = arith.constant 1 : index
    %c0_269 = arith.constant 0 : index
    %c0_270 = arith.constant 0 : index
    %683 = vector.load %arg3[%c1_268, %c0_269, %c0_270] : memref<2x8x8xf32, #tpu.memory_space<vmem>>, vector<1x8x8xf32>
    %684 = vector.shape_cast %683 : vector<1x8x8xf32> to vector<8x8xf32>
    %685 = vector.extract_strided_slice %598 {offsets = [8, 0], sizes = [8, 8], strides = [1, 1]} : vector<16x32xf32> to vector<8x8xf32>
    %686 = vector.extract_strided_slice %599 {offsets = [8, 0], sizes = [8, 8], strides = [1, 1]} : vector<16x64xf32> to vector<8x8xf32>
    %687 = vector.extract_strided_slice %599 {offsets = [8, 32], sizes = [8, 8], strides = [1, 1]} : vector<16x64xf32> to vector<8x8xf32>
    %cst_271 = arith.constant dense<0.000000e+00> : vector<8x8xf32>
    %688 = tpu.matmul %685, %686, %cst_271 {dimension_numbers = #tpu.dot_dimension_numbers<[1], [1], [0], [0], [0, 0, 1, 0], [], []>} : vector<8x8xf32>, vector<8x8xf32>, vector<8x8xf32> -> vector<8x8xf32>
    %cst_272 = arith.constant 0.353553385 : f32
    %689 = vector.broadcast %cst_272 : f32 to vector<8x8xf32>
    %690 = arith.mulf %688, %689 : vector<8x8xf32>
    %cst_273 = arith.constant 0.000000e+00 : f32
    %691 = vector.broadcast %cst_273 : f32 to vector<8x8xf32>
    %692 = arith.cmpf ogt, %684, %691 : vector<8x8xf32>
    %cst_274 = arith.constant -1.000000e+09 : f32
    %693 = vector.broadcast %cst_274 : f32 to vector<8x8xf32>
    %694 = arith.select %692, %690, %693 : vector<8x8xi1>, vector<8x8xf32>
    %cst_275 = arith.constant dense<0xFF800000> : vector<8xf32>
    %695 = vector.multi_reduction <maximumf>, %694, %cst_275 [1] : vector<8x8xf32> to vector<8xf32>
    %696 = vector.shape_cast %695 : vector<8xf32> to vector<8x1xf32>
    %697 = vector.broadcast %696 : vector<8x1xf32> to vector<8x8xf32>
    %698 = arith.subf %694, %697 : vector<8x8xf32>
    %699 = math.exp %698 : vector<8x8xf32>
    %cst_276 = arith.constant dense<0.000000e+00> : vector<8xf32>
    %700 = vector.multi_reduction <add>, %699, %cst_276 [1] : vector<8x8xf32> to vector<8xf32>
    %701 = vector.shape_cast %700 : vector<8xf32> to vector<8x1xf32>
    %702 = vector.broadcast %701 : vector<8x1xf32> to vector<8x8xf32>
    %703 = arith.divf %699, %702 : vector<8x8xf32>
    %cst_277 = arith.constant dense<0.000000e+00> : vector<8x8xf32>
    %704 = tpu.matmul %703, %687, %cst_277 {dimension_numbers = #tpu.dot_dimension_numbers<[1], [0], [0], [1], [0, 0, 1, 1], [], []>} : vector<8x8xf32>, vector<8x8xf32>, vector<8x8xf32> -> vector<8x8xf32>
    %705 = vector.extract_strided_slice %598 {offsets = [8, 8], sizes = [8, 8], strides = [1, 1]} : vector<16x32xf32> to vector<8x8xf32>
    %706 = vector.extract_strided_slice %599 {offsets = [8, 8], sizes = [8, 8], strides = [1, 1]} : vector<16x64xf32> to vector<8x8xf32>
    %707 = vector.extract_strided_slice %599 {offsets = [8, 40], sizes = [8, 8], strides = [1, 1]} : vector<16x64xf32> to vector<8x8xf32>
    %cst_278 = arith.constant dense<0.000000e+00> : vector<8x8xf32>
    %708 = tpu.matmul %705, %706, %cst_278 {dimension_numbers = #tpu.dot_dimension_numbers<[1], [1], [0], [0], [0, 0, 1, 0], [], []>} : vector<8x8xf32>, vector<8x8xf32>, vector<8x8xf32> -> vector<8x8xf32>
    %cst_279 = arith.constant 0.353553385 : f32
    %709 = vector.broadcast %cst_279 : f32 to vector<8x8xf32>
    %710 = arith.mulf %708, %709 : vector<8x8xf32>
    %cst_280 = arith.constant 0.000000e+00 : f32
    %711 = vector.broadcast %cst_280 : f32 to vector<8x8xf32>
    %712 = arith.cmpf ogt, %684, %711 : vector<8x8xf32>
    %cst_281 = arith.constant -1.000000e+09 : f32
    %713 = vector.broadcast %cst_281 : f32 to vector<8x8xf32>
    %714 = arith.select %712, %710, %713 : vector<8x8xi1>, vector<8x8xf32>
    %cst_282 = arith.constant dense<0xFF800000> : vector<8xf32>
    %715 = vector.multi_reduction <maximumf>, %714, %cst_282 [1] : vector<8x8xf32> to vector<8xf32>
    %716 = vector.shape_cast %715 : vector<8xf32> to vector<8x1xf32>
    %717 = vector.broadcast %716 : vector<8x1xf32> to vector<8x8xf32>
    %718 = arith.subf %714, %717 : vector<8x8xf32>
    %719 = math.exp %718 : vector<8x8xf32>
    %cst_283 = arith.constant dense<0.000000e+00> : vector<8xf32>
    %720 = vector.multi_reduction <add>, %719, %cst_283 [1] : vector<8x8xf32> to vector<8xf32>
    %721 = vector.shape_cast %720 : vector<8xf32> to vector<8x1xf32>
    %722 = vector.broadcast %721 : vector<8x1xf32> to vector<8x8xf32>
    %723 = arith.divf %719, %722 : vector<8x8xf32>
    %cst_284 = arith.constant dense<0.000000e+00> : vector<8x8xf32>
    %724 = tpu.matmul %723, %707, %cst_284 {dimension_numbers = #tpu.dot_dimension_numbers<[1], [0], [0], [1], [0, 0, 1, 1], [], []>} : vector<8x8xf32>, vector<8x8xf32>, vector<8x8xf32> -> vector<8x8xf32>
    %725 = vector.extract_strided_slice %598 {offsets = [8, 16], sizes = [8, 8], strides = [1, 1]} : vector<16x32xf32> to vector<8x8xf32>
    %726 = vector.extract_strided_slice %599 {offsets = [8, 16], sizes = [8, 8], strides = [1, 1]} : vector<16x64xf32> to vector<8x8xf32>
    %727 = vector.extract_strided_slice %599 {offsets = [8, 48], sizes = [8, 8], strides = [1, 1]} : vector<16x64xf32> to vector<8x8xf32>
    %cst_285 = arith.constant dense<0.000000e+00> : vector<8x8xf32>
    %728 = tpu.matmul %725, %726, %cst_285 {dimension_numbers = #tpu.dot_dimension_numbers<[1], [1], [0], [0], [0, 0, 1, 0], [], []>} : vector<8x8xf32>, vector<8x8xf32>, vector<8x8xf32> -> vector<8x8xf32>
    %cst_286 = arith.constant 0.353553385 : f32
    %729 = vector.broadcast %cst_286 : f32 to vector<8x8xf32>
    %730 = arith.mulf %728, %729 : vector<8x8xf32>
    %cst_287 = arith.constant 0.000000e+00 : f32
    %731 = vector.broadcast %cst_287 : f32 to vector<8x8xf32>
    %732 = arith.cmpf ogt, %684, %731 : vector<8x8xf32>
    %cst_288 = arith.constant -1.000000e+09 : f32
    %733 = vector.broadcast %cst_288 : f32 to vector<8x8xf32>
    %734 = arith.select %732, %730, %733 : vector<8x8xi1>, vector<8x8xf32>
    %cst_289 = arith.constant dense<0xFF800000> : vector<8xf32>
    %735 = vector.multi_reduction <maximumf>, %734, %cst_289 [1] : vector<8x8xf32> to vector<8xf32>
    %736 = vector.shape_cast %735 : vector<8xf32> to vector<8x1xf32>
    %737 = vector.broadcast %736 : vector<8x1xf32> to vector<8x8xf32>
    %738 = arith.subf %734, %737 : vector<8x8xf32>
    %739 = math.exp %738 : vector<8x8xf32>
    %cst_290 = arith.constant dense<0.000000e+00> : vector<8xf32>
    %740 = vector.multi_reduction <add>, %739, %cst_290 [1] : vector<8x8xf32> to vector<8xf32>
    %741 = vector.shape_cast %740 : vector<8xf32> to vector<8x1xf32>
    %742 = vector.broadcast %741 : vector<8x1xf32> to vector<8x8xf32>
    %743 = arith.divf %739, %742 : vector<8x8xf32>
    %cst_291 = arith.constant dense<0.000000e+00> : vector<8x8xf32>
    %744 = tpu.matmul %743, %727, %cst_291 {dimension_numbers = #tpu.dot_dimension_numbers<[1], [0], [0], [1], [0, 0, 1, 1], [], []>} : vector<8x8xf32>, vector<8x8xf32>, vector<8x8xf32> -> vector<8x8xf32>
    %745 = vector.extract_strided_slice %598 {offsets = [8, 24], sizes = [8, 8], strides = [1, 1]} : vector<16x32xf32> to vector<8x8xf32>
    %746 = vector.extract_strided_slice %599 {offsets = [8, 24], sizes = [8, 8], strides = [1, 1]} : vector<16x64xf32> to vector<8x8xf32>
    %747 = vector.extract_strided_slice %599 {offsets = [8, 56], sizes = [8, 8], strides = [1, 1]} : vector<16x64xf32> to vector<8x8xf32>
    %cst_292 = arith.constant dense<0.000000e+00> : vector<8x8xf32>
    %748 = tpu.matmul %745, %746, %cst_292 {dimension_numbers = #tpu.dot_dimension_numbers<[1], [1], [0], [0], [0, 0, 1, 0], [], []>} : vector<8x8xf32>, vector<8x8xf32>, vector<8x8xf32> -> vector<8x8xf32>
    %cst_293 = arith.constant 0.353553385 : f32
    %749 = vector.broadcast %cst_293 : f32 to vector<8x8xf32>
    %750 = arith.mulf %748, %749 : vector<8x8xf32>
    %cst_294 = arith.constant 0.000000e+00 : f32
    %751 = vector.broadcast %cst_294 : f32 to vector<8x8xf32>
    %752 = arith.cmpf ogt, %684, %751 : vector<8x8xf32>
    %cst_295 = arith.constant -1.000000e+09 : f32
    %753 = vector.broadcast %cst_295 : f32 to vector<8x8xf32>
    %754 = arith.select %752, %750, %753 : vector<8x8xi1>, vector<8x8xf32>
    %cst_296 = arith.constant dense<0xFF800000> : vector<8xf32>
    %755 = vector.multi_reduction <maximumf>, %754, %cst_296 [1] : vector<8x8xf32> to vector<8xf32>
    %756 = vector.shape_cast %755 : vector<8xf32> to vector<8x1xf32>
    %757 = vector.broadcast %756 : vector<8x1xf32> to vector<8x8xf32>
    %758 = arith.subf %754, %757 : vector<8x8xf32>
    %759 = math.exp %758 : vector<8x8xf32>
    %cst_297 = arith.constant dense<0.000000e+00> : vector<8xf32>
    %760 = vector.multi_reduction <add>, %759, %cst_297 [1] : vector<8x8xf32> to vector<8xf32>
    %761 = vector.shape_cast %760 : vector<8xf32> to vector<8x1xf32>
    %762 = vector.broadcast %761 : vector<8x1xf32> to vector<8x8xf32>
    %763 = arith.divf %759, %762 : vector<8x8xf32>
    %cst_298 = arith.constant dense<0.000000e+00> : vector<8x8xf32>
    %764 = tpu.matmul %763, %747, %cst_298 {dimension_numbers = #tpu.dot_dimension_numbers<[1], [0], [0], [1], [0, 0, 1, 1], [], []>} : vector<8x8xf32>, vector<8x8xf32>, vector<8x8xf32> -> vector<8x8xf32>
    %765 = tpu.concatenate %704, %724, %744, %764 in 1 : vector<8x8xf32>, vector<8x8xf32>, vector<8x8xf32>, vector<8x8xf32> -> vector<8x32xf32>
    %766 = tpu.concatenate %682, %765 in 0 : vector<8x32xf32>, vector<8x32xf32> -> vector<16x32xf32>
    %cst_299 = arith.constant dense<0.000000e+00> : vector<16x32xf32>
    %767 = tpu.matmul %766, %592, %cst_299 {dimension_numbers = #tpu.dot_dimension_numbers<[1], [0], [0], [1], [0, 0, 1, 1], [], []>} : vector<16x32xf32>, vector<32x32xf32>, vector<16x32xf32> -> vector<16x32xf32>
    %768 = vector.broadcast %594 : vector<1x32xf32> to vector<16x32xf32>
    %769 = arith.addf %767, %768 : vector<16x32xf32>
    %770 = arith.addf %560, %769 : vector<16x32xf32>
    %771 = vector.extract_strided_slice %562 {offsets = [2, 0], sizes = [1, 32], strides = [1, 1]} : vector<6x32xf32> to vector<1x32xf32>
    %772 = vector.extract_strided_slice %562 {offsets = [3, 0], sizes = [1, 32], strides = [1, 1]} : vector<6x32xf32> to vector<1x32xf32>
    %cst_300 = arith.constant dense<0.000000e+00> : vector<16xf32>
    %773 = vector.multi_reduction <add>, %770, %cst_300 [1] : vector<16x32xf32> to vector<16xf32>
    %774 = vector.shape_cast %773 : vector<16xf32> to vector<16x1xf32>
    %cst_301 = arith.constant 3.200000e+01 : f32
    %775 = vector.broadcast %cst_301 : f32 to vector<16x1xf32>
    %776 = arith.divf %774, %775 : vector<16x1xf32>
    %777 = vector.broadcast %776 : vector<16x1xf32> to vector<16x32xf32>
    %778 = arith.subf %770, %777 : vector<16x32xf32>
    %779 = arith.mulf %778, %778 : vector<16x32xf32>
    %cst_302 = arith.constant dense<0.000000e+00> : vector<16xf32>
    %780 = vector.multi_reduction <add>, %779, %cst_302 [1] : vector<16x32xf32> to vector<16xf32>
    %781 = vector.shape_cast %780 : vector<16xf32> to vector<16x1xf32>
    %cst_303 = arith.constant 0.0322580636 : f32
    %782 = vector.broadcast %cst_303 : f32 to vector<16x1xf32>
    %783 = arith.mulf %781, %782 : vector<16x1xf32>
    %784 = math.sqrt %783 : vector<16x1xf32>
    %785 = vector.broadcast %776 : vector<16x1xf32> to vector<16x32xf32>
    %786 = arith.subf %770, %785 : vector<16x32xf32>
    %787 = vector.broadcast %771 : vector<1x32xf32> to vector<16x32xf32>
    %788 = arith.mulf %787, %786 : vector<16x32xf32>
    %cst_304 = arith.constant 9.99999997E-7 : f32
    %789 = vector.broadcast %cst_304 : f32 to vector<16x1xf32>
    %790 = arith.addf %784, %789 : vector<16x1xf32>
    %791 = vector.broadcast %790 : vector<16x1xf32> to vector<16x32xf32>
    %792 = arith.divf %788, %791 : vector<16x32xf32>
    %793 = vector.broadcast %772 : vector<1x32xf32> to vector<16x32xf32>
    %794 = arith.addf %792, %793 : vector<16x32xf32>
    %c0_305 = arith.constant 0 : index
    %c0_306 = arith.constant 0 : index
    %c0_307 = arith.constant 0 : index
    %795 = vector.load %arg17[%c0_305, %c0_306, %c0_307] : memref<2x32x96xf32, #tpu.memory_space<vmem>>, vector<1x32x96xf32>
    %796 = vector.shape_cast %795 : vector<1x32x96xf32> to vector<32x96xf32>
    %c0_308 = arith.constant 0 : index
    %c0_309 = arith.constant 0 : index
    %c0_310 = arith.constant 0 : index
    %797 = vector.load %arg18[%c0_308, %c0_309, %c0_310] : memref<2x1x96xf32, #tpu.memory_space<vmem>>, vector<1x1x96xf32>
    %798 = vector.shape_cast %797 : vector<1x1x96xf32> to vector<1x96xf32>
    %c0_311 = arith.constant 0 : index
    %c0_312 = arith.constant 0 : index
    %c0_313 = arith.constant 0 : index
    %799 = vector.load %arg19[%c0_311, %c0_312, %c0_313] : memref<2x32x32xf32, #tpu.memory_space<vmem>>, vector<1x32x32xf32>
    %800 = vector.shape_cast %799 : vector<1x32x32xf32> to vector<32x32xf32>
    %c0_314 = arith.constant 0 : index
    %c0_315 = arith.constant 0 : index
    %c0_316 = arith.constant 0 : index
    %801 = vector.load %arg20[%c0_314, %c0_315, %c0_316] : memref<2x1x32xf32, #tpu.memory_space<vmem>>, vector<1x1x32xf32>
    %802 = vector.shape_cast %801 : vector<1x1x32xf32> to vector<1x32xf32>
    %803 = vector.extract_strided_slice %796 {offsets = [0, 0], sizes = [32, 32], strides = [1, 1]} : vector<32x96xf32> to vector<32x32xf32>
    %804 = vector.extract_strided_slice %798 {offsets = [0, 0], sizes = [1, 32], strides = [1, 1]} : vector<1x96xf32> to vector<1x32xf32>
    %cst_317 = arith.constant dense<0.000000e+00> : vector<16x32xf32>
    %805 = tpu.matmul %794, %803, %cst_317 {dimension_numbers = #tpu.dot_dimension_numbers<[1], [0], [0], [1], [0, 0, 1, 1], [], []>} : vector<16x32xf32>, vector<32x32xf32>, vector<16x32xf32> -> vector<16x32xf32>
    %806 = vector.broadcast %804 : vector<1x32xf32> to vector<16x32xf32>
    %807 = arith.addf %805, %806 : vector<16x32xf32>
    %808 = vector.extract_strided_slice %796 {offsets = [0, 32], sizes = [32, 64], strides = [1, 1]} : vector<32x96xf32> to vector<32x64xf32>
    %809 = vector.extract_strided_slice %798 {offsets = [0, 32], sizes = [1, 64], strides = [1, 1]} : vector<1x96xf32> to vector<1x64xf32>
    %cst_318 = arith.constant dense<0.000000e+00> : vector<16x64xf32>
    %810 = tpu.matmul %559, %808, %cst_318 {dimension_numbers = #tpu.dot_dimension_numbers<[1], [0], [0], [1], [0, 0, 1, 1], [], []>} : vector<16x32xf32>, vector<32x64xf32>, vector<16x64xf32> -> vector<16x64xf32>
    %811 = vector.broadcast %809 : vector<1x64xf32> to vector<16x64xf32>
    %812 = arith.addf %810, %811 : vector<16x64xf32>
    %c0_319 = arith.constant 0 : index
    %c0_320 = arith.constant 0 : index
    %c0_321 = arith.constant 0 : index
    %813 = vector.load %arg2[%c0_319, %c0_320, %c0_321] : memref<2x1x8xf32, #tpu.memory_space<vmem>>, vector<1x1x8xf32>
    %814 = vector.shape_cast %813 : vector<1x1x8xf32> to vector<1x8xf32>
    %815 = vector.extract_strided_slice %807 {offsets = [0, 0], sizes = [8, 8], strides = [1, 1]} : vector<16x32xf32> to vector<8x8xf32>
    %816 = vector.extract_strided_slice %812 {offsets = [0, 0], sizes = [8, 8], strides = [1, 1]} : vector<16x64xf32> to vector<8x8xf32>
    %817 = vector.extract_strided_slice %812 {offsets = [0, 32], sizes = [8, 8], strides = [1, 1]} : vector<16x64xf32> to vector<8x8xf32>
    %cst_322 = arith.constant dense<0.000000e+00> : vector<8x8xf32>
    %818 = tpu.matmul %815, %816, %cst_322 {dimension_numbers = #tpu.dot_dimension_numbers<[1], [1], [0], [0], [0, 0, 1, 0], [], []>} : vector<8x8xf32>, vector<8x8xf32>, vector<8x8xf32> -> vector<8x8xf32>
    %cst_323 = arith.constant 0.353553385 : f32
    %819 = vector.broadcast %cst_323 : f32 to vector<8x8xf32>
    %820 = arith.mulf %818, %819 : vector<8x8xf32>
    %cst_324 = arith.constant 0.000000e+00 : f32
    %821 = vector.broadcast %cst_324 : f32 to vector<1x8xf32>
    %822 = arith.cmpf ogt, %814, %821 : vector<1x8xf32>
    %cst_325 = arith.constant -1.000000e+09 : f32
    %823 = vector.shape_cast %822 : vector<1x8xi1> to vector<1x8xi1>
    %824 = vector.broadcast %823 : vector<1x8xi1> to vector<8x8xi1>
    %825 = vector.broadcast %cst_325 : f32 to vector<8x8xf32>
    %826 = arith.select %824, %820, %825 : vector<8x8xi1>, vector<8x8xf32>
    %cst_326 = arith.constant dense<0xFF800000> : vector<8xf32>
    %827 = vector.multi_reduction <maximumf>, %826, %cst_326 [1] : vector<8x8xf32> to vector<8xf32>
    %828 = vector.shape_cast %827 : vector<8xf32> to vector<8x1xf32>
    %829 = vector.broadcast %828 : vector<8x1xf32> to vector<8x8xf32>
    %830 = arith.subf %826, %829 : vector<8x8xf32>
    %831 = math.exp %830 : vector<8x8xf32>
    %cst_327 = arith.constant dense<0.000000e+00> : vector<8xf32>
    %832 = vector.multi_reduction <add>, %831, %cst_327 [1] : vector<8x8xf32> to vector<8xf32>
    %833 = vector.shape_cast %832 : vector<8xf32> to vector<8x1xf32>
    %834 = vector.broadcast %833 : vector<8x1xf32> to vector<8x8xf32>
    %835 = arith.divf %831, %834 : vector<8x8xf32>
    %cst_328 = arith.constant dense<0.000000e+00> : vector<8x8xf32>
    %836 = tpu.matmul %835, %817, %cst_328 {dimension_numbers = #tpu.dot_dimension_numbers<[1], [0], [0], [1], [0, 0, 1, 1], [], []>} : vector<8x8xf32>, vector<8x8xf32>, vector<8x8xf32> -> vector<8x8xf32>
    %837 = vector.extract_strided_slice %807 {offsets = [0, 8], sizes = [8, 8], strides = [1, 1]} : vector<16x32xf32> to vector<8x8xf32>
    %838 = vector.extract_strided_slice %812 {offsets = [0, 8], sizes = [8, 8], strides = [1, 1]} : vector<16x64xf32> to vector<8x8xf32>
    %839 = vector.extract_strided_slice %812 {offsets = [0, 40], sizes = [8, 8], strides = [1, 1]} : vector<16x64xf32> to vector<8x8xf32>
    %cst_329 = arith.constant dense<0.000000e+00> : vector<8x8xf32>
    %840 = tpu.matmul %837, %838, %cst_329 {dimension_numbers = #tpu.dot_dimension_numbers<[1], [1], [0], [0], [0, 0, 1, 0], [], []>} : vector<8x8xf32>, vector<8x8xf32>, vector<8x8xf32> -> vector<8x8xf32>
    %cst_330 = arith.constant 0.353553385 : f32
    %841 = vector.broadcast %cst_330 : f32 to vector<8x8xf32>
    %842 = arith.mulf %840, %841 : vector<8x8xf32>
    %cst_331 = arith.constant 0.000000e+00 : f32
    %843 = vector.broadcast %cst_331 : f32 to vector<1x8xf32>
    %844 = arith.cmpf ogt, %814, %843 : vector<1x8xf32>
    %cst_332 = arith.constant -1.000000e+09 : f32
    %845 = vector.shape_cast %844 : vector<1x8xi1> to vector<1x8xi1>
    %846 = vector.broadcast %845 : vector<1x8xi1> to vector<8x8xi1>
    %847 = vector.broadcast %cst_332 : f32 to vector<8x8xf32>
    %848 = arith.select %846, %842, %847 : vector<8x8xi1>, vector<8x8xf32>
    %cst_333 = arith.constant dense<0xFF800000> : vector<8xf32>
    %849 = vector.multi_reduction <maximumf>, %848, %cst_333 [1] : vector<8x8xf32> to vector<8xf32>
    %850 = vector.shape_cast %849 : vector<8xf32> to vector<8x1xf32>
    %851 = vector.broadcast %850 : vector<8x1xf32> to vector<8x8xf32>
    %852 = arith.subf %848, %851 : vector<8x8xf32>
    %853 = math.exp %852 : vector<8x8xf32>
    %cst_334 = arith.constant dense<0.000000e+00> : vector<8xf32>
    %854 = vector.multi_reduction <add>, %853, %cst_334 [1] : vector<8x8xf32> to vector<8xf32>
    %855 = vector.shape_cast %854 : vector<8xf32> to vector<8x1xf32>
    %856 = vector.broadcast %855 : vector<8x1xf32> to vector<8x8xf32>
    %857 = arith.divf %853, %856 : vector<8x8xf32>
    %cst_335 = arith.constant dense<0.000000e+00> : vector<8x8xf32>
    %858 = tpu.matmul %857, %839, %cst_335 {dimension_numbers = #tpu.dot_dimension_numbers<[1], [0], [0], [1], [0, 0, 1, 1], [], []>} : vector<8x8xf32>, vector<8x8xf32>, vector<8x8xf32> -> vector<8x8xf32>
    %859 = vector.extract_strided_slice %807 {offsets = [0, 16], sizes = [8, 8], strides = [1, 1]} : vector<16x32xf32> to vector<8x8xf32>
    %860 = vector.extract_strided_slice %812 {offsets = [0, 16], sizes = [8, 8], strides = [1, 1]} : vector<16x64xf32> to vector<8x8xf32>
    %861 = vector.extract_strided_slice %812 {offsets = [0, 48], sizes = [8, 8], strides = [1, 1]} : vector<16x64xf32> to vector<8x8xf32>
    %cst_336 = arith.constant dense<0.000000e+00> : vector<8x8xf32>
    %862 = tpu.matmul %859, %860, %cst_336 {dimension_numbers = #tpu.dot_dimension_numbers<[1], [1], [0], [0], [0, 0, 1, 0], [], []>} : vector<8x8xf32>, vector<8x8xf32>, vector<8x8xf32> -> vector<8x8xf32>
    %cst_337 = arith.constant 0.353553385 : f32
    %863 = vector.broadcast %cst_337 : f32 to vector<8x8xf32>
    %864 = arith.mulf %862, %863 : vector<8x8xf32>
    %cst_338 = arith.constant 0.000000e+00 : f32
    %865 = vector.broadcast %cst_338 : f32 to vector<1x8xf32>
    %866 = arith.cmpf ogt, %814, %865 : vector<1x8xf32>
    %cst_339 = arith.constant -1.000000e+09 : f32
    %867 = vector.shape_cast %866 : vector<1x8xi1> to vector<1x8xi1>
    %868 = vector.broadcast %867 : vector<1x8xi1> to vector<8x8xi1>
    %869 = vector.broadcast %cst_339 : f32 to vector<8x8xf32>
    %870 = arith.select %868, %864, %869 : vector<8x8xi1>, vector<8x8xf32>
    %cst_340 = arith.constant dense<0xFF800000> : vector<8xf32>
    %871 = vector.multi_reduction <maximumf>, %870, %cst_340 [1] : vector<8x8xf32> to vector<8xf32>
    %872 = vector.shape_cast %871 : vector<8xf32> to vector<8x1xf32>
    %873 = vector.broadcast %872 : vector<8x1xf32> to vector<8x8xf32>
    %874 = arith.subf %870, %873 : vector<8x8xf32>
    %875 = math.exp %874 : vector<8x8xf32>
    %cst_341 = arith.constant dense<0.000000e+00> : vector<8xf32>
    %876 = vector.multi_reduction <add>, %875, %cst_341 [1] : vector<8x8xf32> to vector<8xf32>
    %877 = vector.shape_cast %876 : vector<8xf32> to vector<8x1xf32>
    %878 = vector.broadcast %877 : vector<8x1xf32> to vector<8x8xf32>
    %879 = arith.divf %875, %878 : vector<8x8xf32>
    %cst_342 = arith.constant dense<0.000000e+00> : vector<8x8xf32>
    %880 = tpu.matmul %879, %861, %cst_342 {dimension_numbers = #tpu.dot_dimension_numbers<[1], [0], [0], [1], [0, 0, 1, 1], [], []>} : vector<8x8xf32>, vector<8x8xf32>, vector<8x8xf32> -> vector<8x8xf32>
    %881 = vector.extract_strided_slice %807 {offsets = [0, 24], sizes = [8, 8], strides = [1, 1]} : vector<16x32xf32> to vector<8x8xf32>
    %882 = vector.extract_strided_slice %812 {offsets = [0, 24], sizes = [8, 8], strides = [1, 1]} : vector<16x64xf32> to vector<8x8xf32>
    %883 = vector.extract_strided_slice %812 {offsets = [0, 56], sizes = [8, 8], strides = [1, 1]} : vector<16x64xf32> to vector<8x8xf32>
    %cst_343 = arith.constant dense<0.000000e+00> : vector<8x8xf32>
    %884 = tpu.matmul %881, %882, %cst_343 {dimension_numbers = #tpu.dot_dimension_numbers<[1], [1], [0], [0], [0, 0, 1, 0], [], []>} : vector<8x8xf32>, vector<8x8xf32>, vector<8x8xf32> -> vector<8x8xf32>
    %cst_344 = arith.constant 0.353553385 : f32
    %885 = vector.broadcast %cst_344 : f32 to vector<8x8xf32>
    %886 = arith.mulf %884, %885 : vector<8x8xf32>
    %cst_345 = arith.constant 0.000000e+00 : f32
    %887 = vector.broadcast %cst_345 : f32 to vector<1x8xf32>
    %888 = arith.cmpf ogt, %814, %887 : vector<1x8xf32>
    %cst_346 = arith.constant -1.000000e+09 : f32
    %889 = vector.shape_cast %888 : vector<1x8xi1> to vector<1x8xi1>
    %890 = vector.broadcast %889 : vector<1x8xi1> to vector<8x8xi1>
    %891 = vector.broadcast %cst_346 : f32 to vector<8x8xf32>
    %892 = arith.select %890, %886, %891 : vector<8x8xi1>, vector<8x8xf32>
    %cst_347 = arith.constant dense<0xFF800000> : vector<8xf32>
    %893 = vector.multi_reduction <maximumf>, %892, %cst_347 [1] : vector<8x8xf32> to vector<8xf32>
    %894 = vector.shape_cast %893 : vector<8xf32> to vector<8x1xf32>
    %895 = vector.broadcast %894 : vector<8x1xf32> to vector<8x8xf32>
    %896 = arith.subf %892, %895 : vector<8x8xf32>
    %897 = math.exp %896 : vector<8x8xf32>
    %cst_348 = arith.constant dense<0.000000e+00> : vector<8xf32>
    %898 = vector.multi_reduction <add>, %897, %cst_348 [1] : vector<8x8xf32> to vector<8xf32>
    %899 = vector.shape_cast %898 : vector<8xf32> to vector<8x1xf32>
    %900 = vector.broadcast %899 : vector<8x1xf32> to vector<8x8xf32>
    %901 = arith.divf %897, %900 : vector<8x8xf32>
    %cst_349 = arith.constant dense<0.000000e+00> : vector<8x8xf32>
    %902 = tpu.matmul %901, %883, %cst_349 {dimension_numbers = #tpu.dot_dimension_numbers<[1], [0], [0], [1], [0, 0, 1, 1], [], []>} : vector<8x8xf32>, vector<8x8xf32>, vector<8x8xf32> -> vector<8x8xf32>
    %903 = tpu.concatenate %836, %858, %880, %902 in 1 : vector<8x8xf32>, vector<8x8xf32>, vector<8x8xf32>, vector<8x8xf32> -> vector<8x32xf32>
    %c1_350 = arith.constant 1 : index
    %c0_351 = arith.constant 0 : index
    %c0_352 = arith.constant 0 : index
    %904 = vector.load %arg2[%c1_350, %c0_351, %c0_352] : memref<2x1x8xf32, #tpu.memory_space<vmem>>, vector<1x1x8xf32>
    %905 = vector.shape_cast %904 : vector<1x1x8xf32> to vector<1x8xf32>
    %906 = vector.extract_strided_slice %807 {offsets = [8, 0], sizes = [8, 8], strides = [1, 1]} : vector<16x32xf32> to vector<8x8xf32>
    %907 = vector.extract_strided_slice %812 {offsets = [8, 0], sizes = [8, 8], strides = [1, 1]} : vector<16x64xf32> to vector<8x8xf32>
    %908 = vector.extract_strided_slice %812 {offsets = [8, 32], sizes = [8, 8], strides = [1, 1]} : vector<16x64xf32> to vector<8x8xf32>
    %cst_353 = arith.constant dense<0.000000e+00> : vector<8x8xf32>
    %909 = tpu.matmul %906, %907, %cst_353 {dimension_numbers = #tpu.dot_dimension_numbers<[1], [1], [0], [0], [0, 0, 1, 0], [], []>} : vector<8x8xf32>, vector<8x8xf32>, vector<8x8xf32> -> vector<8x8xf32>
    %cst_354 = arith.constant 0.353553385 : f32
    %910 = vector.broadcast %cst_354 : f32 to vector<8x8xf32>
    %911 = arith.mulf %909, %910 : vector<8x8xf32>
    %cst_355 = arith.constant 0.000000e+00 : f32
    %912 = vector.broadcast %cst_355 : f32 to vector<1x8xf32>
    %913 = arith.cmpf ogt, %905, %912 : vector<1x8xf32>
    %cst_356 = arith.constant -1.000000e+09 : f32
    %914 = vector.shape_cast %913 : vector<1x8xi1> to vector<1x8xi1>
    %915 = vector.broadcast %914 : vector<1x8xi1> to vector<8x8xi1>
    %916 = vector.broadcast %cst_356 : f32 to vector<8x8xf32>
    %917 = arith.select %915, %911, %916 : vector<8x8xi1>, vector<8x8xf32>
    %cst_357 = arith.constant dense<0xFF800000> : vector<8xf32>
    %918 = vector.multi_reduction <maximumf>, %917, %cst_357 [1] : vector<8x8xf32> to vector<8xf32>
    %919 = vector.shape_cast %918 : vector<8xf32> to vector<8x1xf32>
    %920 = vector.broadcast %919 : vector<8x1xf32> to vector<8x8xf32>
    %921 = arith.subf %917, %920 : vector<8x8xf32>
    %922 = math.exp %921 : vector<8x8xf32>
    %cst_358 = arith.constant dense<0.000000e+00> : vector<8xf32>
    %923 = vector.multi_reduction <add>, %922, %cst_358 [1] : vector<8x8xf32> to vector<8xf32>
    %924 = vector.shape_cast %923 : vector<8xf32> to vector<8x1xf32>
    %925 = vector.broadcast %924 : vector<8x1xf32> to vector<8x8xf32>
    %926 = arith.divf %922, %925 : vector<8x8xf32>
    %cst_359 = arith.constant dense<0.000000e+00> : vector<8x8xf32>
    %927 = tpu.matmul %926, %908, %cst_359 {dimension_numbers = #tpu.dot_dimension_numbers<[1], [0], [0], [1], [0, 0, 1, 1], [], []>} : vector<8x8xf32>, vector<8x8xf32>, vector<8x8xf32> -> vector<8x8xf32>
    %928 = vector.extract_strided_slice %807 {offsets = [8, 8], sizes = [8, 8], strides = [1, 1]} : vector<16x32xf32> to vector<8x8xf32>
    %929 = vector.extract_strided_slice %812 {offsets = [8, 8], sizes = [8, 8], strides = [1, 1]} : vector<16x64xf32> to vector<8x8xf32>
    %930 = vector.extract_strided_slice %812 {offsets = [8, 40], sizes = [8, 8], strides = [1, 1]} : vector<16x64xf32> to vector<8x8xf32>
    %cst_360 = arith.constant dense<0.000000e+00> : vector<8x8xf32>
    %931 = tpu.matmul %928, %929, %cst_360 {dimension_numbers = #tpu.dot_dimension_numbers<[1], [1], [0], [0], [0, 0, 1, 0], [], []>} : vector<8x8xf32>, vector<8x8xf32>, vector<8x8xf32> -> vector<8x8xf32>
    %cst_361 = arith.constant 0.353553385 : f32
    %932 = vector.broadcast %cst_361 : f32 to vector<8x8xf32>
    %933 = arith.mulf %931, %932 : vector<8x8xf32>
    %cst_362 = arith.constant 0.000000e+00 : f32
    %934 = vector.broadcast %cst_362 : f32 to vector<1x8xf32>
    %935 = arith.cmpf ogt, %905, %934 : vector<1x8xf32>
    %cst_363 = arith.constant -1.000000e+09 : f32
    %936 = vector.shape_cast %935 : vector<1x8xi1> to vector<1x8xi1>
    %937 = vector.broadcast %936 : vector<1x8xi1> to vector<8x8xi1>
    %938 = vector.broadcast %cst_363 : f32 to vector<8x8xf32>
    %939 = arith.select %937, %933, %938 : vector<8x8xi1>, vector<8x8xf32>
    %cst_364 = arith.constant dense<0xFF800000> : vector<8xf32>
    %940 = vector.multi_reduction <maximumf>, %939, %cst_364 [1] : vector<8x8xf32> to vector<8xf32>
    %941 = vector.shape_cast %940 : vector<8xf32> to vector<8x1xf32>
    %942 = vector.broadcast %941 : vector<8x1xf32> to vector<8x8xf32>
    %943 = arith.subf %939, %942 : vector<8x8xf32>
    %944 = math.exp %943 : vector<8x8xf32>
    %cst_365 = arith.constant dense<0.000000e+00> : vector<8xf32>
    %945 = vector.multi_reduction <add>, %944, %cst_365 [1] : vector<8x8xf32> to vector<8xf32>
    %946 = vector.shape_cast %945 : vector<8xf32> to vector<8x1xf32>
    %947 = vector.broadcast %946 : vector<8x1xf32> to vector<8x8xf32>
    %948 = arith.divf %944, %947 : vector<8x8xf32>
    %cst_366 = arith.constant dense<0.000000e+00> : vector<8x8xf32>
    %949 = tpu.matmul %948, %930, %cst_366 {dimension_numbers = #tpu.dot_dimension_numbers<[1], [0], [0], [1], [0, 0, 1, 1], [], []>} : vector<8x8xf32>, vector<8x8xf32>, vector<8x8xf32> -> vector<8x8xf32>
    %950 = vector.extract_strided_slice %807 {offsets = [8, 16], sizes = [8, 8], strides = [1, 1]} : vector<16x32xf32> to vector<8x8xf32>
    %951 = vector.extract_strided_slice %812 {offsets = [8, 16], sizes = [8, 8], strides = [1, 1]} : vector<16x64xf32> to vector<8x8xf32>
    %952 = vector.extract_strided_slice %812 {offsets = [8, 48], sizes = [8, 8], strides = [1, 1]} : vector<16x64xf32> to vector<8x8xf32>
    %cst_367 = arith.constant dense<0.000000e+00> : vector<8x8xf32>
    %953 = tpu.matmul %950, %951, %cst_367 {dimension_numbers = #tpu.dot_dimension_numbers<[1], [1], [0], [0], [0, 0, 1, 0], [], []>} : vector<8x8xf32>, vector<8x8xf32>, vector<8x8xf32> -> vector<8x8xf32>
    %cst_368 = arith.constant 0.353553385 : f32
    %954 = vector.broadcast %cst_368 : f32 to vector<8x8xf32>
    %955 = arith.mulf %953, %954 : vector<8x8xf32>
    %cst_369 = arith.constant 0.000000e+00 : f32
    %956 = vector.broadcast %cst_369 : f32 to vector<1x8xf32>
    %957 = arith.cmpf ogt, %905, %956 : vector<1x8xf32>
    %cst_370 = arith.constant -1.000000e+09 : f32
    %958 = vector.shape_cast %957 : vector<1x8xi1> to vector<1x8xi1>
    %959 = vector.broadcast %958 : vector<1x8xi1> to vector<8x8xi1>
    %960 = vector.broadcast %cst_370 : f32 to vector<8x8xf32>
    %961 = arith.select %959, %955, %960 : vector<8x8xi1>, vector<8x8xf32>
    %cst_371 = arith.constant dense<0xFF800000> : vector<8xf32>
    %962 = vector.multi_reduction <maximumf>, %961, %cst_371 [1] : vector<8x8xf32> to vector<8xf32>
    %963 = vector.shape_cast %962 : vector<8xf32> to vector<8x1xf32>
    %964 = vector.broadcast %963 : vector<8x1xf32> to vector<8x8xf32>
    %965 = arith.subf %961, %964 : vector<8x8xf32>
    %966 = math.exp %965 : vector<8x8xf32>
    %cst_372 = arith.constant dense<0.000000e+00> : vector<8xf32>
    %967 = vector.multi_reduction <add>, %966, %cst_372 [1] : vector<8x8xf32> to vector<8xf32>
    %968 = vector.shape_cast %967 : vector<8xf32> to vector<8x1xf32>
    %969 = vector.broadcast %968 : vector<8x1xf32> to vector<8x8xf32>
    %970 = arith.divf %966, %969 : vector<8x8xf32>
    %cst_373 = arith.constant dense<0.000000e+00> : vector<8x8xf32>
    %971 = tpu.matmul %970, %952, %cst_373 {dimension_numbers = #tpu.dot_dimension_numbers<[1], [0], [0], [1], [0, 0, 1, 1], [], []>} : vector<8x8xf32>, vector<8x8xf32>, vector<8x8xf32> -> vector<8x8xf32>
    %972 = vector.extract_strided_slice %807 {offsets = [8, 24], sizes = [8, 8], strides = [1, 1]} : vector<16x32xf32> to vector<8x8xf32>
    %973 = vector.extract_strided_slice %812 {offsets = [8, 24], sizes = [8, 8], strides = [1, 1]} : vector<16x64xf32> to vector<8x8xf32>
    %974 = vector.extract_strided_slice %812 {offsets = [8, 56], sizes = [8, 8], strides = [1, 1]} : vector<16x64xf32> to vector<8x8xf32>
    %cst_374 = arith.constant dense<0.000000e+00> : vector<8x8xf32>
    %975 = tpu.matmul %972, %973, %cst_374 {dimension_numbers = #tpu.dot_dimension_numbers<[1], [1], [0], [0], [0, 0, 1, 0], [], []>} : vector<8x8xf32>, vector<8x8xf32>, vector<8x8xf32> -> vector<8x8xf32>
    %cst_375 = arith.constant 0.353553385 : f32
    %976 = vector.broadcast %cst_375 : f32 to vector<8x8xf32>
    %977 = arith.mulf %975, %976 : vector<8x8xf32>
    %cst_376 = arith.constant 0.000000e+00 : f32
    %978 = vector.broadcast %cst_376 : f32 to vector<1x8xf32>
    %979 = arith.cmpf ogt, %905, %978 : vector<1x8xf32>
    %cst_377 = arith.constant -1.000000e+09 : f32
    %980 = vector.shape_cast %979 : vector<1x8xi1> to vector<1x8xi1>
    %981 = vector.broadcast %980 : vector<1x8xi1> to vector<8x8xi1>
    %982 = vector.broadcast %cst_377 : f32 to vector<8x8xf32>
    %983 = arith.select %981, %977, %982 : vector<8x8xi1>, vector<8x8xf32>
    %cst_378 = arith.constant dense<0xFF800000> : vector<8xf32>
    %984 = vector.multi_reduction <maximumf>, %983, %cst_378 [1] : vector<8x8xf32> to vector<8xf32>
    %985 = vector.shape_cast %984 : vector<8xf32> to vector<8x1xf32>
    %986 = vector.broadcast %985 : vector<8x1xf32> to vector<8x8xf32>
    %987 = arith.subf %983, %986 : vector<8x8xf32>
    %988 = math.exp %987 : vector<8x8xf32>
    %cst_379 = arith.constant dense<0.000000e+00> : vector<8xf32>
    %989 = vector.multi_reduction <add>, %988, %cst_379 [1] : vector<8x8xf32> to vector<8xf32>
    %990 = vector.shape_cast %989 : vector<8xf32> to vector<8x1xf32>
    %991 = vector.broadcast %990 : vector<8x1xf32> to vector<8x8xf32>
    %992 = arith.divf %988, %991 : vector<8x8xf32>
    %cst_380 = arith.constant dense<0.000000e+00> : vector<8x8xf32>
    %993 = tpu.matmul %992, %974, %cst_380 {dimension_numbers = #tpu.dot_dimension_numbers<[1], [0], [0], [1], [0, 0, 1, 1], [], []>} : vector<8x8xf32>, vector<8x8xf32>, vector<8x8xf32> -> vector<8x8xf32>
    %994 = tpu.concatenate %927, %949, %971, %993 in 1 : vector<8x8xf32>, vector<8x8xf32>, vector<8x8xf32>, vector<8x8xf32> -> vector<8x32xf32>
    %995 = tpu.concatenate %903, %994 in 0 : vector<8x32xf32>, vector<8x32xf32> -> vector<16x32xf32>
    %cst_381 = arith.constant dense<0.000000e+00> : vector<16x32xf32>
    %996 = tpu.matmul %995, %800, %cst_381 {dimension_numbers = #tpu.dot_dimension_numbers<[1], [0], [0], [1], [0, 0, 1, 1], [], []>} : vector<16x32xf32>, vector<32x32xf32>, vector<16x32xf32> -> vector<16x32xf32>
    %997 = vector.broadcast %802 : vector<1x32xf32> to vector<16x32xf32>
    %998 = arith.addf %996, %997 : vector<16x32xf32>
    %999 = arith.addf %770, %998 : vector<16x32xf32>
    %1000 = vector.extract_strided_slice %562 {offsets = [4, 0], sizes = [1, 32], strides = [1, 1]} : vector<6x32xf32> to vector<1x32xf32>
    %1001 = vector.extract_strided_slice %562 {offsets = [5, 0], sizes = [1, 32], strides = [1, 1]} : vector<6x32xf32> to vector<1x32xf32>
    %cst_382 = arith.constant dense<0.000000e+00> : vector<16xf32>
    %1002 = vector.multi_reduction <add>, %999, %cst_382 [1] : vector<16x32xf32> to vector<16xf32>
    %1003 = vector.shape_cast %1002 : vector<16xf32> to vector<16x1xf32>
    %cst_383 = arith.constant 3.200000e+01 : f32
    %1004 = vector.broadcast %cst_383 : f32 to vector<16x1xf32>
    %1005 = arith.divf %1003, %1004 : vector<16x1xf32>
    %1006 = vector.broadcast %1005 : vector<16x1xf32> to vector<16x32xf32>
    %1007 = arith.subf %999, %1006 : vector<16x32xf32>
    %1008 = arith.mulf %1007, %1007 : vector<16x32xf32>
    %cst_384 = arith.constant dense<0.000000e+00> : vector<16xf32>
    %1009 = vector.multi_reduction <add>, %1008, %cst_384 [1] : vector<16x32xf32> to vector<16xf32>
    %1010 = vector.shape_cast %1009 : vector<16xf32> to vector<16x1xf32>
    %cst_385 = arith.constant 0.0322580636 : f32
    %1011 = vector.broadcast %cst_385 : f32 to vector<16x1xf32>
    %1012 = arith.mulf %1010, %1011 : vector<16x1xf32>
    %1013 = math.sqrt %1012 : vector<16x1xf32>
    %1014 = vector.broadcast %1005 : vector<16x1xf32> to vector<16x32xf32>
    %1015 = arith.subf %999, %1014 : vector<16x32xf32>
    %1016 = vector.broadcast %1000 : vector<1x32xf32> to vector<16x32xf32>
    %1017 = arith.mulf %1016, %1015 : vector<16x32xf32>
    %cst_386 = arith.constant 9.99999997E-7 : f32
    %1018 = vector.broadcast %cst_386 : f32 to vector<16x1xf32>
    %1019 = arith.addf %1013, %1018 : vector<16x1xf32>
    %1020 = vector.broadcast %1019 : vector<16x1xf32> to vector<16x32xf32>
    %1021 = arith.divf %1017, %1020 : vector<16x32xf32>
    %1022 = vector.broadcast %1001 : vector<1x32xf32> to vector<16x32xf32>
    %1023 = arith.addf %1021, %1022 : vector<16x32xf32>
    %c0_387 = arith.constant 0 : index
    %c0_388 = arith.constant 0 : index
    %c0_389 = arith.constant 0 : index
    %1024 = vector.load %arg21[%c0_387, %c0_388, %c0_389] : memref<2x32x64xf32, #tpu.memory_space<vmem>>, vector<1x32x64xf32>
    %1025 = vector.shape_cast %1024 : vector<1x32x64xf32> to vector<32x64xf32>
    %c0_390 = arith.constant 0 : index
    %c0_391 = arith.constant 0 : index
    %c0_392 = arith.constant 0 : index
    %1026 = vector.load %arg22[%c0_390, %c0_391, %c0_392] : memref<2x1x64xf32, #tpu.memory_space<vmem>>, vector<1x1x64xf32>
    %1027 = vector.shape_cast %1026 : vector<1x1x64xf32> to vector<1x64xf32>
    %c0_393 = arith.constant 0 : index
    %c0_394 = arith.constant 0 : index
    %c0_395 = arith.constant 0 : index
    %1028 = vector.load %arg23[%c0_393, %c0_394, %c0_395] : memref<2x64x32xf32, #tpu.memory_space<vmem>>, vector<1x64x32xf32>
    %1029 = vector.shape_cast %1028 : vector<1x64x32xf32> to vector<64x32xf32>
    %c0_396 = arith.constant 0 : index
    %c0_397 = arith.constant 0 : index
    %c0_398 = arith.constant 0 : index
    %1030 = vector.load %arg24[%c0_396, %c0_397, %c0_398] : memref<2x1x32xf32, #tpu.memory_space<vmem>>, vector<1x1x32xf32>
    %1031 = vector.shape_cast %1030 : vector<1x1x32xf32> to vector<1x32xf32>
    %cst_399 = arith.constant dense<0.000000e+00> : vector<16x64xf32>
    %1032 = tpu.matmul %1023, %1025, %cst_399 {dimension_numbers = #tpu.dot_dimension_numbers<[1], [0], [0], [1], [0, 0, 1, 1], [], []>} : vector<16x32xf32>, vector<32x64xf32>, vector<16x64xf32> -> vector<16x64xf32>
    %1033 = vector.broadcast %1027 : vector<1x64xf32> to vector<16x64xf32>
    %1034 = arith.addf %1032, %1033 : vector<16x64xf32>
    %cst_400 = arith.constant 0.000000e+00 : f32
    %1035 = vector.broadcast %cst_400 : f32 to vector<16x64xf32>
    %1036 = arith.maximumf %1034, %1035 : vector<16x64xf32>
    %cst_401 = arith.constant dense<0.000000e+00> : vector<16x32xf32>
    %1037 = tpu.matmul %1036, %1029, %cst_401 {dimension_numbers = #tpu.dot_dimension_numbers<[1], [0], [0], [1], [0, 0, 1, 1], [], []>} : vector<16x64xf32>, vector<64x32xf32>, vector<16x32xf32> -> vector<16x32xf32>
    %1038 = vector.broadcast %1031 : vector<1x32xf32> to vector<16x32xf32>
    %1039 = arith.addf %1037, %1038 : vector<16x32xf32>
    %1040 = arith.addf %999, %1039 : vector<16x32xf32>
    %c1_402 = arith.constant 1 : index
    %c0_403 = arith.constant 0 : index
    %c0_404 = arith.constant 0 : index
    %1041 = vector.load %arg25[%c1_402, %c0_403, %c0_404] : memref<2x6x32xf32, #tpu.memory_space<vmem>>, vector<1x6x32xf32>
    %1042 = vector.shape_cast %1041 : vector<1x6x32xf32> to vector<6x32xf32>
    %1043 = vector.extract_strided_slice %1042 {offsets = [0, 0], sizes = [1, 32], strides = [1, 1]} : vector<6x32xf32> to vector<1x32xf32>
    %1044 = vector.extract_strided_slice %1042 {offsets = [1, 0], sizes = [1, 32], strides = [1, 1]} : vector<6x32xf32> to vector<1x32xf32>
    %cst_405 = arith.constant dense<0.000000e+00> : vector<16xf32>
    %1045 = vector.multi_reduction <add>, %1040, %cst_405 [1] : vector<16x32xf32> to vector<16xf32>
    %1046 = vector.shape_cast %1045 : vector<16xf32> to vector<16x1xf32>
    %cst_406 = arith.constant 3.200000e+01 : f32
    %1047 = vector.broadcast %cst_406 : f32 to vector<16x1xf32>
    %1048 = arith.divf %1046, %1047 : vector<16x1xf32>
    %1049 = vector.broadcast %1048 : vector<16x1xf32> to vector<16x32xf32>
    %1050 = arith.subf %1040, %1049 : vector<16x32xf32>
    %1051 = arith.mulf %1050, %1050 : vector<16x32xf32>
    %cst_407 = arith.constant dense<0.000000e+00> : vector<16xf32>
    %1052 = vector.multi_reduction <add>, %1051, %cst_407 [1] : vector<16x32xf32> to vector<16xf32>
    %1053 = vector.shape_cast %1052 : vector<16xf32> to vector<16x1xf32>
    %cst_408 = arith.constant 0.0322580636 : f32
    %1054 = vector.broadcast %cst_408 : f32 to vector<16x1xf32>
    %1055 = arith.mulf %1053, %1054 : vector<16x1xf32>
    %1056 = math.sqrt %1055 : vector<16x1xf32>
    %1057 = vector.broadcast %1048 : vector<16x1xf32> to vector<16x32xf32>
    %1058 = arith.subf %1040, %1057 : vector<16x32xf32>
    %1059 = vector.broadcast %1043 : vector<1x32xf32> to vector<16x32xf32>
    %1060 = arith.mulf %1059, %1058 : vector<16x32xf32>
    %cst_409 = arith.constant 9.99999997E-7 : f32
    %1061 = vector.broadcast %cst_409 : f32 to vector<16x1xf32>
    %1062 = arith.addf %1056, %1061 : vector<16x1xf32>
    %1063 = vector.broadcast %1062 : vector<16x1xf32> to vector<16x32xf32>
    %1064 = arith.divf %1060, %1063 : vector<16x32xf32>
    %1065 = vector.broadcast %1044 : vector<1x32xf32> to vector<16x32xf32>
    %1066 = arith.addf %1064, %1065 : vector<16x32xf32>
    %c1_410 = arith.constant 1 : index
    %c0_411 = arith.constant 0 : index
    %c0_412 = arith.constant 0 : index
    %1067 = vector.load %arg13[%c1_410, %c0_411, %c0_412] : memref<2x32x96xf32, #tpu.memory_space<vmem>>, vector<1x32x96xf32>
    %1068 = vector.shape_cast %1067 : vector<1x32x96xf32> to vector<32x96xf32>
    %c1_413 = arith.constant 1 : index
    %c0_414 = arith.constant 0 : index
    %c0_415 = arith.constant 0 : index
    %1069 = vector.load %arg14[%c1_413, %c0_414, %c0_415] : memref<2x1x96xf32, #tpu.memory_space<vmem>>, vector<1x1x96xf32>
    %1070 = vector.shape_cast %1069 : vector<1x1x96xf32> to vector<1x96xf32>
    %c1_416 = arith.constant 1 : index
    %c0_417 = arith.constant 0 : index
    %c0_418 = arith.constant 0 : index
    %1071 = vector.load %arg15[%c1_416, %c0_417, %c0_418] : memref<2x32x32xf32, #tpu.memory_space<vmem>>, vector<1x32x32xf32>
    %1072 = vector.shape_cast %1071 : vector<1x32x32xf32> to vector<32x32xf32>
    %c1_419 = arith.constant 1 : index
    %c0_420 = arith.constant 0 : index
    %c0_421 = arith.constant 0 : index
    %1073 = vector.load %arg16[%c1_419, %c0_420, %c0_421] : memref<2x1x32xf32, #tpu.memory_space<vmem>>, vector<1x1x32xf32>
    %1074 = vector.shape_cast %1073 : vector<1x1x32xf32> to vector<1x32xf32>
    %cst_422 = arith.constant dense<0.000000e+00> : vector<16x96xf32>
    %1075 = tpu.matmul %1066, %1068, %cst_422 {dimension_numbers = #tpu.dot_dimension_numbers<[1], [0], [0], [1], [0, 0, 1, 1], [], []>} : vector<16x32xf32>, vector<32x96xf32>, vector<16x96xf32> -> vector<16x96xf32>
    %1076 = vector.broadcast %1070 : vector<1x96xf32> to vector<16x96xf32>
    %1077 = arith.addf %1075, %1076 : vector<16x96xf32>
    %1078 = vector.extract_strided_slice %1077 {offsets = [0, 0], sizes = [16, 32], strides = [1, 1]} : vector<16x96xf32> to vector<16x32xf32>
    %1079 = vector.extract_strided_slice %1077 {offsets = [0, 32], sizes = [16, 64], strides = [1, 1]} : vector<16x96xf32> to vector<16x64xf32>
    %c0_423 = arith.constant 0 : index
    %c0_424 = arith.constant 0 : index
    %c0_425 = arith.constant 0 : index
    %1080 = vector.load %arg3[%c0_423, %c0_424, %c0_425] : memref<2x8x8xf32, #tpu.memory_space<vmem>>, vector<1x8x8xf32>
    %1081 = vector.shape_cast %1080 : vector<1x8x8xf32> to vector<8x8xf32>
    %1082 = vector.extract_strided_slice %1078 {offsets = [0, 0], sizes = [8, 8], strides = [1, 1]} : vector<16x32xf32> to vector<8x8xf32>
    %1083 = vector.extract_strided_slice %1079 {offsets = [0, 0], sizes = [8, 8], strides = [1, 1]} : vector<16x64xf32> to vector<8x8xf32>
    %1084 = vector.extract_strided_slice %1079 {offsets = [0, 32], sizes = [8, 8], strides = [1, 1]} : vector<16x64xf32> to vector<8x8xf32>
    %cst_426 = arith.constant dense<0.000000e+00> : vector<8x8xf32>
    %1085 = tpu.matmul %1082, %1083, %cst_426 {dimension_numbers = #tpu.dot_dimension_numbers<[1], [1], [0], [0], [0, 0, 1, 0], [], []>} : vector<8x8xf32>, vector<8x8xf32>, vector<8x8xf32> -> vector<8x8xf32>
    %cst_427 = arith.constant 0.353553385 : f32
    %1086 = vector.broadcast %cst_427 : f32 to vector<8x8xf32>
    %1087 = arith.mulf %1085, %1086 : vector<8x8xf32>
    %cst_428 = arith.constant 0.000000e+00 : f32
    %1088 = vector.broadcast %cst_428 : f32 to vector<8x8xf32>
    %1089 = arith.cmpf ogt, %1081, %1088 : vector<8x8xf32>
    %cst_429 = arith.constant -1.000000e+09 : f32
    %1090 = vector.broadcast %cst_429 : f32 to vector<8x8xf32>
    %1091 = arith.select %1089, %1087, %1090 : vector<8x8xi1>, vector<8x8xf32>
    %cst_430 = arith.constant dense<0xFF800000> : vector<8xf32>
    %1092 = vector.multi_reduction <maximumf>, %1091, %cst_430 [1] : vector<8x8xf32> to vector<8xf32>
    %1093 = vector.shape_cast %1092 : vector<8xf32> to vector<8x1xf32>
    %1094 = vector.broadcast %1093 : vector<8x1xf32> to vector<8x8xf32>
    %1095 = arith.subf %1091, %1094 : vector<8x8xf32>
    %1096 = math.exp %1095 : vector<8x8xf32>
    %cst_431 = arith.constant dense<0.000000e+00> : vector<8xf32>
    %1097 = vector.multi_reduction <add>, %1096, %cst_431 [1] : vector<8x8xf32> to vector<8xf32>
    %1098 = vector.shape_cast %1097 : vector<8xf32> to vector<8x1xf32>
    %1099 = vector.broadcast %1098 : vector<8x1xf32> to vector<8x8xf32>
    %1100 = arith.divf %1096, %1099 : vector<8x8xf32>
    %cst_432 = arith.constant dense<0.000000e+00> : vector<8x8xf32>
    %1101 = tpu.matmul %1100, %1084, %cst_432 {dimension_numbers = #tpu.dot_dimension_numbers<[1], [0], [0], [1], [0, 0, 1, 1], [], []>} : vector<8x8xf32>, vector<8x8xf32>, vector<8x8xf32> -> vector<8x8xf32>
    %1102 = vector.extract_strided_slice %1078 {offsets = [0, 8], sizes = [8, 8], strides = [1, 1]} : vector<16x32xf32> to vector<8x8xf32>
    %1103 = vector.extract_strided_slice %1079 {offsets = [0, 8], sizes = [8, 8], strides = [1, 1]} : vector<16x64xf32> to vector<8x8xf32>
    %1104 = vector.extract_strided_slice %1079 {offsets = [0, 40], sizes = [8, 8], strides = [1, 1]} : vector<16x64xf32> to vector<8x8xf32>
    %cst_433 = arith.constant dense<0.000000e+00> : vector<8x8xf32>
    %1105 = tpu.matmul %1102, %1103, %cst_433 {dimension_numbers = #tpu.dot_dimension_numbers<[1], [1], [0], [0], [0, 0, 1, 0], [], []>} : vector<8x8xf32>, vector<8x8xf32>, vector<8x8xf32> -> vector<8x8xf32>
    %cst_434 = arith.constant 0.353553385 : f32
    %1106 = vector.broadcast %cst_434 : f32 to vector<8x8xf32>
    %1107 = arith.mulf %1105, %1106 : vector<8x8xf32>
    %cst_435 = arith.constant 0.000000e+00 : f32
    %1108 = vector.broadcast %cst_435 : f32 to vector<8x8xf32>
    %1109 = arith.cmpf ogt, %1081, %1108 : vector<8x8xf32>
    %cst_436 = arith.constant -1.000000e+09 : f32
    %1110 = vector.broadcast %cst_436 : f32 to vector<8x8xf32>
    %1111 = arith.select %1109, %1107, %1110 : vector<8x8xi1>, vector<8x8xf32>
    %cst_437 = arith.constant dense<0xFF800000> : vector<8xf32>
    %1112 = vector.multi_reduction <maximumf>, %1111, %cst_437 [1] : vector<8x8xf32> to vector<8xf32>
    %1113 = vector.shape_cast %1112 : vector<8xf32> to vector<8x1xf32>
    %1114 = vector.broadcast %1113 : vector<8x1xf32> to vector<8x8xf32>
    %1115 = arith.subf %1111, %1114 : vector<8x8xf32>
    %1116 = math.exp %1115 : vector<8x8xf32>
    %cst_438 = arith.constant dense<0.000000e+00> : vector<8xf32>
    %1117 = vector.multi_reduction <add>, %1116, %cst_438 [1] : vector<8x8xf32> to vector<8xf32>
    %1118 = vector.shape_cast %1117 : vector<8xf32> to vector<8x1xf32>
    %1119 = vector.broadcast %1118 : vector<8x1xf32> to vector<8x8xf32>
    %1120 = arith.divf %1116, %1119 : vector<8x8xf32>
    %cst_439 = arith.constant dense<0.000000e+00> : vector<8x8xf32>
    %1121 = tpu.matmul %1120, %1104, %cst_439 {dimension_numbers = #tpu.dot_dimension_numbers<[1], [0], [0], [1], [0, 0, 1, 1], [], []>} : vector<8x8xf32>, vector<8x8xf32>, vector<8x8xf32> -> vector<8x8xf32>
    %1122 = vector.extract_strided_slice %1078 {offsets = [0, 16], sizes = [8, 8], strides = [1, 1]} : vector<16x32xf32> to vector<8x8xf32>
    %1123 = vector.extract_strided_slice %1079 {offsets = [0, 16], sizes = [8, 8], strides = [1, 1]} : vector<16x64xf32> to vector<8x8xf32>
    %1124 = vector.extract_strided_slice %1079 {offsets = [0, 48], sizes = [8, 8], strides = [1, 1]} : vector<16x64xf32> to vector<8x8xf32>
    %cst_440 = arith.constant dense<0.000000e+00> : vector<8x8xf32>
    %1125 = tpu.matmul %1122, %1123, %cst_440 {dimension_numbers = #tpu.dot_dimension_numbers<[1], [1], [0], [0], [0, 0, 1, 0], [], []>} : vector<8x8xf32>, vector<8x8xf32>, vector<8x8xf32> -> vector<8x8xf32>
    %cst_441 = arith.constant 0.353553385 : f32
    %1126 = vector.broadcast %cst_441 : f32 to vector<8x8xf32>
    %1127 = arith.mulf %1125, %1126 : vector<8x8xf32>
    %cst_442 = arith.constant 0.000000e+00 : f32
    %1128 = vector.broadcast %cst_442 : f32 to vector<8x8xf32>
    %1129 = arith.cmpf ogt, %1081, %1128 : vector<8x8xf32>
    %cst_443 = arith.constant -1.000000e+09 : f32
    %1130 = vector.broadcast %cst_443 : f32 to vector<8x8xf32>
    %1131 = arith.select %1129, %1127, %1130 : vector<8x8xi1>, vector<8x8xf32>
    %cst_444 = arith.constant dense<0xFF800000> : vector<8xf32>
    %1132 = vector.multi_reduction <maximumf>, %1131, %cst_444 [1] : vector<8x8xf32> to vector<8xf32>
    %1133 = vector.shape_cast %1132 : vector<8xf32> to vector<8x1xf32>
    %1134 = vector.broadcast %1133 : vector<8x1xf32> to vector<8x8xf32>
    %1135 = arith.subf %1131, %1134 : vector<8x8xf32>
    %1136 = math.exp %1135 : vector<8x8xf32>
    %cst_445 = arith.constant dense<0.000000e+00> : vector<8xf32>
    %1137 = vector.multi_reduction <add>, %1136, %cst_445 [1] : vector<8x8xf32> to vector<8xf32>
    %1138 = vector.shape_cast %1137 : vector<8xf32> to vector<8x1xf32>
    %1139 = vector.broadcast %1138 : vector<8x1xf32> to vector<8x8xf32>
    %1140 = arith.divf %1136, %1139 : vector<8x8xf32>
    %cst_446 = arith.constant dense<0.000000e+00> : vector<8x8xf32>
    %1141 = tpu.matmul %1140, %1124, %cst_446 {dimension_numbers = #tpu.dot_dimension_numbers<[1], [0], [0], [1], [0, 0, 1, 1], [], []>} : vector<8x8xf32>, vector<8x8xf32>, vector<8x8xf32> -> vector<8x8xf32>
    %1142 = vector.extract_strided_slice %1078 {offsets = [0, 24], sizes = [8, 8], strides = [1, 1]} : vector<16x32xf32> to vector<8x8xf32>
    %1143 = vector.extract_strided_slice %1079 {offsets = [0, 24], sizes = [8, 8], strides = [1, 1]} : vector<16x64xf32> to vector<8x8xf32>
    %1144 = vector.extract_strided_slice %1079 {offsets = [0, 56], sizes = [8, 8], strides = [1, 1]} : vector<16x64xf32> to vector<8x8xf32>
    %cst_447 = arith.constant dense<0.000000e+00> : vector<8x8xf32>
    %1145 = tpu.matmul %1142, %1143, %cst_447 {dimension_numbers = #tpu.dot_dimension_numbers<[1], [1], [0], [0], [0, 0, 1, 0], [], []>} : vector<8x8xf32>, vector<8x8xf32>, vector<8x8xf32> -> vector<8x8xf32>
    %cst_448 = arith.constant 0.353553385 : f32
    %1146 = vector.broadcast %cst_448 : f32 to vector<8x8xf32>
    %1147 = arith.mulf %1145, %1146 : vector<8x8xf32>
    %cst_449 = arith.constant 0.000000e+00 : f32
    %1148 = vector.broadcast %cst_449 : f32 to vector<8x8xf32>
    %1149 = arith.cmpf ogt, %1081, %1148 : vector<8x8xf32>
    %cst_450 = arith.constant -1.000000e+09 : f32
    %1150 = vector.broadcast %cst_450 : f32 to vector<8x8xf32>
    %1151 = arith.select %1149, %1147, %1150 : vector<8x8xi1>, vector<8x8xf32>
    %cst_451 = arith.constant dense<0xFF800000> : vector<8xf32>
    %1152 = vector.multi_reduction <maximumf>, %1151, %cst_451 [1] : vector<8x8xf32> to vector<8xf32>
    %1153 = vector.shape_cast %1152 : vector<8xf32> to vector<8x1xf32>
    %1154 = vector.broadcast %1153 : vector<8x1xf32> to vector<8x8xf32>
    %1155 = arith.subf %1151, %1154 : vector<8x8xf32>
    %1156 = math.exp %1155 : vector<8x8xf32>
    %cst_452 = arith.constant dense<0.000000e+00> : vector<8xf32>
    %1157 = vector.multi_reduction <add>, %1156, %cst_452 [1] : vector<8x8xf32> to vector<8xf32>
    %1158 = vector.shape_cast %1157 : vector<8xf32> to vector<8x1xf32>
    %1159 = vector.broadcast %1158 : vector<8x1xf32> to vector<8x8xf32>
    %1160 = arith.divf %1156, %1159 : vector<8x8xf32>
    %cst_453 = arith.constant dense<0.000000e+00> : vector<8x8xf32>
    %1161 = tpu.matmul %1160, %1144, %cst_453 {dimension_numbers = #tpu.dot_dimension_numbers<[1], [0], [0], [1], [0, 0, 1, 1], [], []>} : vector<8x8xf32>, vector<8x8xf32>, vector<8x8xf32> -> vector<8x8xf32>
    %1162 = tpu.concatenate %1101, %1121, %1141, %1161 in 1 : vector<8x8xf32>, vector<8x8xf32>, vector<8x8xf32>, vector<8x8xf32> -> vector<8x32xf32>
    %c1_454 = arith.constant 1 : index
    %c0_455 = arith.constant 0 : index
    %c0_456 = arith.constant 0 : index
    %1163 = vector.load %arg3[%c1_454, %c0_455, %c0_456] : memref<2x8x8xf32, #tpu.memory_space<vmem>>, vector<1x8x8xf32>
    %1164 = vector.shape_cast %1163 : vector<1x8x8xf32> to vector<8x8xf32>
    %1165 = vector.extract_strided_slice %1078 {offsets = [8, 0], sizes = [8, 8], strides = [1, 1]} : vector<16x32xf32> to vector<8x8xf32>
    %1166 = vector.extract_strided_slice %1079 {offsets = [8, 0], sizes = [8, 8], strides = [1, 1]} : vector<16x64xf32> to vector<8x8xf32>
    %1167 = vector.extract_strided_slice %1079 {offsets = [8, 32], sizes = [8, 8], strides = [1, 1]} : vector<16x64xf32> to vector<8x8xf32>
    %cst_457 = arith.constant dense<0.000000e+00> : vector<8x8xf32>
    %1168 = tpu.matmul %1165, %1166, %cst_457 {dimension_numbers = #tpu.dot_dimension_numbers<[1], [1], [0], [0], [0, 0, 1, 0], [], []>} : vector<8x8xf32>, vector<8x8xf32>, vector<8x8xf32> -> vector<8x8xf32>
    %cst_458 = arith.constant 0.353553385 : f32
    %1169 = vector.broadcast %cst_458 : f32 to vector<8x8xf32>
    %1170 = arith.mulf %1168, %1169 : vector<8x8xf32>
    %cst_459 = arith.constant 0.000000e+00 : f32
    %1171 = vector.broadcast %cst_459 : f32 to vector<8x8xf32>
    %1172 = arith.cmpf ogt, %1164, %1171 : vector<8x8xf32>
    %cst_460 = arith.constant -1.000000e+09 : f32
    %1173 = vector.broadcast %cst_460 : f32 to vector<8x8xf32>
    %1174 = arith.select %1172, %1170, %1173 : vector<8x8xi1>, vector<8x8xf32>
    %cst_461 = arith.constant dense<0xFF800000> : vector<8xf32>
    %1175 = vector.multi_reduction <maximumf>, %1174, %cst_461 [1] : vector<8x8xf32> to vector<8xf32>
    %1176 = vector.shape_cast %1175 : vector<8xf32> to vector<8x1xf32>
    %1177 = vector.broadcast %1176 : vector<8x1xf32> to vector<8x8xf32>
    %1178 = arith.subf %1174, %1177 : vector<8x8xf32>
    %1179 = math.exp %1178 : vector<8x8xf32>
    %cst_462 = arith.constant dense<0.000000e+00> : vector<8xf32>
    %1180 = vector.multi_reduction <add>, %1179, %cst_462 [1] : vector<8x8xf32> to vector<8xf32>
    %1181 = vector.shape_cast %1180 : vector<8xf32> to vector<8x1xf32>
    %1182 = vector.broadcast %1181 : vector<8x1xf32> to vector<8x8xf32>
    %1183 = arith.divf %1179, %1182 : vector<8x8xf32>
    %cst_463 = arith.constant dense<0.000000e+00> : vector<8x8xf32>
    %1184 = tpu.matmul %1183, %1167, %cst_463 {dimension_numbers = #tpu.dot_dimension_numbers<[1], [0], [0], [1], [0, 0, 1, 1], [], []>} : vector<8x8xf32>, vector<8x8xf32>, vector<8x8xf32> -> vector<8x8xf32>
    %1185 = vector.extract_strided_slice %1078 {offsets = [8, 8], sizes = [8, 8], strides = [1, 1]} : vector<16x32xf32> to vector<8x8xf32>
    %1186 = vector.extract_strided_slice %1079 {offsets = [8, 8], sizes = [8, 8], strides = [1, 1]} : vector<16x64xf32> to vector<8x8xf32>
    %1187 = vector.extract_strided_slice %1079 {offsets = [8, 40], sizes = [8, 8], strides = [1, 1]} : vector<16x64xf32> to vector<8x8xf32>
    %cst_464 = arith.constant dense<0.000000e+00> : vector<8x8xf32>
    %1188 = tpu.matmul %1185, %1186, %cst_464 {dimension_numbers = #tpu.dot_dimension_numbers<[1], [1], [0], [0], [0, 0, 1, 0], [], []>} : vector<8x8xf32>, vector<8x8xf32>, vector<8x8xf32> -> vector<8x8xf32>
    %cst_465 = arith.constant 0.353553385 : f32
    %1189 = vector.broadcast %cst_465 : f32 to vector<8x8xf32>
    %1190 = arith.mulf %1188, %1189 : vector<8x8xf32>
    %cst_466 = arith.constant 0.000000e+00 : f32
    %1191 = vector.broadcast %cst_466 : f32 to vector<8x8xf32>
    %1192 = arith.cmpf ogt, %1164, %1191 : vector<8x8xf32>
    %cst_467 = arith.constant -1.000000e+09 : f32
    %1193 = vector.broadcast %cst_467 : f32 to vector<8x8xf32>
    %1194 = arith.select %1192, %1190, %1193 : vector<8x8xi1>, vector<8x8xf32>
    %cst_468 = arith.constant dense<0xFF800000> : vector<8xf32>
    %1195 = vector.multi_reduction <maximumf>, %1194, %cst_468 [1] : vector<8x8xf32> to vector<8xf32>
    %1196 = vector.shape_cast %1195 : vector<8xf32> to vector<8x1xf32>
    %1197 = vector.broadcast %1196 : vector<8x1xf32> to vector<8x8xf32>
    %1198 = arith.subf %1194, %1197 : vector<8x8xf32>
    %1199 = math.exp %1198 : vector<8x8xf32>
    %cst_469 = arith.constant dense<0.000000e+00> : vector<8xf32>
    %1200 = vector.multi_reduction <add>, %1199, %cst_469 [1] : vector<8x8xf32> to vector<8xf32>
    %1201 = vector.shape_cast %1200 : vector<8xf32> to vector<8x1xf32>
    %1202 = vector.broadcast %1201 : vector<8x1xf32> to vector<8x8xf32>
    %1203 = arith.divf %1199, %1202 : vector<8x8xf32>
    %cst_470 = arith.constant dense<0.000000e+00> : vector<8x8xf32>
    %1204 = tpu.matmul %1203, %1187, %cst_470 {dimension_numbers = #tpu.dot_dimension_numbers<[1], [0], [0], [1], [0, 0, 1, 1], [], []>} : vector<8x8xf32>, vector<8x8xf32>, vector<8x8xf32> -> vector<8x8xf32>
    %1205 = vector.extract_strided_slice %1078 {offsets = [8, 16], sizes = [8, 8], strides = [1, 1]} : vector<16x32xf32> to vector<8x8xf32>
    %1206 = vector.extract_strided_slice %1079 {offsets = [8, 16], sizes = [8, 8], strides = [1, 1]} : vector<16x64xf32> to vector<8x8xf32>
    %1207 = vector.extract_strided_slice %1079 {offsets = [8, 48], sizes = [8, 8], strides = [1, 1]} : vector<16x64xf32> to vector<8x8xf32>
    %cst_471 = arith.constant dense<0.000000e+00> : vector<8x8xf32>
    %1208 = tpu.matmul %1205, %1206, %cst_471 {dimension_numbers = #tpu.dot_dimension_numbers<[1], [1], [0], [0], [0, 0, 1, 0], [], []>} : vector<8x8xf32>, vector<8x8xf32>, vector<8x8xf32> -> vector<8x8xf32>
    %cst_472 = arith.constant 0.353553385 : f32
    %1209 = vector.broadcast %cst_472 : f32 to vector<8x8xf32>
    %1210 = arith.mulf %1208, %1209 : vector<8x8xf32>
    %cst_473 = arith.constant 0.000000e+00 : f32
    %1211 = vector.broadcast %cst_473 : f32 to vector<8x8xf32>
    %1212 = arith.cmpf ogt, %1164, %1211 : vector<8x8xf32>
    %cst_474 = arith.constant -1.000000e+09 : f32
    %1213 = vector.broadcast %cst_474 : f32 to vector<8x8xf32>
    %1214 = arith.select %1212, %1210, %1213 : vector<8x8xi1>, vector<8x8xf32>
    %cst_475 = arith.constant dense<0xFF800000> : vector<8xf32>
    %1215 = vector.multi_reduction <maximumf>, %1214, %cst_475 [1] : vector<8x8xf32> to vector<8xf32>
    %1216 = vector.shape_cast %1215 : vector<8xf32> to vector<8x1xf32>
    %1217 = vector.broadcast %1216 : vector<8x1xf32> to vector<8x8xf32>
    %1218 = arith.subf %1214, %1217 : vector<8x8xf32>
    %1219 = math.exp %1218 : vector<8x8xf32>
    %cst_476 = arith.constant dense<0.000000e+00> : vector<8xf32>
    %1220 = vector.multi_reduction <add>, %1219, %cst_476 [1] : vector<8x8xf32> to vector<8xf32>
    %1221 = vector.shape_cast %1220 : vector<8xf32> to vector<8x1xf32>
    %1222 = vector.broadcast %1221 : vector<8x1xf32> to vector<8x8xf32>
    %1223 = arith.divf %1219, %1222 : vector<8x8xf32>
    %cst_477 = arith.constant dense<0.000000e+00> : vector<8x8xf32>
    %1224 = tpu.matmul %1223, %1207, %cst_477 {dimension_numbers = #tpu.dot_dimension_numbers<[1], [0], [0], [1], [0, 0, 1, 1], [], []>} : vector<8x8xf32>, vector<8x8xf32>, vector<8x8xf32> -> vector<8x8xf32>
    %1225 = vector.extract_strided_slice %1078 {offsets = [8, 24], sizes = [8, 8], strides = [1, 1]} : vector<16x32xf32> to vector<8x8xf32>
    %1226 = vector.extract_strided_slice %1079 {offsets = [8, 24], sizes = [8, 8], strides = [1, 1]} : vector<16x64xf32> to vector<8x8xf32>
    %1227 = vector.extract_strided_slice %1079 {offsets = [8, 56], sizes = [8, 8], strides = [1, 1]} : vector<16x64xf32> to vector<8x8xf32>
    %cst_478 = arith.constant dense<0.000000e+00> : vector<8x8xf32>
    %1228 = tpu.matmul %1225, %1226, %cst_478 {dimension_numbers = #tpu.dot_dimension_numbers<[1], [1], [0], [0], [0, 0, 1, 0], [], []>} : vector<8x8xf32>, vector<8x8xf32>, vector<8x8xf32> -> vector<8x8xf32>
    %cst_479 = arith.constant 0.353553385 : f32
    %1229 = vector.broadcast %cst_479 : f32 to vector<8x8xf32>
    %1230 = arith.mulf %1228, %1229 : vector<8x8xf32>
    %cst_480 = arith.constant 0.000000e+00 : f32
    %1231 = vector.broadcast %cst_480 : f32 to vector<8x8xf32>
    %1232 = arith.cmpf ogt, %1164, %1231 : vector<8x8xf32>
    %cst_481 = arith.constant -1.000000e+09 : f32
    %1233 = vector.broadcast %cst_481 : f32 to vector<8x8xf32>
    %1234 = arith.select %1232, %1230, %1233 : vector<8x8xi1>, vector<8x8xf32>
    %cst_482 = arith.constant dense<0xFF800000> : vector<8xf32>
    %1235 = vector.multi_reduction <maximumf>, %1234, %cst_482 [1] : vector<8x8xf32> to vector<8xf32>
    %1236 = vector.shape_cast %1235 : vector<8xf32> to vector<8x1xf32>
    %1237 = vector.broadcast %1236 : vector<8x1xf32> to vector<8x8xf32>
    %1238 = arith.subf %1234, %1237 : vector<8x8xf32>
    %1239 = math.exp %1238 : vector<8x8xf32>
    %cst_483 = arith.constant dense<0.000000e+00> : vector<8xf32>
    %1240 = vector.multi_reduction <add>, %1239, %cst_483 [1] : vector<8x8xf32> to vector<8xf32>
    %1241 = vector.shape_cast %1240 : vector<8xf32> to vector<8x1xf32>
    %1242 = vector.broadcast %1241 : vector<8x1xf32> to vector<8x8xf32>
    %1243 = arith.divf %1239, %1242 : vector<8x8xf32>
    %cst_484 = arith.constant dense<0.000000e+00> : vector<8x8xf32>
    %1244 = tpu.matmul %1243, %1227, %cst_484 {dimension_numbers = #tpu.dot_dimension_numbers<[1], [0], [0], [1], [0, 0, 1, 1], [], []>} : vector<8x8xf32>, vector<8x8xf32>, vector<8x8xf32> -> vector<8x8xf32>
    %1245 = tpu.concatenate %1184, %1204, %1224, %1244 in 1 : vector<8x8xf32>, vector<8x8xf32>, vector<8x8xf32>, vector<8x8xf32> -> vector<8x32xf32>
    %1246 = tpu.concatenate %1162, %1245 in 0 : vector<8x32xf32>, vector<8x32xf32> -> vector<16x32xf32>
    %cst_485 = arith.constant dense<0.000000e+00> : vector<16x32xf32>
    %1247 = tpu.matmul %1246, %1072, %cst_485 {dimension_numbers = #tpu.dot_dimension_numbers<[1], [0], [0], [1], [0, 0, 1, 1], [], []>} : vector<16x32xf32>, vector<32x32xf32>, vector<16x32xf32> -> vector<16x32xf32>
    %1248 = vector.broadcast %1074 : vector<1x32xf32> to vector<16x32xf32>
    %1249 = arith.addf %1247, %1248 : vector<16x32xf32>
    %1250 = arith.addf %1040, %1249 : vector<16x32xf32>
    %1251 = vector.extract_strided_slice %1042 {offsets = [2, 0], sizes = [1, 32], strides = [1, 1]} : vector<6x32xf32> to vector<1x32xf32>
    %1252 = vector.extract_strided_slice %1042 {offsets = [3, 0], sizes = [1, 32], strides = [1, 1]} : vector<6x32xf32> to vector<1x32xf32>
    %cst_486 = arith.constant dense<0.000000e+00> : vector<16xf32>
    %1253 = vector.multi_reduction <add>, %1250, %cst_486 [1] : vector<16x32xf32> to vector<16xf32>
    %1254 = vector.shape_cast %1253 : vector<16xf32> to vector<16x1xf32>
    %cst_487 = arith.constant 3.200000e+01 : f32
    %1255 = vector.broadcast %cst_487 : f32 to vector<16x1xf32>
    %1256 = arith.divf %1254, %1255 : vector<16x1xf32>
    %1257 = vector.broadcast %1256 : vector<16x1xf32> to vector<16x32xf32>
    %1258 = arith.subf %1250, %1257 : vector<16x32xf32>
    %1259 = arith.mulf %1258, %1258 : vector<16x32xf32>
    %cst_488 = arith.constant dense<0.000000e+00> : vector<16xf32>
    %1260 = vector.multi_reduction <add>, %1259, %cst_488 [1] : vector<16x32xf32> to vector<16xf32>
    %1261 = vector.shape_cast %1260 : vector<16xf32> to vector<16x1xf32>
    %cst_489 = arith.constant 0.0322580636 : f32
    %1262 = vector.broadcast %cst_489 : f32 to vector<16x1xf32>
    %1263 = arith.mulf %1261, %1262 : vector<16x1xf32>
    %1264 = math.sqrt %1263 : vector<16x1xf32>
    %1265 = vector.broadcast %1256 : vector<16x1xf32> to vector<16x32xf32>
    %1266 = arith.subf %1250, %1265 : vector<16x32xf32>
    %1267 = vector.broadcast %1251 : vector<1x32xf32> to vector<16x32xf32>
    %1268 = arith.mulf %1267, %1266 : vector<16x32xf32>
    %cst_490 = arith.constant 9.99999997E-7 : f32
    %1269 = vector.broadcast %cst_490 : f32 to vector<16x1xf32>
    %1270 = arith.addf %1264, %1269 : vector<16x1xf32>
    %1271 = vector.broadcast %1270 : vector<16x1xf32> to vector<16x32xf32>
    %1272 = arith.divf %1268, %1271 : vector<16x32xf32>
    %1273 = vector.broadcast %1252 : vector<1x32xf32> to vector<16x32xf32>
    %1274 = arith.addf %1272, %1273 : vector<16x32xf32>
    %c1_491 = arith.constant 1 : index
    %c0_492 = arith.constant 0 : index
    %c0_493 = arith.constant 0 : index
    %1275 = vector.load %arg17[%c1_491, %c0_492, %c0_493] : memref<2x32x96xf32, #tpu.memory_space<vmem>>, vector<1x32x96xf32>
    %1276 = vector.shape_cast %1275 : vector<1x32x96xf32> to vector<32x96xf32>
    %c1_494 = arith.constant 1 : index
    %c0_495 = arith.constant 0 : index
    %c0_496 = arith.constant 0 : index
    %1277 = vector.load %arg18[%c1_494, %c0_495, %c0_496] : memref<2x1x96xf32, #tpu.memory_space<vmem>>, vector<1x1x96xf32>
    %1278 = vector.shape_cast %1277 : vector<1x1x96xf32> to vector<1x96xf32>
    %c1_497 = arith.constant 1 : index
    %c0_498 = arith.constant 0 : index
    %c0_499 = arith.constant 0 : index
    %1279 = vector.load %arg19[%c1_497, %c0_498, %c0_499] : memref<2x32x32xf32, #tpu.memory_space<vmem>>, vector<1x32x32xf32>
    %1280 = vector.shape_cast %1279 : vector<1x32x32xf32> to vector<32x32xf32>
    %c1_500 = arith.constant 1 : index
    %c0_501 = arith.constant 0 : index
    %c0_502 = arith.constant 0 : index
    %1281 = vector.load %arg20[%c1_500, %c0_501, %c0_502] : memref<2x1x32xf32, #tpu.memory_space<vmem>>, vector<1x1x32xf32>
    %1282 = vector.shape_cast %1281 : vector<1x1x32xf32> to vector<1x32xf32>
    %1283 = vector.extract_strided_slice %1276 {offsets = [0, 0], sizes = [32, 32], strides = [1, 1]} : vector<32x96xf32> to vector<32x32xf32>
    %1284 = vector.extract_strided_slice %1278 {offsets = [0, 0], sizes = [1, 32], strides = [1, 1]} : vector<1x96xf32> to vector<1x32xf32>
    %cst_503 = arith.constant dense<0.000000e+00> : vector<16x32xf32>
    %1285 = tpu.matmul %1274, %1283, %cst_503 {dimension_numbers = #tpu.dot_dimension_numbers<[1], [0], [0], [1], [0, 0, 1, 1], [], []>} : vector<16x32xf32>, vector<32x32xf32>, vector<16x32xf32> -> vector<16x32xf32>
    %1286 = vector.broadcast %1284 : vector<1x32xf32> to vector<16x32xf32>
    %1287 = arith.addf %1285, %1286 : vector<16x32xf32>
    %1288 = vector.extract_strided_slice %1276 {offsets = [0, 32], sizes = [32, 64], strides = [1, 1]} : vector<32x96xf32> to vector<32x64xf32>
    %1289 = vector.extract_strided_slice %1278 {offsets = [0, 32], sizes = [1, 64], strides = [1, 1]} : vector<1x96xf32> to vector<1x64xf32>
    %cst_504 = arith.constant dense<0.000000e+00> : vector<16x64xf32>
    %1290 = tpu.matmul %559, %1288, %cst_504 {dimension_numbers = #tpu.dot_dimension_numbers<[1], [0], [0], [1], [0, 0, 1, 1], [], []>} : vector<16x32xf32>, vector<32x64xf32>, vector<16x64xf32> -> vector<16x64xf32>
    %1291 = vector.broadcast %1289 : vector<1x64xf32> to vector<16x64xf32>
    %1292 = arith.addf %1290, %1291 : vector<16x64xf32>
    %c0_505 = arith.constant 0 : index
    %c0_506 = arith.constant 0 : index
    %c0_507 = arith.constant 0 : index
    %1293 = vector.load %arg2[%c0_505, %c0_506, %c0_507] : memref<2x1x8xf32, #tpu.memory_space<vmem>>, vector<1x1x8xf32>
    %1294 = vector.shape_cast %1293 : vector<1x1x8xf32> to vector<1x8xf32>
    %1295 = vector.extract_strided_slice %1287 {offsets = [0, 0], sizes = [8, 8], strides = [1, 1]} : vector<16x32xf32> to vector<8x8xf32>
    %1296 = vector.extract_strided_slice %1292 {offsets = [0, 0], sizes = [8, 8], strides = [1, 1]} : vector<16x64xf32> to vector<8x8xf32>
    %1297 = vector.extract_strided_slice %1292 {offsets = [0, 32], sizes = [8, 8], strides = [1, 1]} : vector<16x64xf32> to vector<8x8xf32>
    %cst_508 = arith.constant dense<0.000000e+00> : vector<8x8xf32>
    %1298 = tpu.matmul %1295, %1296, %cst_508 {dimension_numbers = #tpu.dot_dimension_numbers<[1], [1], [0], [0], [0, 0, 1, 0], [], []>} : vector<8x8xf32>, vector<8x8xf32>, vector<8x8xf32> -> vector<8x8xf32>
    %cst_509 = arith.constant 0.353553385 : f32
    %1299 = vector.broadcast %cst_509 : f32 to vector<8x8xf32>
    %1300 = arith.mulf %1298, %1299 : vector<8x8xf32>
    %cst_510 = arith.constant 0.000000e+00 : f32
    %1301 = vector.broadcast %cst_510 : f32 to vector<1x8xf32>
    %1302 = arith.cmpf ogt, %1294, %1301 : vector<1x8xf32>
    %cst_511 = arith.constant -1.000000e+09 : f32
    %1303 = vector.shape_cast %1302 : vector<1x8xi1> to vector<1x8xi1>
    %1304 = vector.broadcast %1303 : vector<1x8xi1> to vector<8x8xi1>
    %1305 = vector.broadcast %cst_511 : f32 to vector<8x8xf32>
    %1306 = arith.select %1304, %1300, %1305 : vector<8x8xi1>, vector<8x8xf32>
    %cst_512 = arith.constant dense<0xFF800000> : vector<8xf32>
    %1307 = vector.multi_reduction <maximumf>, %1306, %cst_512 [1] : vector<8x8xf32> to vector<8xf32>
    %1308 = vector.shape_cast %1307 : vector<8xf32> to vector<8x1xf32>
    %1309 = vector.broadcast %1308 : vector<8x1xf32> to vector<8x8xf32>
    %1310 = arith.subf %1306, %1309 : vector<8x8xf32>
    %1311 = math.exp %1310 : vector<8x8xf32>
    %cst_513 = arith.constant dense<0.000000e+00> : vector<8xf32>
    %1312 = vector.multi_reduction <add>, %1311, %cst_513 [1] : vector<8x8xf32> to vector<8xf32>
    %1313 = vector.shape_cast %1312 : vector<8xf32> to vector<8x1xf32>
    %1314 = vector.broadcast %1313 : vector<8x1xf32> to vector<8x8xf32>
    %1315 = arith.divf %1311, %1314 : vector<8x8xf32>
    %cst_514 = arith.constant dense<0.000000e+00> : vector<8x8xf32>
    %1316 = tpu.matmul %1315, %1297, %cst_514 {dimension_numbers = #tpu.dot_dimension_numbers<[1], [0], [0], [1], [0, 0, 1, 1], [], []>} : vector<8x8xf32>, vector<8x8xf32>, vector<8x8xf32> -> vector<8x8xf32>
    %1317 = vector.extract_strided_slice %1287 {offsets = [0, 8], sizes = [8, 8], strides = [1, 1]} : vector<16x32xf32> to vector<8x8xf32>
    %1318 = vector.extract_strided_slice %1292 {offsets = [0, 8], sizes = [8, 8], strides = [1, 1]} : vector<16x64xf32> to vector<8x8xf32>
    %1319 = vector.extract_strided_slice %1292 {offsets = [0, 40], sizes = [8, 8], strides = [1, 1]} : vector<16x64xf32> to vector<8x8xf32>
    %cst_515 = arith.constant dense<0.000000e+00> : vector<8x8xf32>
    %1320 = tpu.matmul %1317, %1318, %cst_515 {dimension_numbers = #tpu.dot_dimension_numbers<[1], [1], [0], [0], [0, 0, 1, 0], [], []>} : vector<8x8xf32>, vector<8x8xf32>, vector<8x8xf32> -> vector<8x8xf32>
    %cst_516 = arith.constant 0.353553385 : f32
    %1321 = vector.broadcast %cst_516 : f32 to vector<8x8xf32>
    %1322 = arith.mulf %1320, %1321 : vector<8x8xf32>
    %cst_517 = arith.constant 0.000000e+00 : f32
    %1323 = vector.broadcast %cst_517 : f32 to vector<1x8xf32>
    %1324 = arith.cmpf ogt, %1294, %1323 : vector<1x8xf32>
    %cst_518 = arith.constant -1.000000e+09 : f32
    %1325 = vector.shape_cast %1324 : vector<1x8xi1> to vector<1x8xi1>
    %1326 = vector.broadcast %1325 : vector<1x8xi1> to vector<8x8xi1>
    %1327 = vector.broadcast %cst_518 : f32 to vector<8x8xf32>
    %1328 = arith.select %1326, %1322, %1327 : vector<8x8xi1>, vector<8x8xf32>
    %cst_519 = arith.constant dense<0xFF800000> : vector<8xf32>
    %1329 = vector.multi_reduction <maximumf>, %1328, %cst_519 [1] : vector<8x8xf32> to vector<8xf32>
    %1330 = vector.shape_cast %1329 : vector<8xf32> to vector<8x1xf32>
    %1331 = vector.broadcast %1330 : vector<8x1xf32> to vector<8x8xf32>
    %1332 = arith.subf %1328, %1331 : vector<8x8xf32>
    %1333 = math.exp %1332 : vector<8x8xf32>
    %cst_520 = arith.constant dense<0.000000e+00> : vector<8xf32>
    %1334 = vector.multi_reduction <add>, %1333, %cst_520 [1] : vector<8x8xf32> to vector<8xf32>
    %1335 = vector.shape_cast %1334 : vector<8xf32> to vector<8x1xf32>
    %1336 = vector.broadcast %1335 : vector<8x1xf32> to vector<8x8xf32>
    %1337 = arith.divf %1333, %1336 : vector<8x8xf32>
    %cst_521 = arith.constant dense<0.000000e+00> : vector<8x8xf32>
    %1338 = tpu.matmul %1337, %1319, %cst_521 {dimension_numbers = #tpu.dot_dimension_numbers<[1], [0], [0], [1], [0, 0, 1, 1], [], []>} : vector<8x8xf32>, vector<8x8xf32>, vector<8x8xf32> -> vector<8x8xf32>
    %1339 = vector.extract_strided_slice %1287 {offsets = [0, 16], sizes = [8, 8], strides = [1, 1]} : vector<16x32xf32> to vector<8x8xf32>
    %1340 = vector.extract_strided_slice %1292 {offsets = [0, 16], sizes = [8, 8], strides = [1, 1]} : vector<16x64xf32> to vector<8x8xf32>
    %1341 = vector.extract_strided_slice %1292 {offsets = [0, 48], sizes = [8, 8], strides = [1, 1]} : vector<16x64xf32> to vector<8x8xf32>
    %cst_522 = arith.constant dense<0.000000e+00> : vector<8x8xf32>
    %1342 = tpu.matmul %1339, %1340, %cst_522 {dimension_numbers = #tpu.dot_dimension_numbers<[1], [1], [0], [0], [0, 0, 1, 0], [], []>} : vector<8x8xf32>, vector<8x8xf32>, vector<8x8xf32> -> vector<8x8xf32>
    %cst_523 = arith.constant 0.353553385 : f32
    %1343 = vector.broadcast %cst_523 : f32 to vector<8x8xf32>
    %1344 = arith.mulf %1342, %1343 : vector<8x8xf32>
    %cst_524 = arith.constant 0.000000e+00 : f32
    %1345 = vector.broadcast %cst_524 : f32 to vector<1x8xf32>
    %1346 = arith.cmpf ogt, %1294, %1345 : vector<1x8xf32>
    %cst_525 = arith.constant -1.000000e+09 : f32
    %1347 = vector.shape_cast %1346 : vector<1x8xi1> to vector<1x8xi1>
    %1348 = vector.broadcast %1347 : vector<1x8xi1> to vector<8x8xi1>
    %1349 = vector.broadcast %cst_525 : f32 to vector<8x8xf32>
    %1350 = arith.select %1348, %1344, %1349 : vector<8x8xi1>, vector<8x8xf32>
    %cst_526 = arith.constant dense<0xFF800000> : vector<8xf32>
    %1351 = vector.multi_reduction <maximumf>, %1350, %cst_526 [1] : vector<8x8xf32> to vector<8xf32>
    %1352 = vector.shape_cast %1351 : vector<8xf32> to vector<8x1xf32>
    %1353 = vector.broadcast %1352 : vector<8x1xf32> to vector<8x8xf32>
    %1354 = arith.subf %1350, %1353 : vector<8x8xf32>
    %1355 = math.exp %1354 : vector<8x8xf32>
    %cst_527 = arith.constant dense<0.000000e+00> : vector<8xf32>
    %1356 = vector.multi_reduction <add>, %1355, %cst_527 [1] : vector<8x8xf32> to vector<8xf32>
    %1357 = vector.shape_cast %1356 : vector<8xf32> to vector<8x1xf32>
    %1358 = vector.broadcast %1357 : vector<8x1xf32> to vector<8x8xf32>
    %1359 = arith.divf %1355, %1358 : vector<8x8xf32>
    %cst_528 = arith.constant dense<0.000000e+00> : vector<8x8xf32>
    %1360 = tpu.matmul %1359, %1341, %cst_528 {dimension_numbers = #tpu.dot_dimension_numbers<[1], [0], [0], [1], [0, 0, 1, 1], [], []>} : vector<8x8xf32>, vector<8x8xf32>, vector<8x8xf32> -> vector<8x8xf32>
    %1361 = vector.extract_strided_slice %1287 {offsets = [0, 24], sizes = [8, 8], strides = [1, 1]} : vector<16x32xf32> to vector<8x8xf32>
    %1362 = vector.extract_strided_slice %1292 {offsets = [0, 24], sizes = [8, 8], strides = [1, 1]} : vector<16x64xf32> to vector<8x8xf32>
    %1363 = vector.extract_strided_slice %1292 {offsets = [0, 56], sizes = [8, 8], strides = [1, 1]} : vector<16x64xf32> to vector<8x8xf32>
    %cst_529 = arith.constant dense<0.000000e+00> : vector<8x8xf32>
    %1364 = tpu.matmul %1361, %1362, %cst_529 {dimension_numbers = #tpu.dot_dimension_numbers<[1], [1], [0], [0], [0, 0, 1, 0], [], []>} : vector<8x8xf32>, vector<8x8xf32>, vector<8x8xf32> -> vector<8x8xf32>
    %cst_530 = arith.constant 0.353553385 : f32
    %1365 = vector.broadcast %cst_530 : f32 to vector<8x8xf32>
    %1366 = arith.mulf %1364, %1365 : vector<8x8xf32>
    %cst_531 = arith.constant 0.000000e+00 : f32
    %1367 = vector.broadcast %cst_531 : f32 to vector<1x8xf32>
    %1368 = arith.cmpf ogt, %1294, %1367 : vector<1x8xf32>
    %cst_532 = arith.constant -1.000000e+09 : f32
    %1369 = vector.shape_cast %1368 : vector<1x8xi1> to vector<1x8xi1>
    %1370 = vector.broadcast %1369 : vector<1x8xi1> to vector<8x8xi1>
    %1371 = vector.broadcast %cst_532 : f32 to vector<8x8xf32>
    %1372 = arith.select %1370, %1366, %1371 : vector<8x8xi1>, vector<8x8xf32>
    %cst_533 = arith.constant dense<0xFF800000> : vector<8xf32>
    %1373 = vector.multi_reduction <maximumf>, %1372, %cst_533 [1] : vector<8x8xf32> to vector<8xf32>
    %1374 = vector.shape_cast %1373 : vector<8xf32> to vector<8x1xf32>
    %1375 = vector.broadcast %1374 : vector<8x1xf32> to vector<8x8xf32>
    %1376 = arith.subf %1372, %1375 : vector<8x8xf32>
    %1377 = math.exp %1376 : vector<8x8xf32>
    %cst_534 = arith.constant dense<0.000000e+00> : vector<8xf32>
    %1378 = vector.multi_reduction <add>, %1377, %cst_534 [1] : vector<8x8xf32> to vector<8xf32>
    %1379 = vector.shape_cast %1378 : vector<8xf32> to vector<8x1xf32>
    %1380 = vector.broadcast %1379 : vector<8x1xf32> to vector<8x8xf32>
    %1381 = arith.divf %1377, %1380 : vector<8x8xf32>
    %cst_535 = arith.constant dense<0.000000e+00> : vector<8x8xf32>
    %1382 = tpu.matmul %1381, %1363, %cst_535 {dimension_numbers = #tpu.dot_dimension_numbers<[1], [0], [0], [1], [0, 0, 1, 1], [], []>} : vector<8x8xf32>, vector<8x8xf32>, vector<8x8xf32> -> vector<8x8xf32>
    %1383 = tpu.concatenate %1316, %1338, %1360, %1382 in 1 : vector<8x8xf32>, vector<8x8xf32>, vector<8x8xf32>, vector<8x8xf32> -> vector<8x32xf32>
    %c1_536 = arith.constant 1 : index
    %c0_537 = arith.constant 0 : index
    %c0_538 = arith.constant 0 : index
    %1384 = vector.load %arg2[%c1_536, %c0_537, %c0_538] : memref<2x1x8xf32, #tpu.memory_space<vmem>>, vector<1x1x8xf32>
    %1385 = vector.shape_cast %1384 : vector<1x1x8xf32> to vector<1x8xf32>
    %1386 = vector.extract_strided_slice %1287 {offsets = [8, 0], sizes = [8, 8], strides = [1, 1]} : vector<16x32xf32> to vector<8x8xf32>
    %1387 = vector.extract_strided_slice %1292 {offsets = [8, 0], sizes = [8, 8], strides = [1, 1]} : vector<16x64xf32> to vector<8x8xf32>
    %1388 = vector.extract_strided_slice %1292 {offsets = [8, 32], sizes = [8, 8], strides = [1, 1]} : vector<16x64xf32> to vector<8x8xf32>
    %cst_539 = arith.constant dense<0.000000e+00> : vector<8x8xf32>
    %1389 = tpu.matmul %1386, %1387, %cst_539 {dimension_numbers = #tpu.dot_dimension_numbers<[1], [1], [0], [0], [0, 0, 1, 0], [], []>} : vector<8x8xf32>, vector<8x8xf32>, vector<8x8xf32> -> vector<8x8xf32>
    %cst_540 = arith.constant 0.353553385 : f32
    %1390 = vector.broadcast %cst_540 : f32 to vector<8x8xf32>
    %1391 = arith.mulf %1389, %1390 : vector<8x8xf32>
    %cst_541 = arith.constant 0.000000e+00 : f32
    %1392 = vector.broadcast %cst_541 : f32 to vector<1x8xf32>
    %1393 = arith.cmpf ogt, %1385, %1392 : vector<1x8xf32>
    %cst_542 = arith.constant -1.000000e+09 : f32
    %1394 = vector.shape_cast %1393 : vector<1x8xi1> to vector<1x8xi1>
    %1395 = vector.broadcast %1394 : vector<1x8xi1> to vector<8x8xi1>
    %1396 = vector.broadcast %cst_542 : f32 to vector<8x8xf32>
    %1397 = arith.select %1395, %1391, %1396 : vector<8x8xi1>, vector<8x8xf32>
    %cst_543 = arith.constant dense<0xFF800000> : vector<8xf32>
    %1398 = vector.multi_reduction <maximumf>, %1397, %cst_543 [1] : vector<8x8xf32> to vector<8xf32>
    %1399 = vector.shape_cast %1398 : vector<8xf32> to vector<8x1xf32>
    %1400 = vector.broadcast %1399 : vector<8x1xf32> to vector<8x8xf32>
    %1401 = arith.subf %1397, %1400 : vector<8x8xf32>
    %1402 = math.exp %1401 : vector<8x8xf32>
    %cst_544 = arith.constant dense<0.000000e+00> : vector<8xf32>
    %1403 = vector.multi_reduction <add>, %1402, %cst_544 [1] : vector<8x8xf32> to vector<8xf32>
    %1404 = vector.shape_cast %1403 : vector<8xf32> to vector<8x1xf32>
    %1405 = vector.broadcast %1404 : vector<8x1xf32> to vector<8x8xf32>
    %1406 = arith.divf %1402, %1405 : vector<8x8xf32>
    %cst_545 = arith.constant dense<0.000000e+00> : vector<8x8xf32>
    %1407 = tpu.matmul %1406, %1388, %cst_545 {dimension_numbers = #tpu.dot_dimension_numbers<[1], [0], [0], [1], [0, 0, 1, 1], [], []>} : vector<8x8xf32>, vector<8x8xf32>, vector<8x8xf32> -> vector<8x8xf32>
    %1408 = vector.extract_strided_slice %1287 {offsets = [8, 8], sizes = [8, 8], strides = [1, 1]} : vector<16x32xf32> to vector<8x8xf32>
    %1409 = vector.extract_strided_slice %1292 {offsets = [8, 8], sizes = [8, 8], strides = [1, 1]} : vector<16x64xf32> to vector<8x8xf32>
    %1410 = vector.extract_strided_slice %1292 {offsets = [8, 40], sizes = [8, 8], strides = [1, 1]} : vector<16x64xf32> to vector<8x8xf32>
    %cst_546 = arith.constant dense<0.000000e+00> : vector<8x8xf32>
    %1411 = tpu.matmul %1408, %1409, %cst_546 {dimension_numbers = #tpu.dot_dimension_numbers<[1], [1], [0], [0], [0, 0, 1, 0], [], []>} : vector<8x8xf32>, vector<8x8xf32>, vector<8x8xf32> -> vector<8x8xf32>
    %cst_547 = arith.constant 0.353553385 : f32
    %1412 = vector.broadcast %cst_547 : f32 to vector<8x8xf32>
    %1413 = arith.mulf %1411, %1412 : vector<8x8xf32>
    %cst_548 = arith.constant 0.000000e+00 : f32
    %1414 = vector.broadcast %cst_548 : f32 to vector<1x8xf32>
    %1415 = arith.cmpf ogt, %1385, %1414 : vector<1x8xf32>
    %cst_549 = arith.constant -1.000000e+09 : f32
    %1416 = vector.shape_cast %1415 : vector<1x8xi1> to vector<1x8xi1>
    %1417 = vector.broadcast %1416 : vector<1x8xi1> to vector<8x8xi1>
    %1418 = vector.broadcast %cst_549 : f32 to vector<8x8xf32>
    %1419 = arith.select %1417, %1413, %1418 : vector<8x8xi1>, vector<8x8xf32>
    %cst_550 = arith.constant dense<0xFF800000> : vector<8xf32>
    %1420 = vector.multi_reduction <maximumf>, %1419, %cst_550 [1] : vector<8x8xf32> to vector<8xf32>
    %1421 = vector.shape_cast %1420 : vector<8xf32> to vector<8x1xf32>
    %1422 = vector.broadcast %1421 : vector<8x1xf32> to vector<8x8xf32>
    %1423 = arith.subf %1419, %1422 : vector<8x8xf32>
    %1424 = math.exp %1423 : vector<8x8xf32>
    %cst_551 = arith.constant dense<0.000000e+00> : vector<8xf32>
    %1425 = vector.multi_reduction <add>, %1424, %cst_551 [1] : vector<8x8xf32> to vector<8xf32>
    %1426 = vector.shape_cast %1425 : vector<8xf32> to vector<8x1xf32>
    %1427 = vector.broadcast %1426 : vector<8x1xf32> to vector<8x8xf32>
    %1428 = arith.divf %1424, %1427 : vector<8x8xf32>
    %cst_552 = arith.constant dense<0.000000e+00> : vector<8x8xf32>
    %1429 = tpu.matmul %1428, %1410, %cst_552 {dimension_numbers = #tpu.dot_dimension_numbers<[1], [0], [0], [1], [0, 0, 1, 1], [], []>} : vector<8x8xf32>, vector<8x8xf32>, vector<8x8xf32> -> vector<8x8xf32>
    %1430 = vector.extract_strided_slice %1287 {offsets = [8, 16], sizes = [8, 8], strides = [1, 1]} : vector<16x32xf32> to vector<8x8xf32>
    %1431 = vector.extract_strided_slice %1292 {offsets = [8, 16], sizes = [8, 8], strides = [1, 1]} : vector<16x64xf32> to vector<8x8xf32>
    %1432 = vector.extract_strided_slice %1292 {offsets = [8, 48], sizes = [8, 8], strides = [1, 1]} : vector<16x64xf32> to vector<8x8xf32>
    %cst_553 = arith.constant dense<0.000000e+00> : vector<8x8xf32>
    %1433 = tpu.matmul %1430, %1431, %cst_553 {dimension_numbers = #tpu.dot_dimension_numbers<[1], [1], [0], [0], [0, 0, 1, 0], [], []>} : vector<8x8xf32>, vector<8x8xf32>, vector<8x8xf32> -> vector<8x8xf32>
    %cst_554 = arith.constant 0.353553385 : f32
    %1434 = vector.broadcast %cst_554 : f32 to vector<8x8xf32>
    %1435 = arith.mulf %1433, %1434 : vector<8x8xf32>
    %cst_555 = arith.constant 0.000000e+00 : f32
    %1436 = vector.broadcast %cst_555 : f32 to vector<1x8xf32>
    %1437 = arith.cmpf ogt, %1385, %1436 : vector<1x8xf32>
    %cst_556 = arith.constant -1.000000e+09 : f32
    %1438 = vector.shape_cast %1437 : vector<1x8xi1> to vector<1x8xi1>
    %1439 = vector.broadcast %1438 : vector<1x8xi1> to vector<8x8xi1>
    %1440 = vector.broadcast %cst_556 : f32 to vector<8x8xf32>
    %1441 = arith.select %1439, %1435, %1440 : vector<8x8xi1>, vector<8x8xf32>
    %cst_557 = arith.constant dense<0xFF800000> : vector<8xf32>
    %1442 = vector.multi_reduction <maximumf>, %1441, %cst_557 [1] : vector<8x8xf32> to vector<8xf32>
    %1443 = vector.shape_cast %1442 : vector<8xf32> to vector<8x1xf32>
    %1444 = vector.broadcast %1443 : vector<8x1xf32> to vector<8x8xf32>
    %1445 = arith.subf %1441, %1444 : vector<8x8xf32>
    %1446 = math.exp %1445 : vector<8x8xf32>
    %cst_558 = arith.constant dense<0.000000e+00> : vector<8xf32>
    %1447 = vector.multi_reduction <add>, %1446, %cst_558 [1] : vector<8x8xf32> to vector<8xf32>
    %1448 = vector.shape_cast %1447 : vector<8xf32> to vector<8x1xf32>
    %1449 = vector.broadcast %1448 : vector<8x1xf32> to vector<8x8xf32>
    %1450 = arith.divf %1446, %1449 : vector<8x8xf32>
    %cst_559 = arith.constant dense<0.000000e+00> : vector<8x8xf32>
    %1451 = tpu.matmul %1450, %1432, %cst_559 {dimension_numbers = #tpu.dot_dimension_numbers<[1], [0], [0], [1], [0, 0, 1, 1], [], []>} : vector<8x8xf32>, vector<8x8xf32>, vector<8x8xf32> -> vector<8x8xf32>
    %1452 = vector.extract_strided_slice %1287 {offsets = [8, 24], sizes = [8, 8], strides = [1, 1]} : vector<16x32xf32> to vector<8x8xf32>
    %1453 = vector.extract_strided_slice %1292 {offsets = [8, 24], sizes = [8, 8], strides = [1, 1]} : vector<16x64xf32> to vector<8x8xf32>
    %1454 = vector.extract_strided_slice %1292 {offsets = [8, 56], sizes = [8, 8], strides = [1, 1]} : vector<16x64xf32> to vector<8x8xf32>
    %cst_560 = arith.constant dense<0.000000e+00> : vector<8x8xf32>
    %1455 = tpu.matmul %1452, %1453, %cst_560 {dimension_numbers = #tpu.dot_dimension_numbers<[1], [1], [0], [0], [0, 0, 1, 0], [], []>} : vector<8x8xf32>, vector<8x8xf32>, vector<8x8xf32> -> vector<8x8xf32>
    %cst_561 = arith.constant 0.353553385 : f32
    %1456 = vector.broadcast %cst_561 : f32 to vector<8x8xf32>
    %1457 = arith.mulf %1455, %1456 : vector<8x8xf32>
    %cst_562 = arith.constant 0.000000e+00 : f32
    %1458 = vector.broadcast %cst_562 : f32 to vector<1x8xf32>
    %1459 = arith.cmpf ogt, %1385, %1458 : vector<1x8xf32>
    %cst_563 = arith.constant -1.000000e+09 : f32
    %1460 = vector.shape_cast %1459 : vector<1x8xi1> to vector<1x8xi1>
    %1461 = vector.broadcast %1460 : vector<1x8xi1> to vector<8x8xi1>
    %1462 = vector.broadcast %cst_563 : f32 to vector<8x8xf32>
    %1463 = arith.select %1461, %1457, %1462 : vector<8x8xi1>, vector<8x8xf32>
    %cst_564 = arith.constant dense<0xFF800000> : vector<8xf32>
    %1464 = vector.multi_reduction <maximumf>, %1463, %cst_564 [1] : vector<8x8xf32> to vector<8xf32>
    %1465 = vector.shape_cast %1464 : vector<8xf32> to vector<8x1xf32>
    %1466 = vector.broadcast %1465 : vector<8x1xf32> to vector<8x8xf32>
    %1467 = arith.subf %1463, %1466 : vector<8x8xf32>
    %1468 = math.exp %1467 : vector<8x8xf32>
    %cst_565 = arith.constant dense<0.000000e+00> : vector<8xf32>
    %1469 = vector.multi_reduction <add>, %1468, %cst_565 [1] : vector<8x8xf32> to vector<8xf32>
    %1470 = vector.shape_cast %1469 : vector<8xf32> to vector<8x1xf32>
    %1471 = vector.broadcast %1470 : vector<8x1xf32> to vector<8x8xf32>
    %1472 = arith.divf %1468, %1471 : vector<8x8xf32>
    %cst_566 = arith.constant dense<0.000000e+00> : vector<8x8xf32>
    %1473 = tpu.matmul %1472, %1454, %cst_566 {dimension_numbers = #tpu.dot_dimension_numbers<[1], [0], [0], [1], [0, 0, 1, 1], [], []>} : vector<8x8xf32>, vector<8x8xf32>, vector<8x8xf32> -> vector<8x8xf32>
    %1474 = tpu.concatenate %1407, %1429, %1451, %1473 in 1 : vector<8x8xf32>, vector<8x8xf32>, vector<8x8xf32>, vector<8x8xf32> -> vector<8x32xf32>
    %1475 = tpu.concatenate %1383, %1474 in 0 : vector<8x32xf32>, vector<8x32xf32> -> vector<16x32xf32>
    %cst_567 = arith.constant dense<0.000000e+00> : vector<16x32xf32>
    %1476 = tpu.matmul %1475, %1280, %cst_567 {dimension_numbers = #tpu.dot_dimension_numbers<[1], [0], [0], [1], [0, 0, 1, 1], [], []>} : vector<16x32xf32>, vector<32x32xf32>, vector<16x32xf32> -> vector<16x32xf32>
    %1477 = vector.broadcast %1282 : vector<1x32xf32> to vector<16x32xf32>
    %1478 = arith.addf %1476, %1477 : vector<16x32xf32>
    %1479 = arith.addf %1250, %1478 : vector<16x32xf32>
    %1480 = vector.extract_strided_slice %1042 {offsets = [4, 0], sizes = [1, 32], strides = [1, 1]} : vector<6x32xf32> to vector<1x32xf32>
    %1481 = vector.extract_strided_slice %1042 {offsets = [5, 0], sizes = [1, 32], strides = [1, 1]} : vector<6x32xf32> to vector<1x32xf32>
    %cst_568 = arith.constant dense<0.000000e+00> : vector<16xf32>
    %1482 = vector.multi_reduction <add>, %1479, %cst_568 [1] : vector<16x32xf32> to vector<16xf32>
    %1483 = vector.shape_cast %1482 : vector<16xf32> to vector<16x1xf32>
    %cst_569 = arith.constant 3.200000e+01 : f32
    %1484 = vector.broadcast %cst_569 : f32 to vector<16x1xf32>
    %1485 = arith.divf %1483, %1484 : vector<16x1xf32>
    %1486 = vector.broadcast %1485 : vector<16x1xf32> to vector<16x32xf32>
    %1487 = arith.subf %1479, %1486 : vector<16x32xf32>
    %1488 = arith.mulf %1487, %1487 : vector<16x32xf32>
    %cst_570 = arith.constant dense<0.000000e+00> : vector<16xf32>
    %1489 = vector.multi_reduction <add>, %1488, %cst_570 [1] : vector<16x32xf32> to vector<16xf32>
    %1490 = vector.shape_cast %1489 : vector<16xf32> to vector<16x1xf32>
    %cst_571 = arith.constant 0.0322580636 : f32
    %1491 = vector.broadcast %cst_571 : f32 to vector<16x1xf32>
    %1492 = arith.mulf %1490, %1491 : vector<16x1xf32>
    %1493 = math.sqrt %1492 : vector<16x1xf32>
    %1494 = vector.broadcast %1485 : vector<16x1xf32> to vector<16x32xf32>
    %1495 = arith.subf %1479, %1494 : vector<16x32xf32>
    %1496 = vector.broadcast %1480 : vector<1x32xf32> to vector<16x32xf32>
    %1497 = arith.mulf %1496, %1495 : vector<16x32xf32>
    %cst_572 = arith.constant 9.99999997E-7 : f32
    %1498 = vector.broadcast %cst_572 : f32 to vector<16x1xf32>
    %1499 = arith.addf %1493, %1498 : vector<16x1xf32>
    %1500 = vector.broadcast %1499 : vector<16x1xf32> to vector<16x32xf32>
    %1501 = arith.divf %1497, %1500 : vector<16x32xf32>
    %1502 = vector.broadcast %1481 : vector<1x32xf32> to vector<16x32xf32>
    %1503 = arith.addf %1501, %1502 : vector<16x32xf32>
    %c1_573 = arith.constant 1 : index
    %c0_574 = arith.constant 0 : index
    %c0_575 = arith.constant 0 : index
    %1504 = vector.load %arg21[%c1_573, %c0_574, %c0_575] : memref<2x32x64xf32, #tpu.memory_space<vmem>>, vector<1x32x64xf32>
    %1505 = vector.shape_cast %1504 : vector<1x32x64xf32> to vector<32x64xf32>
    %c1_576 = arith.constant 1 : index
    %c0_577 = arith.constant 0 : index
    %c0_578 = arith.constant 0 : index
    %1506 = vector.load %arg22[%c1_576, %c0_577, %c0_578] : memref<2x1x64xf32, #tpu.memory_space<vmem>>, vector<1x1x64xf32>
    %1507 = vector.shape_cast %1506 : vector<1x1x64xf32> to vector<1x64xf32>
    %c1_579 = arith.constant 1 : index
    %c0_580 = arith.constant 0 : index
    %c0_581 = arith.constant 0 : index
    %1508 = vector.load %arg23[%c1_579, %c0_580, %c0_581] : memref<2x64x32xf32, #tpu.memory_space<vmem>>, vector<1x64x32xf32>
    %1509 = vector.shape_cast %1508 : vector<1x64x32xf32> to vector<64x32xf32>
    %c1_582 = arith.constant 1 : index
    %c0_583 = arith.constant 0 : index
    %c0_584 = arith.constant 0 : index
    %1510 = vector.load %arg24[%c1_582, %c0_583, %c0_584] : memref<2x1x32xf32, #tpu.memory_space<vmem>>, vector<1x1x32xf32>
    %1511 = vector.shape_cast %1510 : vector<1x1x32xf32> to vector<1x32xf32>
    %cst_585 = arith.constant dense<0.000000e+00> : vector<16x64xf32>
    %1512 = tpu.matmul %1503, %1505, %cst_585 {dimension_numbers = #tpu.dot_dimension_numbers<[1], [0], [0], [1], [0, 0, 1, 1], [], []>} : vector<16x32xf32>, vector<32x64xf32>, vector<16x64xf32> -> vector<16x64xf32>
    %1513 = vector.broadcast %1507 : vector<1x64xf32> to vector<16x64xf32>
    %1514 = arith.addf %1512, %1513 : vector<16x64xf32>
    %cst_586 = arith.constant 0.000000e+00 : f32
    %1515 = vector.broadcast %cst_586 : f32 to vector<16x64xf32>
    %1516 = arith.maximumf %1514, %1515 : vector<16x64xf32>
    %cst_587 = arith.constant dense<0.000000e+00> : vector<16x32xf32>
    %1517 = tpu.matmul %1516, %1509, %cst_587 {dimension_numbers = #tpu.dot_dimension_numbers<[1], [0], [0], [1], [0, 0, 1, 1], [], []>} : vector<16x64xf32>, vector<64x32xf32>, vector<16x32xf32> -> vector<16x32xf32>
    %1518 = vector.broadcast %1511 : vector<1x32xf32> to vector<16x32xf32>
    %1519 = arith.addf %1517, %1518 : vector<16x32xf32>
    %1520 = arith.addf %1479, %1519 : vector<16x32xf32>
    %1521 = vector.extract_strided_slice %535 {offsets = [2, 0], sizes = [1, 32], strides = [1, 1]} : vector<4x32xf32> to vector<1x32xf32>
    %1522 = vector.extract_strided_slice %535 {offsets = [3, 0], sizes = [1, 32], strides = [1, 1]} : vector<4x32xf32> to vector<1x32xf32>
    %cst_588 = arith.constant dense<0.000000e+00> : vector<16xf32>
    %1523 = vector.multi_reduction <add>, %1520, %cst_588 [1] : vector<16x32xf32> to vector<16xf32>
    %1524 = vector.shape_cast %1523 : vector<16xf32> to vector<16x1xf32>
    %cst_589 = arith.constant 3.200000e+01 : f32
    %1525 = vector.broadcast %cst_589 : f32 to vector<16x1xf32>
    %1526 = arith.divf %1524, %1525 : vector<16x1xf32>
    %1527 = vector.broadcast %1526 : vector<16x1xf32> to vector<16x32xf32>
    %1528 = arith.subf %1520, %1527 : vector<16x32xf32>
    %1529 = arith.mulf %1528, %1528 : vector<16x32xf32>
    %cst_590 = arith.constant dense<0.000000e+00> : vector<16xf32>
    %1530 = vector.multi_reduction <add>, %1529, %cst_590 [1] : vector<16x32xf32> to vector<16xf32>
    %1531 = vector.shape_cast %1530 : vector<16xf32> to vector<16x1xf32>
    %cst_591 = arith.constant 0.0322580636 : f32
    %1532 = vector.broadcast %cst_591 : f32 to vector<16x1xf32>
    %1533 = arith.mulf %1531, %1532 : vector<16x1xf32>
    %1534 = math.sqrt %1533 : vector<16x1xf32>
    %1535 = vector.broadcast %1526 : vector<16x1xf32> to vector<16x32xf32>
    %1536 = arith.subf %1520, %1535 : vector<16x32xf32>
    %1537 = vector.broadcast %1521 : vector<1x32xf32> to vector<16x32xf32>
    %1538 = arith.mulf %1537, %1536 : vector<16x32xf32>
    %cst_592 = arith.constant 9.99999997E-7 : f32
    %1539 = vector.broadcast %cst_592 : f32 to vector<16x1xf32>
    %1540 = arith.addf %1534, %1539 : vector<16x1xf32>
    %1541 = vector.broadcast %1540 : vector<16x1xf32> to vector<16x32xf32>
    %1542 = arith.divf %1538, %1541 : vector<16x32xf32>
    %1543 = vector.broadcast %1522 : vector<1x32xf32> to vector<16x32xf32>
    %1544 = arith.addf %1542, %1543 : vector<16x32xf32>
    %c0_593 = arith.constant 0 : index
    %c0_594 = arith.constant 0 : index
    %1545 = vector.load %arg27[%c0_593, %c0_594] : memref<16x32xf32, #tpu.memory_space<vmem>>, vector<16x32xf32>
    tpu.vector_store %arg27[%c0_593, %c0_594], %1544 {strides = array<i32>} : memref<16x32xf32, #tpu.memory_space<vmem>>, vector<16x32xf32>,
    return
  }
}

</mosaic_0001>

<bundles_post_ra>
// kernel: encoder_decoder_forward.1
= control target key start
LH: loop header
LB: loop body
LE: loop exit
PB: predicated region body
PF: predicated region fallthrough
CT: control target
= control target key end

     0   :  { %s15169_s0 = inlined_call_operand.vmem [shape: f32[16,32], index: 0, kind: input, shape index: {}]   ;;  %s15170_s1 = inlined_call_operand.vmem [shape: f32[16,32], index: 1, kind: input, shape index: {}]   ;;  %s15171_s2 = inlined_call_operand.vmem [shape: f32[2,1,8], index: 2, kind: input, shape index: {}]   ;;  %s15172_s3 = inlined_call_operand.vmem [shape: f32[2,8,8], index: 3, kind: input, shape index: {}]   ;;  %s15173_s4 = inlined_call_operand.vmem [shape: f32[2,32,96], index: 4, kind: input, shape index: {}]   ;;  %s15174_s5 = inlined_call_operand.vmem [shape: f32[2,1,96], index: 5, kind: input, shape index: {}, may-alias: {5,14,18}]   ;;  %s15175_s6 = inlined_call_operand.vmem [shape: f32[2,32,32], index: 6, kind: input, shape index: {}]   ;;  %s15176_s7 = inlined_call_operand.vmem [shape: f32[2,1,32], index: 7, kind: input, shape index: {}, may-alias: {7,11,16,20,24}]   ;;  %s15177_s8 = inlined_call_operand.vmem [shape: f32[2,32,64], index: 8, kind: input, shape index: {}]   ;;  %s15178_s9 = inlined_call_operand.vmem [shape: f32[2,1,64], index: 9, kind: input, shape index: {}, may-alias: {9,22}]   ;;  %s15179_s10 = inlined_call_operand.vmem [shape: f32[2,64,32], index: 10, kind: input, shape index: {}]   ;;  %s15180_s11 = inlined_call_operand.vmem [shape: f32[2,1,32], index: 11, kind: input, shape index: {}, may-alias: {7,11,16,20,24}]   ;;  %s15181_s12 = inlined_call_operand.vmem [shape: f32[2,4,32], index: 12, kind: input, shape index: {}]   ;;  %s15182_s13 = inlined_call_operand.hbm [shape: f32[2,32,96], index: 13, kind: input, shape index: {}]   ;;  %s15183_s14 = inlined_call_operand.vmem [shape: f32[2,1,96], index: 14, kind: input, shape index: {}, may-alias: {5,14,18}]   ;;  %s15184_s15 = inlined_call_operand.hbm [shape: f32[2,32,32], index: 15, kind: input, shape index: {}]   ;;  %s15185_s16 = inlined_call_operand.vmem [shape: f32[2,1,32], index: 16, kind: input, shape index: {}, may-alias: {7,11,16,20,24}]   ;;  %s15186_s17 = inlined_call_operand.hbm [shape: f32[2,32,96], index: 17, kind: input, shape index: {}]   ;;  %s15187_s18 = inlined_call_operand.vmem [shape: f32[2,1,96], index: 18, kind: input, shape index: {}, may-alias: {5,14,18}]   ;;  %s15188_s19 = inlined_call_operand.hbm [shape: f32[2,32,32], index: 19, kind: input, shape index: {}]   ;;  %s15189_s20 = inlined_call_operand.vmem [shape: f32[2,1,32], index: 20, kind: input, shape index: {}, may-alias: {7,11,16,20,24}]   ;;  %s15190_s21 = inlined_call_operand.hbm [shape: f32[2,32,64], index: 21, kind: input, shape index: {}]   ;;  %s15191_s22 = inlined_call_operand.vmem [shape: f32[2,1,64], index: 22, kind: input, shape index: {}, may-alias: {9,22}]   ;;  %s15192_s23 = inlined_call_operand.vmem [shape: f32[2,64,32], index: 23, kind: input, shape index: {}]   ;;  %s15193_s24 = inlined_call_operand.vmem [shape: f32[2,1,32], index: 24, kind: input, shape index: {}, may-alias: {7,11,16,20,24}]   ;;  %s15194_s25 = inlined_call_operand.vmem [shape: f32[2,6,32], index: 25, kind: input, shape index: {}]   ;;  %s15195_s26 = inlined_call_operand.vmem [shape: f32[4,32], index: 26, kind: input, shape index: {}]   ;;  %s15196_s27 = inlined_call_operand.hbm [shape: f32[16,32], index: 27, kind: output, shape index: {}]  }
   0x1   :  { %15241 = sst [smem:[#allocation16_spill]] %s15169_s0 }
   0x2   :  { %15242 = sst [smem:[#allocation17_spill]] %s15170_s1 }
   0x3   :  { %15243 = sst [smem:[#allocation18_spill]] %s15171_s2 }
   0x4   :  { %15244 = sst [smem:[#allocation19_spill]] %s15172_s3 }
   0x5   :  { %15245 = sst [smem:[#allocation20_spill]] %s15173_s4 }
   0x6   :  { %15246 = sst [smem:[#allocation21_spill]] %s15174_s5 }
   0x7   :  { %15247 = sst [smem:[#allocation22_spill]] %s15175_s6 }
   0x8   :  { %15248 = sst [smem:[#allocation23_spill]] %s15176_s7 }
   0x9   :  { %15249 = sst [smem:[#allocation24_spill]] %s15177_s8 }
   0xa   :  { %15250 = sst [smem:[#allocation25_spill]] %s15178_s9 }
   0xb   :  { %15251 = sst [smem:[#allocation26_spill]] %s15179_s10 }
   0xc   :  { %15252 = sst [smem:[#allocation27_spill]] %s15180_s11 }
   0xd   :  { %15253 = sst [smem:[#allocation28_spill]] %s15193_s24 }
   0xe   :  { %15254 = sst [smem:[#allocation29_spill]] %s15195_s26 }
   0xf   :  { %15255 = sst [smem:[#allocation30_spill]] %s15196_s27 }
  0x10   :  { %32 = vsyncpa [#allocation3], 0 }
  0x11   :  { %33 = vsyncpa [#allocation6], 0 }
  0x12   :  { %34 = vsyncpa [#allocation9], 0 }
  0x13   :  { %35 = vsyncpa [#allocation4], 0  ;;  %s13144_s7 = smov [#allocation5]   ;;  %s13145_s8 = smov [#allocation8]  }
  0x14   :  { %s81_s4 = sshll.u32 %s13144_s7, 4  ;;  %s109_s30 = sshll.u32 %s13145_s8, 4  ;;  %s82_s4 = int_to_ptr.vmem [resolvable:$true] %s81_s4  ;;  %s13308_s30 = int_to_ptr.vmem [resolvable:$true] %s109_s30 }
  0x15   :  { %s13004_s28 = scalar_lea.hbm %s15184_s15, 1024 }
  0x16   :  { %p13005_p0 = scmp.ne.s32.totalorder %s15184_s15, %s13004_s28  ;;  %p13008_p1 = scmp.lt.u32.totalorder %s13004_s28, %s15184_s15 }
  0x18   :  { %p13010_p2 = pnand %p13008_p1, %p13005_p0 }
  0x1a   :  { %13013 = shalt.err (!%p13010_p2)
}
  0x1b   :  { %s13014_s6 = scalar_lea.vmem %s82_s4, 1024  ;;  %p13019_p4 = scmp.lt.s32.totalorder %s82_s4, %s82_s4 }
  0x1c   :  { %p13015_p3 = scmp.ne.s32.totalorder %s82_s4, %s13014_s6  ;;  %p13020_p5 = scmp.lt.s32.totalorder %s13014_s6, %s13014_s6 }
  0x1e   :  { %p13021_p6 = por %p13020_p5, %p13019_p4 }
  0x20   :  { %p13022_p7 = pnand %p13021_p6, %p13015_p3 }
  0x22   :  { %13025 = shalt.err (!%p13022_p7)
}
  0x23   :  { %s15209_s11 = smov 128   ;;  %s15222_s2 = smov 8  }
  0x24   :  { %87 = dma.hbm_to_vmem [thread:$0]  %s15184_s15, 1024, %s82_s4, [#allocation6], %s15209_s11, %s15209_s11, %s15222_s2  }
  0x25   :  { %s13026_s5 = scalar_lea.hbm %s15188_s19, 1024 }
  0x26   :  { %p13027_p8 = scmp.ne.s32.totalorder %s15188_s19, %s13026_s5  ;;  %p13030_p9 = scmp.lt.u32.totalorder %s13026_s5, %s15188_s19 }
  0x28   :  { %p13032_p10 = pnand %p13030_p9, %p13027_p8 }
  0x2a   :  { %13035 = shalt.err (!%p13032_p10)
}
  0x2b   :  { %s13036_s1 = scalar_lea.vmem %s13308_s30, 1024  ;;  %p13041_p12 = scmp.lt.s32.totalorder %s13308_s30, %s13308_s30 }
  0x2c   :  { %p13037_p11 = scmp.ne.s32.totalorder %s13308_s30, %s13036_s1  ;;  %p13042_p13 = scmp.lt.s32.totalorder %s13036_s1, %s13036_s1 }
  0x2e   :  { %p13043_p0 = por %p13042_p13, %p13041_p12 }
  0x30   :  { %p13044_p1 = pnand %p13043_p0, %p13037_p11 }
  0x32   :  { %13047 = shalt.err (!%p13044_p1)
}
  0x33   :  { %115 = dma.hbm_to_vmem [thread:$0]  %s15188_s19, 1024, %s13308_s30, [#allocation9], %s15209_s11, %s15209_s11, %s15222_s2  }
  0x34   :  { %s13148_s6 = smov [#allocation2]   ;;  %s13149_s7 = smov [#allocation7]  }
  0x35   :  { %s67_s3 = sshll.u32 %s13148_s6, 4  ;;  %s95_s8 = sshll.u32 %s13149_s7, 4  ;;  %s68_s3 = int_to_ptr.vmem [resolvable:$true] %s67_s3  ;;  %s13345_s8 = int_to_ptr.vmem [resolvable:$true] %s95_s8 }
  0x36   :  { %s13048_s28 = scalar_lea.hbm %s15182_s13, 1024 }
  0x37   :  { %p13049_p2 = scmp.ne.s32.totalorder %s15182_s13, %s13048_s28  ;;  %p13052_p3 = scmp.lt.u32.totalorder %s13048_s28, %s15182_s13 }
  0x39   :  { %p13054_p4 = pnand %p13052_p3, %p13049_p2 }
  0x3b   :  { %13057 = shalt.err (!%p13054_p4)
}
  0x3c   :  { %s13058_s19 = scalar_lea.vmem %s68_s3, 1024  ;;  %p13063_p6 = scmp.lt.s32.totalorder %s68_s3, %s68_s3 }
  0x3d   :  { %p13059_p5 = scmp.ne.s32.totalorder %s68_s3, %s13058_s19  ;;  %p13064_p7 = scmp.lt.s32.totalorder %s13058_s19, %s13058_s19 }
  0x3f   :  { %p13065_p8 = por %p13064_p7, %p13063_p6 }
  0x41   :  { %p13066_p9 = pnand %p13065_p8, %p13059_p5 }
  0x43   :  { %13069 = shalt.err (!%p13066_p9)
}
  0x44   :  { %73 = dma.hbm_to_vmem [thread:$0]  %s15182_s13, 1024, %s68_s3, [#allocation3], %s15209_s11, %s15209_s11, %s15222_s2  }
  0x45   :  { %s13070_s7 = scalar_lea.hbm %s15186_s17, 1024 }
  0x46   :  { %p13071_p10 = scmp.ne.s32.totalorder %s15186_s17, %s13070_s7  ;;  %p13074_p11 = scmp.lt.u32.totalorder %s13070_s7, %s15186_s17 }
  0x48   :  { %p13076_p12 = pnand %p13074_p11, %p13071_p10 }
  0x4a   :  { %13079 = shalt.err (!%p13076_p12)
}
  0x4b   :  { %s13080_s10 = scalar_lea.vmem %s13345_s8, 1024  ;;  %p13085_p0 = scmp.lt.s32.totalorder %s13345_s8, %s13345_s8 }
  0x4c   :  { %p13081_p13 = scmp.ne.s32.totalorder %s13345_s8, %s13080_s10  ;;  %p13086_p1 = scmp.lt.s32.totalorder %s13080_s10, %s13080_s10 }
  0x4e   :  { %p13087_p2 = por %p13086_p1, %p13085_p0 }
  0x50   :  { %p13088_p3 = pnand %p13087_p2, %p13081_p13 }
  0x52   :  { %13091 = shalt.err (!%p13088_p3)
}
  0x53   :  { %101 = dma.hbm_to_vmem [thread:$0]  %s15186_s17, 1024, %s13345_s8, [#allocation6], %s15209_s11, %s15209_s11, %s15222_s2  }
  0x54   :  { %s13150_s29 = smov [#allocation10]   ;;  %s13092_s15 = scalar_lea.hbm %s15190_s21, 1024 }
  0x55   :  { %s123_s1 = sshll.u32 %s13150_s29, 4  ;;  %p13093_p4 = scmp.ne.s32.totalorder %s15190_s21, %s13092_s15  ;;  %s124_s1 = int_to_ptr.vmem [resolvable:$true] %s123_s1 }
  0x56   :  { %p13096_p5 = scmp.lt.u32.totalorder %s13092_s15, %s15190_s21 }
  0x58   :  { %p13098_p6 = pnand %p13096_p5, %p13093_p4 }
  0x5a   :  { %13101 = shalt.err (!%p13098_p6)
}
  0x5b   :  { %s13102_s5 = scalar_lea.vmem %s124_s1, 1024  ;;  %p13107_p8 = scmp.lt.s32.totalorder %s124_s1, %s124_s1 }
  0x5c   :  { %p13103_p7 = scmp.ne.s32.totalorder %s124_s1, %s13102_s5  ;;  %p13108_p9 = scmp.lt.s32.totalorder %s13102_s5, %s13102_s5 }
  0x5e   :  { %p13109_p10 = por %p13108_p9, %p13107_p8 }
  0x60   :  { %p13110_p11 = pnand %p13109_p10, %p13103_p7 }
  0x62   :  { %13113 = shalt.err (!%p13110_p11)
}
  0x63   :  { %129 = dma.hbm_to_vmem [thread:$0]  %s15190_s21, 1024, %s124_s1, [#allocation9], %s15209_s11, %s15209_s11, %s15222_s2  }
  0x64   :  { %13136 = dma.done.wait [#allocation3], 1024  }
  0x65   :  { %13137 = vsyncadd [#allocation3], 4294966272 }
  0x66   :  { %13138 = dma.done.wait [#allocation6], 2048  }
  0x67   :  { %13139 = vsyncadd [#allocation6], 4294965248 }
  0x68   :  { %13140 = dma.done.wait [#allocation9], 2048  }
  0x69   :  { %13141 = vsyncadd [#allocation9], 4294965248  ;;  %vm158_vm0 = vcmask 261120   ;;  %s15256_s10 = sld [smem:[#allocation16_spill]]  ;;  %s15257_s1 = sld [smem:[#allocation20_spill]]  ;;  %v194_v25 = vlaneseq  ;;  %v13151_v51 = vmov 0.0  }
  0x6a   :  { %v13435_v38 = vld [vmem:[%s15181_s12] sm:$0xf]  ;;  %11728 = vmatprep.subr.mxu0 %v13151_v51  ;;  %vm13152_vm5 = vmmov 0   ;;  %s15258_s28 = sld [smem:[#allocation21_spill]]  ;;  %s15236_s0 = smov 88   ;;  %vm313_vm6 = vcmask 64512  }
  0x6b   :  { %v13427_v30 = vshrl.u32 %v194_v25, 7  ;;  %11730 = vmatprep.mubr.msk.f32.mxu0 %vm13152_vm5, %v13151_v51  ;;  %s15232_s13 = smov 120   ;;  %s15230_s3 = smov 112   ;;  %vm998_vm11 = vcmask 130048   ;;  %vm1000_vm12 = vcmask 195584  }
  0x6c   :  { %s15228_s21 = smov 80   ;;  %s15226_s29 = smov 104  }
  0x6d   :  { %v13430_v36 = vsub.s32 0, %v13427_v30  ;;  %v13440_v41 = vsub.s32 1, %v13427_v30  ;;  %s15224_s19 = smov 72   ;;  %s15259_s4 = sld [smem:[#allocation18_spill]] }
  0x6e   :  { %s15216_s9 = smov 64   ;;  %s15214_s5 = smov 48  }
  0x6f   :  { %v13400_v0 = vld [vmem:[%s15256_s10] sm:$0xff]  ;;  %v13405_v1 = vld [vmem:[%s15256_s10 + $0x8] sm:$0xff]  ;;  %v214_v16 = vld [vmem:[%s15257_s1 + $0x10] sm:$0xff]  ;;  %v197_v40 = vrot.slane %v13435_v38, %v13430_v36  ;;  %v209_v43 = vrot.slane %v13435_v38, %v13440_v41  ;;  %s15234_s10 = smov 96   ;;  %s15212_s17 = smov 40  }
  0x70   :  { %v159_v2 = vsel %vm158_vm0, %v13400_v0, 0.0  ;;  %v162_v3 = vsel %vm158_vm0, %v13405_v1, 0.0  ;;  %v212_v14 = vld [vmem:[%s15257_s1] sm:$0xff]  ;;  %v213_v15 = vld [vmem:[%s15257_s1 + $0x8] sm:$0xff]  ;;  %v215_v18 = vld [vmem:[%s15257_s1 + $0x18] sm:$0xff]  ;;  %s15210_s8 = smov 56  }
  0x71   :  { %160 = vadd.xlane.f32.xlu0 %v159_v2  ;;  %v12461_v17 = vpack.c.bf16 %v213_v15, %v212_v14  ;;  %v12465_v19 = vpack.c.bf16 %v215_v18, %v214_v16  ;;  %v11117_v52 = vld [vmem:[%s15258_s28] ss:$0 sm:$0xff]  ;;  %s15220_s11 = smov 16   ;;  %s15218_s30 = smov 24  }
  0x72   :  { %s15266_s6 = sld [smem:[#allocation24_spill]]  ;;  %s15269_s15 = sld [smem:[#allocation27_spill]] }
  0x73   :  { %12462 = vmatprep.subr.bf16.mxu1 %v12461_v17  ;;  %s15270_s7 = smov 80   ;;  %s15284_s24 = smov 112  }
  0x74   :  { %12464 = vmatpush3.bf16.msra.mxu1 %v12461_v17 }
  0x75   :  { %163 = vadd.xlane.f32.xlu0 %v162_v3  ;;  %12466 = vmatprep.subr.bf16.mxu1 %v12465_v19 }
  0x78   :  { %12468 = vmatpush3.bf16.msra.mxu1 %v12465_v19 }
  0x79   :  { %11718 = vmatprep.subr.mxu1 %v13151_v51 }
  0xfe   :  { %v161_v4 = vpop.xlane.xlu0 %160 }
  0xff   :  { %v166_v5 = vmul.f32 0.03125, %v161_v4 }
 0x101   :  { %v168_v6 = vsub.f32 %v13400_v0, %v166_v5 }
 0x102   :  { %v164_v7 = vpop.xlane.xlu0 %163 }
 0x103   :  { %v167_v8 = vmul.f32 0.03125, %v164_v7  ;;  %v170_v9 = vmul.f32 %v168_v6, %v168_v6  ;;  %v198_v42 = vmul.f32 %v197_v40, %v168_v6 }
 0x105   :  { %v169_v10 = vsub.f32 %v13405_v1, %v167_v8  ;;  %v172_v11 = vsel %vm158_vm0, %v170_v9, 0.0  ;;  %v309_v9 = vld [vmem:[%s15259_s4] sm:$0x1] }
 0x106   :  { %173 = vadd.xlane.f32.xlu1 %v172_v11  ;;  %vm389_vm7 = vcmp.gt.f32.partialorder %v309_v9, 0.0 }
 0x107   :  { %v171_v12 = vmul.f32 %v169_v10, %v169_v10  ;;  %v199_v46 = vmul.f32 %v197_v40, %v169_v10  ;;  %v13160_v10 = vmov 0  }
 0x108   :  { %v390_v11 = vsel %vm389_vm7, 1, %v13160_v10 }
 0x109   :  { %v175_v13 = vsel %vm158_vm0, %v171_v12, 0.0  ;;  %v394_v12 = vrot.slane %v390_v11, %v13430_v36 }
 0x10a   :  { %176 = vadd.xlane.f32.xlu1 %v175_v13 }
 0x10b   :  { %vm13530_vm8 = vcmp.eq.s32.totalorder %v394_v12, 1 }
 0x193   :  { %v174_v20 = vpop.xlane.xlu1 %173 }
 0x194   :  { %v178_v21 = vmul.f32 0.032258064, %v174_v20  ;;  %v11132_v20 = vld [vmem:[%s15259_s4 + $0x1] sm:$0x1]  ;;  %s15264_s4 = sld [smem:[#allocation22_spill]] }
 0x195   :  { %vm1082_vm9 = vcmp.gt.f32.partialorder %v11132_v20, 0.0 }
 0x196   :  { %12713 = vrsqrt.f32 %v178_v21  ;;  %vm182_vm1 = vcmp.eq.f32.partialorder %v178_v21, inf  ;;  %v185_v27 = vand.u32 2147483648, %v178_v21  ;;  %vm184_vm2 = vcmp.eq.f32.partialorder %v178_v21, 0.0 }
 0x197   :  { %v177_v22 = vpop.xlane.xlu1 %176 }
 0x198   :  { %v179_v23 = vmul.f32 0.032258064, %v177_v22 }
 0x19a   :  { %12715 = vrsqrt.f32 %v179_v23  ;;  %vm189_vm3 = vcmp.eq.f32.partialorder %v179_v23, inf  ;;  %v192_v34 = vand.u32 2147483648, %v179_v23  ;;  %vm191_vm4 = vcmp.eq.f32.partialorder %v179_v23, 0.0 }
 0x1a0   :  { %v12714_v24 = vpop.eup %12713 }
 0x1a1   :  { %v181_v26 = vmul.f32 %v12714_v24, %v178_v21 }
 0x1a3   :  { %v183_v28 = vsel %vm182_vm1, %v178_v21, %v181_v26  ;;  %v1083_v26 = vsel %vm1082_vm9, 1, %v13160_v10 }
 0x1a4   :  { %v12716_v29 = vpop.eup %12715  ;;  %v186_v31 = vsel %vm184_vm2, %v185_v27, %v183_v28  ;;  %vm1943_vm2 = vcmask 523264  }
 0x1a5   :  { %v188_v32 = vmul.f32 %v12716_v29, %v179_v23  ;;  %v200_v33 = vadd.f32 1e-06, %v186_v31  ;;  %v1087_v31 = vrot.slane %v1083_v26, %v13430_v36 }
 0x1a7   :  { %v190_v35 = vsel %vm189_vm3, %v179_v23, %v188_v32  ;;  %12717 = vrcp.f32 %v200_v33  ;;  %vm13552_vm10 = vcmp.eq.s32.totalorder %v1087_v31, 1 }
 0x1a8   :  { %v193_v37 = vsel %vm191_vm4, %v192_v34, %v190_v35 }
 0x1a9   :  { %v201_v39 = vadd.f32 1e-06, %v193_v37 }
 0x1ab   :  { %12719 = vrcp.f32 %v201_v39 }
 0x1b1   :  { %v12718_v44 = vpop.eup %12717 }
 0x1b2   :  { %v203_v45 = vmul.f32 %v12718_v44, %v198_v42 }
 0x1b4   :  { %v210_v47 = vadd.f32 %v209_v43, %v203_v45 }
 0x1b5   :  { %v12720_v48 = vpop.eup %12719 }
 0x1b6   :  { %v205_v49 = vmul.f32 %v12720_v48, %v199_v46  ;;  %11715 = vmatprep.mubr.msk.f32.mxu1 %vm158_vm0, %v210_v47 }
 0x1b8   :  { %v211_v50 = vadd.f32 %v209_v43, %v205_v49 }
 0x1ba   :  { %11716 = vmatmul.mubr.msk.f32.vlgmr.msra.gmra.mrb[0].mxu1 %vm158_vm0, %v211_v50 }
 0x1bb   :  { %11720 = vmatprep.mubr.msk.f32.mxu1 %vm13152_vm5, %v13151_v51 }
 0x28d   :  { %v11717_v53 = vpop.f32.mrb[0].mxu1 }
 0x28e   :  { %v300_v54 = vpop.f32.mrb[1].mxu1  ;;  %v13469_v56 = vadd.f32 %v11717_v53, %v11117_v52 }
 0x28f   :  { %v13455_v55 = vadd.f32 %v11117_v52, %v300_v54 }
 0x291   :  { %486 = vrot.lane.b32.xlu1 %v13455_v55, %s15236_s0  ;;  %311 = vrot.lane.b32.xlu0 %v13455_v55, %s15234_s10 }
 0x295   :  { %484 = vrot.lane.b32.xlu1 %v13455_v55, %s15232_s13  ;;  %651 = vrot.lane.b32.xlu0 %v13455_v55, %s15230_s3 }
 0x299   :  { %653 = vrot.lane.b32.xlu1 %v13455_v55, %s15228_s21  ;;  %818 = vrot.lane.b32.xlu0 %v13455_v55, %s15226_s29 }
 0x29d   :  { %820 = vrot.lane.b32.xlu1 %v13455_v55, %s15224_s19  ;;  %1179 = vrot.lane.b32.xlu0 %v13469_v56, %s15236_s0 }
 0x2a1   :  { %1005 = vrot.lane.b32.xlu1 %v13469_v56, %s15234_s10  ;;  %1346 = vrot.lane.b32.xlu0 %v13469_v56, %s15228_s21  ;;  %s15279_s21 = smov 24  }
 0x2a5   :  { %1177 = vrot.lane.b32.xlu1 %v13469_v56, %s15232_s13  ;;  %1513 = vrot.lane.b32.xlu0 %v13469_v56, %s15224_s19  ;;  %s15267_s19 = sld [smem:[#allocation26_spill]] }
 0x2a9   :  { %1344 = vrot.lane.b32.xlu1 %v13469_v56, %s15230_s3 }
 0x2ad   :  { %1511 = vrot.lane.b32.xlu1 %v13469_v56, %s15226_s29  ;;  %s15283_s29 = smov 120  }
 0x303   :  { %v487_v57 = vpop.permute.xlu1 %486  ;;  %v312_v58 = vpop.permute.xlu0 %311 }
 0x304   :  { %11719 = vmatpush3.xpose.msk.msra.mxu1 %vm313_vm6, %v312_v58  ;;  %11729 = vmatpush3.xpose.msk.msra.mxu0 %vm313_vm6, %v487_v57 }
 0x305   :  { %11738 = vmatprep.subr.mxu0 %v13151_v51  ;;  %11723 = vmatprep.subr.mxu1 %v13151_v51 }
 0x307   :  { %v485_v59 = vpop.permute.xlu1 %484  ;;  %11721 = vmatmul.mubr.msk.f32.vlgmr.msra.gmra.mrb[2].mxu1 %vm313_vm6, %v13455_v55  ;;  %v652_v60 = vpop.permute.xlu0 %651 }
 0x308   :  { %11731 = vmatmul.mubr.msk.f32.vlgmr.msra.gmra.mrb[0].mxu0 %vm313_vm6, %v485_v59  ;;  %11725 = vmatprep.mubr.msk.f32.mxu1 %vm13152_vm5, %v13151_v51 }
 0x309   :  { %11740 = vmatprep.mubr.msk.f32.mxu0 %vm13152_vm5, %v13151_v51 }
 0x30b   :  { %v654_v61 = vpop.permute.xlu1 %653  ;;  %v819_v62 = vpop.permute.xlu0 %818 }
 0x30c   :  { %11739 = vmatpush3.xpose.msk.msra.mxu0 %vm313_vm6, %v654_v61 }
 0x30d   :  { %11748 = vmatprep.subr.mxu0 %v13151_v51 }
 0x30f   :  { %v821_v63 = vpop.permute.xlu1 %820  ;;  %11741 = vmatmul.mubr.msk.f32.vlgmr.msra.gmra.mrb[2].mxu0 %vm313_vm6, %v652_v60  ;;  %v1180_v2 = vpop.permute.xlu0 %1179 }
 0x310   :  { %11749 = vmatpush3.xpose.msk.msra.mxu0 %vm313_vm6, %v821_v63  ;;  %11750 = vmatprep.mubr.msk.f32.mxu0 %vm13152_vm5, %v13151_v51 }
 0x311   :  { %11758 = vmatprep.subr.mxu0 %v13151_v51 }
 0x313   :  { %v1006_v3 = vpop.permute.xlu1 %1005  ;;  %11751 = vmatmul.mubr.msk.f32.vlgmr.msra.gmra.mrb[4].mxu0 %vm313_vm6, %v819_v62  ;;  %v1347_v5 = vpop.permute.xlu0 %1346 }
 0x314   :  { %11759 = vmatpush3.xpose.msk.msra.mxu0 %vm313_vm6, %v1006_v3  ;;  %11760 = vmatprep.mubr.msk.f32.mxu0 %vm13152_vm5, %v13151_v51 }
 0x315   :  { %11768 = vmatprep.subr.mxu0 %v13151_v51 }
 0x317   :  { %v1178_v4 = vpop.permute.xlu1 %1177  ;;  %11761 = vmatmul.mubr.msk.f32.vlgmr.msra.gmra.mrb[6].mxu0 %vm313_vm6, %v13469_v56  ;;  %v1514_v7 = vpop.permute.xlu0 %1513 }
 0x318   :  { %11769 = vmatpush3.xpose.msk.msra.mxu0 %vm313_vm6, %v1180_v2  ;;  %11770 = vmatprep.mubr.msk.f32.mxu0 %vm13152_vm5, %v13151_v51 }
 0x319   :  { %11778 = vmatprep.subr.mxu0 %v13151_v51 }
 0x31b   :  { %11771 = vmatmul.mubr.msk.f32.vlgmr.msra.gmra.mrb[8].mxu0 %vm313_vm6, %v1178_v4  ;;  %v1345_v6 = vpop.permute.xlu1 %1344 }
 0x31c   :  { %11779 = vmatpush3.xpose.msk.msra.mxu0 %vm313_vm6, %v1347_v5  ;;  %11780 = vmatprep.mubr.msk.f32.mxu0 %vm13152_vm5, %v13151_v51 }
 0x31d   :  { %11788 = vmatprep.subr.mxu0 %v13151_v51 }
 0x31f   :  { %11781 = vmatmul.mubr.msk.f32.vlgmr.msra.gmra.mrb[10].mxu0 %vm313_vm6, %v1345_v6  ;;  %v1512_v8 = vpop.permute.xlu1 %1511 }
 0x320   :  { %11789 = vmatpush3.xpose.msk.msra.mxu0 %vm313_vm6, %v1514_v7  ;;  %11790 = vmatprep.mubr.msk.f32.mxu0 %vm13152_vm5, %v13151_v51 }
 0x323   :  { %11791 = vmatmul.mubr.msk.f32.vlgmr.msra.gmra.mrb[12].mxu0 %vm313_vm6, %v1512_v8 }
 0x3da   :  { %v384_v14 = vpop.f32.mrb[2].mxu1 }
 0x3db   :  { %v388_v15 = vmul.f32 0.35355338, %v384_v14  ;;  %v11722_v16 = vpop.f32.mrb[3].mxu1  ;;  %v558_v17 = vpop.f32.mrb[0].mxu0 }
 0x3dc   :  { %v562_v18 = vmul.f32 0.35355338, %v558_v17  ;;  %v11732_v19 = vpop.f32.mrb[1].mxu0 }
 0x3dd   :  { %v396_v21 = vsel %vm13530_vm8, %v388_v15, -1e+09 }
 0x3de   :  { %v397_v22 = vsel %vm313_vm6, %v396_v21, -inf  ;;  %v563_v23 = vsel %vm13530_vm8, %v562_v18, -1e+09 }
 0x3df   :  { %398 = vmax.xlane.f32.xlu0 %v397_v22  ;;  %v564_v24 = vsel %vm313_vm6, %v563_v23, -inf }
 0x3e0   :  { %565 = vmax.xlane.f32.xlu1 %v564_v24 }
 0x3e2   :  { %v725_v25 = vpop.f32.mrb[2].mxu0 }
 0x3e3   :  { %v729_v27 = vmul.f32 0.35355338, %v725_v25  ;;  %v11742_v28 = vpop.f32.mrb[3].mxu0 }
 0x3e5   :  { %v13545_v29 = vsel %vm13530_vm8, %v729_v27, -1e+09 }
 0x3e6   :  { %v892_v32 = vpop.f32.mrb[4].mxu0  ;;  %v731_v33 = vsel %vm313_vm6, %v13545_v29, -inf }
 0x3e7   :  { %v896_v34 = vmul.f32 0.35355338, %v892_v32  ;;  %732 = vmax.xlane.f32.xlu0 %v731_v33  ;;  %v11752_v35 = vpop.f32.mrb[5].mxu0 }
 0x3e9   :  { %v897_v37 = vsel %vm13530_vm8, %v896_v34, -1e+09 }
 0x3ea   :  { %v1077_v40 = vpop.f32.mrb[6].mxu0  ;;  %v898_v42 = vsel %vm313_vm6, %v897_v37, -inf }
 0x3eb   :  { %v1081_v43 = vmul.f32 0.35355338, %v1077_v40  ;;  %899 = vmax.xlane.f32.xlu0 %v898_v42  ;;  %v11762_v44 = vpop.f32.mrb[7].mxu0 }
 0x3ed   :  { %v13559_v45 = vsel %vm13552_vm10, %v1081_v43, -1e+09 }
 0x3ee   :  { %v1251_v46 = vpop.f32.mrb[8].mxu0  ;;  %v1090_v47 = vsel %vm313_vm6, %v13559_v45, -inf }
 0x3ef   :  { %v1255_v48 = vmul.f32 0.35355338, %v1251_v46  ;;  %1091 = vmax.xlane.f32.xlu0 %v1090_v47  ;;  %v11772_v49 = vpop.f32.mrb[9].mxu0 }
 0x3f1   :  { %v1256_v50 = vsel %vm13552_vm10, %v1255_v48, -1e+09 }
 0x3f2   :  { %v1418_v52 = vpop.f32.mrb[10].mxu0  ;;  %v1257_v53 = vsel %vm313_vm6, %v1256_v50, -inf }
 0x3f3   :  { %v1422_v54 = vmul.f32 0.35355338, %v1418_v52  ;;  %1258 = vmax.xlane.f32.xlu1 %v1257_v53  ;;  %v11782_v57 = vpop.f32.mrb[11].mxu0 }
 0x3f5   :  { %v1423_v58 = vsel %vm13552_vm10, %v1422_v54, -1e+09 }
 0x3f6   :  { %v1585_v59 = vpop.f32.mrb[12].mxu0  ;;  %v1424_v60 = vsel %vm313_vm6, %v1423_v58, -inf }
 0x3f7   :  { %1425 = vmax.xlane.f32.xlu0 %v1424_v60  ;;  %v11792_v61 = vpop.f32.mrb[13].mxu0  ;;  %v1589_v62 = vmul.f32 0.35355338, %v1585_v59 }
 0x3f9   :  { %v1590_v63 = vsel %vm13552_vm10, %v1589_v62, -1e+09 }
 0x3fa   :  { %v1591_v2 = vsel %vm313_vm6, %v1590_v63, -inf }
 0x404   :  { %408 = vrot.lane.b32.xlu1 %v13455_v55, %s15216_s9 }
 0x428   :  { %1592 = vmax.xlane.f32.xlu1 %v1591_v2 }
 0x439   :  { %742 = vrot.lane.b32.xlu1 %v13455_v55, %s15214_s5 }
 0x43d   :  { %909 = vrot.lane.b32.xlu1 %v13455_v55, %s15212_s17 }
 0x441   :  { %1101 = vrot.lane.b32.xlu1 %v13469_v56, %s15216_s9  ;;  %s15272_s9 = smov 72  }
 0x46c   :  { %v399_v3 = vpop.xlane.xlu0 %398 }
 0x46d   :  { %v400_v4 = vsub.f32 %v396_v21, %v399_v3  ;;  %v566_v5 = vpop.xlane.xlu1 %565 }
 0x46e   :  { %v567_v6 = vsub.f32 %v563_v23, %v566_v5 }
 0x46f   :  { %v401_v7 = vmul.f32 1.442695, %v400_v4 }
 0x470   :  { %v568_v8 = vmul.f32 1.442695, %v567_v6 }
 0x471   :  { %12721 = vpow2.f32 %v401_v7 }
 0x472   :  { %12723 = vpow2.f32 %v568_v8 }
 0x474   :  { %v733_v9 = vpop.xlane.xlu0 %732 }
 0x475   :  { %v734_v22 = vsub.f32 %v13545_v29, %v733_v9 }
 0x477   :  { %v735_v24 = vmul.f32 1.442695, %v734_v22 }
 0x478   :  { %v900_v10 = vpop.xlane.xlu0 %899 }
 0x479   :  { %v901_v11 = vsub.f32 %v897_v37, %v900_v10 }
 0x47b   :  { %v12722_v12 = vpop.eup %12721  ;;  %v902_v14 = vmul.f32 1.442695, %v901_v11 }
 0x47c   :  { %v13580_v15 = vpop.eup %12723  ;;  %v403_v16 = vsel %vm313_vm6, %v12722_v12, 0.0  ;;  %v1092_v23 = vpop.xlane.xlu0 %1091 }
 0x47d   :  { %12725 = vpow2.f32 %v902_v14  ;;  %404 = vadd.xlane.f32.xlu0 %v403_v16  ;;  %v570_v17 = vsel %vm313_vm6, %v13580_v15, 0.0  ;;  %v1093_v25 = vsub.f32 %v13559_v45, %v1092_v23 }
 0x47e   :  { %571 = vadd.xlane.f32.xlu1 %v570_v17  ;;  %12727 = vpow2.f32 %v735_v24 }
 0x47f   :  { %v1094_v27 = vmul.f32 1.442695, %v1093_v25  ;;  %v217_v25 = vld [vmem:[%s15264_s4] sm:$0xff] }
 0x480   :  { %v1259_v18 = vpop.xlane.xlu1 %1258 }
 0x481   :  { %12729 = vpow2.f32 %v1094_v27  ;;  %v1260_v31 = vsub.f32 %v1256_v50, %v1259_v18 }
 0x483   :  { %v1261_v33 = vmul.f32 1.442695, %v1260_v31 }
 0x484   :  { %v409_v19 = vpop.permute.xlu1 %408  ;;  %v1426_v26 = vpop.xlane.xlu0 %1425 }
 0x485   :  { %11724 = vmatpush3.msra.mxu1 %v409_v19  ;;  %v1427_v28 = vsub.f32 %v1423_v58, %v1426_v26  ;;  %v218_v26 = vld [vmem:[%s15264_s4 + $0x8] sm:$0xff] }
 0x486   :  { %11733 = vmatprep.subr.mxu1 %v13151_v51 }
 0x487   :  { %v13586_v20 = vpop.eup %12725  ;;  %v1428_v32 = vmul.f32 1.442695, %v1427_v28  ;;  %v12469_v28 = vpack.c.bf16 %v218_v26, %v217_v25  ;;  %v1841_v25 = vld [vmem:[%s15267_s19 + $0x10] sm:$0xff] }
 0x488   :  { %v904_v21 = vsel %vm313_vm6, %v13586_v20, 0.0  ;;  %v12728_v34 = vpop.eup %12727 }
 0x489   :  { %905 = vadd.xlane.f32.xlu1 %v904_v21  ;;  %12731 = vpow2.f32 %v1428_v32  ;;  %12470 = vmatprep.subr.bf16.mxu0 %v12469_v28  ;;  %v219_v32 = vld [vmem:[%s15264_s4 + $0x10] sm:$0xff] }
 0x48a   :  { %12733 = vpow2.f32 %v1261_v33  ;;  %12472 = vmatpush3.bf16.msra.mxu0 %v12469_v28  ;;  %v220_v33 = vld [vmem:[%s15264_s4 + $0x18] sm:$0xff] }
 0x48b   :  { %v13597_v35 = vpop.eup %12729 }
 0x48c   :  { %v1096_v37 = vsel %vm313_vm6, %v13597_v35, 0.0 }
 0x493   :  { %575 = vrot.lane.b32.xlu0 %v13455_v55, %s15210_s8  ;;  %v737_v55 = vsel %vm313_vm6, %v12728_v34, 0.0  ;;  %v13601_v40 = vpop.eup %12731 }
 0x494   :  { %v1430_v44 = vsel %vm313_vm6, %v13601_v40, 0.0  ;;  %v13605_v45 = vpop.eup %12733 }
 0x495   :  { %v1263_v46 = vsel %vm313_vm6, %v13605_v45, 0.0 }
 0x49a   :  { %1268 = vrot.lane.b32.xlu1 %v13469_v56, %s15210_s8  ;;  %s15276_s8 = smov 56  }
 0x4b2   :  { %738 = vadd.xlane.f32.xlu0 %v737_v55  ;;  %v12473_v55 = vpack.c.bf16 %v220_v33, %v219_v32  ;;  %v1844_v32 = vld [vmem:[%s15267_s19 + $0x28] sm:$0xff] }
 0x4b4   :  { %12474 = vmatprep.subr.bf16.mxu0 %v12473_v55 }
 0x4b5   :  { %v1593_v29 = vpop.xlane.xlu1 %1592  ;;  %12476 = vmatpush3.bf16.msra.mxu0 %v12473_v55 }
 0x4b6   :  { %v1594_v42 = vsub.f32 %v1590_v63, %v1593_v29  ;;  %1097 = vadd.xlane.f32.xlu0 %v1096_v37 }
 0x4b8   :  { %v1595_v43 = vmul.f32 1.442695, %v1594_v42 }
 0x4b9   :  { %v743_v49 = vpop.permute.xlu1 %742 }
 0x4ba   :  { %12735 = vpow2.f32 %v1595_v43  ;;  %1431 = vadd.xlane.f32.xlu0 %v1430_v44 }
 0x4bd   :  { %v910_v50 = vpop.permute.xlu1 %909 }
 0x4be   :  { %1264 = vadd.xlane.f32.xlu1 %v1263_v46 }
 0x4c1   :  { %v1102_v52 = vpop.permute.xlu1 %1101 }
 0x4c4   :  { %v13609_v47 = vpop.eup %12735 }
 0x4c5   :  { %v1597_v48 = vsel %vm313_vm6, %v13609_v47, 0.0 }
 0x4c6   :  { %1598 = vadd.xlane.f32.xlu0 %v1597_v48 }
 0x4cf   :  { %1602 = vrot.lane.b32.xlu1 %v13469_v56, %s15212_s17  ;;  %s15265_s17 = sld [smem:[#allocation23_spill]] }
 0x4dc   :  { %1435 = vrot.lane.b32.xlu0 %v13469_v56, %s15214_s5  ;;  %s15274_s5 = smov 48  }
 0x50a   :  { %v405_v53 = vpop.xlane.xlu0 %404 }
 0x50b   :  { %12737 = vrcp.f32 %v405_v53  ;;  %v572_v54 = vpop.xlane.xlu1 %571 }
 0x50c   :  { %12739 = vrcp.f32 %v572_v54 }
 0x50e   :  { %v576_v60 = vpop.permute.xlu0 %575 }
 0x515   :  { %v12738_v57 = vpop.eup %12737 }
 0x516   :  { %v407_v58 = vmul.f32 %v12738_v57, %v12722_v12  ;;  %v12740_v59 = vpop.eup %12739  ;;  %v906_v61 = vpop.xlane.xlu1 %905 }
 0x517   :  { %v574_v56 = vmul.f32 %v12740_v59, %v13580_v15 }
 0x518   :  { %11726 = vmatmul.mubr.msk.f32.vlgmr.msra.gmra.mrb[4].mxu1 %vm313_vm6, %v407_v58 }
 0x519   :  { %11734 = vmatpush3.msra.mxu1 %v576_v60  ;;  %11735 = vmatprep.mubr.msk.f32.mxu1 %vm13152_vm5, %v13151_v51 }
 0x51a   :  { %11743 = vmatprep.subr.mxu1 %v13151_v51  ;;  %v1269_v2 = vpop.permute.xlu1 %1268 }
 0x51c   :  { %11736 = vmatmul.mubr.msk.f32.vlgmr.msra.gmra.mrb[6].mxu1 %vm313_vm6, %v574_v56 }
 0x51d   :  { %11744 = vmatpush3.msra.mxu1 %v743_v49  ;;  %11745 = vmatprep.mubr.msk.f32.mxu1 %vm13152_vm5, %v13151_v51 }
 0x51e   :  { %11753 = vmatprep.subr.mxu1 %v13151_v51 }
 0x53f   :  { %v739_v62 = vpop.xlane.xlu0 %738 }
 0x540   :  { %12741 = vrcp.f32 %v739_v62 }
 0x541   :  { %12743 = vrcp.f32 %v906_v61  ;;  %v11145_v61 = vld [vmem:[%s15265_s17] ss:$0 sm:$0xff] }
 0x543   :  { %v1098_v63 = vpop.xlane.xlu0 %1097 }
 0x544   :  { %12745 = vrcp.f32 %v1098_v63 }
 0x547   :  { %v1432_v4 = vpop.xlane.xlu0 %1431 }
 0x54a   :  { %v12742_v3 = vpop.eup %12741 }
 0x54b   :  { %v1265_v5 = vpop.xlane.xlu1 %1264  ;;  %v741_v6 = vmul.f32 %v12742_v3, %v12728_v34  ;;  %v12744_v7 = vpop.eup %12743 }
 0x54c   :  { %12747 = vrcp.f32 %v1265_v5  ;;  %v908_v8 = vmul.f32 %v12744_v7, %v13586_v20 }
 0x54d   :  { %11746 = vmatmul.mubr.msk.f32.vlgmr.msra.gmra.mrb[8].mxu1 %vm313_vm6, %v741_v6  ;;  %12749 = vrcp.f32 %v1432_v4 }
 0x54e   :  { %11754 = vmatpush3.msra.mxu1 %v910_v50  ;;  %11755 = vmatprep.mubr.msk.f32.mxu1 %vm13152_vm5, %v13151_v51  ;;  %v12746_v9 = vpop.eup %12745 }
 0x54f   :  { %11763 = vmatprep.subr.mxu1 %v13151_v51  ;;  %v1100_v11 = vmul.f32 %v12746_v9, %v13597_v35  ;;  %v1603_v18 = vpop.permute.xlu1 %1602 }
 0x551   :  { %11756 = vmatmul.mubr.msk.f32.vlgmr.msra.gmra.mrb[10].mxu1 %vm313_vm6, %v908_v8 }
 0x552   :  { %11764 = vmatpush3.msra.mxu1 %v1102_v52  ;;  %11765 = vmatprep.mubr.msk.f32.mxu1 %vm13152_vm5, %v13151_v51 }
 0x553   :  { %v1599_v10 = vpop.xlane.xlu0 %1598  ;;  %11773 = vmatprep.subr.mxu1 %v13151_v51 }
 0x554   :  { %12751 = vrcp.f32 %v1599_v10 }
 0x555   :  { %11766 = vmatmul.mubr.msk.f32.vlgmr.msra.gmra.mrb[12].mxu1 %vm313_vm6, %v1100_v11 }
 0x556   :  { %v12748_v12 = vpop.eup %12747  ;;  %11774 = vmatpush3.msra.mxu1 %v1269_v2  ;;  %11775 = vmatprep.mubr.msk.f32.mxu1 %vm13152_vm5, %v13151_v51 }
 0x557   :  { %v1436_v14 = vpop.permute.xlu0 %1435  ;;  %11783 = vmatprep.subr.mxu1 %v13151_v51  ;;  %v1267_v15 = vmul.f32 %v12748_v12, %v13605_v45  ;;  %v12750_v16 = vpop.eup %12749 }
 0x558   :  { %v1434_v17 = vmul.f32 %v12750_v16, %v13601_v40 }
 0x559   :  { %11776 = vmatmul.mubr.msk.f32.vlgmr.msra.gmra.mrb[14].mxu1 %vm313_vm6, %v1267_v15 }
 0x55a   :  { %11784 = vmatpush3.msra.mxu1 %v1436_v14  ;;  %11785 = vmatprep.mubr.msk.f32.mxu1 %vm13152_vm5, %v13151_v51 }
 0x55b   :  { %11793 = vmatprep.subr.mxu1 %v13151_v51 }
 0x55d   :  { %11786 = vmatmul.mubr.msk.f32.vlgmr.msra.gmra.mrb[16].mxu1 %vm313_vm6, %v1434_v17  ;;  %v1834_v17 = vld [vmem:[%s15266_s6] sm:$0xff] }
 0x55e   :  { %v12752_v19 = vpop.eup %12751  ;;  %11794 = vmatpush3.msra.mxu1 %v1603_v18  ;;  %11795 = vmatprep.mubr.msk.f32.mxu1 %vm13152_vm5, %v13151_v51  ;;  %v1835_v18 = vld [vmem:[%s15266_s6 + $0x8] sm:$0xff] }
 0x55f   :  { %v1601_v20 = vmul.f32 %v12752_v19, %v13609_v47  ;;  %v1836_v19 = vld [vmem:[%s15266_s6 + $0x10] sm:$0xff] }
 0x561   :  { %11796 = vmatmul.mubr.msk.f32.vlgmr.msra.gmra.mrb[18].mxu1 %vm313_vm6, %v1601_v20  ;;  %v12477_v20 = vpack.c.bf16 %v1835_v18, %v1834_v17 }
 0x563   :  { %12478 = vmatprep.subr.bf16.mxu1 %v12477_v20 }
 0x564   :  { %12480 = vmatpush3.bf16.msra.mxu1 %v12477_v20 }
 0x5eb   :  { %v480_v21 = vpop.f32.mrb[4].mxu1 }
 0x5ec   :  { %v11727_v22 = vpop.f32.mrb[5].mxu1 }
 0x5ef   :  { %v647_v23 = vpop.f32.mrb[6].mxu1 }
 0x5f0   :  { %986 = vrot.lane.b32.xlu0 %v647_v23, %s15222_s2  ;;  %v11737_v24 = vpop.f32.mrb[7].mxu1  ;;  %v1839_v23 = vld [vmem:[%s15267_s19] sm:$0xff] }
 0x5f1   :  { %v1840_v24 = vld [vmem:[%s15267_s19 + $0x8] sm:$0xff] }
 0x5f2   :  { %v12485_v26 = vpack.c.bf16 %v1840_v24, %v1839_v23 }
 0x5f4   :  { %12486 = vmatprep.subr.bf16.mxu0 %v12485_v26 }
 0x620   :  { %v814_v27 = vpop.f32.mrb[8].mxu1 }
 0x621   :  { %990 = vrot.lane.b32.xlu1 %v814_v27, %s15220_s11  ;;  %v11747_v31 = vpop.f32.mrb[9].mxu1  ;;  %v1842_v27 = vld [vmem:[%s15267_s19 + $0x18] sm:$0xff] }
 0x622   :  { %v12489_v28 = vpack.c.bf16 %v1842_v27, %v1841_v25  ;;  %v1843_v31 = vld [vmem:[%s15267_s19 + $0x20] sm:$0xff] }
 0x623   :  { %v12493_v33 = vpack.c.bf16 %v1844_v32, %v1843_v31 }
 0x624   :  { %v981_v34 = vpop.f32.mrb[10].mxu1 }
 0x625   :  { %994 = vrot.lane.b32.xlu1 %v981_v34, %s15218_s30  ;;  %v11757_v35 = vpop.f32.mrb[11].mxu1 }
 0x628   :  { %v1173_v29 = vpop.f32.mrb[12].mxu1 }
 0x629   :  { %v11767_v37 = vpop.f32.mrb[13].mxu1 }
 0x62c   :  { %v1340_v40 = vpop.f32.mrb[14].mxu1 }
 0x62d   :  { %1679 = vrot.lane.b32.xlu0 %v1340_v40, %s15222_s2  ;;  %v11777_v42 = vpop.f32.mrb[15].mxu1  ;;  %s15275_s2 = smov 40  }
 0x630   :  { %v1507_v43 = vpop.f32.mrb[16].mxu1 }
 0x631   :  { %1683 = vrot.lane.b32.xlu0 %v1507_v43, %s15220_s11  ;;  %v11787_v44 = vpop.f32.mrb[17].mxu1  ;;  %s15268_s11 = sld [smem:[#allocation25_spill]] }
 0x634   :  { %v1674_v45 = vpop.f32.mrb[18].mxu1 }
 0x635   :  { %1687 = vrot.lane.b32.xlu1 %v1674_v45, %s15218_s30  ;;  %v11797_v46 = vpop.f32.mrb[19].mxu1  ;;  %s15273_s30 = smov 64  }
 0x662   :  { %v987_v47 = vpop.permute.xlu0 %986 }
 0x663   :  { %v997_v49 = vsel %vm313_vm6, %v480_v21, %v987_v47  ;;  %v1837_v21 = vld [vmem:[%s15266_s6 + $0x18] sm:$0xff] }
 0x664   :  { %v12481_v22 = vpack.c.bf16 %v1837_v21, %v1836_v19 }
 0x666   :  { %12482 = vmatprep.subr.bf16.mxu1 %v12481_v22 }
 0x667   :  { %12484 = vmatpush3.bf16.msra.mxu1 %v12481_v22 }
 0x693   :  { %v991_v48 = vpop.permute.xlu1 %990 }
 0x694   :  { %v999_v50 = vsel %vm998_vm11, %v997_v49, %v991_v48 }
 0x697   :  { %v995_v52 = vpop.permute.xlu1 %994 }
 0x698   :  { %v1001_v53 = vsel %vm1000_vm12, %v999_v50, %v995_v52  ;;  %v13729_v50 = vsub.s32 2, %v13427_v30 }
 0x699   :  { %11806 = vmatprep.mubr.msk.f32.mxu0 %vm158_vm0, %v1001_v53 }
 0x69f   :  { %v1680_v54 = vpop.permute.xlu0 %1679 }
 0x6a0   :  { %v1690_v58 = vsel %vm313_vm6, %v1173_v29, %v1680_v54  ;;  %v1819_v54 = vrot.slane %v13435_v38, %v13729_v50 }
 0x6a3   :  { %v1684_v57 = vpop.permute.xlu0 %1683 }
 0x6a4   :  { %v1691_v59 = vsel %vm998_vm11, %v1690_v58, %v1684_v57  ;;  %v13734_v57 = vsub.s32 3, %v13427_v30 }
 0x6a7   :  { %v1688_v60 = vpop.permute.xlu1 %1687 }
 0x6a8   :  { %v1692_v56 = vsel %vm1000_vm12, %v1691_v59, %v1688_v60  ;;  %v1831_v59 = vrot.slane %v13435_v38, %v13734_v57  ;;  %v1846_v38 = vld [vmem:[%s15267_s19 + $0x38] sm:$0xff] }
 0x6a9   :  { %11807 = vmatmul.mubr.msk.f32.vlgmr.msra.gmra.mrb[14].mxu0 %vm158_vm0, %v1692_v56 }
 0x6aa   :  { %12488 = vmatpush3.bf16.msra.mxu0 %v12485_v26 }
 0x6ab   :  { %12490 = vmatprep.subr.bf16.mxu0 %v12489_v28 }
 0x6ae   :  { %12492 = vmatpush3.bf16.msra.mxu0 %v12489_v28 }
 0x6af   :  { %12494 = vmatprep.subr.bf16.mxu0 %v12493_v33 }
 0x6b2   :  { %12496 = vmatpush3.bf16.msra.mxu0 %v12493_v33  ;;  %v11155_v33 = vld [vmem:[%s15257_s1 + $0x20] sm:$0xff] }
 0x77c   :  { %v11808_v62 = vpop.f32.mrb[14].mxu0 }
 0x77d   :  { %v1777_v63 = vadd.f32 %v11808_v62, %v11145_v61  ;;  %v1771_v2 = vpop.f32.mrb[15].mxu0 }
 0x77e   :  { %v1772_v3 = vadd.f32 %v11145_v61, %v1771_v2 }
 0x77f   :  { %v13681_v4 = vadd.f32 %v1777_v63, %v13405_v1 }
 0x780   :  { %v13684_v5 = vadd.f32 %v1772_v3, %v13400_v0 }
 0x781   :  { %v1785_v6 = vsel %vm158_vm0, %v13681_v4, 0.0 }
 0x782   :  { %1786 = vadd.xlane.f32.xlu1 %v1785_v6  ;;  %v1782_v7 = vsel %vm158_vm0, %v13684_v5, 0.0  ;;  %v1845_v6 = vld [vmem:[%s15267_s19 + $0x30] sm:$0xff] }
 0x783   :  { %1783 = vadd.xlane.f32.xlu0 %v1782_v7  ;;  %v12497_v7 = vpack.c.bf16 %v1846_v38, %v1845_v6 }
 0x785   :  { %12498 = vmatprep.subr.bf16.mxu0 %v12497_v7 }
 0x786   :  { %12500 = vmatpush3.bf16.msra.mxu0 %v12497_v7 }
 0x787   :  { %11860 = vmatprep.subr.mxu0 %v13151_v51 }
 0x80f   :  { %v1787_v8 = vpop.xlane.xlu1 %1786 }
 0x810   :  { %v1789_v9 = vmul.f32 0.03125, %v1787_v8  ;;  %v1784_v10 = vpop.xlane.xlu0 %1783  ;;  %v11148_v8 = vld [vmem:[%s15268_s11] ss:$0 sm:$0xff] }
 0x811   :  { %v1788_v11 = vmul.f32 0.03125, %v1784_v10 }
 0x812   :  { %v13691_v12 = vsub.f32 %v13681_v4, %v1789_v9 }
 0x813   :  { %v1790_v1 = vsub.f32 %v13684_v5, %v1788_v11 }
 0x814   :  { %v1793_v15 = vmul.f32 %v13691_v12, %v13691_v12  ;;  %v1821_v61 = vmul.f32 %v1819_v54, %v13691_v12 }
 0x815   :  { %v1792_v14 = vmul.f32 %v1790_v1, %v1790_v1  ;;  %v1820_v58 = vmul.f32 %v1819_v54, %v1790_v1 }
 0x816   :  { %v1797_v16 = vsel %vm158_vm0, %v1793_v15, 0.0 }
 0x817   :  { %v1794_v0 = vsel %vm158_vm0, %v1792_v14, 0.0 }
 0x818   :  { %1795 = vadd.xlane.f32.xlu0 %v1794_v0  ;;  %v11151_v0 = vld [vmem:[%s15269_s15] ss:$0 sm:$0xff] }
 0x81c   :  { %1798 = vadd.xlane.f32.xlu0 %v1797_v16 }
 0x8a5   :  { %v1796_v34 = vpop.xlane.xlu0 %1795 }
 0x8a6   :  { %v1800_v55 = vmul.f32 0.032258064, %v1796_v34  ;;  %v11156_v34 = vld [vmem:[%s15257_s1 + $0x28] sm:$0xff] }
 0x8a8   :  { %12753 = vrsqrt.f32 %v1800_v55  ;;  %vm1804_vm13 = vcmp.eq.f32.partialorder %v1800_v55, inf  ;;  %v1807_v42 = vand.u32 2147483648, %v1800_v55  ;;  %vm1806_vm14 = vcmp.eq.f32.partialorder %v1800_v55, 0.0 }
 0x8a9   :  { %v1799_v35 = vpop.xlane.xlu0 %1798 }
 0x8aa   :  { %v1801_v29 = vmul.f32 0.032258064, %v1799_v35  ;;  %v12501_v35 = vpack.c.bf16 %v11156_v34, %v11155_v33 }
 0x8ac   :  { %12755 = vrsqrt.f32 %v1801_v29  ;;  %vm1811_vm15 = vcmp.eq.f32.partialorder %v1801_v29, inf  ;;  %v1814_v48 = vand.u32 2147483648, %v1801_v29  ;;  %vm1813_vm1 = vcmp.eq.f32.partialorder %v1801_v29, 0.0  ;;  %12502 = vmatprep.subr.bf16.mxu1 %v12501_v35 }
 0x8b2   :  { %v12754_v37 = vpop.eup %12753 }
 0x8b3   :  { %v1803_v40 = vmul.f32 %v12754_v37, %v1800_v55 }
 0x8b5   :  { %v1805_v43 = vsel %vm1804_vm13, %v1800_v55, %v1803_v40  ;;  %v11157_v55 = vld [vmem:[%s15257_s1 + $0x30] sm:$0xff] }
 0x8b6   :  { %v12756_v44 = vpop.eup %12755  ;;  %v1808_v45 = vsel %vm1806_vm14, %v1807_v42, %v1805_v43 }
 0x8b7   :  { %v1810_v46 = vmul.f32 %v12756_v44, %v1801_v29  ;;  %v1822_v47 = vadd.f32 1e-06, %v1808_v45 }
 0x8b9   :  { %v1812_v49 = vsel %vm1811_vm15, %v1801_v29, %v1810_v46  ;;  %12757 = vrcp.f32 %v1822_v47  ;;  %v11158_v29 = vld [vmem:[%s15257_s1 + $0x38] sm:$0xff]  ;;  %s15277_s1 = smov 8  }
 0x8ba   :  { %v1815_v52 = vsel %vm1813_vm1, %v1814_v48, %v1812_v49  ;;  %v12505_v37 = vpack.c.bf16 %v11158_v29, %v11157_v55 }
 0x8bb   :  { %v1823_v53 = vadd.f32 1e-06, %v1815_v52 }
 0x8bd   :  { %12759 = vrcp.f32 %v1823_v53 }
 0x8c3   :  { %v12758_v60 = vpop.eup %12757 }
 0x8c4   :  { %v1825_v56 = vmul.f32 %v12758_v60, %v1820_v58 }
 0x8c6   :  { %v1832_v62 = vadd.f32 %v1831_v59, %v1825_v56 }
 0x8c7   :  { %v12760_v63 = vpop.eup %12759 }
 0x8c8   :  { %v1827_v2 = vmul.f32 %v12760_v63, %v1821_v61  ;;  %11817 = vmatprep.mubr.msk.f32.mxu1 %vm158_vm0, %v1832_v62  ;;  %v13788_v61 = vld [vmem:[%s15181_s12 + $0x4] sm:$0xf]  ;;  %s15282_s12 = smov 96  }
 0x8c9   :  { %v2066_v62 = vrot.slane %v13788_v61, %v13430_v36  ;;  %v2078_v6 = vrot.slane %v13788_v61, %v13440_v41 }
 0x8ca   :  { %v1833_v3 = vadd.f32 %v1831_v59, %v1827_v2 }
 0x8cc   :  { %11818 = vmatmul.mubr.msk.f32.vlgmr.msra.gmra.mrb[20].mxu1 %vm158_vm0, %v1833_v3 }
 0x8cd   :  { %12504 = vmatpush3.bf16.msra.mxu1 %v12501_v35 }
 0x8ce   :  { %12506 = vmatprep.subr.bf16.mxu1 %v12505_v37 }
 0x8d1   :  { %12508 = vmatpush3.bf16.msra.mxu1 %v12505_v37 }
 0x8d2   :  { %11850 = vmatprep.subr.mxu1 %v13151_v51 }
 0x99f   :  { %v11819_v9 = vpop.f32.mrb[20].mxu1 }
 0x9a0   :  { %v1932_v10 = vadd.f32 %v11819_v9, %v11148_v8  ;;  %v1926_v11 = vpop.f32.mrb[21].mxu1 }
 0x9a1   :  { %v1927_v12 = vadd.f32 %v11148_v8, %v1926_v11  ;;  %v11165_v11 = vld [vmem:[%s15258_s28 + $0x1] ss:$0 sm:$0xff]  ;;  %s15271_s28 = smov 104  }
 0x9a2   :  { %v1936_v14 = vmax.f32 %v1932_v10, 0.0 }
 0x9a3   :  { %v1935_v1 = vmax.f32 %v1927_v12, 0.0 }
 0x9a5   :  { %11836 = vmatprep.mubr.msk.f32.mxu0 %vm1943_vm2, %v1935_v1 }
 0x9a6   :  { %11837 = vmatmul.mubr.msk.f32.vlgmr.msra.gmra.mrb[16].mxu0 %vm1943_vm2, %v1936_v14 }
 0x9a7   :  { %11862 = vmatprep.mubr.msk.f32.mxu0 %vm13152_vm5, %v13151_v51 }
 0xa79   :  { %v11838_v15 = vpop.f32.mrb[16].mxu0 }
 0xa7a   :  { %v2022_v16 = vadd.f32 %v11838_v15, %v11151_v0  ;;  %v2016_v17 = vpop.f32.mrb[17].mxu0 }
 0xa7b   :  { %v2017_v18 = vadd.f32 %v11151_v0, %v2016_v17 }
 0xa7c   :  { %v13759_v19 = vadd.f32 %v2022_v16, %v13681_v4 }
 0xa7d   :  { %v13762_v20 = vadd.f32 %v2017_v18, %v13684_v5 }
 0xa7e   :  { %v2032_v21 = vsel %vm158_vm0, %v13759_v19, 0.0 }
 0xa7f   :  { %2033 = vadd.xlane.f32.xlu1 %v2032_v21  ;;  %v2029_v22 = vsel %vm158_vm0, %v13762_v20, 0.0 }
 0xa80   :  { %2030 = vadd.xlane.f32.xlu0 %v2029_v22 }
 0xb0c   :  { %v2034_v23 = vpop.xlane.xlu1 %2033 }
 0xb0d   :  { %v2036_v24 = vmul.f32 0.03125, %v2034_v23  ;;  %v2031_v25 = vpop.xlane.xlu0 %2030 }
 0xb0e   :  { %v2035_v26 = vmul.f32 0.03125, %v2031_v25 }
 0xb0f   :  { %v2038_v27 = vsub.f32 %v13759_v19, %v2036_v24 }
 0xb10   :  { %v2037_v4 = vsub.f32 %v13762_v20, %v2035_v26 }
 0xb11   :  { %v2040_v28 = vmul.f32 %v2038_v27, %v2038_v27  ;;  %v2068_v63 = vmul.f32 %v2066_v62, %v2038_v27 }
 0xb12   :  { %v2039_v31 = vmul.f32 %v2037_v4, %v2037_v4  ;;  %v2067_v3 = vmul.f32 %v2066_v62, %v2037_v4 }
 0xb13   :  { %v2044_v5 = vsel %vm158_vm0, %v2040_v28, 0.0 }
 0xb14   :  { %2045 = vadd.xlane.f32.xlu1 %v2044_v5  ;;  %v2041_v32 = vsel %vm158_vm0, %v2039_v31, 0.0 }
 0xb15   :  { %2042 = vadd.xlane.f32.xlu0 %v2041_v32 }
 0xba1   :  { %v2046_v40 = vpop.xlane.xlu1 %2045 }
 0xba2   :  { %v2048_v42 = vmul.f32 0.032258064, %v2046_v40  ;;  %v2043_v43 = vpop.xlane.xlu0 %2042 }
 0xba3   :  { %v2047_v44 = vmul.f32 0.032258064, %v2043_v43 }
 0xba4   :  { %12761 = vrsqrt.f32 %v2048_v42  ;;  %vm2058_vm3 = vcmp.eq.f32.partialorder %v2048_v42, inf  ;;  %v2061_v48 = vand.u32 2147483648, %v2048_v42  ;;  %vm2060_vm4 = vcmp.eq.f32.partialorder %v2048_v42, 0.0 }
 0xba5   :  { %12763 = vrsqrt.f32 %v2047_v44  ;;  %vm2051_vm7 = vcmp.eq.f32.partialorder %v2047_v44, inf  ;;  %v2054_v53 = vand.u32 2147483648, %v2047_v44  ;;  %vm2053_vm9 = vcmp.eq.f32.partialorder %v2047_v44, 0.0 }
 0xbae   :  { %v12762_v45 = vpop.eup %12761 }
 0xbaf   :  { %v12764_v46 = vpop.eup %12763  ;;  %v2057_v47 = vmul.f32 %v12762_v45, %v2048_v42 }
 0xbb0   :  { %v2050_v49 = vmul.f32 %v12764_v46, %v2047_v44 }
 0xbb1   :  { %v2059_v52 = vsel %vm2058_vm3, %v2048_v42, %v2057_v47 }
 0xbb2   :  { %v2062_v54 = vsel %vm2060_vm4, %v2061_v48, %v2059_v52  ;;  %v2052_v58 = vsel %vm2051_vm7, %v2047_v44, %v2050_v49 }
 0xbb3   :  { %v2070_v59 = vadd.f32 1e-06, %v2062_v54  ;;  %v2055_v60 = vsel %vm2053_vm9, %v2054_v53, %v2052_v58 }
 0xbb4   :  { %v2069_v56 = vadd.f32 1e-06, %v2055_v60 }
 0xbb5   :  { %12765 = vrcp.f32 %v2070_v59 }
 0xbb6   :  { %12767 = vrcp.f32 %v2069_v56 }
 0xbbf   :  { %v12766_v2 = vpop.eup %12765 }
 0xbc0   :  { %v12768_v38 = vpop.eup %12767  ;;  %v2074_v7 = vmul.f32 %v12766_v2, %v2068_v63 }
 0xbc1   :  { %v2072_v8 = vmul.f32 %v12768_v38, %v2067_v3 }
 0xbc2   :  { %v2080_v10 = vadd.f32 %v2078_v6, %v2074_v7 }
 0xbc3   :  { %v2079_v9 = vadd.f32 %v2078_v6, %v2072_v8 }
 0xbc5   :  { %11847 = vmatprep.mubr.msk.f32.mxu1 %vm158_vm0, %v2079_v9 }
 0xbc6   :  { %11848 = vmatmul.mubr.msk.f32.vlgmr.msra.gmra.mrb[22].mxu1 %vm158_vm0, %v2080_v10 }
 0xbc7   :  { %11852 = vmatprep.mubr.msk.f32.mxu1 %vm13152_vm5, %v13151_v51 }
 0xc99   :  { %v11849_v12 = vpop.f32.mrb[22].mxu1 }
 0xc9a   :  { %v2173_v1 = vpop.f32.mrb[23].mxu1  ;;  %v13815_v0 = vadd.f32 %v11849_v12, %v11165_v11 }
 0xc9b   :  { %v13801_v14 = vadd.f32 %v11165_v11, %v2173_v1 }
 0xc9d   :  { %2350 = vrot.lane.b32.xlu1 %v13801_v14, %s15236_s0  ;;  %2183 = vrot.lane.b32.xlu0 %v13801_v14, %s15234_s10 }
 0xca1   :  { %2348 = vrot.lane.b32.xlu1 %v13801_v14, %s15232_s13  ;;  %2515 = vrot.lane.b32.xlu0 %v13801_v14, %s15230_s3 }
 0xca5   :  { %2517 = vrot.lane.b32.xlu1 %v13801_v14, %s15270_s7  ;;  %2682 = vrot.lane.b32.xlu0 %v13801_v14, %s15271_s28 }
 0xca9   :  { %2684 = vrot.lane.b32.xlu1 %v13801_v14, %s15272_s9  ;;  %3032 = vrot.lane.b32.xlu0 %v13815_v0, %s15236_s0  ;;  %s15285_s0 = sld [smem:[#allocation19_spill]] }
 0xcad   :  { %2865 = vrot.lane.b32.xlu1 %v13815_v0, %s15234_s10  ;;  %3199 = vrot.lane.b32.xlu0 %v13815_v0, %s15270_s7 }
 0xcb1   :  { %3030 = vrot.lane.b32.xlu1 %v13815_v0, %s15232_s13  ;;  %3366 = vrot.lane.b32.xlu0 %v13815_v0, %s15272_s9  ;;  %s15278_s13 = smov 16  }
 0xcb5   :  { %3197 = vrot.lane.b32.xlu1 %v13815_v0, %s15230_s3  ;;  %s15280_s3 = sld [smem:[#allocation17_spill]] }
 0xcb9   :  { %3364 = vrot.lane.b32.xlu1 %v13815_v0, %s15271_s28 }
 0xd0f   :  { %v2351_v15 = vpop.permute.xlu1 %2350  ;;  %v2184_v16 = vpop.permute.xlu0 %2183 }
 0xd10   :  { %11851 = vmatpush3.xpose.msk.msra.mxu1 %vm313_vm6, %v2184_v16  ;;  %11861 = vmatpush3.xpose.msk.msra.mxu0 %vm313_vm6, %v2351_v15 }
 0xd11   :  { %11870 = vmatprep.subr.mxu0 %v13151_v51  ;;  %11855 = vmatprep.subr.mxu1 %v13151_v51 }
 0xd13   :  { %v2349_v17 = vpop.permute.xlu1 %2348  ;;  %11853 = vmatmul.mubr.msk.f32.vlgmr.msra.gmra.mrb[24].mxu1 %vm313_vm6, %v13801_v14  ;;  %v2516_v18 = vpop.permute.xlu0 %2515 }
 0xd14   :  { %11863 = vmatmul.mubr.msk.f32.vlgmr.msra.gmra.mrb[18].mxu0 %vm313_vm6, %v2349_v17  ;;  %11857 = vmatprep.mubr.msk.f32.mxu1 %vm13152_vm5, %v13151_v51 }
 0xd15   :  { %11872 = vmatprep.mubr.msk.f32.mxu0 %vm13152_vm5, %v13151_v51 }
 0xd17   :  { %v2518_v21 = vpop.permute.xlu1 %2517  ;;  %v2683_v22 = vpop.permute.xlu0 %2682 }
 0xd18   :  { %11871 = vmatpush3.xpose.msk.msra.mxu0 %vm313_vm6, %v2518_v21 }
 0xd19   :  { %11880 = vmatprep.subr.mxu0 %v13151_v51 }
 0xd1b   :  { %v2685_v23 = vpop.permute.xlu1 %2684  ;;  %11873 = vmatmul.mubr.msk.f32.vlgmr.msra.gmra.mrb[20].mxu0 %vm313_vm6, %v2516_v18  ;;  %v3033_v24 = vpop.permute.xlu0 %3032 }
 0xd1c   :  { %11881 = vmatpush3.xpose.msk.msra.mxu0 %vm313_vm6, %v2685_v23  ;;  %11882 = vmatprep.mubr.msk.f32.mxu0 %vm13152_vm5, %v13151_v51 }
 0xd1d   :  { %11890 = vmatprep.subr.mxu0 %v13151_v51 }
 0xd1f   :  { %v2866_v25 = vpop.permute.xlu1 %2865  ;;  %11883 = vmatmul.mubr.msk.f32.vlgmr.msra.gmra.mrb[22].mxu0 %vm313_vm6, %v2683_v22  ;;  %v3200_v27 = vpop.permute.xlu0 %3199 }
 0xd20   :  { %11891 = vmatpush3.xpose.msk.msra.mxu0 %vm313_vm6, %v2866_v25  ;;  %11892 = vmatprep.mubr.msk.f32.mxu0 %vm13152_vm5, %v13151_v51 }
 0xd21   :  { %11900 = vmatprep.subr.mxu0 %v13151_v51 }
 0xd23   :  { %v3031_v26 = vpop.permute.xlu1 %3030  ;;  %11893 = vmatmul.mubr.msk.f32.vlgmr.msra.gmra.mrb[24].mxu0 %vm313_vm6, %v13815_v0  ;;  %v3367_v28 = vpop.permute.xlu0 %3366 }
 0xd24   :  { %11901 = vmatpush3.xpose.msk.msra.mxu0 %vm313_vm6, %v3033_v24  ;;  %11902 = vmatprep.mubr.msk.f32.mxu0 %vm13152_vm5, %v13151_v51 }
 0xd25   :  { %11910 = vmatprep.subr.mxu0 %v13151_v51 }
 0xd27   :  { %11903 = vmatmul.mubr.msk.f32.vlgmr.msra.gmra.mrb[26].mxu0 %vm313_vm6, %v3031_v26  ;;  %v3198_v4 = vpop.permute.xlu1 %3197 }
 0xd28   :  { %11911 = vmatpush3.xpose.msk.msra.mxu0 %vm313_vm6, %v3200_v27  ;;  %11912 = vmatprep.mubr.msk.f32.mxu0 %vm13152_vm5, %v13151_v51 }
 0xd29   :  { %11920 = vmatprep.subr.mxu0 %v13151_v51 }
 0xd2b   :  { %11913 = vmatmul.mubr.msk.f32.vlgmr.msra.gmra.mrb[28].mxu0 %vm313_vm6, %v3198_v4  ;;  %v3365_v31 = vpop.permute.xlu1 %3364 }
 0xd2c   :  { %11921 = vmatpush3.xpose.msk.msra.mxu0 %vm313_vm6, %v3367_v28  ;;  %11922 = vmatprep.mubr.msk.f32.mxu0 %vm13152_vm5, %v13151_v51 }
 0xd2f   :  { %11923 = vmatmul.mubr.msk.f32.vlgmr.msra.gmra.mrb[30].mxu0 %vm313_vm6, %v3365_v31 }
 0xde6   :  { %v2255_v5 = vpop.f32.mrb[24].mxu1 }
 0xde7   :  { %v2259_v32 = vmul.f32 0.35355338, %v2255_v5  ;;  %v11854_v33 = vpop.f32.mrb[25].mxu1  ;;  %v2422_v34 = vpop.f32.mrb[18].mxu0 }
 0xde8   :  { %v2426_v55 = vmul.f32 0.35355338, %v2422_v34  ;;  %v11864_v35 = vpop.f32.mrb[19].mxu0 }
 0xde9   :  { %v2260_v29 = vsel %vm13530_vm8, %v2259_v32, -1e+09 }
 0xdea   :  { %v2261_v37 = vsel %vm313_vm6, %v2260_v29, -inf  ;;  %v2427_v40 = vsel %vm13530_vm8, %v2426_v55, -1e+09 }
 0xdeb   :  { %2262 = vmax.xlane.f32.xlu0 %v2261_v37  ;;  %v2428_v42 = vsel %vm313_vm6, %v2427_v40, -inf }
 0xdec   :  { %2429 = vmax.xlane.f32.xlu1 %v2428_v42 }
 0xdee   :  { %v2589_v43 = vpop.f32.mrb[20].mxu0 }
 0xdef   :  { %v2593_v44 = vmul.f32 0.35355338, %v2589_v43  ;;  %v11874_v45 = vpop.f32.mrb[21].mxu0 }
 0xdf1   :  { %v13880_v46 = vsel %vm13530_vm8, %v2593_v44, -1e+09 }
 0xdf2   :  { %v2756_v47 = vpop.f32.mrb[22].mxu0  ;;  %v2595_v48 = vsel %vm313_vm6, %v13880_v46, -inf }
 0xdf3   :  { %v2760_v49 = vmul.f32 0.35355338, %v2756_v47  ;;  %2596 = vmax.xlane.f32.xlu0 %v2595_v48  ;;  %v11884_v52 = vpop.f32.mrb[23].mxu0 }
 0xdf5   :  { %v2761_v53 = vsel %vm13530_vm8, %v2760_v49, -1e+09 }
 0xdf6   :  { %v2937_v54 = vpop.f32.mrb[24].mxu0  ;;  %v2762_v58 = vsel %vm313_vm6, %v2761_v53, -inf }
 0xdf7   :  { %v2941_v59 = vmul.f32 0.35355338, %v2937_v54  ;;  %2763 = vmax.xlane.f32.xlu0 %v2762_v58  ;;  %v11894_v60 = vpop.f32.mrb[25].mxu0 }
 0xdf9   :  { %v2942_v56 = vsel %vm13552_vm10, %v2941_v59, -1e+09 }
 0xdfa   :  { %v3104_v62 = vpop.f32.mrb[26].mxu0  ;;  %v2943_v63 = vsel %vm313_vm6, %v2942_v56, -inf }
 0xdfb   :  { %v3108_v2 = vmul.f32 0.35355338, %v3104_v62  ;;  %2944 = vmax.xlane.f32.xlu0 %v2943_v63  ;;  %v11904_v3 = vpop.f32.mrb[27].mxu0 }
 0xdfd   :  { %v3109_v6 = vsel %vm13552_vm10, %v3108_v2, -1e+09 }
 0xdfe   :  { %v3271_v38 = vpop.f32.mrb[28].mxu0  ;;  %v3110_v7 = vsel %vm313_vm6, %v3109_v6, -inf }
 0xdff   :  { %v3275_v8 = vmul.f32 0.35355338, %v3271_v38  ;;  %3111 = vmax.xlane.f32.xlu1 %v3110_v7  ;;  %v11914_v9 = vpop.f32.mrb[29].mxu0 }
 0xe01   :  { %v3276_v10 = vsel %vm13552_vm10, %v3275_v8, -1e+09 }
 0xe02   :  { %v3438_v11 = vpop.f32.mrb[30].mxu0  ;;  %v3277_v12 = vsel %vm313_vm6, %v3276_v10, -inf }
 0xe03   :  { %3278 = vmax.xlane.f32.xlu0 %v3277_v12  ;;  %v11924_v1 = vpop.f32.mrb[31].mxu0  ;;  %v3442_v15 = vmul.f32 0.35355338, %v3438_v11 }
 0xe05   :  { %v3443_v16 = vsel %vm13552_vm10, %v3442_v15, -1e+09 }
 0xe06   :  { %v3444_v17 = vsel %vm313_vm6, %v3443_v16, -inf }
 0xe10   :  { %2272 = vrot.lane.b32.xlu1 %v13801_v14, %s15273_s30 }
 0xe34   :  { %3445 = vmax.xlane.f32.xlu1 %v3444_v17 }
 0xe45   :  { %2606 = vrot.lane.b32.xlu1 %v13801_v14, %s15274_s5 }
 0xe49   :  { %2773 = vrot.lane.b32.xlu1 %v13801_v14, %s15275_s2 }
 0xe4d   :  { %2954 = vrot.lane.b32.xlu1 %v13815_v0, %s15273_s30 }
 0xe78   :  { %v2263_v18 = vpop.xlane.xlu0 %2262 }
 0xe79   :  { %v2264_v21 = vsub.f32 %v2260_v29, %v2263_v18  ;;  %v2430_v22 = vpop.xlane.xlu1 %2429 }
 0xe7a   :  { %v2431_v23 = vsub.f32 %v2427_v40, %v2430_v22 }
 0xe7b   :  { %v2265_v24 = vmul.f32 1.442695, %v2264_v21 }
 0xe7c   :  { %v2432_v25 = vmul.f32 1.442695, %v2431_v23 }
 0xe7d   :  { %12769 = vpow2.f32 %v2265_v24 }
 0xe7e   :  { %12771 = vpow2.f32 %v2432_v25 }
 0xe80   :  { %v2597_v26 = vpop.xlane.xlu0 %2596 }
 0xe81   :  { %v2598_v37 = vsub.f32 %v13880_v46, %v2597_v26 }
 0xe83   :  { %v2599_v42 = vmul.f32 1.442695, %v2598_v37 }
 0xe84   :  { %v2764_v27 = vpop.xlane.xlu0 %2763 }
 0xe85   :  { %v2765_v4 = vsub.f32 %v2761_v53, %v2764_v27 }
 0xe87   :  { %v12770_v28 = vpop.eup %12769  ;;  %v2766_v31 = vmul.f32 1.442695, %v2765_v4 }
 0xe88   :  { %v13907_v5 = vpop.eup %12771  ;;  %v2267_v32 = vsel %vm313_vm6, %v12770_v28, 0.0  ;;  %v2945_v40 = vpop.xlane.xlu0 %2944 }
 0xe89   :  { %12773 = vpow2.f32 %v2766_v31  ;;  %2268 = vadd.xlane.f32.xlu0 %v2267_v32  ;;  %v2434_v33 = vsel %vm313_vm6, %v13907_v5, 0.0  ;;  %v2946_v43 = vsub.f32 %v2942_v56, %v2945_v40 }
 0xe8a   :  { %2435 = vadd.xlane.f32.xlu1 %v2434_v33  ;;  %12775 = vpow2.f32 %v2599_v42 }
 0xe8b   :  { %v2947_v45 = vmul.f32 1.442695, %v2946_v43 }
 0xe8c   :  { %v3112_v34 = vpop.xlane.xlu1 %3111 }
 0xe8d   :  { %12777 = vpow2.f32 %v2947_v45  ;;  %v3113_v48 = vsub.f32 %v3109_v6, %v3112_v34  ;;  %v11160_v45 = vld [vmem:[%s15264_s4 + $0x20] sm:$0xff] }
 0xe8f   :  { %v3114_v52 = vmul.f32 1.442695, %v3113_v48 }
 0xe90   :  { %v2273_v55 = vpop.permute.xlu1 %2272  ;;  %v3279_v44 = vpop.xlane.xlu0 %3278 }
 0xe91   :  { %11856 = vmatpush3.msra.mxu1 %v2273_v55  ;;  %v3280_v47 = vsub.f32 %v3276_v10, %v3279_v44 }
 0xe92   :  { %11865 = vmatprep.subr.mxu1 %v13151_v51 }
 0xe93   :  { %v13913_v35 = vpop.eup %12773  ;;  %v3281_v49 = vmul.f32 1.442695, %v3280_v47  ;;  %v11161_v47 = vld [vmem:[%s15264_s4 + $0x28] sm:$0xff] }
 0xe94   :  { %v2768_v29 = vsel %vm313_vm6, %v13913_v35, 0.0  ;;  %v12776_v53 = vpop.eup %12775 }
 0xe95   :  { %2769 = vadd.xlane.f32.xlu1 %v2768_v29  ;;  %12779 = vpow2.f32 %v3281_v49  ;;  %v12509_v49 = vpack.c.bf16 %v11161_v47, %v11160_v45 }
 0xe96   :  { %12781 = vpow2.f32 %v3114_v52 }
 0xe97   :  { %v13923_v54 = vpop.eup %12777  ;;  %12510 = vmatprep.subr.bf16.mxu0 %v12509_v49 }
 0xe98   :  { %v2949_v58 = vsel %vm313_vm6, %v13923_v54, 0.0  ;;  %12512 = vmatpush3.bf16.msra.mxu0 %v12509_v49 }
 0xe9f   :  { %2439 = vrot.lane.b32.xlu0 %v13801_v14, %s15276_s8  ;;  %v2601_v14 = vsel %vm313_vm6, %v12776_v53, 0.0  ;;  %v13927_v59 = vpop.eup %12779 }
 0xea0   :  { %v3283_v62 = vsel %vm313_vm6, %v13927_v59, 0.0  ;;  %v13931_v63 = vpop.eup %12781 }
 0xea1   :  { %v3116_v2 = vsel %vm313_vm6, %v13931_v63, 0.0 }
 0xea6   :  { %3121 = vrot.lane.b32.xlu1 %v13815_v0, %s15276_s8 }
 0xebe   :  { %2602 = vadd.xlane.f32.xlu0 %v2601_v14  ;;  %v11163_v14 = vld [vmem:[%s15264_s4 + $0x38] sm:$0xff] }
 0xec1   :  { %v3446_v46 = vpop.xlane.xlu1 %3445 }
 0xec2   :  { %v3447_v60 = vsub.f32 %v3443_v16, %v3446_v46  ;;  %2950 = vadd.xlane.f32.xlu0 %v2949_v58 }
 0xec4   :  { %v3448_v56 = vmul.f32 1.442695, %v3447_v60 }
 0xec5   :  { %v2607_v38 = vpop.permute.xlu1 %2606 }
 0xec6   :  { %12783 = vpow2.f32 %v3448_v56  ;;  %3284 = vadd.xlane.f32.xlu0 %v3283_v62 }
 0xec9   :  { %v2774_v7 = vpop.permute.xlu1 %2773 }
 0xeca   :  { %3117 = vadd.xlane.f32.xlu1 %v3116_v2 }
 0xecd   :  { %v2955_v8 = vpop.permute.xlu1 %2954 }
 0xed0   :  { %v13935_v3 = vpop.eup %12783 }
 0xed1   :  { %v3450_v6 = vsel %vm313_vm6, %v13935_v3, 0.0 }
 0xed2   :  { %3451 = vadd.xlane.f32.xlu0 %v3450_v6 }
 0xedb   :  { %3455 = vrot.lane.b32.xlu1 %v13815_v0, %s15275_s2 }
 0xee8   :  { %3288 = vrot.lane.b32.xlu0 %v13815_v0, %s15274_s5 }
 0xf16   :  { %v2269_v9 = vpop.xlane.xlu0 %2268 }
 0xf17   :  { %12785 = vrcp.f32 %v2269_v9  ;;  %v2436_v10 = vpop.xlane.xlu1 %2435 }
 0xf18   :  { %12787 = vrcp.f32 %v2436_v10 }
 0xf1a   :  { %v2440_v15 = vpop.permute.xlu0 %2439 }
 0xf21   :  { %v12786_v11 = vpop.eup %12785 }
 0xf22   :  { %v2271_v12 = vmul.f32 %v12786_v11, %v12770_v28  ;;  %v12788_v1 = vpop.eup %12787  ;;  %v2770_v16 = vpop.xlane.xlu1 %2769 }
 0xf23   :  { %v2438_v0 = vmul.f32 %v12788_v1, %v13907_v5 }
 0xf24   :  { %11858 = vmatmul.mubr.msk.f32.vlgmr.msra.gmra.mrb[26].mxu1 %vm313_vm6, %v2271_v12 }
 0xf25   :  { %11866 = vmatpush3.msra.mxu1 %v2440_v15  ;;  %11867 = vmatprep.mubr.msk.f32.mxu1 %vm13152_vm5, %v13151_v51 }
 0xf26   :  { %11875 = vmatprep.subr.mxu1 %v13151_v51  ;;  %v3122_v21 = vpop.permute.xlu1 %3121 }
 0xf28   :  { %11868 = vmatmul.mubr.msk.f32.vlgmr.msra.gmra.mrb[28].mxu1 %vm313_vm6, %v2438_v0 }
 0xf29   :  { %11876 = vmatpush3.msra.mxu1 %v2607_v38  ;;  %11877 = vmatprep.mubr.msk.f32.mxu1 %vm13152_vm5, %v13151_v51 }
 0xf2a   :  { %11885 = vmatprep.subr.mxu1 %v13151_v51 }
 0xf4b   :  { %v2603_v17 = vpop.xlane.xlu0 %2602 }
 0xf4c   :  { %12789 = vrcp.f32 %v2603_v17 }
 0xf4d   :  { %12791 = vrcp.f32 %v2770_v16 }
 0xf4f   :  { %v2951_v18 = vpop.xlane.xlu0 %2950 }
 0xf50   :  { %12793 = vrcp.f32 %v2951_v18  ;;  %v11192_v18 = vld [vmem:[%s15265_s17 + $0x1] ss:$0 sm:$0xff] }
 0xf53   :  { %v3285_v23 = vpop.xlane.xlu0 %3284 }
 0xf56   :  { %v12790_v22 = vpop.eup %12789 }
 0xf57   :  { %v3118_v24 = vpop.xlane.xlu1 %3117  ;;  %v2605_v25 = vmul.f32 %v12790_v22, %v12776_v53  ;;  %v12792_v26 = vpop.eup %12791  ;;  %v11162_v53 = vld [vmem:[%s15264_s4 + $0x30] sm:$0xff] }
 0xf58   :  { %12795 = vrcp.f32 %v3118_v24  ;;  %v2772_v27 = vmul.f32 %v12792_v26, %v13913_v35  ;;  %v12513_v46 = vpack.c.bf16 %v11163_v14, %v11162_v53 }
 0xf59   :  { %11878 = vmatmul.mubr.msk.f32.vlgmr.msra.gmra.mrb[30].mxu1 %vm313_vm6, %v2605_v25  ;;  %12797 = vrcp.f32 %v3285_v23 }
 0xf5a   :  { %11886 = vmatpush3.msra.mxu1 %v2774_v7  ;;  %11887 = vmatprep.mubr.msk.f32.mxu1 %vm13152_vm5, %v13151_v51  ;;  %v12794_v4 = vpop.eup %12793 }
 0xf5b   :  { %11895 = vmatprep.subr.mxu1 %v13151_v51  ;;  %v2953_v31 = vmul.f32 %v12794_v4, %v13923_v54  ;;  %v3456_v35 = vpop.permute.xlu1 %3455  ;;  %12514 = vmatprep.subr.bf16.mxu0 %v12513_v46  ;;  %v14017_v4 = vld [vmem:[%s15280_s3] sm:$0xff] }
 0xf5c   :  { %12516 = vmatpush3.bf16.msra.mxu0 %v12513_v46  ;;  %v11195_v46 = vld [vmem:[%s15266_s6 + $0x20] sm:$0xff] }
 0xf5d   :  { %11888 = vmatmul.mubr.msk.f32.vlgmr.msra.gmra.mrb[32].mxu1 %vm313_vm6, %v2772_v27 }
 0xf5e   :  { %11896 = vmatpush3.msra.mxu1 %v2955_v8  ;;  %11897 = vmatprep.mubr.msk.f32.mxu1 %vm13152_vm5, %v13151_v51 }
 0xf5f   :  { %v3452_v28 = vpop.xlane.xlu0 %3451  ;;  %11905 = vmatprep.subr.mxu1 %v13151_v51 }
 0xf60   :  { %12799 = vrcp.f32 %v3452_v28 }
 0xf61   :  { %11898 = vmatmul.mubr.msk.f32.vlgmr.msra.gmra.mrb[34].mxu1 %vm313_vm6, %v2953_v31 }
 0xf62   :  { %v12796_v5 = vpop.eup %12795  ;;  %11906 = vmatpush3.msra.mxu1 %v3122_v21  ;;  %11907 = vmatprep.mubr.msk.f32.mxu1 %vm13152_vm5, %v13151_v51 }
 0xf63   :  { %v3289_v32 = vpop.permute.xlu0 %3288  ;;  %11915 = vmatprep.subr.mxu1 %v13151_v51  ;;  %v3120_v33 = vmul.f32 %v12796_v5, %v13931_v63  ;;  %v12798_v34 = vpop.eup %12797 }
 0xf64   :  { %v3287_v55 = vmul.f32 %v12798_v34, %v13927_v59 }
 0xf65   :  { %11908 = vmatmul.mubr.msk.f32.vlgmr.msra.gmra.mrb[36].mxu1 %vm313_vm6, %v3120_v33 }
 0xf66   :  { %11916 = vmatpush3.msra.mxu1 %v3289_v32  ;;  %11917 = vmatprep.mubr.msk.f32.mxu1 %vm13152_vm5, %v13151_v51 }
 0xf67   :  { %11925 = vmatprep.subr.mxu1 %v13151_v51 }
 0xf69   :  { %11918 = vmatmul.mubr.msk.f32.vlgmr.msra.gmra.mrb[38].mxu1 %vm313_vm6, %v3287_v55 }
 0xf6a   :  { %v12800_v29 = vpop.eup %12799  ;;  %11926 = vmatpush3.msra.mxu1 %v3456_v35  ;;  %11927 = vmatprep.mubr.msk.f32.mxu1 %vm13152_vm5, %v13151_v51 }
 0xf6b   :  { %v3454_v37 = vmul.f32 %v12800_v29, %v13935_v3 }
 0xf6d   :  { %11928 = vmatmul.mubr.msk.f32.vlgmr.msra.gmra.mrb[40].mxu1 %vm313_vm6, %v3454_v37 }
 0xff7   :  { %v2344_v40 = vpop.f32.mrb[26].mxu1 }
 0xff8   :  { %v11859_v42 = vpop.f32.mrb[27].mxu1 }
 0xffb   :  { %v2511_v43 = vpop.f32.mrb[28].mxu1 }
 0xffc   :  { %2850 = vrot.lane.b32.xlu0 %v2511_v43, %s15277_s1  ;;  %v11869_v44 = vpop.f32.mrb[29].mxu1 }
0x102c   :  { %v2678_v48 = vpop.f32.mrb[30].mxu1 }
0x102d   :  { %2854 = vrot.lane.b32.xlu1 %v2678_v48, %s15278_s13  ;;  %v11879_v52 = vpop.f32.mrb[31].mxu1 }
0x1030   :  { %v2845_v54 = vpop.f32.mrb[32].mxu1 }
0x1031   :  { %2858 = vrot.lane.b32.xlu1 %v2845_v54, %s15279_s21  ;;  %v11889_v58 = vpop.f32.mrb[33].mxu1 }
0x1032   :  { %v11196_v58 = vld [vmem:[%s15266_s6 + $0x28] sm:$0xff] }
0x1034   :  { %v3026_v59 = vpop.f32.mrb[34].mxu1 }
0x1035   :  { %v11899_v60 = vpop.f32.mrb[35].mxu1 }
0x1036   :  { %v11197_v60 = vld [vmem:[%s15266_s6 + $0x30] sm:$0xff] }
0x1038   :  { %v3193_v56 = vpop.f32.mrb[36].mxu1 }
0x1039   :  { %3532 = vrot.lane.b32.xlu0 %v3193_v56, %s15277_s1  ;;  %v11909_v62 = vpop.f32.mrb[37].mxu1  ;;  %v11198_v56 = vld [vmem:[%s15266_s6 + $0x38] sm:$0xff] }
0x103a   :  { %v12521_v62 = vpack.c.bf16 %v11198_v56, %v11197_v60  ;;  %v14092_v60 = vld [vmem:[%s15194_s25] sm:$0x3f] }
0x103c   :  { %v3360_v63 = vpop.f32.mrb[38].mxu1 }
0x103d   :  { %3536 = vrot.lane.b32.xlu0 %v3360_v63, %s15278_s13  ;;  %v11919_v2 = vpop.f32.mrb[39].mxu1  ;;  %v3991_v63 = vld [vmem:[#allocation2] sm:$0xff] }
0x103e   :  { %v3992_v2 = vld [vmem:[#allocation2 + $0x8] sm:$0xff] }
0x1040   :  { %v3527_v3 = vpop.f32.mrb[40].mxu1 }
0x1041   :  { %3540 = vrot.lane.b32.xlu1 %v3527_v3, %s15279_s21  ;;  %v11929_v6 = vpop.f32.mrb[41].mxu1  ;;  %v14066_v3 = vpack.c.bf16 %v3992_v2, %v3991_v63 }
0x1042   :  { %v11200_v6 = vld [vmem:[%s15267_s19 + $0x40] sm:$0xff] }
0x106e   :  { %v2851_v38 = vpop.permute.xlu0 %2850 }
0x106f   :  { %v2861_v8 = vsel %vm313_vm6, %v2344_v40, %v2851_v38  ;;  %v11201_v38 = vld [vmem:[%s15267_s19 + $0x48] sm:$0xff] }
0x109f   :  { %v2855_v7 = vpop.permute.xlu1 %2854 }
0x10a0   :  { %v2862_v9 = vsel %vm998_vm11, %v2861_v8, %v2855_v7  ;;  %v11202_v7 = vld [vmem:[%s15267_s19 + $0x50] sm:$0xff]  ;;  %v12525_v8 = vpack.c.bf16 %v11201_v38, %v11200_v6  ;;  %v3976_v6 = vrot.slane %v14092_v60, %v13430_v36  ;;  %v3684_v38 = vrot.slane %v13788_v61, %v13734_v57 }
0x10a2   :  { %12526 = vmatprep.subr.bf16.mxu0 %v12525_v8 }
0x10a3   :  { %v2859_v10 = vpop.permute.xlu1 %2858 }
0x10a4   :  { %v2863_v11 = vsel %vm1000_vm12, %v2862_v9, %v2859_v10  ;;  %v11203_v9 = vld [vmem:[%s15267_s19 + $0x58] sm:$0xff] }
0x10a5   :  { %11938 = vmatprep.mubr.msk.f32.mxu0 %vm158_vm0, %v2863_v11  ;;  %v12529_v10 = vpack.c.bf16 %v11203_v9, %v11202_v7  ;;  %v11204_v11 = vld [vmem:[%s15267_s19 + $0x60] sm:$0xff] }
0x10ab   :  { %v3533_v12 = vpop.permute.xlu0 %3532 }
0x10ac   :  { %v3543_v15 = vsel %vm313_vm6, %v3026_v59, %v3533_v12  ;;  %v12517_v59 = vpack.c.bf16 %v11196_v58, %v11195_v46  ;;  %v11205_v12 = vld [vmem:[%s15267_s19 + $0x68] sm:$0xff]  ;;  %v3672_v46 = vrot.slane %v13788_v61, %v13729_v50 }
0x10ae   :  { %12518 = vmatprep.subr.bf16.mxu1 %v12517_v59 }
0x10af   :  { %v3537_v1 = vpop.permute.xlu0 %3536  ;;  %12520 = vmatpush3.bf16.msra.mxu1 %v12517_v59 }
0x10b0   :  { %v3544_v0 = vsel %vm998_vm11, %v3543_v15, %v3537_v1  ;;  %12522 = vmatprep.subr.bf16.mxu1 %v12521_v62  ;;  %v12533_v1 = vpack.c.bf16 %v11205_v12, %v11204_v11  ;;  %v3994_v11 = vld [vmem:[#allocation2 + $0x18] sm:$0xff] }
0x10b3   :  { %v3541_v16 = vpop.permute.xlu1 %3540  ;;  %12524 = vmatpush3.bf16.msra.mxu1 %v12521_v62 }
0x10b4   :  { %v3545_v17 = vsel %vm1000_vm12, %v3544_v0, %v3541_v16  ;;  %12542 = vmatprep.subr.bf16.mxu1 %v14066_v3 }
0x10b5   :  { %11939 = vmatmul.mubr.msk.f32.vlgmr.msra.gmra.mrb[32].mxu0 %vm158_vm0, %v3545_v17 }
0x10b6   :  { %12528 = vmatpush3.bf16.msra.mxu0 %v12525_v8 }
0x10b7   :  { %12530 = vmatprep.subr.bf16.mxu0 %v12529_v10 }
0x10ba   :  { %12532 = vmatpush3.bf16.msra.mxu0 %v12529_v10  ;;  %v3993_v10 = vld [vmem:[#allocation2 + $0x10] sm:$0xff] }
0x10bb   :  { %12534 = vmatprep.subr.bf16.mxu0 %v12533_v1 }
0x10be   :  { %12536 = vmatpush3.bf16.msra.mxu0 %v12533_v1 }
0x1188   :  { %v11940_v21 = vpop.f32.mrb[32].mxu0 }
0x1189   :  { %v3630_v22 = vadd.f32 %v11940_v21, %v11192_v18  ;;  %v3624_v23 = vpop.f32.mrb[33].mxu0 }
0x118a   :  { %v3625_v24 = vadd.f32 %v11192_v18, %v3624_v23 }
0x118b   :  { %v14007_v25 = vadd.f32 %v3630_v22, %v13759_v19  ;;  %v3939_v19 = vsel %vm158_vm0, %v14017_v4, 0.0 }
0x118c   :  { %v14010_v26 = vadd.f32 %v3625_v24, %v13762_v20  ;;  %v14026_v20 = vld [vmem:[%s15280_s3 + $0x8] sm:$0xff] }
0x118d   :  { %v3638_v27 = vsel %vm158_vm0, %v14007_v25, 0.0  ;;  %v3942_v31 = vsel %vm158_vm0, %v14026_v20, 0.0 }
0x118e   :  { %3639 = vadd.xlane.f32.xlu1 %v3638_v27  ;;  %v3635_v28 = vsel %vm158_vm0, %v14010_v26, 0.0 }
0x118f   :  { %3636 = vadd.xlane.f32.xlu0 %v3635_v28 }
0x1193   :  { %3940 = vadd.xlane.f32.xlu0 %v3939_v19 }
0x1197   :  { %3943 = vadd.xlane.f32.xlu0 %v3942_v31 }
0x121b   :  { %v3640_v5 = vpop.xlane.xlu1 %3639 }
0x121c   :  { %v3642_v32 = vmul.f32 0.03125, %v3640_v5  ;;  %v3637_v33 = vpop.xlane.xlu0 %3636 }
0x121d   :  { %v3641_v34 = vmul.f32 0.03125, %v3637_v33 }
0x121e   :  { %v14031_v55 = vsub.f32 %v14007_v25, %v3642_v32 }
0x121f   :  { %v14034_v35 = vsub.f32 %v14010_v26, %v3641_v34 }
0x1220   :  { %v3941_v29 = vpop.xlane.xlu0 %3940  ;;  %v3646_v37 = vmul.f32 %v14031_v55, %v14031_v55  ;;  %v3674_v62 = vmul.f32 %v3672_v46, %v14031_v55  ;;  %v3988_v55 = vrot.slane %v14092_v60, %v13440_v41 }
0x1221   :  { %v3945_v40 = vmul.f32 0.03125, %v3941_v29  ;;  %v3645_v42 = vmul.f32 %v14034_v35, %v14034_v35  ;;  %v3673_v2 = vmul.f32 %v3672_v46, %v14034_v35  ;;  %v12545_v35 = vpack.c.bf16 %v3994_v11, %v3993_v10 }
0x1222   :  { %v3650_v43 = vsel %vm158_vm0, %v3646_v37, 0.0 }
0x1223   :  { %v14042_v44 = vsub.f32 %v14017_v4, %v3945_v40  ;;  %3651 = vadd.xlane.f32.xlu1 %v3650_v43  ;;  %v3647_v45 = vsel %vm158_vm0, %v3645_v42, 0.0 }
0x1224   :  { %3648 = vadd.xlane.f32.xlu0 %v3647_v45  ;;  %v3944_v47 = vpop.xlane.xlu0 %3943 }
0x1225   :  { %v3946_v48 = vmul.f32 0.03125, %v3944_v47  ;;  %v3949_v49 = vmul.f32 %v14042_v44, %v14042_v44  ;;  %v3977_v12 = vmul.f32 %v3976_v6, %v14042_v44 }
0x1227   :  { %v14048_v52 = vsub.f32 %v14026_v20, %v3946_v48  ;;  %v3951_v53 = vsel %vm158_vm0, %v3949_v49, 0.0 }
0x1228   :  { %3952 = vadd.xlane.f32.xlu0 %v3951_v53 }
0x1229   :  { %v3950_v14 = vmul.f32 %v14048_v52, %v14048_v52  ;;  %v3978_v61 = vmul.f32 %v3976_v6, %v14048_v52  ;;  %v11206_v52 = vld [vmem:[%s15267_s19 + $0x70] sm:$0xff] }
0x122b   :  { %v3954_v54 = vsel %vm158_vm0, %v3950_v14, 0.0 }
0x122c   :  { %3955 = vadd.xlane.f32.xlu1 %v3954_v54 }
0x12b0   :  { %v3652_v15 = vpop.xlane.xlu1 %3651 }
0x12b1   :  { %v3654_v0 = vmul.f32 0.032258064, %v3652_v15  ;;  %v3649_v16 = vpop.xlane.xlu0 %3648 }
0x12b2   :  { %v3653_v17 = vmul.f32 0.032258064, %v3649_v16 }
0x12b3   :  { %12801 = vrsqrt.f32 %v3654_v0  ;;  %vm3664_vm13 = vcmp.eq.f32.partialorder %v3654_v0, inf  ;;  %v3667_v19 = vand.u32 2147483648, %v3654_v0  ;;  %vm3666_vm14 = vcmp.eq.f32.partialorder %v3654_v0, 0.0 }
0x12b4   :  { %12803 = vrsqrt.f32 %v3653_v17  ;;  %vm3657_vm15 = vcmp.eq.f32.partialorder %v3653_v17, inf  ;;  %v3660_v32 = vand.u32 2147483648, %v3653_v17  ;;  %vm3659_vm1 = vcmp.eq.f32.partialorder %v3653_v17, 0.0 }
0x12b5   :  { %v3953_v18 = vpop.xlane.xlu0 %3952 }
0x12b6   :  { %v3957_v21 = vmul.f32 0.032258064, %v3953_v18 }
0x12b8   :  { %12805 = vrsqrt.f32 %v3957_v21  ;;  %vm3961_vm3 = vcmp.eq.f32.partialorder %v3957_v21, inf  ;;  %v3964_v45 = vand.u32 2147483648, %v3957_v21  ;;  %vm3963_vm4 = vcmp.eq.f32.partialorder %v3957_v21, 0.0 }
0x12b9   :  { %v3956_v22 = vpop.xlane.xlu1 %3955 }
0x12ba   :  { %v3958_v23 = vmul.f32 0.032258064, %v3956_v22 }
0x12bc   :  { %12807 = vrsqrt.f32 %v3958_v23  ;;  %vm3968_vm7 = vcmp.eq.f32.partialorder %v3958_v23, inf  ;;  %v3971_v54 = vand.u32 2147483648, %v3958_v23  ;;  %vm3970_vm9 = vcmp.eq.f32.partialorder %v3958_v23, 0.0 }
0x12bd   :  { %v12802_v24 = vpop.eup %12801 }
0x12be   :  { %v12804_v27 = vpop.eup %12803  ;;  %v3663_v28 = vmul.f32 %v12802_v24, %v3654_v0 }
0x12bf   :  { %v3656_v31 = vmul.f32 %v12804_v27, %v3653_v17 }
0x12c0   :  { %v3665_v5 = vsel %vm3664_vm13, %v3654_v0, %v3663_v28 }
0x12c1   :  { %v3668_v33 = vsel %vm3666_vm14, %v3667_v19, %v3665_v5  ;;  %v3658_v34 = vsel %vm3657_vm15, %v3653_v17, %v3656_v31 }
0x12c2   :  { %v12806_v29 = vpop.eup %12805  ;;  %v3676_v37 = vadd.f32 1e-06, %v3668_v33  ;;  %v3661_v40 = vsel %vm3659_vm1, %v3660_v32, %v3658_v34  ;;  %v11215_v32 = vld [vmem:[%s15183_s14] ss:$0 sm:$0xff] }
0x12c3   :  { %v3960_v42 = vmul.f32 %v12806_v29, %v3957_v21  ;;  %v3675_v43 = vadd.f32 1e-06, %v3661_v40 }
0x12c4   :  { %12809 = vrcp.f32 %v3676_v37 }
0x12c5   :  { %v3962_v47 = vsel %vm3961_vm3, %v3957_v21, %v3960_v42  ;;  %12811 = vrcp.f32 %v3675_v43 }
0x12c6   :  { %v12808_v48 = vpop.eup %12807  ;;  %v3965_v49 = vsel %vm3963_vm4, %v3964_v45, %v3962_v47 }
0x12c7   :  { %v3967_v53 = vmul.f32 %v12808_v48, %v3958_v23  ;;  %v3979_v14 = vadd.f32 1e-06, %v3965_v49 }
0x12c9   :  { %v3969_v58 = vsel %vm3968_vm7, %v3958_v23, %v3967_v53  ;;  %12813 = vrcp.f32 %v3979_v14  ;;  %v11209_v23 = vld [vmem:[%s15268_s11 + $0x1] ss:$0 sm:$0xff]  ;;  %s15281_s11 = smov 88  }
0x12ca   :  { %v3972_v59 = vsel %vm3970_vm9, %v3971_v54, %v3969_v58 }
0x12cb   :  { %v3980_v56 = vadd.f32 1e-06, %v3972_v59 }
0x12cd   :  { %12815 = vrcp.f32 %v3980_v56 }
0x12ce   :  { %v12810_v63 = vpop.eup %12809 }
0x12cf   :  { %v12812_v7 = vpop.eup %12811  ;;  %v3680_v8 = vmul.f32 %v12810_v63, %v3674_v62 }
0x12d0   :  { %v3678_v9 = vmul.f32 %v12812_v7, %v3673_v2  ;;  %v14207_v2 = vld [vmem:[%s15285_s0] sm:$0xff] }
0x12d1   :  { %v3686_v0 = vadd.f32 %v3684_v38, %v3680_v8  ;;  %vm4167_vm13 = vcmp.gt.f32.partialorder %v14207_v2, 0.0 }
0x12d2   :  { %v3685_v1 = vadd.f32 %v3684_v38, %v3678_v9 }
0x12d3   :  { %v12814_v15 = vpop.eup %12813 }
0x12d4   :  { %11949 = vmatprep.mubr.msk.f32.mxu1 %vm158_vm0, %v3685_v1  ;;  %v3982_v16 = vmul.f32 %v12814_v15, %v3977_v12 }
0x12d5   :  { %11950 = vmatmul.mubr.msk.f32.vlgmr.msra.gmra.mrb[42].mxu1 %vm158_vm0, %v3686_v0 }
0x12d6   :  { %12544 = vmatpush3.bf16.msra.mxu1 %v14066_v3  ;;  %v3989_v17 = vadd.f32 %v3988_v55, %v3982_v16  ;;  %v11207_v3 = vld [vmem:[%s15267_s19 + $0x78] sm:$0xff] }
0x12d7   :  { %v12816_v18 = vpop.eup %12815  ;;  %12546 = vmatprep.subr.bf16.mxu1 %v12545_v35  ;;  %v12537_v22 = vpack.c.bf16 %v11207_v3, %v11206_v52 }
0x12d8   :  { %v3984_v44 = vmul.f32 %v12816_v18, %v3978_v61  ;;  %11979 = vmatprep.mubr.msk.f32.mxu1 %vm158_vm0, %v3989_v17 }
0x12d9   :  { %12538 = vmatprep.subr.bf16.mxu0 %v12537_v22 }
0x12da   :  { %v3990_v21 = vadd.f32 %v3988_v55, %v3984_v44  ;;  %12548 = vmatpush3.bf16.msra.mxu1 %v12545_v35  ;;  %12540 = vmatpush3.bf16.msra.mxu0 %v12537_v22 }
0x12db   :  { %11982 = vmatprep.subr.mxu1 %v13151_v51  ;;  %11992 = vmatprep.subr.mxu0 %v13151_v51 }
0x12dd   :  { %11980 = vmatmul.mubr.msk.f32.vlgmr.msra.gmra.mrb[44].mxu1 %vm158_vm0, %v3990_v21  ;;  %v14225_v21 = vld [vmem:[%s15285_s0 + $0x8] sm:$0xff] }
0x12de   :  { %11984 = vmatprep.mubr.msk.f32.mxu1 %vm13152_vm5, %v13151_v51  ;;  %vm4852_vm14 = vcmp.gt.f32.partialorder %v14225_v21, 0.0 }
0x13a8   :  { %v11951_v24 = vpop.f32.mrb[42].mxu1 }
0x13a9   :  { %v3789_v27 = vadd.f32 %v11951_v24, %v11209_v23  ;;  %v3783_v28 = vpop.f32.mrb[43].mxu1 }
0x13aa   :  { %v3784_v19 = vadd.f32 %v11209_v23, %v3783_v28 }
0x13ab   :  { %v3793_v5 = vmax.f32 %v3789_v27, 0.0 }
0x13ac   :  { %v3792_v31 = vmax.f32 %v3784_v19, 0.0 }
0x13ae   :  { %11968 = vmatprep.mubr.msk.f32.mxu0 %vm1943_vm2, %v3792_v31 }
0x13af   :  { %11969 = vmatmul.mubr.msk.f32.vlgmr.msra.gmra.mrb[34].mxu0 %vm1943_vm2, %v3793_v5 }
0x13b0   :  { %v11981_v33 = vpop.f32.mrb[44].mxu1  ;;  %11994 = vmatprep.mubr.msk.f32.mxu0 %vm13152_vm5, %v13151_v51 }
0x13b1   :  { %v4079_v34 = vpop.f32.mrb[45].mxu1  ;;  %v14143_v37 = vadd.f32 %v11981_v33, %v11215_v32 }
0x13b2   :  { %v14129_v29 = vadd.f32 %v11215_v32, %v4079_v34 }
0x13b4   :  { %4258 = vrot.lane.b32.xlu1 %v14129_v29, %s15281_s11  ;;  %4090 = vrot.lane.b32.xlu0 %v14129_v29, %s15282_s12 }
0x13b8   :  { %4256 = vrot.lane.b32.xlu1 %v14129_v29, %s15283_s29  ;;  %4423 = vrot.lane.b32.xlu0 %v14129_v29, %s15284_s24 }
0x13bc   :  { %4425 = vrot.lane.b32.xlu1 %v14129_v29, %s15270_s7  ;;  %4590 = vrot.lane.b32.xlu0 %v14129_v29, %s15271_s28 }
0x13c0   :  { %4592 = vrot.lane.b32.xlu1 %v14129_v29, %s15272_s9  ;;  %4943 = vrot.lane.b32.xlu0 %v14143_v37, %s15281_s11 }
0x13c4   :  { %4775 = vrot.lane.b32.xlu1 %v14143_v37, %s15282_s12  ;;  %5110 = vrot.lane.b32.xlu0 %v14143_v37, %s15270_s7 }
0x13c8   :  { %4941 = vrot.lane.b32.xlu1 %v14143_v37, %s15283_s29  ;;  %5277 = vrot.lane.b32.xlu0 %v14143_v37, %s15272_s9 }
0x13cc   :  { %5108 = vrot.lane.b32.xlu1 %v14143_v37, %s15284_s24 }
0x13d0   :  { %5275 = vrot.lane.b32.xlu1 %v14143_v37, %s15271_s28 }
0x1426   :  { %v4259_v40 = vpop.permute.xlu1 %4258  ;;  %v4091_v42 = vpop.permute.xlu0 %4090 }
0x1427   :  { %11983 = vmatpush3.xpose.msk.msra.mxu1 %vm313_vm6, %v4091_v42  ;;  %11993 = vmatpush3.xpose.msk.msra.mxu0 %vm313_vm6, %v4259_v40 }
0x1428   :  { %12002 = vmatprep.subr.mxu0 %v13151_v51  ;;  %11987 = vmatprep.subr.mxu1 %v13151_v51 }
0x142a   :  { %v4257_v43 = vpop.permute.xlu1 %4256  ;;  %11985 = vmatmul.mubr.msk.f32.vlgmr.msra.gmra.mrb[46].mxu1 %vm313_vm6, %v14129_v29  ;;  %v4424_v45 = vpop.permute.xlu0 %4423 }
0x142b   :  { %11995 = vmatmul.mubr.msk.f32.vlgmr.msra.gmra.mrb[36].mxu0 %vm313_vm6, %v4257_v43  ;;  %11989 = vmatprep.mubr.msk.f32.mxu1 %vm13152_vm5, %v13151_v51 }
0x142c   :  { %12004 = vmatprep.mubr.msk.f32.mxu0 %vm13152_vm5, %v13151_v51 }
0x142e   :  { %v4426_v47 = vpop.permute.xlu1 %4425  ;;  %v4591_v48 = vpop.permute.xlu0 %4590 }
0x142f   :  { %12003 = vmatpush3.xpose.msk.msra.mxu0 %vm313_vm6, %v4426_v47 }
0x1430   :  { %12012 = vmatprep.subr.mxu0 %v13151_v51 }
0x1432   :  { %v4593_v49 = vpop.permute.xlu1 %4592  ;;  %12005 = vmatmul.mubr.msk.f32.vlgmr.msra.gmra.mrb[38].mxu0 %vm313_vm6, %v4424_v45  ;;  %v4944_v53 = vpop.permute.xlu0 %4943 }
0x1433   :  { %12013 = vmatpush3.xpose.msk.msra.mxu0 %vm313_vm6, %v4593_v49  ;;  %12014 = vmatprep.mubr.msk.f32.mxu0 %vm13152_vm5, %v13151_v51 }
0x1434   :  { %12022 = vmatprep.subr.mxu0 %v13151_v51 }
0x1436   :  { %v4776_v14 = vpop.permute.xlu1 %4775  ;;  %12015 = vmatmul.mubr.msk.f32.vlgmr.msra.gmra.mrb[40].mxu0 %vm313_vm6, %v4591_v48  ;;  %v5111_v46 = vpop.permute.xlu0 %5110 }
0x1437   :  { %12023 = vmatpush3.xpose.msk.msra.mxu0 %vm313_vm6, %v4776_v14  ;;  %12024 = vmatprep.mubr.msk.f32.mxu0 %vm13152_vm5, %v13151_v51 }
0x1438   :  { %12032 = vmatprep.subr.mxu0 %v13151_v51 }
0x143a   :  { %v4942_v54 = vpop.permute.xlu1 %4941  ;;  %12025 = vmatmul.mubr.msk.f32.vlgmr.msra.gmra.mrb[42].mxu0 %vm313_vm6, %v14143_v37  ;;  %v5278_v59 = vpop.permute.xlu0 %5277 }
0x143b   :  { %12033 = vmatpush3.xpose.msk.msra.mxu0 %vm313_vm6, %v4944_v53  ;;  %12034 = vmatprep.mubr.msk.f32.mxu0 %vm13152_vm5, %v13151_v51 }
0x143c   :  { %12042 = vmatprep.subr.mxu0 %v13151_v51 }
0x143e   :  { %12035 = vmatmul.mubr.msk.f32.vlgmr.msra.gmra.mrb[44].mxu0 %vm313_vm6, %v4942_v54  ;;  %v5109_v58 = vpop.permute.xlu1 %5108 }
0x143f   :  { %12043 = vmatpush3.xpose.msk.msra.mxu0 %vm313_vm6, %v5111_v46  ;;  %12044 = vmatprep.mubr.msk.f32.mxu0 %vm13152_vm5, %v13151_v51 }
0x1440   :  { %12052 = vmatprep.subr.mxu0 %v13151_v51 }
0x1442   :  { %12045 = vmatmul.mubr.msk.f32.vlgmr.msra.gmra.mrb[46].mxu0 %vm313_vm6, %v5109_v58  ;;  %v5276_v56 = vpop.permute.xlu1 %5275 }
0x1443   :  { %12053 = vmatpush3.xpose.msk.msra.mxu0 %vm313_vm6, %v5278_v59  ;;  %12054 = vmatprep.mubr.msk.f32.mxu0 %vm13152_vm5, %v13151_v51 }
0x1446   :  { %12055 = vmatmul.mubr.msk.f32.vlgmr.msra.gmra.mrb[48].mxu0 %vm313_vm6, %v5276_v56 }
0x1482   :  { %v14200_v62 = vpop.f32.mrb[34].mxu0 }
0x1483   :  { %v14202_v63 = vpop.f32.mrb[35].mxu0 }
0x14fd   :  { %v4162_v6 = vpop.f32.mrb[46].mxu1 }
0x14fe   :  { %v4166_v38 = vmul.f32 0.35355338, %v4162_v6  ;;  %v11986_v7 = vpop.f32.mrb[47].mxu1  ;;  %v4330_v8 = vpop.f32.mrb[36].mxu0 }
0x14ff   :  { %v4334_v9 = vmul.f32 0.35355338, %v4330_v8  ;;  %v11996_v10 = vpop.f32.mrb[37].mxu0 }
0x1500   :  { %v4168_v11 = vsel %vm4167_vm13, %v4166_v38, -1e+09 }
0x1501   :  { %v4335_v12 = vsel %vm4167_vm13, %v4334_v9, -1e+09  ;;  %v4169_v1 = vsel %vm313_vm6, %v4168_v11, -inf }
0x1502   :  { %4170 = vmax.xlane.f32.xlu0 %v4169_v1  ;;  %v4336_v55 = vsel %vm313_vm6, %v4335_v12, -inf }
0x1503   :  { %4337 = vmax.xlane.f32.xlu1 %v4336_v55 }
0x1505   :  { %v4497_v15 = vpop.f32.mrb[38].mxu0 }
0x1506   :  { %v4501_v0 = vmul.f32 0.35355338, %v4497_v15  ;;  %v12006_v35 = vpop.f32.mrb[39].mxu0 }
0x1508   :  { %v14218_v16 = vsel %vm4167_vm13, %v4501_v0, -1e+09 }
0x1509   :  { %v4664_v61 = vpop.f32.mrb[40].mxu0  ;;  %v4503_v17 = vsel %vm313_vm6, %v14218_v16, -inf }
0x150a   :  { %v4668_v18 = vmul.f32 0.35355338, %v4664_v61  ;;  %4504 = vmax.xlane.f32.xlu0 %v4503_v17  ;;  %v12016_v44 = vpop.f32.mrb[41].mxu0 }
0x150c   :  { %v4669_v52 = vsel %vm4167_vm13, %v4668_v18, -1e+09 }
0x150d   :  { %v4847_v3 = vpop.f32.mrb[42].mxu0  ;;  %v4670_v22 = vsel %vm313_vm6, %v4669_v52, -inf }
0x150e   :  { %v4851_v23 = vmul.f32 0.35355338, %v4847_v3  ;;  %4671 = vmax.xlane.f32.xlu0 %v4670_v22  ;;  %v12026_v24 = vpop.f32.mrb[43].mxu0 }
0x1510   :  { %v4853_v27 = vsel %vm4852_vm14, %v4851_v23, -1e+09 }
0x1511   :  { %v5015_v28 = vpop.f32.mrb[44].mxu0  ;;  %v4854_v19 = vsel %vm313_vm6, %v4853_v27, -inf }
0x1512   :  { %v5019_v31 = vmul.f32 0.35355338, %v5015_v28  ;;  %4855 = vmax.xlane.f32.xlu0 %v4854_v19  ;;  %v12036_v5 = vpop.f32.mrb[45].mxu0 }
0x1514   :  { %v5020_v32 = vsel %vm4852_vm14, %v5019_v31, -1e+09 }
0x1515   :  { %v5182_v33 = vpop.f32.mrb[46].mxu0  ;;  %v5021_v34 = vsel %vm313_vm6, %v5020_v32, -inf }
0x1516   :  { %v5186_v40 = vmul.f32 0.35355338, %v5182_v33  ;;  %5022 = vmax.xlane.f32.xlu1 %v5021_v34  ;;  %v12046_v42 = vpop.f32.mrb[47].mxu0 }
0x1518   :  { %v5187_v43 = vsel %vm4852_vm14, %v5186_v40, -1e+09 }
0x1519   :  { %v5349_v45 = vpop.f32.mrb[48].mxu0  ;;  %v5188_v47 = vsel %vm313_vm6, %v5187_v43, -inf }
0x151a   :  { %5189 = vmax.xlane.f32.xlu0 %v5188_v47  ;;  %v12056_v48 = vpop.f32.mrb[49].mxu0  ;;  %v5353_v49 = vmul.f32 0.35355338, %v5349_v45 }
0x151c   :  { %v5354_v53 = vsel %vm4852_vm14, %v5353_v49, -1e+09 }
0x151d   :  { %v5355_v14 = vsel %vm313_vm6, %v5354_v53, -inf }
0x1527   :  { %4180 = vrot.lane.b32.xlu1 %v14129_v29, %s15273_s30 }
0x154b   :  { %5356 = vmax.xlane.f32.xlu1 %v5355_v14 }
0x155c   :  { %4514 = vrot.lane.b32.xlu1 %v14129_v29, %s15274_s5 }
0x1560   :  { %4681 = vrot.lane.b32.xlu1 %v14129_v29, %s15275_s2 }
0x1564   :  { %4865 = vrot.lane.b32.xlu1 %v14143_v37, %s15273_s30 }
0x158f   :  { %v4171_v54 = vpop.xlane.xlu0 %4170 }
0x1590   :  { %v4172_v46 = vsub.f32 %v4168_v11, %v4171_v54  ;;  %v4338_v58 = vpop.xlane.xlu1 %4337 }
0x1591   :  { %v4339_v59 = vsub.f32 %v4335_v12, %v4338_v58 }
0x1592   :  { %v4173_v56 = vmul.f32 1.442695, %v4172_v46 }
0x1593   :  { %v4340_v6 = vmul.f32 1.442695, %v4339_v59 }
0x1594   :  { %12817 = vpow2.f32 %v4173_v56 }
0x1595   :  { %12819 = vpow2.f32 %v4340_v6 }
0x1597   :  { %v4505_v38 = vpop.xlane.xlu0 %4504 }
0x1598   :  { %v4506_v61 = vsub.f32 %v14218_v16, %v4505_v38 }
0x159a   :  { %v4507_v18 = vmul.f32 1.442695, %v4506_v61 }
0x159b   :  { %v4672_v7 = vpop.xlane.xlu0 %4671 }
0x159c   :  { %v4673_v8 = vsub.f32 %v4669_v52, %v4672_v7 }
0x159e   :  { %v12818_v9 = vpop.eup %12817  ;;  %v4674_v10 = vmul.f32 1.442695, %v4673_v8 }
0x159f   :  { %v14251_v1 = vpop.eup %12819  ;;  %v4175_v55 = vsel %vm313_vm6, %v12818_v9, 0.0  ;;  %v4856_v17 = vpop.xlane.xlu0 %4855 }
0x15a0   :  { %12821 = vpow2.f32 %v4674_v10  ;;  %4176 = vadd.xlane.f32.xlu0 %v4175_v55  ;;  %v4342_v11 = vsel %vm313_vm6, %v14251_v1, 0.0  ;;  %v4857_v44 = vsub.f32 %v4853_v27, %v4856_v17 }
0x15a1   :  { %4343 = vadd.xlane.f32.xlu1 %v4342_v11  ;;  %12823 = vpow2.f32 %v4507_v18 }
0x15a2   :  { %v4858_v3 = vmul.f32 1.442695, %v4857_v44 }
0x15a3   :  { %v5023_v12 = vpop.xlane.xlu1 %5022 }
0x15a4   :  { %12825 = vpow2.f32 %v4858_v3  ;;  %v5024_v23 = vsub.f32 %v5020_v32, %v5023_v12 }
0x15a6   :  { %v5025_v28 = vmul.f32 1.442695, %v5024_v23 }
0x15a7   :  { %v4181_v15 = vpop.permute.xlu1 %4180  ;;  %v5190_v52 = vpop.xlane.xlu0 %5189 }
0x15a8   :  { %11988 = vmatpush3.msra.mxu1 %v4181_v15  ;;  %v5191_v22 = vsub.f32 %v5187_v43, %v5190_v52 }
0x15a9   :  { %11997 = vmatprep.subr.mxu1 %v13151_v51 }
0x15aa   :  { %v14257_v0 = vpop.eup %12821  ;;  %v5192_v24 = vmul.f32 1.442695, %v5191_v22 }
0x15ab   :  { %v4676_v35 = vsel %vm313_vm6, %v14257_v0, 0.0  ;;  %v12824_v19 = vpop.eup %12823 }
0x15ac   :  { %4677 = vadd.xlane.f32.xlu1 %v4676_v35  ;;  %12827 = vpow2.f32 %v5192_v24 }
0x15ad   :  { %12829 = vpow2.f32 %v5025_v28 }
0x15ae   :  { %v14267_v31 = vpop.eup %12825 }
0x15af   :  { %v4860_v27 = vsel %vm313_vm6, %v14267_v31, 0.0 }
0x15b6   :  { %4347 = vrot.lane.b32.xlu0 %v14129_v29, %s15276_s8  ;;  %v4509_v29 = vsel %vm313_vm6, %v12824_v19, 0.0  ;;  %v14271_v5 = vpop.eup %12827 }
0x15b7   :  { %v5194_v32 = vsel %vm313_vm6, %v14271_v5, 0.0  ;;  %v14275_v40 = vpop.eup %12829 }
0x15b8   :  { %v5027_v42 = vsel %vm313_vm6, %v14275_v40, 0.0 }
0x15bd   :  { %5032 = vrot.lane.b32.xlu1 %v14143_v37, %s15276_s8 }
0x15d5   :  { %4510 = vadd.xlane.f32.xlu0 %v4509_v29  ;;  %v3996_v29 = vld [vmem:[#allocation5] sm:$0xff] }
0x15d8   :  { %v5357_v16 = vpop.xlane.xlu1 %5356 }
0x15d9   :  { %v5358_v33 = vsub.f32 %v5354_v53, %v5357_v16  ;;  %4861 = vadd.xlane.f32.xlu0 %v4860_v27 }
0x15db   :  { %v5359_v34 = vmul.f32 1.442695, %v5358_v33  ;;  %v3998_v33 = vld [vmem:[#allocation5 + $0x10] sm:$0xff] }
0x15dc   :  { %v4515_v47 = vpop.permute.xlu1 %4514 }
0x15dd   :  { %12831 = vpow2.f32 %v5359_v34  ;;  %5195 = vadd.xlane.f32.xlu0 %v5194_v32  ;;  %v3999_v34 = vld [vmem:[#allocation5 + $0x18] sm:$0xff] }
0x15e0   :  { %v4682_v48 = vpop.permute.xlu1 %4681 }
0x15e1   :  { %5028 = vadd.xlane.f32.xlu1 %v5027_v42 }
0x15e4   :  { %v4866_v49 = vpop.permute.xlu1 %4865 }
0x15e7   :  { %v14279_v43 = vpop.eup %12831 }
0x15e8   :  { %v5361_v45 = vsel %vm313_vm6, %v14279_v43, 0.0 }
0x15e9   :  { %5362 = vadd.xlane.f32.xlu0 %v5361_v45 }
0x15f2   :  { %5366 = vrot.lane.b32.xlu1 %v14143_v37, %s15275_s2 }
0x15ff   :  { %5199 = vrot.lane.b32.xlu0 %v14143_v37, %s15274_s5 }
0x162d   :  { %v4177_v53 = vpop.xlane.xlu0 %4176 }
0x162e   :  { %12833 = vrcp.f32 %v4177_v53  ;;  %v4344_v14 = vpop.xlane.xlu1 %4343 }
0x162f   :  { %12835 = vrcp.f32 %v4344_v14 }
0x1631   :  { %v4348_v59 = vpop.permute.xlu0 %4347 }
0x1638   :  { %v12834_v54 = vpop.eup %12833 }
0x1639   :  { %v4179_v46 = vmul.f32 %v12834_v54, %v12818_v9  ;;  %v12836_v58 = vpop.eup %12835  ;;  %v4678_v56 = vpop.xlane.xlu1 %4677 }
0x163a   :  { %v4346_v37 = vmul.f32 %v12836_v58, %v14251_v1 }
0x163b   :  { %11990 = vmatmul.mubr.msk.f32.vlgmr.msra.gmra.mrb[48].mxu1 %vm313_vm6, %v4179_v46  ;;  %v11212_v46 = vld [vmem:[%s15269_s15 + $0x1] ss:$0 sm:$0xff] }
0x163c   :  { %11998 = vmatpush3.msra.mxu1 %v4348_v59  ;;  %11999 = vmatprep.mubr.msk.f32.mxu1 %vm13152_vm5, %v13151_v51  ;;  %v3873_v58 = vadd.f32 %v11212_v46, %v14202_v63 }
0x163d   :  { %12007 = vmatprep.subr.mxu1 %v13151_v51  ;;  %v5033_v7 = vpop.permute.xlu1 %5032 }
0x163e   :  { %v3881_v59 = vadd.f32 %v3873_v58, %v14010_v26 }
0x163f   :  { %12000 = vmatmul.mubr.msk.f32.vlgmr.msra.gmra.mrb[50].mxu1 %vm313_vm6, %v4346_v37 }
0x1640   :  { %12008 = vmatpush3.msra.mxu1 %v4515_v47  ;;  %12009 = vmatprep.mubr.msk.f32.mxu1 %vm13152_vm5, %v13151_v51  ;;  %v3884_v37 = vsel %vm158_vm0, %v3881_v59, 0.0 }
0x1641   :  { %12017 = vmatprep.subr.mxu1 %v13151_v51 }
0x1662   :  { %v4511_v6 = vpop.xlane.xlu0 %4510 }
0x1663   :  { %12837 = vrcp.f32 %v4511_v6 }
0x1664   :  { %12839 = vrcp.f32 %v4678_v56  ;;  %v3878_v56 = vadd.f32 %v14200_v62, %v11212_v46 }
0x1666   :  { %v4862_v38 = vpop.xlane.xlu0 %4861  ;;  %v3882_v6 = vadd.f32 %v3878_v56, %v14007_v25  ;;  %v5599_v56 = vld [vmem:[#allocation7 + $0x8] sm:$0xff] }
0x1667   :  { %12841 = vrcp.f32 %v4862_v38 }
0x1668   :  { %v3887_v38 = vsel %vm158_vm0, %v3882_v6, 0.0 }
0x166a   :  { %v5196_v9 = vpop.xlane.xlu0 %5195 }
0x166d   :  { %v12838_v8 = vpop.eup %12837 }
0x166e   :  { %v5029_v10 = vpop.xlane.xlu1 %5028  ;;  %v4513_v55 = vmul.f32 %v12838_v8, %v12824_v19  ;;  %v12840_v1 = vpop.eup %12839 }
0x166f   :  { %12843 = vrcp.f32 %v5029_v10  ;;  %v4680_v11 = vmul.f32 %v12840_v1, %v14257_v0 }
0x1670   :  { %12010 = vmatmul.mubr.msk.f32.vlgmr.msra.gmra.mrb[52].mxu1 %vm313_vm6, %v4513_v55  ;;  %12845 = vrcp.f32 %v5196_v9 }
0x1671   :  { %12018 = vmatpush3.msra.mxu1 %v4682_v48  ;;  %12019 = vmatprep.mubr.msk.f32.mxu1 %vm13152_vm5, %v13151_v51  ;;  %v12842_v12 = vpop.eup %12841 }
0x1672   :  { %12027 = vmatprep.subr.mxu1 %v13151_v51  ;;  %v4864_v35 = vmul.f32 %v12842_v12, %v14267_v31  ;;  %v5367_v52 = vpop.permute.xlu1 %5366  ;;  %v3997_v31 = vld [vmem:[#allocation5 + $0x8] sm:$0xff] }
0x1673   :  { %v12549_v27 = vpack.c.bf16 %v3997_v31, %v3996_v29 }
0x1674   :  { %12020 = vmatmul.mubr.msk.f32.vlgmr.msra.gmra.mrb[54].mxu1 %vm313_vm6, %v4680_v11 }
0x1675   :  { %12028 = vmatpush3.msra.mxu1 %v4866_v49  ;;  %12029 = vmatprep.mubr.msk.f32.mxu1 %vm13152_vm5, %v13151_v51 }
0x1676   :  { %v5363_v15 = vpop.xlane.xlu0 %5362  ;;  %12037 = vmatprep.subr.mxu1 %v13151_v51  ;;  %12550 = vmatprep.subr.bf16.mxu0 %v12549_v27 }
0x1677   :  { %12847 = vrcp.f32 %v5363_v15  ;;  %12552 = vmatpush3.bf16.msra.mxu0 %v12549_v27  ;;  %v3883_v15 = vld [vmem:[%s15195_s26] sm:$0xf]  ;;  %s15286_s26 = sld [smem:[#allocation28_spill]] }
0x1678   :  { %12030 = vmatmul.mubr.msk.f32.vlgmr.msra.gmra.mrb[56].mxu1 %vm313_vm6, %v4864_v35 }
0x1679   :  { %v12844_v61 = vpop.eup %12843  ;;  %12038 = vmatpush3.msra.mxu1 %v5033_v7  ;;  %12039 = vmatprep.mubr.msk.f32.mxu1 %vm13152_vm5, %v13151_v51 }
0x167a   :  { %v5200_v0 = vpop.permute.xlu0 %5199  ;;  %12047 = vmatprep.subr.mxu1 %v13151_v51  ;;  %v5031_v17 = vmul.f32 %v12844_v61, %v14275_v40  ;;  %v12846_v18 = vpop.eup %12845  ;;  %v12553_v40 = vpack.c.bf16 %v3999_v34, %v3998_v33 }
0x167b   :  { %v5198_v44 = vmul.f32 %v12846_v18, %v14271_v5 }
0x167c   :  { %12040 = vmatmul.mubr.msk.f32.vlgmr.msra.gmra.mrb[58].mxu1 %vm313_vm6, %v5031_v17  ;;  %12554 = vmatprep.subr.bf16.mxu0 %v12553_v40 }
0x167d   :  { %12048 = vmatpush3.msra.mxu1 %v5200_v0  ;;  %12049 = vmatprep.mubr.msk.f32.mxu1 %vm13152_vm5, %v13151_v51  ;;  %v3921_v0 = vrot.slane %v3883_v15, %v13430_v36 }
0x167e   :  { %12057 = vmatprep.subr.mxu1 %v13151_v51  ;;  %12556 = vmatpush3.bf16.msra.mxu0 %v12553_v40 }
0x1680   :  { %12050 = vmatmul.mubr.msk.f32.vlgmr.msra.gmra.mrb[60].mxu1 %vm313_vm6, %v5198_v44 }
0x1681   :  { %v12848_v3 = vpop.eup %12847  ;;  %12058 = vmatpush3.msra.mxu1 %v5367_v52  ;;  %12059 = vmatprep.mubr.msk.f32.mxu1 %vm13152_vm5, %v13151_v51 }
0x1682   :  { %v5365_v22 = vmul.f32 %v12848_v3, %v14279_v43 }
0x1684   :  { %12060 = vmatmul.mubr.msk.f32.vlgmr.msra.gmra.mrb[62].mxu1 %vm313_vm6, %v5365_v22 }
0x170e   :  { %v4252_v23 = vpop.f32.mrb[48].mxu1 }
0x170f   :  { %v11991_v24 = vpop.f32.mrb[49].mxu1 }
0x1712   :  { %v4419_v28 = vpop.f32.mrb[50].mxu1 }
0x1713   :  { %4758 = vrot.lane.b32.xlu0 %v4419_v28, %s15277_s1  ;;  %v12001_v19 = vpop.f32.mrb[51].mxu1 }
0x1743   :  { %v4586_v16 = vpop.f32.mrb[52].mxu1 }
0x1744   :  { %4762 = vrot.lane.b32.xlu1 %v4586_v16, %s15278_s13  ;;  %v12011_v5 = vpop.f32.mrb[53].mxu1 }
0x1747   :  { %v4753_v32 = vpop.f32.mrb[54].mxu1 }
0x1748   :  { %4766 = vrot.lane.b32.xlu1 %v4753_v32, %s15279_s21  ;;  %v12021_v42 = vpop.f32.mrb[55].mxu1 }
0x174b   :  { %v4937_v43 = vpop.f32.mrb[56].mxu1 }
0x174c   :  { %v12031_v45 = vpop.f32.mrb[57].mxu1 }
0x174f   :  { %v5104_v47 = vpop.f32.mrb[58].mxu1 }
0x1750   :  { %5443 = vrot.lane.b32.xlu0 %v5104_v47, %s15277_s1  ;;  %v12041_v48 = vpop.f32.mrb[59].mxu1 }
0x1753   :  { %v5271_v49 = vpop.f32.mrb[60].mxu1 }
0x1754   :  { %5447 = vrot.lane.b32.xlu0 %v5271_v49, %s15278_s13  ;;  %v12051_v53 = vpop.f32.mrb[61].mxu1 }
0x1757   :  { %v5438_v14 = vpop.f32.mrb[62].mxu1 }
0x1758   :  { %5451 = vrot.lane.b32.xlu1 %v5438_v14, %s15279_s21  ;;  %v12061_v54 = vpop.f32.mrb[63].mxu1 }
0x1773   :  { %3885 = vadd.xlane.f32.xlu0 %v3884_v37 }
0x177c   :  { %3888 = vadd.xlane.f32.xlu1 %v3887_v38  ;;  %v5601_v38 = vld [vmem:[#allocation7 + $0x18] sm:$0xff] }
0x1785   :  { %v4759_v7 = vpop.permute.xlu0 %4758 }
0x1786   :  { %v4769_v9 = vsel %vm313_vm6, %v4252_v23, %v4759_v7  ;;  %v11243_v23 = vld [vmem:[%s15185_s16] ss:$0 sm:$0xff] }
0x17b6   :  { %v4763_v8 = vpop.permute.xlu1 %4762 }
0x17b7   :  { %v4770_v10 = vsel %vm998_vm11, %v4769_v9, %v4763_v8 }
0x17ba   :  { %v4767_v55 = vpop.permute.xlu1 %4766 }
0x17bb   :  { %v4771_v63 = vsel %vm1000_vm12, %v4770_v10, %v4767_v55 }
0x17bc   :  { %12070 = vmatprep.mubr.msk.f32.mxu0 %vm158_vm0, %v4771_v63 }
0x17c2   :  { %v5444_v26 = vpop.permute.xlu0 %5443 }
0x17c3   :  { %v5454_v62 = vsel %vm313_vm6, %v4937_v43, %v5444_v26 }
0x17c6   :  { %v5448_v1 = vpop.permute.xlu0 %5447 }
0x17c7   :  { %v5455_v25 = vsel %vm998_vm11, %v5454_v62, %v5448_v1  ;;  %v3933_v62 = vrot.slane %v3883_v15, %v13440_v41 }
0x17ca   :  { %v5452_v11 = vpop.permute.xlu1 %5451 }
0x17cb   :  { %v5456_v12 = vsel %vm1000_vm12, %v5455_v25, %v5452_v11 }
0x17cc   :  { %12071 = vmatmul.mubr.msk.f32.vlgmr.msra.gmra.mrb[50].mxu0 %vm158_vm0, %v5456_v12 }
0x1800   :  { %v3886_v3 = vpop.xlane.xlu0 %3885 }
0x1801   :  { %v3890_v28 = vmul.f32 0.03125, %v3886_v3 }
0x1803   :  { %v3892_v16 = vsub.f32 %v3881_v59, %v3890_v28  ;;  %v5598_v59 = vld [vmem:[#allocation7] sm:$0xff] }
0x1804   :  { %v12693_v9 = vpack.i.bf16 %v5599_v56, %v5598_v59  ;;  %v12557_v11 = vpack.c.bf16 %v5599_v56, %v5598_v59 }
0x1805   :  { %v3894_v34 = vmul.f32 %v3892_v16, %v3892_v16  ;;  %v3922_v63 = vmul.f32 %v3921_v0, %v3892_v16 }
0x1806   :  { %12558 = vmatprep.subr.bf16.mxu1 %v12557_v11 }
0x1807   :  { %v3896_v32 = vsel %vm158_vm0, %v3894_v34, 0.0  ;;  %12560 = vmatpush3.bf16.msra.mxu1 %v12557_v11 }
0x1809   :  { %v3889_v35 = vpop.xlane.xlu1 %3888 }
0x180a   :  { %v3891_v61 = vmul.f32 0.03125, %v3889_v35  ;;  %v14388_v35 = vld [vmem:[%s15187_s18] ss:$0 sm:$0xff] }
0x180c   :  { %v3893_v17 = vsub.f32 %v3882_v6, %v3891_v61  ;;  %v5600_v6 = vld [vmem:[#allocation7 + $0x10] sm:$0xff] }
0x180d   :  { %v12698_v10 = vpack.i.bf16 %v5601_v38, %v5600_v6  ;;  %v12561_v12 = vpack.c.bf16 %v5601_v38, %v5600_v6  ;;  %v5583_v38 = vrot.slane %v14092_v60, %v13729_v50 }
0x180e   :  { %v14348_v18 = vmul.f32 %v3921_v0, %v3893_v17  ;;  %v3895_v44 = vmul.f32 %v3893_v17, %v3893_v17 }
0x180f   :  { %12562 = vmatprep.subr.bf16.mxu1 %v12561_v12 }
0x1810   :  { %v3899_v52 = vsel %vm158_vm0, %v3895_v44, 0.0  ;;  %12564 = vmatpush3.bf16.msra.mxu1 %v12561_v12 }
0x1811   :  { %3900 = vadd.xlane.f32.xlu1 %v3899_v52  ;;  %12095 = vmatprep.subr.mxu1 %v13151_v51 }
0x189e   :  { %v3901_v15 = vpop.xlane.xlu1 %3900 }
0x189f   :  { %v12072_v22 = vpop.f32.mrb[50].mxu0  ;;  %v3903_v61 = vmul.f32 0.032258064, %v3901_v15 }
0x18a0   :  { %v5535_v24 = vpop.f32.mrb[51].mxu0  ;;  %v5541_v19 = vadd.f32 %v12072_v22, %v11243_v23 }
0x18a1   :  { %v5536_v29 = vadd.f32 %v11243_v23, %v5535_v24  ;;  %vm3913_vm3 = vcmp.eq.f32.partialorder %v3903_v61, inf  ;;  %v3916_v52 = vand.u32 2147483648, %v3903_v61  ;;  %vm3915_vm4 = vcmp.eq.f32.partialorder %v3903_v61, 0.0 }
0x18a2   :  { %v14358_v27 = vadd.f32 %v5541_v19, %v14026_v20 }
0x18a3   :  { %v14355_v31 = vadd.f32 %v5536_v29, %v14017_v4 }
0x18a4   :  { %v5549_v33 = vsel %vm158_vm0, %v14358_v27, 0.0 }
0x18a5   :  { %v5546_v5 = vsel %vm158_vm0, %v14355_v31, 0.0 }
0x18a6   :  { %5547 = vadd.xlane.f32.xlu0 %v5546_v5 }
0x18aa   :  { %5550 = vadd.xlane.f32.xlu0 %v5549_v33 }
0x18ae   :  { %3897 = vadd.xlane.f32.xlu0 %v3896_v32 }
0x1933   :  { %v5548_v40 = vpop.xlane.xlu0 %5547 }
0x1934   :  { %v5552_v42 = vmul.f32 0.03125, %v5548_v40 }
0x1936   :  { %v14366_v4 = vsub.f32 %v14355_v31, %v5552_v42 }
0x1937   :  { %v5551_v43 = vpop.xlane.xlu0 %5550 }
0x1938   :  { %v5553_v20 = vmul.f32 0.03125, %v5551_v43  ;;  %v5556_v45 = vmul.f32 %v14366_v4, %v14366_v4 }
0x193a   :  { %v14371_v47 = vsub.f32 %v14358_v27, %v5553_v20  ;;  %v5558_v48 = vsel %vm158_vm0, %v5556_v45, 0.0 }
0x193b   :  { %5559 = vadd.xlane.f32.xlu0 %v5558_v48  ;;  %v3898_v49 = vpop.xlane.xlu0 %3897 }
0x193c   :  { %v3902_v53 = vmul.f32 0.032258064, %v3898_v49  ;;  %v5557_v14 = vmul.f32 %v14371_v47, %v14371_v47 }
0x193e   :  { %12849 = vrsqrt.f32 %v3902_v53  ;;  %v5561_v54 = vsel %vm158_vm0, %v5557_v14, 0.0  ;;  %vm3906_vm15 = vcmp.eq.f32.partialorder %v3902_v53, inf  ;;  %v3909_v37 = vand.u32 2147483648, %v3902_v53 }
0x193f   :  { %5562 = vadd.xlane.f32.xlu1 %v5561_v54  ;;  %vm3908_vm1 = vcmp.eq.f32.partialorder %v3902_v53, 0.0 }
0x1948   :  { %v12850_v46 = vpop.eup %12849 }
0x1949   :  { %v3905_v58 = vmul.f32 %v12850_v46, %v3902_v53 }
0x194b   :  { %v3907_v7 = vsel %vm3906_vm15, %v3902_v53, %v3905_v58 }
0x194c   :  { %v3910_v8 = vsel %vm3908_vm1, %v3909_v37, %v3907_v7  ;;  %v5584_v7 = vmul.f32 %v5583_v38, %v14366_v4 }
0x194d   :  { %v3924_v55 = vadd.f32 1e-06, %v3910_v8  ;;  %v5595_v8 = vrot.slane %v14092_v60, %v13734_v57 }
0x194f   :  { %12851 = vrcp.f32 %v3924_v55 }
0x1950   :  { %12699 = vrot.lane.b32.xlu1 %v12698_v10, %s15282_s12  ;;  %12853 = vrsqrt.f32 %v3903_v61 }
0x1951   :  { %12694 = vrot.lane.b32.xlu0 %v12693_v9, %s15282_s12 }
0x1954   :  { %5711 = vrot.lane.b32.xlu1 %v14388_v35, %s15282_s12 }
0x1959   :  { %v12852_v26 = vpop.eup %12851 }
0x195a   :  { %v3927_v1 = vmul.f32 %v12852_v26, %v3922_v63  ;;  %v12854_v0 = vpop.eup %12853  ;;  %v5585_v63 = vmul.f32 %v5583_v38, %v14371_v47 }
0x195b   :  { %v3912_v17 = vmul.f32 %v12854_v0, %v3903_v61 }
0x195c   :  { %v14380_v25 = vadd.f32 %v3933_v62, %v3927_v1 }
0x195d   :  { %v3914_v44 = vsel %vm3913_vm3, %v3903_v61, %v3912_v17 }
0x195e   :  { %12092 = vmatprep.mubr.msk.f32.mxu0 %vm158_vm0, %v14380_v25  ;;  %v3917_v3 = vsel %vm3915_vm4, %v3916_v52, %v3914_v44 }
0x195f   :  { %v3925_v22 = vadd.f32 1e-06, %v3917_v3 }
0x1961   :  { %12855 = vrcp.f32 %v3925_v22 }
0x196b   :  { %v12856_v34 = vpop.eup %12855 }
0x196c   :  { %v3929_v43 = vmul.f32 %v12856_v34, %v14348_v18 }
0x196e   :  { %v14393_v53 = vadd.f32 %v3933_v62, %v3929_v43 }
0x19c8   :  { %v5560_v23 = vpop.xlane.xlu0 %5559 }
0x19c9   :  { %v5564_v24 = vmul.f32 0.032258064, %v5560_v23 }
0x19cb   :  { %12857 = vrsqrt.f32 %v5564_v24  ;;  %vm5568_vm7 = vcmp.eq.f32.partialorder %v5564_v24, inf  ;;  %v5571_v49 = vand.u32 2147483648, %v5564_v24  ;;  %vm5570_vm9 = vcmp.eq.f32.partialorder %v5564_v24, 0.0 }
0x19cc   :  { %v12695_v28 = vpop.permute.xlu0 %12694  ;;  %v5563_v19 = vpop.xlane.xlu1 %5562 }
0x19cd   :  { %v12697_v29 = vunpack.i.h.bf16 %v12695_v28  ;;  %v12696_v16 = vunpack.i.l.bf16 %v12695_v28  ;;  %v5565_v5 = vmul.f32 0.032258064, %v5563_v19 }
0x19cf   :  { %v12565_v33 = vpack.c.bf16 %v12697_v29, %v12696_v16  ;;  %12859 = vrsqrt.f32 %v5565_v5  ;;  %vm5575_vm15 = vcmp.eq.f32.partialorder %v5565_v5, inf  ;;  %v5578_v59 = vand.u32 2147483648, %v5565_v5 }
0x19d0   :  { %v12700_v32 = vpop.permute.xlu1 %12699  ;;  %vm5577_vm1 = vcmp.eq.f32.partialorder %v5565_v5, 0.0 }
0x19d1   :  { %12566 = vmatprep.subr.bf16.mxu0 %v12565_v33  ;;  %v12702_v40 = vunpack.i.h.bf16 %v12700_v32  ;;  %v12701_v42 = vunpack.i.l.bf16 %v12700_v32 }
0x19d2   :  { %12568 = vmatpush3.bf16.msra.mxu0 %v12565_v33 }
0x19d3   :  { %v12569_v20 = vpack.c.bf16 %v12702_v40, %v12701_v42 }
0x19d4   :  { %v5712_v11 = vpop.permute.xlu1 %5711 }
0x19d5   :  { %v12858_v45 = vpop.eup %12857  ;;  %12570 = vmatprep.subr.bf16.mxu0 %v12569_v20 }
0x19d6   :  { %v5567_v48 = vmul.f32 %v12858_v45, %v5564_v24  ;;  %12572 = vmatpush3.bf16.msra.mxu0 %v12569_v20 }
0x19d7   :  { %12105 = vmatprep.subr.mxu0 %v13151_v51 }
0x19d8   :  { %v5569_v14 = vsel %vm5568_vm7, %v5564_v24, %v5567_v48 }
0x19d9   :  { %v5572_v54 = vsel %vm5570_vm9, %v5571_v49, %v5569_v14  ;;  %v12860_v46 = vpop.eup %12859  ;;  %12093 = vmatmul.mubr.msk.f32.vlgmr.msra.gmra.mrb[52].mxu0 %vm158_vm0, %v14393_v53 }
0x19da   :  { %v5586_v58 = vadd.f32 1e-06, %v5572_v54  ;;  %v5574_v18 = vmul.f32 %v12860_v46, %v5565_v5  ;;  %12107 = vmatprep.mubr.msk.f32.mxu0 %vm13152_vm5, %v13151_v51 }
0x19dc   :  { %12861 = vrcp.f32 %v5586_v58  ;;  %v5576_v37 = vsel %vm5575_vm15, %v5565_v5, %v5574_v18 }
0x19dd   :  { %v5579_v56 = vsel %vm5577_vm1, %v5578_v59, %v5576_v37 }
0x19de   :  { %v5587_v6 = vadd.f32 1e-06, %v5579_v56 }
0x19e0   :  { %12863 = vrcp.f32 %v5587_v6 }
0x19e6   :  { %v12862_v9 = vpop.eup %12861 }
0x19e7   :  { %v5589_v10 = vmul.f32 %v12862_v9, %v5584_v7 }
0x19e9   :  { %v5596_v55 = vadd.f32 %v5595_v8, %v5589_v10 }
0x19ea   :  { %v12864_v26 = vpop.eup %12863 }
0x19eb   :  { %12081 = vmatprep.mubr.msk.f32.mxu1 %vm158_vm0, %v5596_v55  ;;  %v5591_v1 = vmul.f32 %v12864_v26, %v5585_v63 }
0x19ed   :  { %v5597_v62 = vadd.f32 %v5595_v8, %v5591_v1 }
0x19ef   :  { %12082 = vmatmul.mubr.msk.f32.vlgmr.msra.gmra.mrb[64].mxu1 %vm158_vm0, %v5597_v62 }
0x19f0   :  { %12097 = vmatprep.mubr.msk.f32.mxu1 %vm13152_vm5, %v13151_v51 }
0x1aac   :  { %v12094_v4 = vpop.f32.mrb[52].mxu0 }
0x1aad   :  { %v5786_v12 = vpop.f32.mrb[53].mxu0  ;;  %v14421_v60 = vadd.f32 %v12094_v4, %v5712_v11 }
0x1aae   :  { %v14410_v15 = vadd.f32 %v5786_v12, %v5712_v11 }
0x1ab0   :  { %5962 = vrot.lane.b32.xlu1 %v14410_v15, %s15283_s29  ;;  %12096 = vmatpush3.xpose.msk.msra.mxu1 %vm313_vm6, %v14410_v15 }
0x1ab1   :  { %12100 = vmatprep.subr.mxu1 %v13151_v51 }
0x1ab4   :  { %6129 = vrot.lane.b32.xlu1 %v14410_v15, %s15284_s24 }
0x1ab8   :  { %6296 = vrot.lane.b32.xlu1 %v14410_v15, %s15271_s28 }
0x1abc   :  { %6643 = vrot.lane.b32.xlu1 %v14421_v60, %s15283_s29 }
0x1ac0   :  { %6810 = vrot.lane.b32.xlu1 %v14421_v60, %s15284_s24 }
0x1ac2   :  { %v12083_v47 = vpop.f32.mrb[64].mxu1 }
0x1ac3   :  { %v5686_v61 = vpop.f32.mrb[65].mxu1  ;;  %v5692_v17 = vadd.f32 %v12083_v47, %v14388_v35 }
0x1ac4   :  { %v5687_v0 = vadd.f32 %v14388_v35, %v5686_v61  ;;  %6977 = vrot.lane.b32.xlu1 %v14421_v60, %s15271_s28 }
0x1ac6   :  { %5960 = vrot.lane.b32.xlu0 %v5687_v0, %s15283_s29  ;;  %12098 = vmatmul.mubr.msk.f32.vlgmr.msra.gmra.mrb[66].mxu1 %vm313_vm6, %v5687_v0 }
0x1ac7   :  { %12102 = vmatprep.mubr.msk.f32.mxu1 %vm13152_vm5, %v13151_v51 }
0x1aca   :  { %6127 = vrot.lane.b32.xlu0 %v5687_v0, %s15284_s24 }
0x1ace   :  { %6294 = vrot.lane.b32.xlu0 %v5687_v0, %s15271_s28 }
0x1ad2   :  { %6641 = vrot.lane.b32.xlu0 %v5692_v17, %s15283_s29 }
0x1ad6   :  { %6808 = vrot.lane.b32.xlu0 %v5692_v17, %s15284_s24 }
0x1ada   :  { %6975 = vrot.lane.b32.xlu0 %v5692_v17, %s15271_s28 }
0x1b22   :  { %v5963_v44 = vpop.permute.xlu1 %5962 }
0x1b23   :  { %12106 = vmatpush3.xpose.msk.msra.mxu0 %vm313_vm6, %v5963_v44 }
0x1b24   :  { %12115 = vmatprep.subr.mxu0 %v13151_v51 }
0x1b26   :  { %v6130_v52 = vpop.permute.xlu1 %6129 }
0x1b2a   :  { %v6297_v35 = vpop.permute.xlu1 %6296 }
0x1b2e   :  { %v6644_v24 = vpop.permute.xlu1 %6643 }
0x1b32   :  { %v6811_v19 = vpop.permute.xlu1 %6810 }
0x1b36   :  { %v6978_v16 = vpop.permute.xlu1 %6977 }
0x1b38   :  { %v5961_v3 = vpop.permute.xlu0 %5960 }
0x1b39   :  { %12108 = vmatmul.mubr.msk.f32.vlgmr.msra.gmra.mrb[54].mxu0 %vm313_vm6, %v5961_v3 }
0x1b3a   :  { %12116 = vmatpush3.xpose.msk.msra.mxu0 %vm313_vm6, %v6130_v52  ;;  %12117 = vmatprep.mubr.msk.f32.mxu0 %vm13152_vm5, %v13151_v51 }
0x1b3b   :  { %12125 = vmatprep.subr.mxu0 %v13151_v51 }
0x1b3c   :  { %v6128_v22 = vpop.permute.xlu0 %6127 }
0x1b3d   :  { %12118 = vmatmul.mubr.msk.f32.vlgmr.msra.gmra.mrb[56].mxu0 %vm313_vm6, %v6128_v22 }
0x1b3e   :  { %12126 = vmatpush3.xpose.msk.msra.mxu0 %vm313_vm6, %v6297_v35  ;;  %12127 = vmatprep.mubr.msk.f32.mxu0 %vm13152_vm5, %v13151_v51 }
0x1b3f   :  { %12135 = vmatprep.subr.mxu0 %v13151_v51 }
0x1b40   :  { %v6295_v23 = vpop.permute.xlu0 %6294 }
0x1b41   :  { %12128 = vmatmul.mubr.msk.f32.vlgmr.msra.gmra.mrb[58].mxu0 %vm313_vm6, %v6295_v23 }
0x1b42   :  { %12136 = vmatpush3.xpose.msk.msra.mxu0 %vm313_vm6, %v14421_v60  ;;  %12137 = vmatprep.mubr.msk.f32.mxu0 %vm13152_vm5, %v13151_v51 }
0x1b43   :  { %12145 = vmatprep.subr.mxu0 %v13151_v51 }
0x1b44   :  { %v6642_v28 = vpop.permute.xlu0 %6641 }
0x1b45   :  { %12138 = vmatmul.mubr.msk.f32.vlgmr.msra.gmra.mrb[60].mxu0 %vm313_vm6, %v5692_v17 }
0x1b46   :  { %12146 = vmatpush3.xpose.msk.msra.mxu0 %vm313_vm6, %v6644_v24  ;;  %12147 = vmatprep.mubr.msk.f32.mxu0 %vm13152_vm5, %v13151_v51 }
0x1b47   :  { %12155 = vmatprep.subr.mxu0 %v13151_v51 }
0x1b48   :  { %v6809_v29 = vpop.permute.xlu0 %6808 }
0x1b49   :  { %12148 = vmatmul.mubr.msk.f32.vlgmr.msra.gmra.mrb[62].mxu0 %vm313_vm6, %v6642_v28 }
0x1b4a   :  { %12156 = vmatpush3.xpose.msk.msra.mxu0 %vm313_vm6, %v6811_v19  ;;  %12157 = vmatprep.mubr.msk.f32.mxu0 %vm13152_vm5, %v13151_v51 }
0x1b4b   :  { %12165 = vmatprep.subr.mxu0 %v13151_v51 }
0x1b4c   :  { %v6976_v5 = vpop.permute.xlu0 %6975 }
0x1b4d   :  { %12158 = vmatmul.mubr.msk.f32.vlgmr.msra.gmra.mrb[64].mxu0 %vm313_vm6, %v6809_v29 }
0x1b4e   :  { %12166 = vmatpush3.xpose.msk.msra.mxu0 %vm313_vm6, %v6978_v16  ;;  %12167 = vmatprep.mubr.msk.f32.mxu0 %vm13152_vm5, %v13151_v51 }
0x1b51   :  { %12168 = vmatmul.mubr.msk.f32.vlgmr.msra.gmra.mrb[66].mxu0 %vm313_vm6, %v6976_v5 }
0x1b99   :  { %v5867_v33 = vpop.f32.mrb[66].mxu1 }
0x1b9a   :  { %v5871_v34 = vmul.f32 0.35355338, %v5867_v33  ;;  %v12099_v32 = vpop.f32.mrb[67].mxu1 }
0x1b9c   :  { %v5872_v40 = vsel %vm13530_vm8, %v5871_v34, -1e+09 }
0x1b9d   :  { %v5873_v42 = vsel %vm313_vm6, %v5872_v40, -inf }
0x1b9e   :  { %5874 = vmax.xlane.f32.xlu1 %v5873_v42 }
0x1c0c   :  { %v6034_v43 = vpop.f32.mrb[54].mxu0 }
0x1c0d   :  { %v6038_v20 = vmul.f32 0.35355338, %v6034_v43  ;;  %v12109_v45 = vpop.f32.mrb[55].mxu0 }
0x1c0f   :  { %v6039_v48 = vsel %vm13530_vm8, %v6038_v20, -1e+09 }
0x1c10   :  { %v6201_v49 = vpop.f32.mrb[56].mxu0  ;;  %v6040_v14 = vsel %vm313_vm6, %v6039_v48, -inf }
0x1c11   :  { %v6205_v54 = vmul.f32 0.35355338, %v6201_v49  ;;  %6041 = vmax.xlane.f32.xlu0 %v6040_v14  ;;  %v12119_v46 = vpop.f32.mrb[57].mxu0 }
0x1c13   :  { %v6206_v58 = vsel %vm13530_vm8, %v6205_v54, -1e+09 }
0x1c14   :  { %v6368_v18 = vpop.f32.mrb[58].mxu0  ;;  %v6207_v59 = vsel %vm313_vm6, %v6206_v58, -inf }
0x1c15   :  { %v6372_v37 = vmul.f32 0.35355338, %v6368_v18  ;;  %6208 = vmax.xlane.f32.xlu0 %v6207_v59  ;;  %v12129_v56 = vpop.f32.mrb[59].mxu0 }
0x1c17   :  { %v14484_v6 = vsel %vm13530_vm8, %v6372_v37, -1e+09 }
0x1c18   :  { %v6548_v38 = vpop.f32.mrb[60].mxu0  ;;  %v6374_v7 = vsel %vm313_vm6, %v14484_v6, -inf }
0x1c19   :  { %v6552_v8 = vmul.f32 0.35355338, %v6548_v38  ;;  %6375 = vmax.xlane.f32.xlu0 %v6374_v7  ;;  %v12139_v9 = vpop.f32.mrb[61].mxu0 }
0x1c1b   :  { %v6553_v10 = vsel %vm13552_vm10, %v6552_v8, -1e+09 }
0x1c1c   :  { %v6715_v55 = vpop.f32.mrb[62].mxu0  ;;  %v6554_v63 = vsel %vm313_vm6, %v6553_v10, -inf }
0x1c1d   :  { %v6719_v26 = vmul.f32 0.35355338, %v6715_v55  ;;  %v12149_v1 = vpop.f32.mrb[63].mxu0  ;;  %6555 = vmax.xlane.f32.xlu1 %v6554_v63 }
0x1c1f   :  { %v14493_v62 = vsel %vm13552_vm10, %v6719_v26, -1e+09 }
0x1c20   :  { %v6882_v11 = vpop.f32.mrb[64].mxu0  ;;  %v6721_v4 = vsel %vm313_vm6, %v14493_v62, -inf }
0x1c21   :  { %v6886_v12 = vmul.f32 0.35355338, %v6882_v11  ;;  %6722 = vmax.xlane.f32.xlu0 %v6721_v4  ;;  %v12159_v47 = vpop.f32.mrb[65].mxu0 }
0x1c23   :  { %v6887_v61 = vsel %vm13552_vm10, %v6886_v12, -1e+09 }
0x1c24   :  { %v7049_v0 = vpop.f32.mrb[66].mxu0  ;;  %v6888_v17 = vsel %vm313_vm6, %v6887_v61, -inf }
0x1c25   :  { %v7053_v44 = vmul.f32 0.35355338, %v7049_v0  ;;  %v12169_v52 = vpop.f32.mrb[67].mxu0  ;;  %6889 = vmax.xlane.f32.xlu1 %v6888_v17 }
0x1c27   :  { %v7054_v3 = vsel %vm13552_vm10, %v7053_v44, -1e+09 }
0x1c28   :  { %v7055_v35 = vsel %vm313_vm6, %v7054_v3, -inf }
0x1c29   :  { %7056 = vmax.xlane.f32.xlu0 %v7055_v35 }
0x1c2b   :  { %v5875_v22 = vpop.xlane.xlu1 %5874 }
0x1c2c   :  { %v5876_v23 = vsub.f32 %v5872_v40, %v5875_v22 }
0x1c2e   :  { %v5877_v24 = vmul.f32 1.442695, %v5876_v23 }
0x1c30   :  { %12865 = vpow2.f32 %v5877_v24 }
0x1c36   :  { %6051 = vrot.lane.b32.xlu1 %v14410_v15, %s15281_s11 }
0x1c3a   :  { %6218 = vrot.lane.b32.xlu1 %v14410_v15, %s15270_s7  ;;  %v14509_v28 = vpop.eup %12865 }
0x1c3b   :  { %v5879_v19 = vsel %vm313_vm6, %v14509_v28, 0.0 }
0x1c3f   :  { %5884 = vrot.lane.b32.xlu0 %v14410_v15, %s15282_s12 }
0x1c5e   :  { %5880 = vadd.xlane.f32.xlu1 %v5879_v19 }
0x1c6f   :  { %6565 = vrot.lane.b32.xlu1 %v14421_v60, %s15282_s12 }
0x1c9e   :  { %v6042_v29 = vpop.xlane.xlu0 %6041 }
0x1c9f   :  { %v6043_v16 = vsub.f32 %v6039_v48, %v6042_v29 }
0x1ca1   :  { %v6044_v5 = vmul.f32 1.442695, %v6043_v16 }
0x1ca2   :  { %v6209_v33 = vpop.xlane.xlu0 %6208 }
0x1ca3   :  { %12867 = vpow2.f32 %v6044_v5  ;;  %v6210_v34 = vsub.f32 %v6206_v58, %v6209_v33 }
0x1ca5   :  { %v6211_v32 = vmul.f32 1.442695, %v6210_v34 }
0x1ca6   :  { %v6376_v45 = vpop.xlane.xlu0 %6375 }
0x1ca7   :  { %12869 = vpow2.f32 %v6211_v32  ;;  %v6377_v26 = vsub.f32 %v14484_v6, %v6376_v45 }
0x1ca9   :  { %v6378_v1 = vmul.f32 1.442695, %v6377_v26  ;;  %v5606_v26 = vld [vmem:[#allocation8 + $0x18] sm:$0xff] }
0x1caa   :  { %v6556_v40 = vpop.xlane.xlu1 %6555 }
0x1cab   :  { %v6557_v42 = vsub.f32 %v6553_v10, %v6556_v40 }
0x1cad   :  { %v12868_v43 = vpop.eup %12867  ;;  %v6558_v20 = vmul.f32 1.442695, %v6557_v42 }
0x1cae   :  { %v6046_v49 = vsel %vm313_vm6, %v12868_v43, 0.0  ;;  %v6723_v54 = vpop.xlane.xlu0 %6722 }
0x1caf   :  { %12871 = vpow2.f32 %v6558_v20  ;;  %6047 = vadd.xlane.f32.xlu0 %v6046_v49  ;;  %v6724_v11 = vsub.f32 %v14493_v62, %v6723_v54 }
0x1cb1   :  { %v12870_v14 = vpop.eup %12869  ;;  %v6725_v4 = vmul.f32 1.442695, %v6724_v11 }
0x1cb2   :  { %v6890_v46 = vpop.xlane.xlu1 %6889  ;;  %v6213_v48 = vsel %vm313_vm6, %v12870_v14, 0.0 }
0x1cb3   :  { %v6891_v18 = vsub.f32 %v6887_v61, %v6890_v46  ;;  %6214 = vadd.xlane.f32.xlu1 %v6213_v48 }
0x1cb5   :  { %v6892_v59 = vmul.f32 1.442695, %v6891_v18 }
0x1cb6   :  { %v7057_v58 = vpop.xlane.xlu0 %7056  ;;  %v6052_v47 = vpop.permute.xlu1 %6051 }
0x1cb7   :  { %12873 = vpow2.f32 %v6892_v59  ;;  %v7058_v37 = vsub.f32 %v7054_v3, %v7057_v58 }
0x1cb9   :  { %v14517_v56 = vpop.eup %12871  ;;  %v7059_v38 = vmul.f32 1.442695, %v7058_v37 }
0x1cba   :  { %v5885_v7 = vpop.permute.xlu0 %5884  ;;  %v6560_v8 = vsel %vm313_vm6, %v14517_v56, 0.0  ;;  %v6219_v0 = vpop.permute.xlu1 %6218 }
0x1cbb   :  { %12875 = vpow2.f32 %v7059_v38  ;;  %12101 = vmatpush3.msra.mxu1 %v5885_v7  ;;  %6561 = vadd.xlane.f32.xlu1 %v6560_v8  ;;  %v5603_v8 = vld [vmem:[#allocation8] sm:$0xff] }
0x1cbc   :  { %12110 = vmatprep.subr.mxu1 %v13151_v51  ;;  %12877 = vpow2.f32 %v6378_v1 }
0x1cbd   :  { %12879 = vpow2.f32 %v6725_v4 }
0x1cc1   :  { %v14522_v9 = vpop.eup %12873 }
0x1cc2   :  { %v6894_v10 = vsel %vm313_vm6, %v14522_v9, 0.0 }
0x1cc3   :  { %6895 = vadd.xlane.f32.xlu1 %v6894_v10 }
0x1cc5   :  { %v14526_v55 = vpop.eup %12875  ;;  %6385 = vrot.lane.b32.xlu0 %v14410_v15, %s15272_s9 }
0x1cc6   :  { %v7061_v63 = vsel %vm313_vm6, %v14526_v55, 0.0  ;;  %v12878_v12 = vpop.eup %12877 }
0x1cc7   :  { %7062 = vadd.xlane.f32.xlu1 %v7061_v63  ;;  %v6380_v61 = vsel %vm313_vm6, %v12878_v12, 0.0  ;;  %v12880_v15 = vpop.eup %12879  ;;  %v5605_v63 = vld [vmem:[#allocation8 + $0x10] sm:$0xff] }
0x1cc8   :  { %v6727_v17 = vsel %vm313_vm6, %v12880_v15, 0.0  ;;  %v12577_v1 = vpack.c.bf16 %v5606_v26, %v5605_v63  ;;  %v7305_v63 = vld [vmem:[%s15192_s23 + $0x10] sm:$0xff] }
0x1cd8   :  { %6899 = vrot.lane.b32.xlu1 %v14421_v60, %s15270_s7 }
0x1ce4   :  { %6381 = vadd.xlane.f32.xlu0 %v6380_v61 }
0x1ce8   :  { %6728 = vadd.xlane.f32.xlu0 %v6727_v17 }
0x1ceb   :  { %v5881_v6 = vpop.xlane.xlu1 %5880 }
0x1cec   :  { %12881 = vrcp.f32 %v5881_v6 }
0x1cef   :  { %v6566_v52 = vpop.permute.xlu1 %6565 }
0x1cf6   :  { %v12882_v44 = vpop.eup %12881 }
0x1cf7   :  { %v5883_v62 = vmul.f32 %v12882_v44, %v14509_v28 }
0x1cf9   :  { %12103 = vmatmul.mubr.msk.f32.vlgmr.msra.gmra.mrb[68].mxu1 %vm313_vm6, %v5883_v62 }
0x1cfa   :  { %12111 = vmatpush3.msra.mxu1 %v6052_v47  ;;  %12112 = vmatprep.mubr.msk.f32.mxu1 %vm13152_vm5, %v13151_v51 }
0x1cfb   :  { %12120 = vmatprep.subr.mxu1 %v13151_v51 }
0x1cfe   :  { %6732 = vrot.lane.b32.xlu0 %v14421_v60, %s15281_s11 }
0x1d02   :  { %7066 = vrot.lane.b32.xlu0 %v14421_v60, %s15272_s9 }
0x1d3c   :  { %v6048_v3 = vpop.xlane.xlu0 %6047 }
0x1d3d   :  { %12883 = vrcp.f32 %v6048_v3 }
0x1d40   :  { %v6215_v35 = vpop.xlane.xlu1 %6214  ;;  %v6386_v19 = vpop.permute.xlu0 %6385 }
0x1d41   :  { %12885 = vrcp.f32 %v6215_v35 }
0x1d47   :  { %v12884_v22 = vpop.eup %12883 }
0x1d48   :  { %v6050_v23 = vmul.f32 %v12884_v22, %v12868_v43  ;;  %v6562_v60 = vpop.xlane.xlu1 %6561 }
0x1d4a   :  { %12113 = vmatmul.mubr.msk.f32.vlgmr.msra.gmra.mrb[70].mxu1 %vm313_vm6, %v6050_v23 }
0x1d4b   :  { %v12886_v24 = vpop.eup %12885  ;;  %12121 = vmatpush3.msra.mxu1 %v6219_v0  ;;  %12122 = vmatprep.mubr.msk.f32.mxu1 %vm13152_vm5, %v13151_v51 }
0x1d4c   :  { %12130 = vmatprep.subr.mxu1 %v13151_v51  ;;  %v6217_v28 = vmul.f32 %v12886_v24, %v12870_v14 }
0x1d4e   :  { %12123 = vmatmul.mubr.msk.f32.vlgmr.msra.gmra.mrb[72].mxu1 %vm313_vm6, %v6217_v28 }
0x1d4f   :  { %12131 = vmatpush3.msra.mxu1 %v6386_v19  ;;  %12132 = vmatprep.mubr.msk.f32.mxu1 %vm13152_vm5, %v13151_v51 }
0x1d50   :  { %12140 = vmatprep.subr.mxu1 %v13151_v51  ;;  %v6896_v5 = vpop.xlane.xlu1 %6895 }
0x1d54   :  { %v7063_v34 = vpop.xlane.xlu1 %7062 }
0x1d58   :  { %v6900_v14 = vpop.permute.xlu1 %6899 }
0x1d71   :  { %v6382_v29 = vpop.xlane.xlu0 %6381 }
0x1d72   :  { %12887 = vrcp.f32 %v6382_v29 }
0x1d73   :  { %12889 = vrcp.f32 %v6562_v60 }
0x1d75   :  { %v6729_v16 = vpop.xlane.xlu0 %6728 }
0x1d76   :  { %12891 = vrcp.f32 %v6729_v16  ;;  %v11275_v16 = vld [vmem:[%s15189_s20] ss:$0 sm:$0xff] }
0x1d77   :  { %12893 = vrcp.f32 %v6896_v5 }
0x1d78   :  { %12895 = vrcp.f32 %v7063_v34 }
0x1d79   :  { %v6733_v20 = vpop.permute.xlu0 %6732 }
0x1d7c   :  { %v12888_v33 = vpop.eup %12887 }
0x1d7d   :  { %v6384_v32 = vmul.f32 %v12888_v33, %v12878_v12  ;;  %v12890_v40 = vpop.eup %12889  ;;  %v7067_v48 = vpop.permute.xlu0 %7066 }
0x1d7e   :  { %v6564_v42 = vmul.f32 %v12890_v40, %v14517_v56 }
0x1d7f   :  { %12133 = vmatmul.mubr.msk.f32.vlgmr.msra.gmra.mrb[74].mxu1 %vm313_vm6, %v6384_v32 }
0x1d80   :  { %12141 = vmatpush3.msra.mxu1 %v6566_v52  ;;  %12142 = vmatprep.mubr.msk.f32.mxu1 %vm13152_vm5, %v13151_v51  ;;  %v12892_v43 = vpop.eup %12891 }
0x1d81   :  { %12150 = vmatprep.subr.mxu1 %v13151_v51  ;;  %v6731_v45 = vmul.f32 %v12892_v43, %v12880_v15  ;;  %v12894_v49 = vpop.eup %12893 }
0x1d82   :  { %v6898_v54 = vmul.f32 %v12894_v49, %v14522_v9  ;;  %v12896_v46 = vpop.eup %12895  ;;  %v5604_v9 = vld [vmem:[#allocation8 + $0x8] sm:$0xff] }
0x1d83   :  { %12143 = vmatmul.mubr.msk.f32.vlgmr.msra.gmra.mrb[76].mxu1 %vm313_vm6, %v6564_v42  ;;  %v7065_v18 = vmul.f32 %v12896_v46, %v14526_v55  ;;  %v12573_v10 = vpack.c.bf16 %v5604_v9, %v5603_v8  ;;  %v7303_v9 = vld [vmem:[%s15192_s23] sm:$0xff] }
0x1d84   :  { %12151 = vmatpush3.msra.mxu1 %v6733_v20  ;;  %12152 = vmatprep.mubr.msk.f32.mxu1 %vm13152_vm5, %v13151_v51 }
0x1d85   :  { %12160 = vmatprep.subr.mxu1 %v13151_v51  ;;  %12574 = vmatprep.subr.bf16.mxu0 %v12573_v10 }
0x1d86   :  { %12576 = vmatpush3.bf16.msra.mxu0 %v12573_v10  ;;  %v7304_v10 = vld [vmem:[%s15192_s23 + $0x8] sm:$0xff] }
0x1d87   :  { %12153 = vmatmul.mubr.msk.f32.vlgmr.msra.gmra.mrb[78].mxu1 %vm313_vm6, %v6731_v45  ;;  %12578 = vmatprep.subr.bf16.mxu0 %v12577_v1  ;;  %v12589_v26 = vpack.c.bf16 %v7304_v10, %v7303_v9 }
0x1d88   :  { %12161 = vmatpush3.msra.mxu1 %v6900_v14  ;;  %12162 = vmatprep.mubr.msk.f32.mxu1 %vm13152_vm5, %v13151_v51 }
0x1d89   :  { %12170 = vmatprep.subr.mxu1 %v13151_v51 }
0x1d8a   :  { %12580 = vmatpush3.bf16.msra.mxu0 %v12577_v1 }
0x1d8b   :  { %12163 = vmatmul.mubr.msk.f32.vlgmr.msra.gmra.mrb[80].mxu1 %vm313_vm6, %v6898_v54  ;;  %12590 = vmatprep.subr.bf16.mxu0 %v12589_v26 }
0x1d8c   :  { %12171 = vmatpush3.msra.mxu1 %v7067_v48  ;;  %12172 = vmatprep.mubr.msk.f32.mxu1 %vm13152_vm5, %v13151_v51 }
0x1d8f   :  { %12173 = vmatmul.mubr.msk.f32.vlgmr.msra.gmra.mrb[82].mxu1 %vm313_vm6, %v7065_v18 }
0x1dcc   :  { %v5956_v59 = vpop.f32.mrb[68].mxu1 }
0x1dcd   :  { %v12104_v58 = vpop.f32.mrb[69].mxu1 }
0x1dce   :  { %v7298_v58 = vld [vmem:[#allocation10] sm:$0xff] }
0x1e1d   :  { %v6123_v37 = vpop.f32.mrb[70].mxu1 }
0x1e1e   :  { %6462 = vrot.lane.b32.xlu1 %v6123_v37, %s15277_s1  ;;  %v12114_v56 = vpop.f32.mrb[71].mxu1  ;;  %v7299_v37 = vld [vmem:[#allocation10 + $0x8] sm:$0xff] }
0x1e1f   :  { %v7300_v56 = vld [vmem:[#allocation10 + $0x10] sm:$0xff] }
0x1e21   :  { %v6290_v38 = vpop.f32.mrb[72].mxu1 }
0x1e22   :  { %6466 = vrot.lane.b32.xlu0 %v6290_v38, %s15278_s13  ;;  %v12124_v7 = vpop.f32.mrb[73].mxu1  ;;  %v12581_v38 = vpack.c.bf16 %v7299_v37, %v7298_v58 }
0x1e23   :  { %v7301_v7 = vld [vmem:[#allocation10 + $0x18] sm:$0xff] }
0x1e24   :  { %v12585_v8 = vpack.c.bf16 %v7301_v7, %v7300_v56  ;;  %12582 = vmatprep.subr.bf16.mxu1 %v12581_v38  ;;  %v11281_v7 = vld [vmem:[%s15286_s26] ss:$0 sm:$0xff] }
0x1e25   :  { %12584 = vmatpush3.bf16.msra.mxu1 %v12581_v38 }
0x1e26   :  { %12586 = vmatprep.subr.bf16.mxu1 %v12585_v8 }
0x1e29   :  { %12588 = vmatpush3.bf16.msra.mxu1 %v12585_v8 }
0x1e52   :  { %v6457_v55 = vpop.f32.mrb[74].mxu1 }
0x1e53   :  { %6470 = vrot.lane.b32.xlu0 %v6457_v55, %s15279_s21  ;;  %v12134_v11 = vpop.f32.mrb[75].mxu1  ;;  %v7306_v55 = vld [vmem:[%s15192_s23 + $0x18] sm:$0xff] }
0x1e54   :  { %v12593_v1 = vpack.c.bf16 %v7306_v55, %v7305_v63  ;;  %v7307_v11 = vld [vmem:[%s15192_s23 + $0x20] sm:$0xff] }
0x1e56   :  { %v6637_v4 = vpop.f32.mrb[76].mxu1 }
0x1e57   :  { %v12144_v12 = vpop.f32.mrb[77].mxu1 }
0x1e5a   :  { %v6804_v47 = vpop.f32.mrb[78].mxu1 }
0x1e5b   :  { %7143 = vrot.lane.b32.xlu1 %v6804_v47, %s15277_s1  ;;  %v12154_v61 = vpop.f32.mrb[79].mxu1 }
0x1e5e   :  { %v6971_v15 = vpop.f32.mrb[80].mxu1 }
0x1e5f   :  { %7147 = vrot.lane.b32.xlu1 %v6971_v15, %s15278_s13  ;;  %v12164_v0 = vpop.f32.mrb[81].mxu1 }
0x1e62   :  { %v7138_v17 = vpop.f32.mrb[82].mxu1 }
0x1e63   :  { %7151 = vrot.lane.b32.xlu0 %v7138_v17, %s15279_s21  ;;  %v12174_v6 = vpop.f32.mrb[83].mxu1 }
0x1e90   :  { %v6463_v44 = vpop.permute.xlu1 %6462 }
0x1e91   :  { %v6473_v52 = vsel %vm313_vm6, %v5956_v59, %v6463_v44 }
0x1e94   :  { %v6467_v62 = vpop.permute.xlu0 %6466 }
0x1e95   :  { %v6474_v3 = vsel %vm998_vm11, %v6473_v52, %v6467_v62 }
0x1ec5   :  { %v6471_v35 = vpop.permute.xlu0 %6470 }
0x1ec6   :  { %v6475_v22 = vsel %vm1000_vm12, %v6474_v3, %v6471_v35 }
0x1ec7   :  { %12183 = vmatprep.mubr.msk.f32.mxu0 %vm158_vm0, %v6475_v22 }
0x1ecd   :  { %v7144_v23 = vpop.permute.xlu1 %7143 }
0x1ece   :  { %v7154_v28 = vsel %vm313_vm6, %v6637_v4, %v7144_v23  ;;  %v7308_v4 = vld [vmem:[%s15192_s23 + $0x28] sm:$0xff] }
0x1ecf   :  { %v12597_v12 = vpack.c.bf16 %v7308_v4, %v7307_v11 }
0x1ed1   :  { %v7148_v24 = vpop.permute.xlu1 %7147 }
0x1ed2   :  { %v7155_v19 = vsel %vm998_vm11, %v7154_v28, %v7148_v24  ;;  %v7282_v28 = vsub.s32 4, %v13427_v30 }
0x1ed5   :  { %v7152_v60 = vpop.permute.xlu0 %7151 }
0x1ed6   :  { %v7156_v29 = vsel %vm1000_vm12, %v7155_v19, %v7152_v60 }
0x1ed7   :  { %12184 = vmatmul.mubr.msk.f32.vlgmr.msra.gmra.mrb[68].mxu0 %vm158_vm0, %v7156_v29  ;;  %v13001_v29 = vld [vmem:[%s15194_s25] sm:$0x3f] }
0x1ed8   :  { %12592 = vmatpush3.bf16.msra.mxu0 %v12589_v26 }
0x1ed9   :  { %12594 = vmatprep.subr.bf16.mxu0 %v12593_v1 }
0x1edc   :  { %12596 = vmatpush3.bf16.msra.mxu0 %v12593_v1 }
0x1edd   :  { %12598 = vmatprep.subr.bf16.mxu0 %v12597_v12 }
0x1ee0   :  { %12600 = vmatpush3.bf16.msra.mxu0 %v12597_v12 }
0x1faa   :  { %v12185_v5 = vpop.f32.mrb[68].mxu0 }
0x1fab   :  { %v7241_v33 = vadd.f32 %v12185_v5, %v11275_v16  ;;  %v7235_v34 = vpop.f32.mrb[69].mxu0  ;;  %v7294_v5 = vsub.s32 5, %v13427_v30  ;;  %v11359_v30 = vld [vmem:[%s15192_s23 + $0x78] sm:$0xff] }
0x1fac   :  { %v7236_v32 = vadd.f32 %v11275_v16, %v7235_v34  ;;  %v7283_v16 = vrot.slane %v13001_v29, %v7282_v28 }
0x1fad   :  { %v14592_v40 = vadd.f32 %v7241_v33, %v14358_v27  ;;  %v7295_v34 = vrot.slane %v13001_v29, %v7294_v5 }
0x1fae   :  { %v14595_v42 = vadd.f32 %v7236_v32, %v14355_v31 }
0x1faf   :  { %v7249_v43 = vsel %vm158_vm0, %v14592_v40, 0.0 }
0x1fb0   :  { %7250 = vadd.xlane.f32.xlu0 %v7249_v43  ;;  %v7246_v20 = vsel %vm158_vm0, %v14595_v42, 0.0 }
0x1fb1   :  { %7247 = vadd.xlane.f32.xlu1 %v7246_v20 }
0x203d   :  { %v7251_v45 = vpop.xlane.xlu0 %7250 }
0x203e   :  { %v7253_v49 = vmul.f32 0.03125, %v7251_v45  ;;  %v7248_v14 = vpop.xlane.xlu1 %7247 }
0x203f   :  { %v7252_v54 = vmul.f32 0.03125, %v7248_v14 }
0x2040   :  { %v14602_v46 = vsub.f32 %v14592_v40, %v7253_v49 }
0x2041   :  { %v7254_v27 = vsub.f32 %v14595_v42, %v7252_v54 }
0x2042   :  { %v7257_v18 = vmul.f32 %v14602_v46, %v14602_v46  ;;  %v7285_v20 = vmul.f32 %v7283_v16, %v14602_v46  ;;  %v11278_v46 = vld [vmem:[%s15191_s22] ss:$0 sm:$0xff] }
0x2043   :  { %v7256_v48 = vmul.f32 %v7254_v27, %v7254_v27  ;;  %v7284_v33 = vmul.f32 %v7283_v16, %v7254_v27  ;;  %v7310_v27 = vld [vmem:[%s15192_s23 + $0x38] sm:$0xff] }
0x2044   :  { %v7261_v59 = vsel %vm158_vm0, %v7257_v18, 0.0 }
0x2045   :  { %v7258_v31 = vsel %vm158_vm0, %v7256_v48, 0.0  ;;  %v7309_v48 = vld [vmem:[%s15192_s23 + $0x30] sm:$0xff] }
0x2046   :  { %7259 = vadd.xlane.f32.xlu0 %v7258_v31  ;;  %v12601_v31 = vpack.c.bf16 %v7310_v27, %v7309_v48  ;;  %v14674_v27 = vld [vmem:[%s15194_s25 + $0x8] sm:$0x3f] }
0x2048   :  { %12602 = vmatprep.subr.bf16.mxu0 %v12601_v31 }
0x2049   :  { %12604 = vmatpush3.bf16.msra.mxu0 %v12601_v31  ;;  %v7529_v31 = vrot.slane %v14674_v27, %v13430_v36  ;;  %v11287_v36 = vld [vmem:[%s15183_s14 + $0x1] ss:$0 sm:$0xff] }
0x204a   :  { %7262 = vadd.xlane.f32.xlu0 %v7261_v59  ;;  %12237 = vmatprep.subr.mxu0 %v13151_v51 }
0x20d3   :  { %v7260_v47 = vpop.xlane.xlu0 %7259 }
0x20d4   :  { %v7264_v61 = vmul.f32 0.032258064, %v7260_v47 }
0x20d6   :  { %12897 = vrsqrt.f32 %v7264_v61  ;;  %vm7268_vm3 = vcmp.eq.f32.partialorder %v7264_v61, inf  ;;  %v7271_v44 = vand.u32 2147483648, %v7264_v61  ;;  %vm7270_vm4 = vcmp.eq.f32.partialorder %v7264_v61, 0.0 }
0x20d7   :  { %v7263_v15 = vpop.xlane.xlu0 %7262 }
0x20d8   :  { %v7265_v0 = vmul.f32 0.032258064, %v7263_v15 }
0x20da   :  { %12899 = vrsqrt.f32 %v7265_v0  ;;  %vm7275_vm7 = vcmp.eq.f32.partialorder %v7265_v0, inf  ;;  %v7278_v23 = vand.u32 2147483648, %v7265_v0  ;;  %vm7277_vm9 = vcmp.eq.f32.partialorder %v7265_v0, 0.0 }
0x20e0   :  { %v12898_v17 = vpop.eup %12897 }
0x20e1   :  { %v7267_v6 = vmul.f32 %v12898_v17, %v7264_v61 }
0x20e3   :  { %v7269_v62 = vsel %vm7268_vm3, %v7264_v61, %v7267_v6 }
0x20e4   :  { %v12900_v52 = vpop.eup %12899  ;;  %v7272_v3 = vsel %vm7270_vm4, %v7271_v44, %v7269_v62  ;;  %v7545_v44 = vld [vmem:[#allocation2 + $0x20] sm:$0xff]  ;;  %v7546_v62 = vld [vmem:[#allocation2 + $0x28] sm:$0xff] }
0x20e5   :  { %v7274_v35 = vmul.f32 %v12900_v52, %v7265_v0  ;;  %v7286_v22 = vadd.f32 1e-06, %v7272_v3  ;;  %v7547_v52 = vld [vmem:[#allocation2 + $0x30] sm:$0xff]  ;;  %v12605_v3 = vpack.c.bf16 %v7546_v62, %v7545_v44 }
0x20e7   :  { %v7276_v24 = vsel %vm7275_vm7, %v7265_v0, %v7274_v35  ;;  %12901 = vrcp.f32 %v7286_v22  ;;  %v7548_v35 = vld [vmem:[#allocation2 + $0x38] sm:$0xff]  ;;  %12606 = vmatprep.subr.bf16.mxu1 %v12605_v3 }
0x20e8   :  { %v7279_v19 = vsel %vm7277_vm9, %v7278_v23, %v7276_v24  ;;  %v12609_v22 = vpack.c.bf16 %v7548_v35, %v7547_v52 }
0x20e9   :  { %v7287_v60 = vadd.f32 1e-06, %v7279_v19 }
0x20eb   :  { %12903 = vrcp.f32 %v7287_v60 }
0x20f1   :  { %v12902_v32 = vpop.eup %12901 }
0x20f2   :  { %v7289_v43 = vmul.f32 %v12902_v32, %v7284_v33 }
0x20f4   :  { %v7296_v45 = vadd.f32 %v7295_v34, %v7289_v43 }
0x20f5   :  { %v12904_v49 = vpop.eup %12903 }
0x20f6   :  { %v7291_v14 = vmul.f32 %v12904_v49, %v7285_v20  ;;  %12194 = vmatprep.mubr.msk.f32.mxu1 %vm158_vm0, %v7296_v45 }
0x20f8   :  { %v7297_v54 = vadd.f32 %v7295_v34, %v7291_v14 }
0x20fa   :  { %12195 = vmatmul.mubr.msk.f32.vlgmr.msra.gmra.mrb[84].mxu1 %vm158_vm0, %v7297_v54 }
0x20fb   :  { %12608 = vmatpush3.bf16.msra.mxu1 %v12605_v3 }
0x20fc   :  { %12610 = vmatprep.subr.bf16.mxu1 %v12609_v22 }
0x20ff   :  { %12612 = vmatpush3.bf16.msra.mxu1 %v12609_v22 }
0x2100   :  { %12227 = vmatprep.subr.mxu1 %v13151_v51 }
0x21cd   :  { %v12196_v18 = vpop.f32.mrb[84].mxu1 }
0x21ce   :  { %v7396_v59 = vadd.f32 %v12196_v18, %v11278_v46  ;;  %v7390_v58 = vpop.f32.mrb[85].mxu1 }
0x21cf   :  { %v7391_v37 = vadd.f32 %v11278_v46, %v7390_v58  ;;  %v7541_v58 = vrot.slane %v14674_v27, %v13440_v41 }
0x21d0   :  { %v7400_v38 = vmax.f32 %v7396_v59, 0.0 }
0x21d1   :  { %v7399_v56 = vmax.f32 %v7391_v37, 0.0 }
0x21d3   :  { %12213 = vmatprep.mubr.msk.f32.mxu0 %vm1943_vm2, %v7399_v56 }
0x21d4   :  { %12214 = vmatmul.mubr.msk.f32.vlgmr.msra.gmra.mrb[70].mxu0 %vm1943_vm2, %v7400_v38 }
0x21d5   :  { %12239 = vmatprep.mubr.msk.f32.mxu0 %vm13152_vm5, %v13151_v51 }
0x22a7   :  { %v12215_v8 = vpop.f32.mrb[70].mxu0 }
0x22a8   :  { %v7485_v9 = vadd.f32 %v12215_v8, %v11281_v7  ;;  %v7479_v10 = vpop.f32.mrb[71].mxu0 }
0x22a9   :  { %v7480_v63 = vadd.f32 %v11281_v7, %v7479_v10 }
0x22aa   :  { %v14657_v26 = vadd.f32 %v7485_v9, %v14592_v40 }
0x22ab   :  { %v14660_v55 = vadd.f32 %v7480_v63, %v14595_v42 }
0x22ac   :  { %v7495_v1 = vsel %vm158_vm0, %v14657_v26, 0.0 }
0x22ad   :  { %7496 = vadd.xlane.f32.xlu0 %v7495_v1  ;;  %v7492_v11 = vsel %vm158_vm0, %v14660_v55, 0.0 }
0x22ae   :  { %7493 = vadd.xlane.f32.xlu1 %v7492_v11 }
0x233a   :  { %v7497_v4 = vpop.xlane.xlu0 %7496 }
0x233b   :  { %v7499_v12 = vmul.f32 0.03125, %v7497_v4  ;;  %v7494_v47 = vpop.xlane.xlu1 %7493 }
0x233c   :  { %v7498_v61 = vmul.f32 0.03125, %v7494_v47 }
0x233d   :  { %v7501_v15 = vsub.f32 %v14657_v26, %v7499_v12 }
0x233e   :  { %v7500_v40 = vsub.f32 %v14660_v55, %v7498_v61 }
0x233f   :  { %v7503_v0 = vmul.f32 %v7501_v15, %v7501_v15  ;;  %v7531_v46 = vmul.f32 %v7529_v31, %v7501_v15 }
0x2340   :  { %v7502_v17 = vmul.f32 %v7500_v40, %v7500_v40  ;;  %v7530_v59 = vmul.f32 %v7529_v31, %v7500_v40 }
0x2341   :  { %v7507_v42 = vsel %vm158_vm0, %v7503_v0, 0.0 }
0x2342   :  { %7508 = vadd.xlane.f32.xlu0 %v7507_v42  ;;  %v7504_v6 = vsel %vm158_vm0, %v7502_v17, 0.0 }
0x2343   :  { %7505 = vadd.xlane.f32.xlu1 %v7504_v6 }
0x23cf   :  { %v7509_v23 = vpop.xlane.xlu0 %7508 }
0x23d0   :  { %v7511_v24 = vmul.f32 0.032258064, %v7509_v23  ;;  %v7506_v19 = vpop.xlane.xlu1 %7505 }
0x23d1   :  { %v7510_v60 = vmul.f32 0.032258064, %v7506_v19 }
0x23d2   :  { %12905 = vrsqrt.f32 %v7511_v24  ;;  %vm7521_vm15 = vcmp.eq.f32.partialorder %v7511_v24, inf  ;;  %v7524_v34 = vand.u32 2147483648, %v7511_v24  ;;  %vm7523_vm1 = vcmp.eq.f32.partialorder %v7511_v24, 0.0 }
0x23d3   :  { %12907 = vrsqrt.f32 %v7510_v60  ;;  %vm7514_vm3 = vcmp.eq.f32.partialorder %v7510_v60, inf  ;;  %v7517_v20 = vand.u32 2147483648, %v7510_v60  ;;  %vm7516_vm4 = vcmp.eq.f32.partialorder %v7510_v60, 0.0 }
0x23dc   :  { %v12906_v29 = vpop.eup %12905 }
0x23dd   :  { %v12908_v16 = vpop.eup %12907  ;;  %v7520_v33 = vmul.f32 %v12906_v29, %v7511_v24 }
0x23de   :  { %v7513_v32 = vmul.f32 %v12908_v16, %v7510_v60 }
0x23df   :  { %v7522_v43 = vsel %vm7521_vm15, %v7511_v24, %v7520_v33 }
0x23e0   :  { %v7525_v45 = vsel %vm7523_vm1, %v7524_v34, %v7522_v43  ;;  %v7515_v49 = vsel %vm7514_vm3, %v7510_v60, %v7513_v32 }
0x23e1   :  { %v7533_v14 = vadd.f32 1e-06, %v7525_v45  ;;  %v7518_v54 = vsel %vm7516_vm4, %v7517_v20, %v7515_v49 }
0x23e2   :  { %v7532_v48 = vadd.f32 1e-06, %v7518_v54 }
0x23e3   :  { %12909 = vrcp.f32 %v7533_v14 }
0x23e4   :  { %12911 = vrcp.f32 %v7532_v48 }
0x23ed   :  { %v12910_v18 = vpop.eup %12909 }
0x23ee   :  { %v12912_v37 = vpop.eup %12911  ;;  %v7537_v56 = vmul.f32 %v12910_v18, %v7531_v46 }
0x23ef   :  { %v7535_v38 = vmul.f32 %v12912_v37, %v7530_v59 }
0x23f0   :  { %v7543_v8 = vadd.f32 %v7541_v58, %v7537_v56 }
0x23f1   :  { %v7542_v7 = vadd.f32 %v7541_v58, %v7535_v38 }
0x23f3   :  { %12224 = vmatprep.mubr.msk.f32.mxu1 %vm158_vm0, %v7542_v7 }
0x23f4   :  { %12225 = vmatmul.mubr.msk.f32.vlgmr.msra.gmra.mrb[86].mxu1 %vm158_vm0, %v7543_v8 }
0x23f5   :  { %12229 = vmatprep.mubr.msk.f32.mxu1 %vm13152_vm5, %v13151_v51 }
0x24c7   :  { %v12226_v9 = vpop.f32.mrb[86].mxu1 }
0x24c8   :  { %v7636_v10 = vpop.f32.mrb[87].mxu1  ;;  %v14697_v41 = vadd.f32 %v12226_v9, %v11287_v36 }
0x24c9   :  { %v14687_v63 = vadd.f32 %v11287_v36, %v7636_v10 }
0x24cb   :  { %7813 = vrot.lane.b32.xlu0 %v14687_v63, %s15281_s11  ;;  %7646 = vrot.lane.b32.xlu1 %v14687_v63, %s15282_s12 }
0x24cf   :  { %8147 = vrot.lane.b32.xlu0 %v14687_v63, %s15272_s9  ;;  %7811 = vrot.lane.b32.xlu1 %v14687_v63, %s15283_s29 }
0x24d3   :  { %8328 = vrot.lane.b32.xlu0 %v14697_v41, %s15282_s12  ;;  %7980 = vrot.lane.b32.xlu1 %v14687_v63, %s15270_s7 }
0x24d7   :  { %8493 = vrot.lane.b32.xlu0 %v14697_v41, %s15283_s29  ;;  %7978 = vrot.lane.b32.xlu1 %v14687_v63, %s15284_s24 }
0x24db   :  { %8660 = vrot.lane.b32.xlu0 %v14697_v41, %s15284_s24  ;;  %8145 = vrot.lane.b32.xlu1 %v14687_v63, %s15271_s28 }
0x24df   :  { %8827 = vrot.lane.b32.xlu0 %v14697_v41, %s15271_s28  ;;  %8495 = vrot.lane.b32.xlu1 %v14697_v41, %s15281_s11 }
0x24e3   :  { %8662 = vrot.lane.b32.xlu1 %v14697_v41, %s15270_s7 }
0x24e7   :  { %8829 = vrot.lane.b32.xlu1 %v14697_v41, %s15272_s9 }
0x253d   :  { %v7814_v1 = vpop.permute.xlu0 %7813  ;;  %v7647_v11 = vpop.permute.xlu1 %7646 }
0x253e   :  { %12228 = vmatpush3.xpose.msk.msra.mxu1 %vm313_vm6, %v7647_v11  ;;  %12238 = vmatpush3.xpose.msk.msra.mxu0 %vm313_vm6, %v7814_v1 }
0x253f   :  { %12247 = vmatprep.subr.mxu0 %v13151_v51  ;;  %12232 = vmatprep.subr.mxu1 %v13151_v51 }
0x2541   :  { %12230 = vmatmul.mubr.msk.f32.vlgmr.msra.gmra.mrb[88].mxu1 %vm313_vm6, %v14687_v63  ;;  %v7812_v4 = vpop.permute.xlu1 %7811  ;;  %v8148_v12 = vpop.permute.xlu0 %8147 }
0x2542   :  { %12240 = vmatmul.mubr.msk.f32.vlgmr.msra.gmra.mrb[72].mxu0 %vm313_vm6, %v7812_v4  ;;  %12234 = vmatprep.mubr.msk.f32.mxu1 %vm13152_vm5, %v13151_v51 }
0x2543   :  { %12249 = vmatprep.mubr.msk.f32.mxu0 %vm13152_vm5, %v13151_v51 }
0x2545   :  { %v7981_v47 = vpop.permute.xlu1 %7980  ;;  %v8329_v15 = vpop.permute.xlu0 %8328 }
0x2546   :  { %12248 = vmatpush3.xpose.msk.msra.mxu0 %vm313_vm6, %v7981_v47 }
0x2547   :  { %12257 = vmatprep.subr.mxu0 %v13151_v51 }
0x2549   :  { %v7979_v61 = vpop.permute.xlu1 %7978  ;;  %v8494_v0 = vpop.permute.xlu0 %8493 }
0x254a   :  { %12250 = vmatmul.mubr.msk.f32.vlgmr.msra.gmra.mrb[74].mxu0 %vm313_vm6, %v7979_v61 }
0x254b   :  { %12258 = vmatpush3.xpose.msk.msra.mxu0 %vm313_vm6, %v8148_v12  ;;  %12259 = vmatprep.mubr.msk.f32.mxu0 %vm13152_vm5, %v13151_v51 }
0x254c   :  { %12267 = vmatprep.subr.mxu0 %v13151_v51 }
0x254d   :  { %v8146_v40 = vpop.permute.xlu1 %8145  ;;  %v8661_v6 = vpop.permute.xlu0 %8660 }
0x254e   :  { %12260 = vmatmul.mubr.msk.f32.vlgmr.msra.gmra.mrb[76].mxu0 %vm313_vm6, %v8146_v40 }
0x254f   :  { %12268 = vmatpush3.xpose.msk.msra.mxu0 %vm313_vm6, %v8329_v15  ;;  %12269 = vmatprep.mubr.msk.f32.mxu0 %vm13152_vm5, %v13151_v51 }
0x2550   :  { %12277 = vmatprep.subr.mxu0 %v13151_v51 }
0x2551   :  { %v8496_v17 = vpop.permute.xlu1 %8495  ;;  %v8828_v62 = vpop.permute.xlu0 %8827 }
0x2552   :  { %12270 = vmatmul.mubr.msk.f32.vlgmr.msra.gmra.mrb[78].mxu0 %vm313_vm6, %v14697_v41 }
0x2553   :  { %12278 = vmatpush3.xpose.msk.msra.mxu0 %vm313_vm6, %v8496_v17  ;;  %12279 = vmatprep.mubr.msk.f32.mxu0 %vm13152_vm5, %v13151_v51 }
0x2554   :  { %12287 = vmatprep.subr.mxu0 %v13151_v51 }
0x2555   :  { %v8663_v42 = vpop.permute.xlu1 %8662 }
0x2556   :  { %12280 = vmatmul.mubr.msk.f32.vlgmr.msra.gmra.mrb[80].mxu0 %vm313_vm6, %v8494_v0 }
0x2557   :  { %12288 = vmatpush3.xpose.msk.msra.mxu0 %vm313_vm6, %v8663_v42  ;;  %12289 = vmatprep.mubr.msk.f32.mxu0 %vm13152_vm5, %v13151_v51 }
0x2558   :  { %12297 = vmatprep.subr.mxu0 %v13151_v51 }
0x2559   :  { %v8830_v44 = vpop.permute.xlu1 %8829 }
0x255a   :  { %12290 = vmatmul.mubr.msk.f32.vlgmr.msra.gmra.mrb[82].mxu0 %vm313_vm6, %v8661_v6 }
0x255b   :  { %12298 = vmatpush3.xpose.msk.msra.mxu0 %vm313_vm6, %v8830_v44  ;;  %12299 = vmatprep.mubr.msk.f32.mxu0 %vm13152_vm5, %v13151_v51 }
0x255e   :  { %12300 = vmatmul.mubr.msk.f32.vlgmr.msra.gmra.mrb[84].mxu0 %vm313_vm6, %v8828_v62 }
0x2614   :  { %v7718_v52 = vpop.f32.mrb[88].mxu1 }
0x2615   :  { %v7722_v3 = vmul.f32 0.35355338, %v7718_v52  ;;  %v12231_v35 = vpop.f32.mrb[89].mxu1  ;;  %v7885_v22 = vpop.f32.mrb[72].mxu0 }
0x2616   :  { %v7889_v23 = vmul.f32 0.35355338, %v7885_v22  ;;  %v12241_v24 = vpop.f32.mrb[73].mxu0 }
0x2617   :  { %v7723_v19 = vsel %vm4167_vm13, %v7722_v3, -1e+09 }
0x2618   :  { %v7890_v60 = vsel %vm4167_vm13, %v7889_v23, -1e+09  ;;  %v7724_v29 = vsel %vm313_vm6, %v7723_v19, -inf }
0x2619   :  { %7725 = vmax.xlane.f32.xlu1 %v7724_v29  ;;  %v7891_v16 = vsel %vm313_vm6, %v7890_v60, -inf }
0x261a   :  { %7892 = vmax.xlane.f32.xlu0 %v7891_v16 }
0x261d   :  { %v8052_v33 = vpop.f32.mrb[74].mxu0 }
0x261e   :  { %v8056_v34 = vmul.f32 0.35355338, %v8052_v33  ;;  %v12251_v32 = vpop.f32.mrb[75].mxu0 }
0x2620   :  { %v8057_v43 = vsel %vm4167_vm13, %v8056_v34, -1e+09 }
0x2621   :  { %v8219_v20 = vpop.f32.mrb[76].mxu0  ;;  %v8058_v45 = vsel %vm313_vm6, %v8057_v43, -inf }
0x2622   :  { %v8223_v49 = vmul.f32 0.35355338, %v8219_v20  ;;  %8059 = vmax.xlane.f32.xlu0 %v8058_v45  ;;  %v12261_v14 = vpop.f32.mrb[77].mxu0 }
0x2624   :  { %v8224_v54 = vsel %vm4167_vm13, %v8223_v49, -1e+09 }
0x2625   :  { %v8400_v48 = vpop.f32.mrb[78].mxu0  ;;  %v8225_v31 = vsel %vm313_vm6, %v8224_v54, -inf }
0x2626   :  { %v8404_v46 = vmul.f32 0.35355338, %v8400_v48  ;;  %8226 = vmax.xlane.f32.xlu0 %v8225_v31  ;;  %v12271_v18 = vpop.f32.mrb[79].mxu0 }
0x2628   :  { %v8405_v59 = vsel %vm4852_vm14, %v8404_v46, -1e+09 }
0x2629   :  { %v8567_v58 = vpop.f32.mrb[80].mxu0  ;;  %v8406_v37 = vsel %vm313_vm6, %v8405_v59, -inf }
0x262a   :  { %v8571_v56 = vmul.f32 0.35355338, %v8567_v58  ;;  %8407 = vmax.xlane.f32.xlu1 %v8406_v37  ;;  %v12281_v38 = vpop.f32.mrb[81].mxu0 }
0x262c   :  { %v8572_v7 = vsel %vm4852_vm14, %v8571_v56, -1e+09 }
0x262d   :  { %v8734_v2 = vpop.f32.mrb[82].mxu0  ;;  %v8573_v8 = vsel %vm313_vm6, %v8572_v7, -inf }
0x262e   :  { %v8738_v36 = vmul.f32 0.35355338, %v8734_v2  ;;  %8574 = vmax.xlane.f32.xlu0 %v8573_v8  ;;  %v12291_v9 = vpop.f32.mrb[83].mxu0 }
0x2630   :  { %v8739_v10 = vsel %vm4852_vm14, %v8738_v36, -1e+09 }
0x2631   :  { %v8901_v1 = vpop.f32.mrb[84].mxu0  ;;  %v8740_v11 = vsel %vm313_vm6, %v8739_v10, -inf }
0x2632   :  { %v8905_v4 = vmul.f32 0.35355338, %v8901_v1  ;;  %8741 = vmax.xlane.f32.xlu1 %v8740_v11  ;;  %v12301_v12 = vpop.f32.mrb[85].mxu0 }
0x2634   :  { %v8906_v47 = vsel %vm4852_vm14, %v8905_v4, -1e+09 }
0x2635   :  { %v8907_v61 = vsel %vm313_vm6, %v8906_v47, -inf }
0x2636   :  { %8908 = vmax.xlane.f32.xlu0 %v8907_v61 }
0x2643   :  { %7902 = vrot.lane.b32.xlu1 %v14687_v63, %s15276_s8 }
0x2647   :  { %8069 = vrot.lane.b32.xlu1 %v14687_v63, %s15274_s5 }
0x264c   :  { %7735 = vrot.lane.b32.xlu0 %v14687_v63, %s15273_s30 }
0x26a6   :  { %v7726_v15 = vpop.xlane.xlu1 %7725 }
0x26a7   :  { %v7727_v40 = vsub.f32 %v7723_v19, %v7726_v15  ;;  %v7893_v0 = vpop.xlane.xlu0 %7892 }
0x26a8   :  { %v7894_v17 = vsub.f32 %v7890_v60, %v7893_v0 }
0x26a9   :  { %v7728_v42 = vmul.f32 1.442695, %v7727_v40 }
0x26aa   :  { %v7895_v6 = vmul.f32 1.442695, %v7894_v17 }
0x26ab   :  { %12913 = vpow2.f32 %v7728_v42 }
0x26ac   :  { %12915 = vpow2.f32 %v7895_v6 }
0x26af   :  { %v8060_v44 = vpop.xlane.xlu0 %8059 }
0x26b0   :  { %v8061_v19 = vsub.f32 %v8057_v43, %v8060_v44 }
0x26b2   :  { %v8062_v16 = vmul.f32 1.442695, %v8061_v19 }
0x26b3   :  { %v8227_v35 = vpop.xlane.xlu0 %8226 }
0x26b4   :  { %v8228_v60 = vsub.f32 %v8224_v54, %v8227_v35  ;;  %12917 = vpow2.f32 %v8062_v16 }
0x26b5   :  { %v14788_v21 = vpop.eup %12913 }
0x26b6   :  { %v14790_v62 = vpop.eup %12915  ;;  %v7730_v52 = vsel %vm313_vm6, %v14788_v21, 0.0  ;;  %v8229_v34 = vmul.f32 1.442695, %v8228_v60 }
0x26b7   :  { %7731 = vadd.xlane.f32.xlu1 %v7730_v52  ;;  %v7897_v3 = vsel %vm313_vm6, %v14790_v62, 0.0  ;;  %v8408_v29 = vpop.xlane.xlu1 %8407 }
0x26b8   :  { %7898 = vadd.xlane.f32.xlu0 %v7897_v3  ;;  %v8409_v33 = vsub.f32 %v8405_v59, %v8408_v29  ;;  %12919 = vpow2.f32 %v8229_v34 }
0x26ba   :  { %v8410_v45 = vmul.f32 1.442695, %v8409_v33 }
0x26bb   :  { %v8575_v22 = vpop.xlane.xlu0 %8574 }
0x26bc   :  { %v8576_v32 = vsub.f32 %v8572_v7, %v8575_v22  ;;  %12921 = vpow2.f32 %v8410_v45 }
0x26be   :  { %v8577_v14 = vmul.f32 1.442695, %v8576_v32 }
0x26bf   :  { %v8742_v20 = vpop.xlane.xlu1 %8741 }
0x26c0   :  { %v8743_v49 = vsub.f32 %v8739_v10, %v8742_v20  ;;  %12923 = vpow2.f32 %v8577_v14  ;;  %v7552_v14 = vld [vmem:[#allocation5 + $0x20] sm:$0xff] }
0x26c2   :  { %v8744_v48 = vmul.f32 1.442695, %v8743_v49 }
0x26c3   :  { %v8909_v23 = vpop.xlane.xlu0 %8908  ;;  %v7903_v36 = vpop.permute.xlu1 %7902 }
0x26c4   :  { %v8910_v31 = vsub.f32 %v8906_v47, %v8909_v23  ;;  %12925 = vpow2.f32 %v8744_v48  ;;  %v7553_v48 = vld [vmem:[#allocation5 + $0x28] sm:$0xff] }
0x26c6   :  { %v8911_v46 = vmul.f32 1.442695, %v8910_v31 }
0x26c7   :  { %v7736_v24 = vpop.permute.xlu0 %7735  ;;  %v8070_v9 = vpop.permute.xlu1 %8069 }
0x26c8   :  { %12233 = vmatpush3.msra.mxu1 %v7736_v24  ;;  %8417 = vrot.lane.b32.xlu1 %v14697_v41, %s15273_s30  ;;  %12927 = vpow2.f32 %v8911_v46  ;;  %v12613_v46 = vpack.c.bf16 %v7553_v48, %v7552_v14  ;;  %v9154_v14 = vld [vmem:[#allocation7 + $0x38] sm:$0xff]  ;;  %s13167_s30 = smov [#allocation11]  }
0x26c9   :  { %12242 = vmatprep.subr.mxu1 %v13151_v51 }
0x26ca   :  { %12614 = vmatprep.subr.bf16.mxu0 %v12613_v46 }
0x26cb   :  { %12616 = vmatpush3.bf16.msra.mxu0 %v12613_v46 }
0x26ce   :  { %8236 = vrot.lane.b32.xlu0 %v14687_v63, %s15275_s2  ;;  %v12918_v63 = vpop.eup %12917 }
0x26cf   :  { %v12920_v43 = vpop.eup %12919  ;;  %v8064_v54 = vsel %vm313_vm6, %v12918_v63, 0.0 }
0x26d0   :  { %v12922_v18 = vpop.eup %12921  ;;  %v8231_v59 = vsel %vm313_vm6, %v12920_v43, 0.0 }
0x26d1   :  { %v14803_v58 = vpop.eup %12923  ;;  %v8412_v37 = vsel %vm313_vm6, %v12922_v18, 0.0 }
0x26d2   :  { %v14806_v56 = vpop.eup %12925  ;;  %v8579_v38 = vsel %vm313_vm6, %v14803_v58, 0.0 }
0x26d3   :  { %v8746_v7 = vsel %vm313_vm6, %v14806_v56, 0.0  ;;  %v14812_v2 = vpop.eup %12927 }
0x26d4   :  { %v8913_v8 = vsel %vm313_vm6, %v14812_v2, 0.0 }
0x26ec   :  { %8065 = vadd.xlane.f32.xlu1 %v8064_v54  ;;  %v7555_v54 = vld [vmem:[#allocation5 + $0x38] sm:$0xff] }
0x26ed   :  { %8232 = vadd.xlane.f32.xlu0 %v8231_v59 }
0x26f0   :  { %8413 = vadd.xlane.f32.xlu1 %v8412_v37 }
0x26f1   :  { %8580 = vadd.xlane.f32.xlu0 %v8579_v38 }
0x26f4   :  { %8747 = vadd.xlane.f32.xlu1 %v8746_v7 }
0x26f8   :  { %8914 = vadd.xlane.f32.xlu1 %v8913_v8 }
0x2707   :  { %8584 = vrot.lane.b32.xlu0 %v14697_v41, %s15276_s8 }
0x2709   :  { %8751 = vrot.lane.b32.xlu1 %v14697_v41, %s15274_s5 }
0x270b   :  { %8918 = vrot.lane.b32.xlu0 %v14697_v41, %s15275_s2 }
0x2744   :  { %v7732_v10 = vpop.xlane.xlu1 %7731 }
0x2745   :  { %12929 = vrcp.f32 %v7732_v10  ;;  %v7899_v1 = vpop.xlane.xlu0 %7898 }
0x2746   :  { %12931 = vrcp.f32 %v7899_v1 }
0x2748   :  { %v8418_v41 = vpop.permute.xlu1 %8417 }
0x2749   :  { %v8237_v61 = vpop.permute.xlu0 %8236 }
0x274f   :  { %v12930_v11 = vpop.eup %12929 }
0x2750   :  { %v7734_v4 = vmul.f32 %v12930_v11, %v14788_v21  ;;  %v12932_v12 = vpop.eup %12931 }
0x2751   :  { %v7901_v47 = vmul.f32 %v12932_v12, %v14790_v62 }
0x2752   :  { %12235 = vmatmul.mubr.msk.f32.vlgmr.msra.gmra.mrb[90].mxu1 %vm313_vm6, %v7734_v4 }
0x2753   :  { %12243 = vmatpush3.msra.mxu1 %v7903_v36  ;;  %12244 = vmatprep.mubr.msk.f32.mxu1 %vm13152_vm5, %v13151_v51 }
0x2754   :  { %12252 = vmatprep.subr.mxu1 %v13151_v51 }
0x2756   :  { %12245 = vmatmul.mubr.msk.f32.vlgmr.msra.gmra.mrb[92].mxu1 %vm313_vm6, %v7901_v47 }
0x2757   :  { %12253 = vmatpush3.msra.mxu1 %v8070_v9  ;;  %12254 = vmatprep.mubr.msk.f32.mxu1 %vm13152_vm5, %v13151_v51 }
0x2758   :  { %12262 = vmatprep.subr.mxu1 %v13151_v51 }
0x2779   :  { %v8066_v15 = vpop.xlane.xlu1 %8065 }
0x277a   :  { %12933 = vrcp.f32 %v8066_v15  ;;  %v8233_v40 = vpop.xlane.xlu0 %8232 }
0x277b   :  { %12935 = vrcp.f32 %v8233_v40 }
0x277d   :  { %v8414_v0 = vpop.xlane.xlu1 %8413 }
0x277e   :  { %12937 = vrcp.f32 %v8414_v0  ;;  %v8581_v17 = vpop.xlane.xlu0 %8580 }
0x277f   :  { %12939 = vrcp.f32 %v8581_v17 }
0x2781   :  { %v8748_v42 = vpop.xlane.xlu1 %8747 }
0x2782   :  { %12941 = vrcp.f32 %v8748_v42  ;;  %v8585_v23 = vpop.permute.xlu0 %8584  ;;  %v11314_v42 = vld [vmem:[%s15185_s16 + $0x1] ss:$0 sm:$0xff]  ;;  %s11103_s16 = sshll.u32 %s13167_s30, 4  ;;  %s11104_s16 = int_to_ptr.vmem [resolvable:$true] %s11103_s16 }
0x2783   :  { %s13114_s5 = scalar_lea.vmem %s11104_s16, 256  ;;  %p13119_p13 = scmp.lt.s32.totalorder %s11104_s16, %s11104_s16 }
0x2784   :  { %v12934_v6 = vpop.eup %12933  ;;  %p13115_p12 = scmp.ne.s32.totalorder %s11104_s16, %s13114_s5  ;;  %p13120_p0 = scmp.lt.s32.totalorder %s13114_s5, %s13114_s5 }
0x2785   :  { %v8068_v21 = vmul.f32 %v12934_v6, %v12918_v63  ;;  %v12936_v44 = vpop.eup %12935  ;;  %v8915_v52 = vpop.xlane.xlu1 %8914 }
0x2786   :  { %v8235_v62 = vmul.f32 %v12936_v44, %v12920_v43  ;;  %12943 = vrcp.f32 %v8915_v52  ;;  %v8919_v33 = vpop.permute.xlu0 %8918  ;;  %v7554_v43 = vld [vmem:[#allocation5 + $0x30] sm:$0xff]  ;;  %p13121_p1 = por %p13120_p0, %p13119_p13 }
0x2787   :  { %12255 = vmatmul.mubr.msk.f32.vlgmr.msra.gmra.mrb[94].mxu1 %vm313_vm6, %v8068_v21  ;;  %v12617_v59 = vpack.c.bf16 %v7555_v54, %v7554_v43 }
0x2788   :  { %12263 = vmatpush3.msra.mxu1 %v8237_v61  ;;  %12264 = vmatprep.mubr.msk.f32.mxu1 %vm13152_vm5, %v13151_v51  ;;  %v12938_v3 = vpop.eup %12937  ;;  %p13122_p2 = pnand %p13121_p1, %p13115_p12 }
0x2789   :  { %12272 = vmatprep.subr.mxu1 %v13151_v51  ;;  %v8416_v35 = vmul.f32 %v12938_v3, %v12922_v18  ;;  %v12940_v22 = vpop.eup %12939  ;;  %v8752_v60 = vpop.permute.xlu1 %8751  ;;  %12618 = vmatprep.subr.bf16.mxu0 %v12617_v59 }
0x278a   :  { %v8583_v24 = vmul.f32 %v12940_v22, %v14803_v58  ;;  %12620 = vmatpush3.bf16.msra.mxu0 %v12617_v59  ;;  %v9151_v22 = vld [vmem:[#allocation7 + $0x20] sm:$0xff] }
0x278b   :  { %12265 = vmatmul.mubr.msk.f32.vlgmr.msra.gmra.mrb[96].mxu1 %vm313_vm6, %v8235_v62 }
0x278c   :  { %12273 = vmatpush3.msra.mxu1 %v8418_v41  ;;  %12274 = vmatprep.mubr.msk.f32.mxu1 %vm13152_vm5, %v13151_v51  ;;  %v12942_v19 = vpop.eup %12941 }
0x278d   :  { %12282 = vmatprep.subr.mxu1 %v13151_v51  ;;  %v8750_v29 = vmul.f32 %v12942_v19, %v14806_v56 }
0x278f   :  { %12275 = vmatmul.mubr.msk.f32.vlgmr.msra.gmra.mrb[98].mxu1 %vm313_vm6, %v8416_v35 }
0x2790   :  { %12283 = vmatpush3.msra.mxu1 %v8585_v23  ;;  %12284 = vmatprep.mubr.msk.f32.mxu1 %vm13152_vm5, %v13151_v51  ;;  %v12944_v16 = vpop.eup %12943  ;;  %v9152_v23 = vld [vmem:[#allocation7 + $0x28] sm:$0xff] }
0x2791   :  { %12292 = vmatprep.subr.mxu1 %v13151_v51  ;;  %v8917_v34 = vmul.f32 %v12944_v16, %v14812_v2  ;;  %v12621_v43 = vpack.c.bf16 %v9152_v23, %v9151_v22 }
0x2793   :  { %12285 = vmatmul.mubr.msk.f32.vlgmr.msra.gmra.mrb[100].mxu1 %vm313_vm6, %v8583_v24  ;;  %v12703_v24 = vpack.i.bf16 %v9152_v23, %v9151_v22 }
0x2794   :  { %12293 = vmatpush3.msra.mxu1 %v8752_v60  ;;  %12294 = vmatprep.mubr.msk.f32.mxu1 %vm13152_vm5, %v13151_v51 }
0x2795   :  { %12302 = vmatprep.subr.mxu1 %v13151_v51 }
0x2797   :  { %12295 = vmatmul.mubr.msk.f32.vlgmr.msra.gmra.mrb[102].mxu1 %vm313_vm6, %v8750_v29 }
0x2798   :  { %12303 = vmatpush3.msra.mxu1 %v8919_v33  ;;  %12304 = vmatprep.mubr.msk.f32.mxu1 %vm13152_vm5, %v13151_v51 }
0x2799   :  { %12622 = vmatprep.subr.bf16.mxu1 %v12621_v43 }
0x279b   :  { %12305 = vmatmul.mubr.msk.f32.vlgmr.msra.gmra.mrb[104].mxu1 %vm313_vm6, %v8917_v34 }
0x279c   :  { %12624 = vmatpush3.bf16.msra.mxu1 %v12621_v43 }
0x2825   :  { %v7807_v32 = vpop.f32.mrb[90].mxu1 }
0x2826   :  { %v12236_v20 = vpop.f32.mrb[91].mxu1 }
0x2829   :  { %v7974_v45 = vpop.f32.mrb[92].mxu1 }
0x282a   :  { %8313 = vrot.lane.b32.xlu1 %v7974_v45, %s15277_s1  ;;  %v12246_v49 = vpop.f32.mrb[93].mxu1 }
0x282b   :  { %v9153_v49 = vld [vmem:[#allocation7 + $0x30] sm:$0xff] }
0x282c   :  { %v12625_v54 = vpack.c.bf16 %v9154_v14, %v9153_v49 }
0x282e   :  { %12626 = vmatprep.subr.bf16.mxu1 %v12625_v54 }
0x282f   :  { %12628 = vmatpush3.bf16.msra.mxu1 %v12625_v54 }
0x2830   :  { %12340 = vmatprep.subr.mxu1 %v13151_v51 }
0x285a   :  { %v8141_v31 = vpop.f32.mrb[94].mxu1 }
0x285b   :  { %8317 = vrot.lane.b32.xlu0 %v8141_v31, %s15278_s13  ;;  %v12256_v63 = vpop.f32.mrb[95].mxu1 }
0x285c   :  { %v12708_v63 = vpack.i.bf16 %v9154_v14, %v9153_v49 }
0x285e   :  { %v8308_v18 = vpop.f32.mrb[96].mxu1 }
0x285f   :  { %8321 = vrot.lane.b32.xlu0 %v8308_v18, %s15279_s21  ;;  %v12266_v58 = vpop.f32.mrb[97].mxu1  ;;  %v14898_v18 = vld [vmem:[%s15187_s18 + $0x1] ss:$0 sm:$0xff] }
0x2862   :  { %v8489_v37 = vpop.f32.mrb[98].mxu1 }
0x2863   :  { %v12276_v56 = vpop.f32.mrb[99].mxu1 }
0x2866   :  { %v8656_v38 = vpop.f32.mrb[100].mxu1 }
0x2867   :  { %8995 = vrot.lane.b32.xlu1 %v8656_v38, %s15277_s1  ;;  %v12286_v7 = vpop.f32.mrb[101].mxu1 }
0x286a   :  { %v8823_v2 = vpop.f32.mrb[102].mxu1 }
0x286b   :  { %8999 = vrot.lane.b32.xlu1 %v8823_v2, %s15278_s13  ;;  %v12296_v8 = vpop.f32.mrb[103].mxu1 }
0x286e   :  { %v8990_v36 = vpop.f32.mrb[104].mxu1 }
0x286f   :  { %9003 = vrot.lane.b32.xlu0 %v8990_v36, %s15279_s21  ;;  %v12306_v9 = vpop.f32.mrb[105].mxu1 }
0x289c   :  { %v8314_v10 = vpop.permute.xlu1 %8313 }
0x289d   :  { %v8324_v11 = vsel %vm313_vm6, %v7807_v32, %v8314_v10 }
0x28cd   :  { %v8318_v1 = vpop.permute.xlu0 %8317 }
0x28ce   :  { %v8325_v4 = vsel %vm998_vm11, %v8324_v11, %v8318_v1 }
0x28d1   :  { %v8322_v12 = vpop.permute.xlu0 %8321 }
0x28d2   :  { %v8326_v47 = vsel %vm1000_vm12, %v8325_v4, %v8322_v12 }
0x28d3   :  { %12315 = vmatprep.mubr.msk.f32.mxu0 %vm158_vm0, %v8326_v47 }
0x28d9   :  { %v8996_v41 = vpop.permute.xlu1 %8995 }
0x28da   :  { %v9006_v15 = vsel %vm313_vm6, %v8489_v37, %v8996_v41 }
0x28dd   :  { %v9000_v61 = vpop.permute.xlu1 %8999 }
0x28de   :  { %v9007_v40 = vsel %vm998_vm11, %v9006_v15, %v9000_v61 }
0x28e1   :  { %v9004_v0 = vpop.permute.xlu0 %9003 }
0x28e2   :  { %v9008_v17 = vsel %vm1000_vm12, %v9007_v40, %v9004_v0  ;;  %v9135_v0 = vrot.slane %v14674_v27, %v13729_v50 }
0x28e3   :  { %12316 = vmatmul.mubr.msk.f32.vlgmr.msra.gmra.mrb[86].mxu0 %vm158_vm0, %v9008_v17 }
0x28e4   :  { %12337 = vmatprep.mubr.msk.f32.mxu0 %vm158_vm0, %v14380_v25 }
0x29b6   :  { %v12317_v6 = vpop.f32.mrb[86].mxu0 }
0x29b7   :  { %v9093_v21 = vadd.f32 %v12317_v6, %v11314_v42  ;;  %v9087_v44 = vpop.f32.mrb[87].mxu0 }
0x29b8   :  { %v9088_v62 = vadd.f32 %v11314_v42, %v9087_v44 }
0x29b9   :  { %v14875_v52 = vadd.f32 %v9093_v21, %v14657_v26 }
0x29ba   :  { %v14878_v3 = vadd.f32 %v9088_v62, %v14660_v55 }
0x29bb   :  { %v9101_v35 = vsel %vm158_vm0, %v14875_v52, 0.0 }
0x29bc   :  { %9102 = vadd.xlane.f32.xlu0 %v9101_v35  ;;  %v9098_v25 = vsel %vm158_vm0, %v14878_v3, 0.0 }
0x29bd   :  { %9099 = vadd.xlane.f32.xlu1 %v9098_v25 }
0x29ce   :  { %12704 = vrot.lane.b32.xlu1 %v12703_v24, %s15282_s12 }
0x29d2   :  { %9267 = vrot.lane.b32.xlu1 %v14898_v18, %s15282_s12 }
0x2a49   :  { %v9103_v19 = vpop.xlane.xlu0 %9102 }
0x2a4a   :  { %v9105_v60 = vmul.f32 0.03125, %v9103_v19  ;;  %v9100_v26 = vpop.xlane.xlu1 %9099 }
0x2a4b   :  { %v9104_v29 = vmul.f32 0.03125, %v9100_v26 }
0x2a4c   :  { %v14886_v55 = vsub.f32 %v14875_v52, %v9105_v60 }
0x2a4d   :  { %v9106_v16 = vsub.f32 %v14878_v3, %v9104_v29 }
0x2a4e   :  { %v9109_v32 = vmul.f32 %v14886_v55, %v14886_v55  ;;  %v12705_v45 = vpop.permute.xlu1 %12704  ;;  %v9137_v21 = vmul.f32 %v9135_v0, %v14886_v55 }
0x2a4f   :  { %v9108_v33 = vmul.f32 %v9106_v16, %v9106_v16  ;;  %v12707_v48 = vunpack.i.h.bf16 %v12705_v45  ;;  %v12706_v31 = vunpack.i.l.bf16 %v12705_v45  ;;  %v9136_v17 = vmul.f32 %v9135_v0, %v9106_v16 }
0x2a50   :  { %v9113_v20 = vsel %vm158_vm0, %v9109_v32, 0.0 }
0x2a51   :  { %v9110_v34 = vsel %vm158_vm0, %v9108_v33, 0.0  ;;  %v12629_v46 = vpack.c.bf16 %v12707_v48, %v12706_v31 }
0x2a52   :  { %9111 = vadd.xlane.f32.xlu0 %v9110_v34  ;;  %v9268_v22 = vpop.permute.xlu1 %9267 }
0x2a53   :  { %12630 = vmatprep.subr.bf16.mxu0 %v12629_v46 }
0x2a54   :  { %12632 = vmatpush3.bf16.msra.mxu0 %v12629_v46 }
0x2a56   :  { %9114 = vadd.xlane.f32.xlu0 %v9113_v20 }
0x2a6c   :  { %12709 = vrot.lane.b32.xlu0 %v12708_v63, %s15282_s12 }
0x2adf   :  { %v9112_v59 = vpop.xlane.xlu0 %9111 }
0x2ae0   :  { %v9116_v58 = vmul.f32 0.032258064, %v9112_v59 }
0x2ae2   :  { %12945 = vrsqrt.f32 %v9116_v58  ;;  %vm9120_vm13 = vcmp.eq.f32.partialorder %v9116_v58, inf  ;;  %v9123_v10 = vand.u32 2147483648, %v9116_v58  ;;  %vm9122_vm14 = vcmp.eq.f32.partialorder %v9116_v58, 0.0 }
0x2ae3   :  { %v9115_v37 = vpop.xlane.xlu0 %9114 }
0x2ae4   :  { %v9117_v56 = vmul.f32 0.032258064, %v9115_v37 }
0x2ae6   :  { %12947 = vrsqrt.f32 %v9117_v56  ;;  %vm9127_vm7 = vcmp.eq.f32.partialorder %v9117_v56, inf  ;;  %v9130_v41 = vand.u32 2147483648, %v9117_v56  ;;  %vm9129_vm9 = vcmp.eq.f32.partialorder %v9117_v56, 0.0 }
0x2ae7   :  { %v12710_v38 = vpop.permute.xlu0 %12709 }
0x2ae8   :  { %v12712_v7 = vunpack.i.h.bf16 %v12710_v38  ;;  %v12711_v2 = vunpack.i.l.bf16 %v12710_v38 }
0x2aea   :  { %v12633_v8 = vpack.c.bf16 %v12712_v7, %v12711_v2 }
0x2aec   :  { %v12946_v36 = vpop.eup %12945  ;;  %12634 = vmatprep.subr.bf16.mxu0 %v12633_v8 }
0x2aed   :  { %v9119_v9 = vmul.f32 %v12946_v36, %v9116_v58  ;;  %12636 = vmatpush3.bf16.msra.mxu0 %v12633_v8 }
0x2aee   :  { %12350 = vmatprep.subr.mxu0 %v13151_v51 }
0x2aef   :  { %v9121_v1 = vsel %vm9120_vm13, %v9116_v58, %v9119_v9 }
0x2af0   :  { %v12948_v11 = vpop.eup %12947  ;;  %v9124_v4 = vsel %vm9122_vm14, %v9123_v10, %v9121_v1  ;;  %12338 = vmatmul.mubr.msk.f32.vlgmr.msra.gmra.mrb[88].mxu0 %vm158_vm0, %v14393_v53  ;;  %v9147_v53 = vrot.slane %v14674_v27, %v13734_v57 }
0x2af1   :  { %v9126_v12 = vmul.f32 %v12948_v11, %v9117_v56  ;;  %v9138_v47 = vadd.f32 1e-06, %v9124_v4  ;;  %12352 = vmatprep.mubr.msk.f32.mxu0 %vm13152_vm5, %v13151_v51 }
0x2af3   :  { %v9128_v61 = vsel %vm9127_vm7, %v9117_v56, %v9126_v12  ;;  %12949 = vrcp.f32 %v9138_v47 }
0x2af4   :  { %v9131_v15 = vsel %vm9129_vm9, %v9130_v41, %v9128_v61 }
0x2af5   :  { %v9139_v40 = vadd.f32 1e-06, %v9131_v15 }
0x2af7   :  { %12951 = vrcp.f32 %v9139_v40 }
0x2afd   :  { %v12950_v42 = vpop.eup %12949 }
0x2afe   :  { %v9141_v6 = vmul.f32 %v12950_v42, %v9136_v17 }
0x2b00   :  { %v9148_v44 = vadd.f32 %v9147_v53, %v9141_v6 }
0x2b01   :  { %v12952_v62 = vpop.eup %12951 }
0x2b02   :  { %v9143_v35 = vmul.f32 %v12952_v62, %v9137_v21  ;;  %12326 = vmatprep.mubr.msk.f32.mxu1 %vm158_vm0, %v9148_v44 }
0x2b04   :  { %v9149_v25 = vadd.f32 %v9147_v53, %v9143_v35 }
0x2b06   :  { %12327 = vmatmul.mubr.msk.f32.vlgmr.msra.gmra.mrb[106].mxu1 %vm158_vm0, %v9149_v25 }
0x2b07   :  { %12342 = vmatprep.mubr.msk.f32.mxu1 %vm13152_vm5, %v13151_v51 }
0x2bc3   :  { %v12339_v23 = vpop.f32.mrb[88].mxu0 }
0x2bc4   :  { %v9336_v24 = vpop.f32.mrb[89].mxu0  ;;  %v14927_v27 = vadd.f32 %v12339_v23, %v9268_v22 }
0x2bc5   :  { %v14916_v19 = vadd.f32 %v9336_v24, %v9268_v22 }
0x2bc7   :  { %9679 = vrot.lane.b32.xlu0 %v14916_v19, %s15284_s24  ;;  %9512 = vrot.lane.b32.xlu1 %v14916_v19, %s15283_s29 }
0x2bc8   :  { %12341 = vmatpush3.xpose.msk.msra.mxu1 %vm313_vm6, %v14916_v19 }
0x2bc9   :  { %12345 = vmatprep.subr.mxu1 %v13151_v51 }
0x2bcb   :  { %9846 = vrot.lane.b32.xlu0 %v14916_v19, %s15271_s28 }
0x2bcf   :  { %10193 = vrot.lane.b32.xlu0 %v14927_v27, %s15283_s29 }
0x2bd3   :  { %10360 = vrot.lane.b32.xlu0 %v14927_v27, %s15284_s24 }
0x2bd7   :  { %10527 = vrot.lane.b32.xlu0 %v14927_v27, %s15271_s28 }
0x2bd9   :  { %v12328_v60 = vpop.f32.mrb[106].mxu1 }
0x2bda   :  { %v9242_v26 = vpop.f32.mrb[107].mxu1  ;;  %v9248_v55 = vadd.f32 %v12328_v60, %v14898_v18 }
0x2bdb   :  { %v9243_v29 = vadd.f32 %v14898_v18, %v9242_v26 }
0x2bdd   :  { %9510 = vrot.lane.b32.xlu1 %v9243_v29, %s15283_s29  ;;  %12343 = vmatmul.mubr.msk.f32.vlgmr.msra.gmra.mrb[108].mxu1 %vm313_vm6, %v9243_v29 }
0x2bde   :  { %12347 = vmatprep.mubr.msk.f32.mxu1 %vm13152_vm5, %v13151_v51 }
0x2be1   :  { %9677 = vrot.lane.b32.xlu1 %v9243_v29, %s15284_s24 }
0x2be5   :  { %9844 = vrot.lane.b32.xlu1 %v9243_v29, %s15271_s28 }
0x2be9   :  { %10191 = vrot.lane.b32.xlu1 %v9248_v55, %s15283_s29 }
0x2bed   :  { %10358 = vrot.lane.b32.xlu1 %v9248_v55, %s15284_s24 }
0x2bf1   :  { %10525 = vrot.lane.b32.xlu1 %v9248_v55, %s15271_s28 }
0x2c39   :  { %v9513_v16 = vpop.permute.xlu1 %9512  ;;  %v9680_v33 = vpop.permute.xlu0 %9679 }
0x2c3a   :  { %12351 = vmatpush3.xpose.msk.msra.mxu0 %vm313_vm6, %v9513_v16 }
0x2c3b   :  { %12360 = vmatprep.subr.mxu0 %v13151_v51 }
0x2c3d   :  { %v9847_v32 = vpop.permute.xlu0 %9846 }
0x2c41   :  { %v10194_v49 = vpop.permute.xlu0 %10193 }
0x2c45   :  { %v10361_v48 = vpop.permute.xlu0 %10360 }
0x2c49   :  { %v10528_v46 = vpop.permute.xlu0 %10527 }
0x2c4f   :  { %v9511_v34 = vpop.permute.xlu1 %9510 }
0x2c50   :  { %12353 = vmatmul.mubr.msk.f32.vlgmr.msra.gmra.mrb[90].mxu0 %vm313_vm6, %v9511_v34 }
0x2c51   :  { %12361 = vmatpush3.xpose.msk.msra.mxu0 %vm313_vm6, %v9680_v33  ;;  %12362 = vmatprep.mubr.msk.f32.mxu0 %vm13152_vm5, %v13151_v51 }
0x2c52   :  { %12370 = vmatprep.subr.mxu0 %v13151_v51 }
0x2c53   :  { %v9678_v20 = vpop.permute.xlu1 %9677 }
0x2c54   :  { %12363 = vmatmul.mubr.msk.f32.vlgmr.msra.gmra.mrb[92].mxu0 %vm313_vm6, %v9678_v20 }
0x2c55   :  { %12371 = vmatpush3.xpose.msk.msra.mxu0 %vm313_vm6, %v9847_v32  ;;  %12372 = vmatprep.mubr.msk.f32.mxu0 %vm13152_vm5, %v13151_v51 }
0x2c56   :  { %12380 = vmatprep.subr.mxu0 %v13151_v51 }
0x2c57   :  { %v9845_v45 = vpop.permute.xlu1 %9844 }
0x2c58   :  { %12373 = vmatmul.mubr.msk.f32.vlgmr.msra.gmra.mrb[94].mxu0 %vm313_vm6, %v9845_v45 }
0x2c59   :  { %12381 = vmatpush3.xpose.msk.msra.mxu0 %vm313_vm6, %v14927_v27  ;;  %12382 = vmatprep.mubr.msk.f32.mxu0 %vm13152_vm5, %v13151_v51 }
0x2c5a   :  { %12390 = vmatprep.subr.mxu0 %v13151_v51 }
0x2c5b   :  { %v10192_v14 = vpop.permute.xlu1 %10191 }
0x2c5c   :  { %12383 = vmatmul.mubr.msk.f32.vlgmr.msra.gmra.mrb[96].mxu0 %vm313_vm6, %v9248_v55 }
0x2c5d   :  { %12391 = vmatpush3.xpose.msk.msra.mxu0 %vm313_vm6, %v10194_v49  ;;  %12392 = vmatprep.mubr.msk.f32.mxu0 %vm13152_vm5, %v13151_v51 }
0x2c5e   :  { %12400 = vmatprep.subr.mxu0 %v13151_v51 }
0x2c5f   :  { %v10359_v31 = vpop.permute.xlu1 %10358 }
0x2c60   :  { %12393 = vmatmul.mubr.msk.f32.vlgmr.msra.gmra.mrb[98].mxu0 %vm313_vm6, %v10192_v14 }
0x2c61   :  { %12401 = vmatpush3.xpose.msk.msra.mxu0 %vm313_vm6, %v10361_v48  ;;  %12402 = vmatprep.mubr.msk.f32.mxu0 %vm13152_vm5, %v13151_v51 }
0x2c62   :  { %12410 = vmatprep.subr.mxu0 %v13151_v51 }
0x2c63   :  { %v10526_v63 = vpop.permute.xlu1 %10525 }
0x2c64   :  { %12403 = vmatmul.mubr.msk.f32.vlgmr.msra.gmra.mrb[100].mxu0 %vm313_vm6, %v10359_v31 }
0x2c65   :  { %12411 = vmatpush3.xpose.msk.msra.mxu0 %vm313_vm6, %v10528_v46  ;;  %12412 = vmatprep.mubr.msk.f32.mxu0 %vm13152_vm5, %v13151_v51 }
0x2c68   :  { %12413 = vmatmul.mubr.msk.f32.vlgmr.msra.gmra.mrb[102].mxu0 %vm313_vm6, %v10526_v63 }
0x2cb0   :  { %v9417_v43 = vpop.f32.mrb[108].mxu1 }
0x2cb1   :  { %v9421_v54 = vmul.f32 0.35355338, %v9417_v43  ;;  %v12344_v18 = vpop.f32.mrb[109].mxu1 }
0x2cb3   :  { %v9422_v59 = vsel %vm13530_vm8, %v9421_v54, -1e+09 }
0x2cb4   :  { %v9423_v58 = vsel %vm313_vm6, %v9422_v59, -inf }
0x2cb5   :  { %9424 = vmax.xlane.f32.xlu0 %v9423_v58 }
0x2d23   :  { %v9584_v37 = vpop.f32.mrb[90].mxu0 }
0x2d24   :  { %v9588_v56 = vmul.f32 0.35355338, %v9584_v37  ;;  %v12354_v38 = vpop.f32.mrb[91].mxu0 }
0x2d26   :  { %v9589_v7 = vsel %vm13530_vm8, %v9588_v56, -1e+09 }
0x2d27   :  { %v9751_v2 = vpop.f32.mrb[92].mxu0  ;;  %v9590_v8 = vsel %vm313_vm6, %v9589_v7, -inf }
0x2d28   :  { %v9755_v36 = vmul.f32 0.35355338, %v9751_v2  ;;  %9591 = vmax.xlane.f32.xlu1 %v9590_v8  ;;  %v12364_v9 = vpop.f32.mrb[93].mxu0 }
0x2d2a   :  { %v9756_v10 = vsel %vm13530_vm8, %v9755_v36, -1e+09 }
0x2d2b   :  { %v9918_v1 = vpop.f32.mrb[94].mxu0  ;;  %v9757_v11 = vsel %vm313_vm6, %v9756_v10, -inf }
0x2d2c   :  { %v9922_v4 = vmul.f32 0.35355338, %v9918_v1  ;;  %v12374_v12 = vpop.f32.mrb[95].mxu0  ;;  %9758 = vmax.xlane.f32.xlu0 %v9757_v11 }
0x2d2e   :  { %v9923_v47 = vsel %vm13530_vm8, %v9922_v4, -1e+09 }
0x2d2f   :  { %v10098_v41 = vpop.f32.mrb[96].mxu0  ;;  %v9924_v61 = vsel %vm313_vm6, %v9923_v47, -inf }
0x2d30   :  { %v10102_v15 = vmul.f32 0.35355338, %v10098_v41  ;;  %v12384_v40 = vpop.f32.mrb[97].mxu0  ;;  %9925 = vmax.xlane.f32.xlu0 %v9924_v61 }
0x2d32   :  { %v10103_v0 = vsel %vm13552_vm10, %v10102_v15, -1e+09 }
0x2d33   :  { %v10265_v17 = vpop.f32.mrb[98].mxu0  ;;  %v10104_v53 = vsel %vm313_vm6, %v10103_v0, -inf }
0x2d34   :  { %v10269_v42 = vmul.f32 0.35355338, %v10265_v17  ;;  %v12394_v6 = vpop.f32.mrb[99].mxu0  ;;  %10105 = vmax.xlane.f32.xlu0 %v10104_v53 }
0x2d36   :  { %v14996_v21 = vsel %vm13552_vm10, %v10269_v42, -1e+09 }
0x2d37   :  { %v10432_v13 = vpop.f32.mrb[100].mxu0  ;;  %v10271_v44 = vsel %vm313_vm6, %v14996_v21, -inf }
0x2d38   :  { %v10436_v62 = vmul.f32 0.35355338, %v10432_v13  ;;  %10272 = vmax.xlane.f32.xlu1 %v10271_v44  ;;  %v12404_v35 = vpop.f32.mrb[101].mxu0 }
0x2d3a   :  { %v10437_v25 = vsel %vm13552_vm10, %v10436_v62, -1e+09 }
0x2d3b   :  { %v10599_v22 = vpop.f32.mrb[102].mxu0  ;;  %v10438_v23 = vsel %vm313_vm6, %v10437_v25, -inf }
0x2d3c   :  { %v12414_v24 = vpop.f32.mrb[103].mxu0  ;;  %10439 = vmax.xlane.f32.xlu0 %v10438_v23  ;;  %v10603_v33 = vmul.f32 0.35355338, %v10599_v22 }
0x2d3e   :  { %v10604_v34 = vsel %vm13552_vm10, %v10603_v33, -1e+09 }
0x2d3f   :  { %v10605_v32 = vsel %vm313_vm6, %v10604_v34, -inf }
0x2d42   :  { %v9425_v60 = vpop.xlane.xlu0 %9424 }
0x2d43   :  { %v9426_v26 = vsub.f32 %v9422_v59, %v9425_v60 }
0x2d45   :  { %v9427_v29 = vmul.f32 1.442695, %v9426_v26 }
0x2d47   :  { %12953 = vpow2.f32 %v9427_v29 }
0x2d49   :  { %9434 = vrot.lane.b32.xlu1 %v14916_v19, %s15282_s12 }
0x2d51   :  { %v12954_v55 = vpop.eup %12953 }
0x2d52   :  { %v9429_v16 = vsel %vm313_vm6, %v12954_v55, 0.0 }
0x2d53   :  { %9430 = vadd.xlane.f32.xlu0 %v9429_v16 }
0x2d69   :  { %9601 = vrot.lane.b32.xlu0 %v14916_v19, %s15281_s11 }
0x2d6d   :  { %10606 = vmax.xlane.f32.xlu1 %v10605_v32 }
0x2d7e   :  { %9768 = vrot.lane.b32.xlu1 %v14916_v19, %s15270_s7 }
0x2d82   :  { %9935 = vrot.lane.b32.xlu1 %v14916_v19, %s15272_s9 }
0x2d86   :  { %10115 = vrot.lane.b32.xlu1 %v14927_v27, %s15282_s12 }
0x2db5   :  { %v9592_v20 = vpop.xlane.xlu1 %9591 }
0x2db6   :  { %v9593_v45 = vsub.f32 %v9589_v7, %v9592_v20 }
0x2db8   :  { %v9594_v49 = vmul.f32 1.442695, %v9593_v45 }
0x2db9   :  { %v9759_v39 = vpop.xlane.xlu0 %9758 }
0x2dba   :  { %12955 = vpow2.f32 %v9594_v49  ;;  %v9760_v14 = vsub.f32 %v9756_v10, %v9759_v39 }
0x2dbc   :  { %v9761_v48 = vmul.f32 1.442695, %v9760_v14 }
0x2dbd   :  { %v9926_v31 = vpop.xlane.xlu0 %9925 }
0x2dbe   :  { %12957 = vpow2.f32 %v9761_v48  ;;  %v9927_v46 = vsub.f32 %v9923_v47, %v9926_v31 }
0x2dc0   :  { %v9928_v63 = vmul.f32 1.442695, %v9927_v46 }
0x2dc1   :  { %v10106_v43 = vpop.xlane.xlu0 %10105 }
0x2dc2   :  { %12959 = vpow2.f32 %v9928_v63  ;;  %v10107_v54 = vsub.f32 %v10103_v0, %v10106_v43 }
0x2dc4   :  { %v12956_v18 = vpop.eup %12955  ;;  %v10108_v59 = vmul.f32 1.442695, %v10107_v54 }
0x2dc5   :  { %v10273_v19 = vpop.xlane.xlu1 %10272  ;;  %v9596_v58 = vsel %vm313_vm6, %v12956_v18, 0.0 }
0x2dc6   :  { %12961 = vpow2.f32 %v10108_v59  ;;  %9597 = vadd.xlane.f32.xlu1 %v9596_v58  ;;  %v10274_v61 = vsub.f32 %v14996_v21, %v10273_v19 }
0x2dc8   :  { %v12958_v37 = vpop.eup %12957  ;;  %v10275_v40 = vmul.f32 1.442695, %v10274_v61 }
0x2dc9   :  { %v9435_v56 = vpop.permute.xlu1 %9434  ;;  %v10440_v38 = vpop.xlane.xlu0 %10439  ;;  %v9763_v7 = vsel %vm313_vm6, %v12958_v37, 0.0 }
0x2dca   :  { %v10441_v2 = vsub.f32 %v10437_v25, %v10440_v38  ;;  %12346 = vmatpush3.msra.mxu1 %v9435_v56  ;;  %9764 = vadd.xlane.f32.xlu0 %v9763_v7 }
0x2dcb   :  { %12355 = vmatprep.subr.mxu1 %v13151_v51 }
0x2dcc   :  { %v12960_v8 = vpop.eup %12959  ;;  %v10442_v36 = vmul.f32 1.442695, %v10441_v2 }
0x2dcd   :  { %v9930_v9 = vsel %vm313_vm6, %v12960_v8, 0.0 }
0x2dce   :  { %12963 = vpow2.f32 %v10442_v36  ;;  %9931 = vadd.xlane.f32.xlu1 %v9930_v9  ;;  %v9159_v36 = vld [vmem:[#allocation8 + $0x28] sm:$0xff] }
0x2dd0   :  { %v12962_v10 = vpop.eup %12961 }
0x2dd1   :  { %v10110_v1 = vsel %vm313_vm6, %v12962_v10, 0.0 }
0x2dd2   :  { %10111 = vadd.xlane.f32.xlu0 %v10110_v1  ;;  %v9161_v1 = vld [vmem:[#allocation8 + $0x38] sm:$0xff] }
0x2dd8   :  { %v15022_v11 = vpop.eup %12963 }
0x2dd9   :  { %v10444_v4 = vsel %vm313_vm6, %v15022_v11, 0.0 }
0x2dda   :  { %10445 = vadd.xlane.f32.xlu0 %v10444_v4 }
0x2ddf   :  { %10282 = vrot.lane.b32.xlu1 %v14927_v27, %s15281_s11 }
0x2de0   :  { %v9431_v12 = vpop.xlane.xlu0 %9430 }
0x2de1   :  { %12965 = vrcp.f32 %v9431_v12 }
0x2de2   :  { %12967 = vpow2.f32 %v10275_v40 }
0x2de4   :  { %v9602_v15 = vpop.permute.xlu0 %9601 }
0x2deb   :  { %v12966_v47 = vpop.eup %12965 }
0x2dec   :  { %v9433_v41 = vmul.f32 %v12966_v47, %v12954_v55  ;;  %v12968_v42 = vpop.eup %12967 }
0x2ded   :  { %v10277_v6 = vsel %vm313_vm6, %v12968_v42, 0.0 }
0x2dee   :  { %12348 = vmatmul.mubr.msk.f32.vlgmr.msra.gmra.mrb[110].mxu1 %vm313_vm6, %v9433_v41 }
0x2def   :  { %12356 = vmatpush3.msra.mxu1 %v9602_v15  ;;  %12357 = vmatprep.mubr.msk.f32.mxu1 %vm13152_vm5, %v13151_v51 }
0x2df0   :  { %12365 = vmatprep.subr.mxu1 %v13151_v51 }
0x2dfa   :  { %v10607_v0 = vpop.xlane.xlu1 %10606 }
0x2dfb   :  { %v10608_v17 = vsub.f32 %v10604_v34, %v10607_v0 }
0x2dfd   :  { %v10609_v53 = vmul.f32 1.442695, %v10608_v17 }
0x2dfe   :  { %v9769_v44 = vpop.permute.xlu1 %9768 }
0x2dff   :  { %12969 = vpow2.f32 %v10609_v53 }
0x2e02   :  { %v9936_v62 = vpop.permute.xlu1 %9935 }
0x2e03   :  { %10278 = vadd.xlane.f32.xlu1 %v10277_v6 }
0x2e06   :  { %v10116_v35 = vpop.permute.xlu1 %10115 }
0x2e09   :  { %v12970_v21 = vpop.eup %12969 }
0x2e0a   :  { %v10611_v13 = vsel %vm313_vm6, %v12970_v21, 0.0 }
0x2e0b   :  { %10612 = vadd.xlane.f32.xlu0 %v10611_v13 }
0x2e14   :  { %10616 = vrot.lane.b32.xlu1 %v14927_v27, %s15272_s9 }
0x2e21   :  { %10449 = vrot.lane.b32.xlu0 %v14927_v27, %s15270_s7 }
0x2e53   :  { %v9598_v25 = vpop.xlane.xlu1 %9597 }
0x2e54   :  { %12971 = vrcp.f32 %v9598_v25 }
0x2e57   :  { %v9765_v22 = vpop.xlane.xlu0 %9764 }
0x2e58   :  { %12973 = vrcp.f32 %v9765_v22  ;;  %v11348_v22 = vld [vmem:[%s15189_s20 + $0x1] ss:$0 sm:$0xff] }
0x2e5b   :  { %v9932_v23 = vpop.xlane.xlu1 %9931 }
0x2e5c   :  { %12975 = vrcp.f32 %v9932_v23 }
0x2e5e   :  { %v12972_v24 = vpop.eup %12971 }
0x2e5f   :  { %v9600_v60 = vmul.f32 %v12972_v24, %v12956_v18  ;;  %v10112_v26 = vpop.xlane.xlu0 %10111  ;;  %v10283_v32 = vpop.permute.xlu1 %10282 }
0x2e60   :  { %12977 = vrcp.f32 %v10112_v26 }
0x2e61   :  { %12358 = vmatmul.mubr.msk.f32.vlgmr.msra.gmra.mrb[112].mxu1 %vm313_vm6, %v9600_v60 }
0x2e62   :  { %v12974_v29 = vpop.eup %12973  ;;  %12366 = vmatpush3.msra.mxu1 %v9769_v44  ;;  %12367 = vmatprep.mubr.msk.f32.mxu1 %vm13152_vm5, %v13151_v51 }
0x2e63   :  { %v9767_v27 = vmul.f32 %v12974_v29, %v12958_v37  ;;  %12375 = vmatprep.subr.mxu1 %v13151_v51 }
0x2e65   :  { %12368 = vmatmul.mubr.msk.f32.vlgmr.msra.gmra.mrb[114].mxu1 %vm313_vm6, %v9767_v27 }
0x2e66   :  { %v12976_v55 = vpop.eup %12975  ;;  %12376 = vmatpush3.msra.mxu1 %v9936_v62  ;;  %12377 = vmatprep.mubr.msk.f32.mxu1 %vm13152_vm5, %v13151_v51 }
0x2e67   :  { %v9934_v16 = vmul.f32 %v12976_v55, %v12960_v8  ;;  %12385 = vmatprep.subr.mxu1 %v13151_v51  ;;  %v10446_v20 = vpop.xlane.xlu0 %10445 }
0x2e69   :  { %12378 = vmatmul.mubr.msk.f32.vlgmr.msra.gmra.mrb[116].mxu1 %vm313_vm6, %v9934_v16 }
0x2e6a   :  { %v12978_v33 = vpop.eup %12977  ;;  %12386 = vmatpush3.msra.mxu1 %v10116_v35  ;;  %12387 = vmatprep.mubr.msk.f32.mxu1 %vm13152_vm5, %v13151_v51 }
0x2e6b   :  { %v10114_v34 = vmul.f32 %v12978_v33, %v12962_v10  ;;  %12395 = vmatprep.subr.mxu1 %v13151_v51  ;;  %v9160_v10 = vld [vmem:[#allocation8 + $0x30] sm:$0xff] }
0x2e6d   :  { %12388 = vmatmul.mubr.msk.f32.vlgmr.msra.gmra.mrb[118].mxu1 %vm313_vm6, %v10114_v34 }
0x2e6e   :  { %12396 = vmatpush3.msra.mxu1 %v10283_v32  ;;  %12397 = vmatprep.mubr.msk.f32.mxu1 %vm13152_vm5, %v13151_v51 }
0x2e6f   :  { %12405 = vmatprep.subr.mxu1 %v13151_v51 }
0x2e90   :  { %v10279_v45 = vpop.xlane.xlu1 %10278 }
0x2e91   :  { %12979 = vrcp.f32 %v10279_v45 }
0x2e92   :  { %12981 = vrcp.f32 %v10446_v20 }
0x2e94   :  { %v10617_v63 = vpop.permute.xlu1 %10616 }
0x2e98   :  { %v10613_v49 = vpop.xlane.xlu0 %10612 }
0x2e99   :  { %12983 = vrcp.f32 %v10613_v49 }
0x2e9b   :  { %v12980_v39 = vpop.eup %12979 }
0x2e9c   :  { %v10281_v14 = vmul.f32 %v12980_v39, %v12968_v42  ;;  %v10450_v48 = vpop.permute.xlu0 %10449  ;;  %v12982_v31 = vpop.eup %12981 }
0x2e9d   :  { %v10448_v46 = vmul.f32 %v12982_v31, %v15022_v11  ;;  %v12641_v11 = vpack.c.bf16 %v9161_v1, %v9160_v10  ;;  %v10850_v31 = vld [vmem:[#allocation10 + $0x28] sm:$0xff] }
0x2e9e   :  { %12398 = vmatmul.mubr.msk.f32.vlgmr.msra.gmra.mrb[120].mxu1 %vm313_vm6, %v10281_v14 }
0x2e9f   :  { %12406 = vmatpush3.msra.mxu1 %v10450_v48  ;;  %12407 = vmatprep.mubr.msk.f32.mxu1 %vm13152_vm5, %v13151_v51  ;;  %v10849_v48 = vld [vmem:[#allocation10 + $0x20] sm:$0xff] }
0x2ea0   :  { %12415 = vmatprep.subr.mxu1 %v13151_v51 }
0x2ea2   :  { %12408 = vmatmul.mubr.msk.f32.vlgmr.msra.gmra.mrb[122].mxu1 %vm313_vm6, %v10448_v46  ;;  %v10851_v46 = vld [vmem:[#allocation10 + $0x30] sm:$0xff] }
0x2ea3   :  { %v12984_v43 = vpop.eup %12983  ;;  %12416 = vmatpush3.msra.mxu1 %v10617_v63  ;;  %12417 = vmatprep.mubr.msk.f32.mxu1 %vm13152_vm5, %v13151_v51  ;;  %v9158_v51 = vld [vmem:[#allocation8 + $0x20] sm:$0xff]  ;;  %v12645_v63 = vpack.c.bf16 %v10850_v31, %v10849_v48 }
0x2ea4   :  { %v10615_v54 = vmul.f32 %v12984_v43, %v12970_v21  ;;  %v12637_v9 = vpack.c.bf16 %v9159_v36, %v9158_v51  ;;  %v10852_v43 = vld [vmem:[#allocation10 + $0x38] sm:$0xff] }
0x2ea5   :  { %12646 = vmatprep.subr.bf16.mxu1 %v12645_v63 }
0x2ea6   :  { %12418 = vmatmul.mubr.msk.f32.vlgmr.msra.gmra.mrb[124].mxu1 %vm313_vm6, %v10615_v54  ;;  %12638 = vmatprep.subr.bf16.mxu0 %v12637_v9  ;;  %v12649_v54 = vpack.c.bf16 %v10852_v43, %v10851_v46 }
0x2ea7   :  { %12640 = vmatpush3.bf16.msra.mxu0 %v12637_v9  ;;  %12648 = vmatpush3.bf16.msra.mxu1 %v12645_v63 }
0x2ea8   :  { %12642 = vmatprep.subr.bf16.mxu0 %v12641_v11  ;;  %12650 = vmatprep.subr.bf16.mxu1 %v12649_v54 }
0x2eab   :  { %12644 = vmatpush3.bf16.msra.mxu0 %v12641_v11  ;;  %12652 = vmatpush3.bf16.msra.mxu1 %v12649_v54 }
0x2ec1   :  { %v9506_v18 = vpop.f32.mrb[110].mxu1 }
0x2ec2   :  { %v12349_v59 = vpop.f32.mrb[111].mxu1 }
0x2ec3   :  { %v11353_v59 = vld [vmem:[%s15192_s23 + $0x48] sm:$0xff] }
0x2f34   :  { %v9673_v19 = vpop.f32.mrb[112].mxu1 }
0x2f35   :  { %10012 = vrot.lane.b32.xlu0 %v9673_v19, %s15277_s1  ;;  %v12359_v58 = vpop.f32.mrb[113].mxu1  ;;  %v11354_v19 = vld [vmem:[%s15192_s23 + $0x50] sm:$0xff] }
0x2f38   :  { %v9840_v37 = vpop.f32.mrb[114].mxu1 }
0x2f39   :  { %10016 = vrot.lane.b32.xlu1 %v9840_v37, %s15278_s13  ;;  %v12369_v56 = vpop.f32.mrb[115].mxu1  ;;  %v11355_v37 = vld [vmem:[%s15192_s23 + $0x58] sm:$0xff] }
0x2f3a   :  { %v12657_v56 = vpack.c.bf16 %v11355_v37, %v11354_v19 }
0x2f3c   :  { %v10007_v38 = vpop.f32.mrb[116].mxu1 }
0x2f3d   :  { %10020 = vrot.lane.b32.xlu1 %v10007_v38, %s15279_s21  ;;  %v12379_v7 = vpop.f32.mrb[117].mxu1  ;;  %v11356_v38 = vld [vmem:[%s15192_s23 + $0x60] sm:$0xff] }
0x2f3e   :  { %v11357_v7 = vld [vmem:[%s15192_s23 + $0x68] sm:$0xff] }
0x2f40   :  { %v10187_v2 = vpop.f32.mrb[118].mxu1 }
0x2f41   :  { %v12389_v8 = vpop.f32.mrb[119].mxu1 }
0x2f71   :  { %v10354_v4 = vpop.f32.mrb[120].mxu1 }
0x2f72   :  { %10693 = vrot.lane.b32.xlu0 %v10354_v4, %s15277_s1  ;;  %v12399_v12 = vpop.f32.mrb[121].mxu1 }
0x2f75   :  { %v10521_v47 = vpop.f32.mrb[122].mxu1 }
0x2f76   :  { %10697 = vrot.lane.b32.xlu0 %v10521_v47, %s15278_s13  ;;  %v12409_v41 = vpop.f32.mrb[123].mxu1 }
0x2f79   :  { %v10688_v61 = vpop.f32.mrb[124].mxu1 }
0x2f7a   :  { %10701 = vrot.lane.b32.xlu1 %v10688_v61, %s15279_s21  ;;  %v12419_v15 = vpop.f32.mrb[125].mxu1 }
0x2fa7   :  { %v10013_v40 = vpop.permute.xlu0 %10012 }
0x2fa8   :  { %v10023_v17 = vsel %vm313_vm6, %v9506_v18, %v10013_v40  ;;  %v11352_v18 = vld [vmem:[%s15192_s23 + $0x40] sm:$0xff] }
0x2fa9   :  { %v12653_v58 = vpack.c.bf16 %v11353_v59, %v11352_v18 }
0x2fab   :  { %v10017_v0 = vpop.permute.xlu1 %10016  ;;  %12654 = vmatprep.subr.bf16.mxu0 %v12653_v58 }
0x2fac   :  { %v10024_v53 = vsel %vm998_vm11, %v10023_v17, %v10017_v0 }
0x2faf   :  { %v10021_v42 = vpop.permute.xlu1 %10020 }
0x2fb0   :  { %v10025_v6 = vsel %vm1000_vm12, %v10024_v53, %v10021_v42  ;;  %v13002_v53 = vld [vmem:[%s15194_s25 + $0x8] sm:$0x3f] }
0x2fb1   :  { %12428 = vmatprep.mubr.msk.f32.mxu0 %vm158_vm0, %v10025_v6  ;;  %v10833_v42 = vrot.slane %v13002_v53, %v7282_v28  ;;  %v11358_v28 = vld [vmem:[%s15192_s23 + $0x70] sm:$0xff] }
0x2fe4   :  { %v10694_v21 = vpop.permute.xlu0 %10693 }
0x2fe5   :  { %v10704_v44 = vsel %vm313_vm6, %v10187_v2, %v10694_v21  ;;  %v12661_v2 = vpack.c.bf16 %v11357_v7, %v11356_v38  ;;  %v10845_v21 = vrot.slane %v13002_v53, %v7294_v5  ;;  %v12665_v5 = vpack.c.bf16 %v11359_v30, %v11358_v28 }
0x2fe8   :  { %v10698_v13 = vpop.permute.xlu0 %10697 }
0x2fe9   :  { %v10705_v62 = vsel %vm998_vm11, %v10704_v44, %v10698_v13 }
0x2fec   :  { %v10702_v35 = vpop.permute.xlu1 %10701 }
0x2fed   :  { %v10706_v25 = vsel %vm1000_vm12, %v10705_v62, %v10702_v35 }
0x2fee   :  { %12429 = vmatmul.mubr.msk.f32.vlgmr.msra.gmra.mrb[104].mxu0 %vm158_vm0, %v10706_v25 }
0x2fef   :  { %12656 = vmatpush3.bf16.msra.mxu0 %v12653_v58 }
0x2ff0   :  { %12658 = vmatprep.subr.bf16.mxu0 %v12657_v56 }
0x2ff3   :  { %12660 = vmatpush3.bf16.msra.mxu0 %v12657_v56 }
0x2ff4   :  { %12662 = vmatprep.subr.bf16.mxu0 %v12661_v2 }
0x2ff7   :  { %12664 = vmatpush3.bf16.msra.mxu0 %v12661_v2 }
0x2ff8   :  { %12666 = vmatprep.subr.bf16.mxu0 %v12665_v5 }
0x2ffb   :  { %12668 = vmatpush3.bf16.msra.mxu0 %v12665_v5 }
0x30c1   :  { %v12430_v23 = vpop.f32.mrb[104].mxu0 }
0x30c2   :  { %v10791_v24 = vadd.f32 %v12430_v23, %v11348_v22  ;;  %v10785_v60 = vpop.f32.mrb[105].mxu0 }
0x30c3   :  { %v10786_v26 = vadd.f32 %v11348_v22, %v10785_v60 }
0x30c4   :  { %v15082_v29 = vadd.f32 %v10791_v24, %v14875_v52  ;;  %v11361_v24 = vld [vmem:[%s15191_s22 + $0x1] ss:$0 sm:$0xff] }
0x30c5   :  { %v15085_v27 = vadd.f32 %v10786_v26, %v14878_v3 }
0x30c6   :  { %v10799_v55 = vsel %vm158_vm0, %v15082_v29, 0.0 }
0x30c7   :  { %10800 = vadd.xlane.f32.xlu1 %v10799_v55  ;;  %v10796_v16 = vsel %vm158_vm0, %v15085_v27, 0.0 }
0x30c8   :  { %10797 = vadd.xlane.f32.xlu0 %v10796_v16 }
0x3154   :  { %v10801_v33 = vpop.xlane.xlu1 %10800 }
0x3155   :  { %v10803_v34 = vmul.f32 0.03125, %v10801_v33  ;;  %v10798_v32 = vpop.xlane.xlu0 %10797 }
0x3156   :  { %v10802_v20 = vmul.f32 0.03125, %v10798_v32  ;;  %v11364_v32 = vld [vmem:[%s15286_s26 + $0x1] ss:$0 sm:$0xff]  ;;  %s15287_s26 = sld [smem:[#allocation29_spill]] }
0x3157   :  { %v15092_v45 = vsub.f32 %v15082_v29, %v10803_v34 }
0x3158   :  { %v10804_v52 = vsub.f32 %v15085_v27, %v10802_v20 }
0x3159   :  { %v10807_v39 = vmul.f32 %v15092_v45, %v15092_v45  ;;  %v10835_v62 = vmul.f32 %v10833_v42, %v15092_v45 }
0x315a   :  { %v10806_v49 = vmul.f32 %v10804_v52, %v10804_v52  ;;  %v10834_v6 = vmul.f32 %v10833_v42, %v10804_v52 }
0x315b   :  { %v10811_v14 = vsel %vm158_vm0, %v10807_v39, 0.0 }
0x315c   :  { %v10808_v3 = vsel %vm158_vm0, %v10806_v49, 0.0 }
0x315d   :  { %10809 = vadd.xlane.f32.xlu0 %v10808_v3 }
0x3161   :  { %10812 = vadd.xlane.f32.xlu0 %v10811_v14 }
0x31ea   :  { %v10810_v8 = vpop.xlane.xlu0 %10809 }
0x31eb   :  { %v10814_v51 = vmul.f32 0.032258064, %v10810_v8 }
0x31ed   :  { %12985 = vrsqrt.f32 %v10814_v51  ;;  %vm10818_vm5 = vcmp.eq.f32.partialorder %v10814_v51, inf  ;;  %v10821_v11 = vand.u32 2147483648, %v10814_v51  ;;  %vm10820_vm6 = vcmp.eq.f32.partialorder %v10814_v51, 0.0 }
0x31ee   :  { %v10813_v36 = vpop.xlane.xlu0 %10812 }
0x31ef   :  { %v10815_v9 = vmul.f32 0.032258064, %v10813_v36 }
0x31f1   :  { %12987 = vrsqrt.f32 %v10815_v9  ;;  %vm10825_vm8 = vcmp.eq.f32.partialorder %v10815_v9, inf  ;;  %v10828_v15 = vand.u32 2147483648, %v10815_v9  ;;  %vm10827_vm10 = vcmp.eq.f32.partialorder %v10815_v9, 0.0 }
0x31f7   :  { %v12986_v10 = vpop.eup %12985 }
0x31f8   :  { %v10817_v1 = vmul.f32 %v12986_v10, %v10814_v51 }
0x31fa   :  { %v10819_v4 = vsel %vm10818_vm5, %v10814_v51, %v10817_v1 }
0x31fb   :  { %v12988_v12 = vpop.eup %12987  ;;  %v10822_v47 = vsel %vm10820_vm6, %v10821_v11, %v10819_v4 }
0x31fc   :  { %v10824_v41 = vmul.f32 %v12988_v12, %v10815_v9  ;;  %v10836_v61 = vadd.f32 1e-06, %v10822_v47 }
0x31fe   :  { %v10826_v40 = vsel %vm10825_vm8, %v10815_v9, %v10824_v41  ;;  %12989 = vrcp.f32 %v10836_v61  ;;  %v13003_v41 = vld [vmem:[%s15287_s26] sm:$0xf] }
0x31ff   :  { %v10829_v0 = vsel %vm10827_vm10, %v10828_v15, %v10826_v40  ;;  %v11081_v61 = vrot.slane %v13003_v41, %v13729_v50  ;;  %v11093_v40 = vrot.slane %v13003_v41, %v13734_v57 }
0x3200   :  { %v10837_v17 = vadd.f32 1e-06, %v10829_v0 }
0x3202   :  { %12991 = vrcp.f32 %v10837_v17 }
0x3208   :  { %v12990_v13 = vpop.eup %12989 }
0x3209   :  { %v10839_v44 = vmul.f32 %v12990_v13, %v10834_v6 }
0x320b   :  { %v10846_v35 = vadd.f32 %v10845_v21, %v10839_v44 }
0x320c   :  { %v12992_v25 = vpop.eup %12991 }
0x320d   :  { %v10841_v22 = vmul.f32 %v12992_v25, %v10835_v62  ;;  %12439 = vmatprep.mubr.msk.f32.mxu1 %vm158_vm0, %v10846_v35 }
0x320f   :  { %v10847_v23 = vadd.f32 %v10845_v21, %v10841_v22 }
0x3211   :  { %12440 = vmatmul.mubr.msk.f32.vlgmr.msra.gmra.mrb[126].mxu1 %vm158_vm0, %v10847_v23 }
0x32e4   :  { %v12441_v60 = vpop.f32.mrb[126].mxu1 }
0x32e5   :  { %v10950_v26 = vadd.f32 %v12441_v60, %v11361_v24  ;;  %v10944_v55 = vpop.f32.mrb[127].mxu1 }
0x32e6   :  { %v10945_v16 = vadd.f32 %v11361_v24, %v10944_v55 }
0x32e7   :  { %v10954_v34 = vmax.f32 %v10950_v26, 0.0 }
0x32e8   :  { %v10953_v33 = vmax.f32 %v10945_v16, 0.0 }
0x32ea   :  { %12458 = vmatprep.mubr.msk.f32.mxu0 %vm1943_vm2, %v10953_v33 }
0x32eb   :  { %12459 = vmatmul.mubr.msk.f32.vlgmr.msra.gmra.mrb[106].mxu0 %vm1943_vm2, %v10954_v34 }
0x33be   :  { %v12460_v20 = vpop.f32.mrb[106].mxu0 }
0x33bf   :  { %v11039_v45 = vadd.f32 %v12460_v20, %v11364_v32  ;;  %v11033_v52 = vpop.f32.mrb[107].mxu0 }
0x33c0   :  { %v11034_v49 = vadd.f32 %v11364_v32, %v11033_v52 }
0x33c1   :  { %v11043_v3 = vadd.f32 %v11039_v45, %v15082_v29 }
0x33c2   :  { %v11042_v39 = vadd.f32 %v11034_v49, %v15085_v27 }
0x33c3   :  { %v11047_v14 = vsel %vm158_vm0, %v11043_v3, 0.0 }
0x33c4   :  { %11048 = vadd.xlane.f32.xlu1 %v11047_v14  ;;  %v11044_v48 = vsel %vm158_vm0, %v11042_v39, 0.0 }
0x33c5   :  { %11045 = vadd.xlane.f32.xlu0 %v11044_v48 }
0x3451   :  { %v11049_v31 = vpop.xlane.xlu1 %11048 }
0x3452   :  { %v11051_v46 = vmul.f32 0.03125, %v11049_v31  ;;  %v11046_v63 = vpop.xlane.xlu0 %11045 }
0x3453   :  { %v11050_v43 = vmul.f32 0.03125, %v11046_v63 }
0x3454   :  { %v11053_v54 = vsub.f32 %v11043_v3, %v11051_v46 }
0x3455   :  { %v11052_v18 = vsub.f32 %v11042_v39, %v11050_v43 }
0x3456   :  { %v11055_v59 = vmul.f32 %v11053_v54, %v11053_v54  ;;  %v11083_v15 = vmul.f32 %v11081_v61, %v11053_v54 }
0x3457   :  { %v11054_v19 = vmul.f32 %v11052_v18, %v11052_v18  ;;  %v11082_v17 = vmul.f32 %v11081_v61, %v11052_v18 }
0x3458   :  { %v11059_v58 = vsel %vm158_vm0, %v11055_v59, 0.0 }
0x3459   :  { %11060 = vadd.xlane.f32.xlu1 %v11059_v58  ;;  %v11056_v29 = vsel %vm158_vm0, %v11054_v19, 0.0 }
0x345a   :  { %11057 = vadd.xlane.f32.xlu0 %v11056_v29 }
0x34e6   :  { %v11061_v27 = vpop.xlane.xlu1 %11060 }
0x34e7   :  { %v11063_v37 = vmul.f32 0.032258064, %v11061_v27  ;;  %v11058_v56 = vpop.xlane.xlu0 %11057 }
0x34e8   :  { %v11062_v38 = vmul.f32 0.032258064, %v11058_v56 }
0x34e9   :  { %12993 = vrsqrt.f32 %v11063_v37  ;;  %vm11073_vm11 = vcmp.eq.f32.partialorder %v11063_v37, inf  ;;  %v11076_v51 = vand.u32 2147483648, %v11063_v37  ;;  %vm11075_vm12 = vcmp.eq.f32.partialorder %v11063_v37, 0.0 }
0x34ea   :  { %12995 = vrsqrt.f32 %v11062_v38  ;;  %vm11066_vm2 = vcmp.eq.f32.partialorder %v11062_v38, inf  ;;  %v11069_v10 = vand.u32 2147483648, %v11062_v38  ;;  %vm11068_vm15 = vcmp.eq.f32.partialorder %v11062_v38, 0.0 }
0x34f3   :  { %v12994_v7 = vpop.eup %12993 }
0x34f4   :  { %v12996_v2 = vpop.eup %12995  ;;  %v11072_v8 = vmul.f32 %v12994_v7, %v11063_v37 }
0x34f5   :  { %v11065_v36 = vmul.f32 %v12996_v2, %v11062_v38 }
0x34f6   :  { %v11074_v9 = vsel %vm11073_vm11, %v11063_v37, %v11072_v8 }
0x34f7   :  { %v11077_v1 = vsel %vm11075_vm12, %v11076_v51, %v11074_v9  ;;  %v11067_v11 = vsel %vm11066_vm2, %v11062_v38, %v11065_v36 }
0x34f8   :  { %v11085_v4 = vadd.f32 1e-06, %v11077_v1  ;;  %v11070_v12 = vsel %vm11068_vm15, %v11069_v10, %v11067_v11 }
0x34f9   :  { %v11084_v47 = vadd.f32 1e-06, %v11070_v12 }
0x34fa   :  { %12997 = vrcp.f32 %v11085_v4 }
0x34fb   :  { %12999 = vrcp.f32 %v11084_v47 }
0x3504   :  { %v12998_v0 = vpop.eup %12997 }
0x3505   :  { %v13000_v53 = vpop.eup %12999  ;;  %v11089_v42 = vmul.f32 %v12998_v0, %v11083_v15 }
0x3506   :  { %v11087_v6 = vmul.f32 %v13000_v53, %v11082_v17 }
0x3507   :  { %v11095_v21 = vadd.f32 %v11093_v40, %v11089_v42 }
0x3508   :  { %v11094_v13 = vadd.f32 %v11093_v40, %v11087_v6 }
0x3509   :  { %11097 = vst.msk [vmem:[#allocation11 + $0x8] sm:$0xff] %vm158_vm0, %v11095_v21 }
0x350a   :  { %11096 = vst.msk [vmem:[#allocation11] sm:$0xff] %vm158_vm0, %v11094_v13 }
0x350b   :  { %13125 = shalt.err (!%p13122_p2)
}
0x350c   :  { %s15288_s20 = sld [smem:[#allocation30_spill]] }
0x3512   :  { %s13126_s7 = scalar_lea.hbm %s15288_s20, 256 }
0x3513   :  { %p13127_p3 = scmp.ne.s32.totalorder %s15288_s20, %s13126_s7  ;;  %p13130_p4 = scmp.lt.u32.totalorder %s13126_s7, %s15288_s20 }
0x3515   :  { %p13132_p5 = pnand %p13130_p4, %p13127_p3 }
0x3517   :  { %13135 = shalt.err (!%p13132_p5)
}
0x3518   :  { %s15289_s21 = smov 128  }
0x3519   :  { %11109 = dma.vmem_to_hbm [thread:$0]  %s11104_s16, 256, %s15288_s20, [#allocation4], %s15289_s21, %s15289_s21, %s15277_s1  }
0x351a   :  { %13142 = dma.done.wait [#allocation4], 256  }
0x351b   :  { %13143 = vsyncadd [#allocation4], 4294967040 }
0x351c   :  { %11113 = vsyncpa [#allocation3], 1 }
0x351d   :  { %11114 = vsyncpa [#allocation6], 1 }
0x351e   :  { %11115 = vsyncpa [#allocation9], 1 }
0x351f   :  { %11116 = vsyncpa [#allocation4], 1 }

</bundles_post_ra>
